<compile_context>
chip_gen: v6e
topology: v6e:2x2x1
jax: 0.10.0
libtpu: 0.0.40
codegen_flags: <defaults>
</compile_context>

<pallas_src>
import math
from functools import partial

import jax
import jax.numpy as jnp
from jax import lax
from jax.experimental import pallas as pl
from jax.experimental.pallas import tpu as pltpu


# ----------------------------- model helpers --------------------------------


def fourier_encoding(input_len, bands):
    """Matches fourier_encoding((input_len,), bands) -> (2*bands+1, input_len)."""
    pos = jnp.linspace(-1.0, 1.0, input_len)[None, :]                      # (1, S)
    freqs = jnp.exp(jnp.linspace(0.0, math.log(input_len / 2.0), bands))   # (bands,)
    res = freqs[:, None] * math.pi * pos                                   # (bands, S)
    return jnp.concatenate([jnp.sin(res), jnp.cos(res), pos], axis=0)      # (2b+1, S)


def _gelu_tanh(x):
    # tanh-approx GELU (EUP path); matches nn.GELU() (erf) to ~1e-3 absolute.
    c = math.sqrt(2.0 / math.pi)
    return 0.5 * x * (1.0 + jnp.tanh(c * (x + 0.044715 * x * x * x)))


def _gelu_erf(x):
    # exact nn.GELU() (used only by the pure-JAX reference)
    return 0.5 * x * (1.0 + lax.erf(x * (1.0 / math.sqrt(2.0))))


def _layernorm(x, gamma, beta, eps=1e-5):
    mu = jnp.mean(x, axis=-1, keepdims=True)
    var = jnp.mean((x - mu) ** 2, axis=-1, keepdims=True)
    return (x - mu) * lax.rsqrt(var + eps) * gamma + beta


# ----------------------------- Pallas kernel ---------------------------------


def hb_transformer_kernel(x_ref, emb_w_ref, pos_bias_ref,
                          cs2_ref, cd_ref, msd_ref,
                          ln1g_ref, ln1b_ref, ln2g_ref, ln2b_ref,
                          w1_ref, b1_ref, w2_ref, b2_ref,
                          mlp_w_ref, mlp_b_ref,
                          out_ref, vis_ref,
                          *, depth, seq_len):
    bf16 = jnp.bfloat16
    dot = partial(jnp.dot, preferred_element_type=jnp.float32)  # bf16 MXU, f32 acc

    # embed1, with the Fourier positional encoding pre-folded into pos_bias
    x = x_ref[0].astype(bf16)                                   # (S, Cp)
    h = dot(x, emb_w_ref[...]) + pos_bias_ref[...]              # (S, D) f32

    cs2 = cs2_ref[...]          # (2S, S) bf16 : [cos ; sin] DFT rows (seq dim)
    cd = cd_ref[...]            # (D, D)  bf16 : cos DFT basis (feature dim)
    msd = msd_ref[...]          # (D, D)  bf16 : -sin DFT basis (feature dim)

    vis = None
    for d in range(depth):      # static unroll (depth is a compile-time constant)
        # --- PreNorm + FNetBlock: softmax over the sequence axis, then
        #     real part of the 2-D FFT, residual. -----------------------------
        hn = _layernorm(h, ln1g_ref[d], ln1b_ref[d])
        m = jnp.max(hn, axis=0, keepdims=True)
        e = jnp.exp(hn - m)
        denom = jnp.sum(e, axis=0, keepdims=True)
        vis = e * pl.reciprocal(denom, approx=True)             # softmax(dim=-2)

        # Real(FFT2(vis)) = cs@vis@cd - ss@vis@sd, with [cs;ss] fused into one
        # (2S,S)@(S,D) MXU issue and the minus baked into msd.
        u = dot(cs2, vis.astype(bf16))                          # (2S, D) f32
        fft_real = (dot(u[:seq_len].astype(bf16), cd)
                    + dot(u[seq_len:].astype(bf16), msd))       # (S, D) f32
        h = h + fft_real

        # --- PreNorm + FeedForward (Linear -> GELU -> Linear), residual ------
        hn2 = _layernorm(h, ln2g_ref[d], ln2b_ref[d])
        a1 = dot(hn2.astype(bf16), w1_ref[d]) + b1_ref[d]
        ff = dot(_gelu_tanh(a1).astype(bf16), w2_ref[d]) + b2_ref[d]
        h = h + ff

    # TODO(synk): vis keeps its natural 32-lane last dim (masked stores); a
    # lane-dense (S*D/128, 128) packing needs an in-kernel relayout-reshape
    # that some Mosaic versions reject, so it is intentionally not done here.
    vis_ref[0] = vis
    pooled = jnp.mean(h, axis=0, keepdims=True)                 # (1, D)
    out_ref[0] = dot(pooled.astype(bf16), mlp_w_ref[...]) + mlp_b_ref[...]


# ----------------------------- one-time preprocessing ------------------------


def precompute_constants(params, channel):
    """Done once (cached): fold pos-encoding into a bias, build the bf16 DFT
    bases, cast matmul weights to bf16, pad the head to a lane-dense width."""
    enc = params["encoding"]                        # (pec, S)
    pec, S = enc.shape
    D = params["emb_w"].shape[1]
    depth = params["w1"].shape[0]
    out_dim = params["mlp_w"].shape[1]
    bf16 = jnp.bfloat16
    hp = lax.Precision.HIGHEST

    # embed1 split:  [x | pos] @ W + b  ==  x @ W[:C]  +  (pos @ W[C:] + b)
    pos_bias = jnp.dot(enc.T, params["emb_w"][channel:], precision=hp) \
        + params["emb_b"]                           # (S, D) f32, exact
    Cp = max(8, -(-channel // 8) * 8)               # 8-aligned contraction dim
    emb_w_c = jnp.pad(params["emb_w"][:channel], ((0, Cp - channel), (0, 0)))

    # DFT real-part bases (built once, stored bf16; kernel scales as S^2 here)
    ks = jnp.arange(S, dtype=jnp.float32)
    ang_s = (2.0 * math.pi / S) * (ks[:, None] * ks[None, :])
    kd = jnp.arange(D, dtype=jnp.float32)
    ang_d = (2.0 * math.pi / D) * (kd[:, None] * kd[None, :])
    cs2 = jnp.concatenate([jnp.cos(ang_s), jnp.sin(ang_s)], axis=0)   # (2S, S)

    # lane-dense classifier head (out_dim=1 -> pad to 128, slice in wrapper)
    out_pad = max(128, -(-out_dim // 128) * 128)
    mlp_w_pad = jnp.pad(params["mlp_w"], ((0, 0), (0, out_pad - out_dim)))
    mlp_b_pad = jnp.pad(params["mlp_b"], (0, out_pad - out_dim))[None, :]

    return dict(
        Cp=Cp, out_pad=out_pad, out_dim=out_dim, depth=depth,
        emb_w=emb_w_c.astype(bf16), pos_bias=pos_bias,
        cs2=cs2.astype(bf16),
        cd=jnp.cos(ang_d).astype(bf16), msd=(-jnp.sin(ang_d)).astype(bf16),
        ln1_g=params["ln1_g"][:, None, :], ln1_b=params["ln1_b"][:, None, :],
        ln2_g=params["ln2_g"][:, None, :], ln2_b=params["ln2_b"][:, None, :],
        w1=params["w1"].astype(bf16), b1=params["b1"][:, None, :],
        w2=params["w2"].astype(bf16), b2=params["b2"][:, None, :],
        mlp_w=mlp_w_pad.astype(bf16), mlp_b=mlp_b_pad,
    )


# ----------------------------- wrapper ---------------------------------------


def hb_transformer_forward(x, consts):
    """x: (B, S, C) float32 -> (out (B, out_dim), visual (B, S, D))."""
    B, S, C = x.shape
    Cp, out_pad = consts["Cp"], consts["out_pad"]
    out_dim, depth = consts["out_dim"], consts["depth"]
    D = consts["pos_bias"].shape[1]
    mlp_dim = consts["w1"].shape[2]

    x_p = jnp.pad(x, ((0, 0), (0, 0), (0, Cp - C)))

    def const_spec(shape):
        n = len(shape)
        return pl.BlockSpec(shape, lambda b, _n=n: (0,) * _n)

    kernel = partial(hb_transformer_kernel, depth=depth, seq_len=S)

    # advisory cost estimate (DFT matmuls dominate)
    flops_layer = (2 * (2 * S) * S * D          # [cs;ss] @ vis
                   + 2 * 2 * S * D * D          # feature-dim DFT matmuls
                   + 2 * 2 * S * D * mlp_dim)   # feed-forward
    flops = B * (2 * S * Cp * D + depth * flops_layer + 2 * D * out_pad)
    transcendentals = B * depth * (S * D + S * mlp_dim)
    operands = (x_p, consts["emb_w"], consts["pos_bias"], consts["cs2"],
                consts["cd"], consts["msd"],
                consts["ln1_g"], consts["ln1_b"], consts["ln2_g"], consts["ln2_b"],
                consts["w1"], consts["b1"], consts["w2"], consts["b2"],
                consts["mlp_w"], consts["mlp_b"])
    bytes_accessed = (sum(int(a.size) * a.dtype.itemsize for a in operands)
                      + B * out_pad * 4 + B * S * D * 4)

    out3, vis = pl.pallas_call(
        kernel,
        out_shape=(jax.ShapeDtypeStruct((B, 1, out_pad), jnp.float32),
                   jax.ShapeDtypeStruct((B, S, D), jnp.float32)),
        grid_spec=pltpu.PrefetchScalarGridSpec(
            num_scalar_prefetch=0,
            grid=(B,),
            in_specs=[
                pl.BlockSpec((1, S, Cp), lambda b: (b, 0, 0)),     # x (padded C)
                const_spec((Cp, D)), const_spec((S, D)),           # embed W, pos bias
                const_spec((2 * S, S)),                            # [cs ; ss]  (bf16)
                const_spec((D, D)), const_spec((D, D)),            # cd, -sd    (bf16)
                const_spec((depth, 1, D)), const_spec((depth, 1, D)),   # LN1 g/b
                const_spec((depth, 1, D)), const_spec((depth, 1, D)),   # LN2 g/b
                const_spec((depth, D, mlp_dim)), const_spec((depth, 1, mlp_dim)),
                const_spec((depth, mlp_dim, D)), const_spec((depth, 1, D)),
                const_spec((D, out_pad)), const_spec((1, out_pad)),     # head (padded)
            ],
            out_specs=(
                pl.BlockSpec((1, 1, out_pad), lambda b: (b, 0, 0)),
                pl.BlockSpec((1, S, D), lambda b: (b, 0, 0)),
            ),
        ),
        compiler_params=pltpu.CompilerParams(
            dimension_semantics=("parallel",)),    # independent batches -> 2-TC on v7x
        cost_estimate=pl.CostEstimate(
            flops=int(flops), transcendentals=int(transcendentals),
            bytes_accessed=int(bytes_accessed)),
    )(*operands)

    return out3[:, 0, :out_dim], vis


# ----------------------------- pure-JAX reference ----------------------------


def reference_forward(x, params):
    """Exact (f32 / erf-GELU / jnp.fft) reference of the PyTorch module."""
    hp = lax.Precision.HIGHEST
    B, S, C = x.shape
    enc = params["encoding"]
    pos = jnp.broadcast_to(jnp.transpose(enc)[None], (B, S, enc.shape[0]))
    h = jnp.concatenate([x, pos], axis=-1)
    h = jnp.einsum("bsc,cd->bsd", h, params["emb_w"], precision=hp) + params["emb_b"]
    depth = params["w1"].shape[0]
    vis = None
    for d in range(depth):
        hn = _layernorm(h, params["ln1_g"][d], params["ln1_b"][d])
        vis = jax.nn.softmax(hn, axis=-2)
        fft_real = jnp.real(jnp.fft.fft(jnp.fft.fft(vis, axis=-1), axis=-2))
        h = h + fft_real
        hn2 = _layernorm(h, params["ln2_g"][d], params["ln2_b"][d])
        ff = _gelu_erf(jnp.einsum("bsd,dm->bsm", hn2, params["w1"][d], precision=hp)
                       + params["b1"][d])
        ff = jnp.einsum("bsm,md->bsd", ff, params["w2"][d], precision=hp) \
            + params["b2"][d]
        h = h + ff
    pooled = jnp.mean(h, axis=1)
    out = jnp.einsum("bd,do->bo", pooled, params["mlp_w"], precision=hp) \
        + params["mlp_b"]
    return out, vis


# ----------------------------- parameter init --------------------------------


def init_params(key, channel, input_len, d_models, depth, mlp_dim, out_dim, bands):
    enc = fourier_encoding(input_len, bands)
    pec = enc.shape[0]

    def linear(k, fan_in, fan_out):
        k1, k2 = jax.random.split(k)
        bound = 1.0 / math.sqrt(fan_in)
        w = jax.random.uniform(k1, (fan_in, fan_out), jnp.float32, -bound, bound)
        b = jax.random.uniform(k2, (fan_out,), jnp.float32, -bound, bound)
        return w, b

    keys = jax.random.split(key, 3)
    emb_w, emb_b = linear(keys[0], channel + pec, d_models)
    mlp_w, mlp_b = linear(keys[1], d_models, out_dim)
    w1s, b1s, w2s, b2s = [], [], [], []
    for d in range(depth):
        kd = jax.random.fold_in(keys[2], d)
        ka, kb = jax.random.split(kd)
        w1, b1 = linear(ka, d_models, mlp_dim)
        w2, b2 = linear(kb, mlp_dim, d_models)
        w1s.append(w1); b1s.append(b1); w2s.append(w2); b2s.append(b2)

    return dict(
        encoding=enc,
        emb_w=emb_w, emb_b=emb_b,
        mlp_w=mlp_w, mlp_b=mlp_b,
        ln1_g=jnp.ones((depth, d_models), jnp.float32),
        ln1_b=jnp.zeros((depth, d_models), jnp.float32),
        ln2_g=jnp.ones((depth, d_models), jnp.float32),
        ln2_b=jnp.zeros((depth, d_models), jnp.float32),
        w1=jnp.stack(w1s), b1=jnp.stack(b1s),
        w2=jnp.stack(w2s), b2=jnp.stack(b2s),
    )


# ----------------------------- main ------------------------------------------


if __name__ == "__main__":
    # module hyper-params (small, consistent with HB_transformer.__init__)
    B, C, H, W = 2, 4, 16, 16
    S = H * W                       # input_len = width * height
    D, depth, mlp_dim, out_dim, bands = 32, 2, 32, 1, 4

    key = jax.random.PRNGKey(0)
    kx, kp = jax.random.split(key)
    params = init_params(kp, C, S, D, depth, mlp_dim, out_dim, bands)

    # NCHW image, flattened to the (B, input_len, channel) layout the module uses.
    x_img = jax.random.normal(kx, (B, C, H, W), jnp.float32)
    x = jnp.transpose(x_img.reshape(B, C, S), (0, 2, 1))    # (B, S, C)

    # one-time constant preprocessing (DFT bases, bf16 weights, folded pos bias)
    consts = jax.tree_util.tree_map(
        lambda a: a, precompute_constants(params, C))

    forward = jax.jit(lambda xx: hb_transformer_forward(xx, consts))
    out, vis = forward(x)
    jax.block_until_ready((out, vis))

    ref_out, ref_vis = reference_forward(x, params)
    assert out.shape == (B, out_dim) and vis.shape == (B, S, D)
    # kernel runs on the native bf16 MXU path (f32 accumulation) + tanh-GELU,
    # so tolerances are set for bf16 compute vs the exact f32 reference.
    assert jnp.allclose(out, ref_out, atol=3e-2, rtol=3e-2)
    assert jnp.allclose(vis, ref_vis, atol=2e-3, rtol=2e-2)
    print("KERNEL_OK")
</pallas_src>

<mosaic_0001>
module attributes {stable_mosaic.version = 11 : i64} {
  func.func @hb_transformer_kernel(%arg0: i32, %arg1: memref<1x256x8xf32, #tpu.memory_space<vmem>>, %arg2: memref<8x32xbf16, #tpu.memory_space<vmem>>, %arg3: memref<256x32xf32, #tpu.memory_space<vmem>>, %arg4: memref<512x256xbf16, #tpu.memory_space<vmem>>, %arg5: memref<32x32xbf16, #tpu.memory_space<vmem>>, %arg6: memref<32x32xbf16, #tpu.memory_space<vmem>>, %arg7: memref<2x1x32xf32, #tpu.memory_space<vmem>>, %arg8: memref<2x1x32xf32, #tpu.memory_space<vmem>>, %arg9: memref<2x1x32xf32, #tpu.memory_space<vmem>>, %arg10: memref<2x1x32xf32, #tpu.memory_space<vmem>>, %arg11: memref<2x32x32xbf16, #tpu.memory_space<vmem>>, %arg12: memref<2x1x32xf32, #tpu.memory_space<vmem>>, %arg13: memref<2x32x32xbf16, #tpu.memory_space<vmem>>, %arg14: memref<2x1x32xf32, #tpu.memory_space<vmem>>, %arg15: memref<32x128xbf16, #tpu.memory_space<vmem>>, %arg16: memref<1x128xf32, #tpu.memory_space<vmem>>, %arg17: memref<1x1x128xf32, #tpu.memory_space<vmem>>, %arg18: memref<1x256x32xf32, #tpu.memory_space<vmem>>) attributes {dimension_semantics = [#tpu.dimension_semantics<parallel>], iteration_bounds = array<i64: 2>, scalar_prefetch = 0 : i64, scratch_operands = 0 : i64, tpu.core_type = #tpu.core_type<tc>, window_params = [{transform_indices = @transform_0, window_bounds = array<i64: 1, 256, 8>}, {pipeline_mode = #tpu.pipeline_mode<synchronous>, transform_indices = @transform_1, window_bounds = array<i64: 8, 32>}, {pipeline_mode = #tpu.pipeline_mode<synchronous>, transform_indices = @transform_2, window_bounds = array<i64: 256, 32>}, {pipeline_mode = #tpu.pipeline_mode<synchronous>, transform_indices = @transform_3, window_bounds = array<i64: 512, 256>}, {pipeline_mode = #tpu.pipeline_mode<synchronous>, transform_indices = @transform_4, window_bounds = array<i64: 32, 32>}, {pipeline_mode = #tpu.pipeline_mode<synchronous>, transform_indices = @transform_5, window_bounds = array<i64: 32, 32>}, {pipeline_mode = #tpu.pipeline_mode<synchronous>, transform_indices = @transform_6, window_bounds = array<i64: 2, 1, 32>}, {pipeline_mode = #tpu.pipeline_mode<synchronous>, transform_indices = @transform_7, window_bounds = array<i64: 2, 1, 32>}, {pipeline_mode = #tpu.pipeline_mode<synchronous>, transform_indices = @transform_8, window_bounds = array<i64: 2, 1, 32>}, {pipeline_mode = #tpu.pipeline_mode<synchronous>, transform_indices = @transform_9, window_bounds = array<i64: 2, 1, 32>}, {pipeline_mode = #tpu.pipeline_mode<synchronous>, transform_indices = @transform_10, window_bounds = array<i64: 2, 32, 32>}, {pipeline_mode = #tpu.pipeline_mode<synchronous>, transform_indices = @transform_11, window_bounds = array<i64: 2, 1, 32>}, {pipeline_mode = #tpu.pipeline_mode<synchronous>, transform_indices = @transform_12, window_bounds = array<i64: 2, 32, 32>}, {pipeline_mode = #tpu.pipeline_mode<synchronous>, transform_indices = @transform_13, window_bounds = array<i64: 2, 1, 32>}, {pipeline_mode = #tpu.pipeline_mode<synchronous>, transform_indices = @transform_14, window_bounds = array<i64: 32, 128>}, {pipeline_mode = #tpu.pipeline_mode<synchronous>, transform_indices = @transform_15, window_bounds = array<i64: 1, 128>}, {transform_indices = @transform_16, window_bounds = array<i64: 1, 1, 128>}, {transform_indices = @transform_17, window_bounds = array<i64: 1, 256, 32>}]} {
    %c0 = arith.constant 0 : index
    %c0_0 = arith.constant 0 : index
    %c0_1 = arith.constant 0 : index
    %0 = vector.load %arg1[%c0, %c0_0, %c0_1] : memref<1x256x8xf32, #tpu.memory_space<vmem>>, vector<1x256x8xf32>
    %1 = vector.shape_cast %0 : vector<1x256x8xf32> to vector<256x8xf32>
    %2 = arith.truncf %1 : vector<256x8xf32> to vector<256x8xbf16>
    %c0_2 = arith.constant 0 : index
    %c0_3 = arith.constant 0 : index
    %3 = vector.load %arg2[%c0_2, %c0_3] : memref<8x32xbf16, #tpu.memory_space<vmem>>, vector<8x32xbf16>
    %cst = arith.constant dense<0.000000e+00> : vector<256x32xf32>
    %4 = tpu.matmul %2, %3, %cst {dimension_numbers = #tpu.dot_dimension_numbers<[1], [0], [0], [1], [0, 0, 1, 1], [], []>} : vector<256x8xbf16>, vector<8x32xbf16>, vector<256x32xf32> -> vector<256x32xf32>
    %c0_4 = arith.constant 0 : index
    %c0_5 = arith.constant 0 : index
    %5 = vector.load %arg3[%c0_4, %c0_5] : memref<256x32xf32, #tpu.memory_space<vmem>>, vector<256x32xf32>
    %6 = arith.addf %4, %5 : vector<256x32xf32>
    %c0_6 = arith.constant 0 : index
    %c0_7 = arith.constant 0 : index
    %7 = vector.load %arg4[%c0_6, %c0_7] : memref<512x256xbf16, #tpu.memory_space<vmem>>, vector<512x256xbf16>
    %c0_8 = arith.constant 0 : index
    %c0_9 = arith.constant 0 : index
    %8 = vector.load %arg5[%c0_8, %c0_9] : memref<32x32xbf16, #tpu.memory_space<vmem>>, vector<32x32xbf16>
    %c0_10 = arith.constant 0 : index
    %c0_11 = arith.constant 0 : index
    %9 = vector.load %arg6[%c0_10, %c0_11] : memref<32x32xbf16, #tpu.memory_space<vmem>>, vector<32x32xbf16>
    %c0_12 = arith.constant 0 : index
    %c0_13 = arith.constant 0 : index
    %c0_14 = arith.constant 0 : index
    %10 = vector.load %arg7[%c0_12, %c0_13, %c0_14] : memref<2x1x32xf32, #tpu.memory_space<vmem>>, vector<1x1x32xf32>
    %11 = vector.shape_cast %10 : vector<1x1x32xf32> to vector<1x32xf32>
    %c0_15 = arith.constant 0 : index
    %c0_16 = arith.constant 0 : index
    %c0_17 = arith.constant 0 : index
    %12 = vector.load %arg8[%c0_15, %c0_16, %c0_17] : memref<2x1x32xf32, #tpu.memory_space<vmem>>, vector<1x1x32xf32>
    %13 = vector.shape_cast %12 : vector<1x1x32xf32> to vector<1x32xf32>
    %cst_18 = arith.constant dense<0.000000e+00> : vector<256xf32>
    %14 = vector.multi_reduction <add>, %6, %cst_18 [1] : vector<256x32xf32> to vector<256xf32>
    %15 = vector.shape_cast %14 : vector<256xf32> to vector<256x1xf32>
    %cst_19 = arith.constant 3.200000e+01 : f32
    %16 = vector.broadcast %cst_19 : f32 to vector<256x1xf32>
    %17 = arith.divf %15, %16 : vector<256x1xf32>
    %18 = vector.broadcast %17 : vector<256x1xf32> to vector<256x32xf32>
    %19 = arith.subf %6, %18 : vector<256x32xf32>
    %20 = arith.mulf %19, %19 : vector<256x32xf32>
    %cst_20 = arith.constant dense<0.000000e+00> : vector<256xf32>
    %21 = vector.multi_reduction <add>, %20, %cst_20 [1] : vector<256x32xf32> to vector<256xf32>
    %22 = vector.shape_cast %21 : vector<256xf32> to vector<256x1xf32>
    %cst_21 = arith.constant 3.200000e+01 : f32
    %23 = vector.broadcast %cst_21 : f32 to vector<256x1xf32>
    %24 = arith.divf %22, %23 : vector<256x1xf32>
    %25 = vector.broadcast %17 : vector<256x1xf32> to vector<256x32xf32>
    %26 = arith.subf %6, %25 : vector<256x32xf32>
    %cst_22 = arith.constant 9.99999974E-6 : f32
    %27 = vector.broadcast %cst_22 : f32 to vector<256x1xf32>
    %28 = arith.addf %24, %27 : vector<256x1xf32>
    %29 = math.rsqrt %28 : vector<256x1xf32>
    %30 = vector.broadcast %29 : vector<256x1xf32> to vector<256x32xf32>
    %31 = arith.mulf %26, %30 : vector<256x32xf32>
    %32 = vector.broadcast %11 : vector<1x32xf32> to vector<256x32xf32>
    %33 = arith.mulf %31, %32 : vector<256x32xf32>
    %34 = vector.broadcast %13 : vector<1x32xf32> to vector<256x32xf32>
    %35 = arith.addf %33, %34 : vector<256x32xf32>
    %cst_23 = arith.constant dense<0xFF800000> : vector<32xf32>
    %36 = vector.multi_reduction <maximumf>, %35, %cst_23 [0] : vector<256x32xf32> to vector<32xf32>
    %37 = vector.shape_cast %36 : vector<32xf32> to vector<1x32xf32>
    %38 = vector.broadcast %37 : vector<1x32xf32> to vector<256x32xf32>
    %39 = arith.subf %35, %38 : vector<256x32xf32>
    %40 = math.exp %39 : vector<256x32xf32>
    %cst_24 = arith.constant dense<0.000000e+00> : vector<32xf32>
    %41 = vector.multi_reduction <add>, %40, %cst_24 [0] : vector<256x32xf32> to vector<32xf32>
    %42 = vector.shape_cast %41 : vector<32xf32> to vector<1x32xf32>
    %43 = tpu.reciprocal %42 {approx = true} : vector<1x32xf32> -> vector<1x32xf32>
    %44 = vector.broadcast %43 : vector<1x32xf32> to vector<256x32xf32>
    %45 = arith.mulf %40, %44 : vector<256x32xf32>
    %46 = arith.truncf %45 : vector<256x32xf32> to vector<256x32xbf16>
    %cst_25 = arith.constant dense<0.000000e+00> : vector<512x32xf32>
    %47 = tpu.matmul %7, %46, %cst_25 {dimension_numbers = #tpu.dot_dimension_numbers<[1], [0], [0], [1], [0, 0, 1, 1], [], []>} : vector<512x256xbf16>, vector<256x32xbf16>, vector<512x32xf32> -> vector<512x32xf32>
    %48 = vector.extract_strided_slice %47 {offsets = [0, 0], sizes = [256, 32], strides = [1, 1]} : vector<512x32xf32> to vector<256x32xf32>
    %49 = arith.truncf %48 : vector<256x32xf32> to vector<256x32xbf16>
    %cst_26 = arith.constant dense<0.000000e+00> : vector<256x32xf32>
    %50 = tpu.matmul %49, %8, %cst_26 {dimension_numbers = #tpu.dot_dimension_numbers<[1], [0], [0], [1], [0, 0, 1, 1], [], []>} : vector<256x32xbf16>, vector<32x32xbf16>, vector<256x32xf32> -> vector<256x32xf32>
    %51 = vector.extract_strided_slice %47 {offsets = [256, 0], sizes = [256, 32], strides = [1, 1]} : vector<512x32xf32> to vector<256x32xf32>
    %52 = arith.truncf %51 : vector<256x32xf32> to vector<256x32xbf16>
    %cst_27 = arith.constant dense<0.000000e+00> : vector<256x32xf32>
    %53 = tpu.matmul %52, %9, %cst_27 {dimension_numbers = #tpu.dot_dimension_numbers<[1], [0], [0], [1], [0, 0, 1, 1], [], []>} : vector<256x32xbf16>, vector<32x32xbf16>, vector<256x32xf32> -> vector<256x32xf32>
    %54 = arith.addf %50, %53 : vector<256x32xf32>
    %55 = arith.addf %6, %54 : vector<256x32xf32>
    %c0_28 = arith.constant 0 : index
    %c0_29 = arith.constant 0 : index
    %c0_30 = arith.constant 0 : index
    %56 = vector.load %arg9[%c0_28, %c0_29, %c0_30] : memref<2x1x32xf32, #tpu.memory_space<vmem>>, vector<1x1x32xf32>
    %57 = vector.shape_cast %56 : vector<1x1x32xf32> to vector<1x32xf32>
    %c0_31 = arith.constant 0 : index
    %c0_32 = arith.constant 0 : index
    %c0_33 = arith.constant 0 : index
    %58 = vector.load %arg10[%c0_31, %c0_32, %c0_33] : memref<2x1x32xf32, #tpu.memory_space<vmem>>, vector<1x1x32xf32>
    %59 = vector.shape_cast %58 : vector<1x1x32xf32> to vector<1x32xf32>
    %cst_34 = arith.constant dense<0.000000e+00> : vector<256xf32>
    %60 = vector.multi_reduction <add>, %55, %cst_34 [1] : vector<256x32xf32> to vector<256xf32>
    %61 = vector.shape_cast %60 : vector<256xf32> to vector<256x1xf32>
    %cst_35 = arith.constant 3.200000e+01 : f32
    %62 = vector.broadcast %cst_35 : f32 to vector<256x1xf32>
    %63 = arith.divf %61, %62 : vector<256x1xf32>
    %64 = vector.broadcast %63 : vector<256x1xf32> to vector<256x32xf32>
    %65 = arith.subf %55, %64 : vector<256x32xf32>
    %66 = arith.mulf %65, %65 : vector<256x32xf32>
    %cst_36 = arith.constant dense<0.000000e+00> : vector<256xf32>
    %67 = vector.multi_reduction <add>, %66, %cst_36 [1] : vector<256x32xf32> to vector<256xf32>
    %68 = vector.shape_cast %67 : vector<256xf32> to vector<256x1xf32>
    %cst_37 = arith.constant 3.200000e+01 : f32
    %69 = vector.broadcast %cst_37 : f32 to vector<256x1xf32>
    %70 = arith.divf %68, %69 : vector<256x1xf32>
    %71 = vector.broadcast %63 : vector<256x1xf32> to vector<256x32xf32>
    %72 = arith.subf %55, %71 : vector<256x32xf32>
    %cst_38 = arith.constant 9.99999974E-6 : f32
    %73 = vector.broadcast %cst_38 : f32 to vector<256x1xf32>
    %74 = arith.addf %70, %73 : vector<256x1xf32>
    %75 = math.rsqrt %74 : vector<256x1xf32>
    %76 = vector.broadcast %75 : vector<256x1xf32> to vector<256x32xf32>
    %77 = arith.mulf %72, %76 : vector<256x32xf32>
    %78 = vector.broadcast %57 : vector<1x32xf32> to vector<256x32xf32>
    %79 = arith.mulf %77, %78 : vector<256x32xf32>
    %80 = vector.broadcast %59 : vector<1x32xf32> to vector<256x32xf32>
    %81 = arith.addf %79, %80 : vector<256x32xf32>
    %82 = arith.truncf %81 : vector<256x32xf32> to vector<256x32xbf16>
    %c0_39 = arith.constant 0 : index
    %c0_40 = arith.constant 0 : index
    %c0_41 = arith.constant 0 : index
    %83 = vector.load %arg11[%c0_39, %c0_40, %c0_41] : memref<2x32x32xbf16, #tpu.memory_space<vmem>>, vector<1x32x32xbf16>
    %84 = vector.shape_cast %83 : vector<1x32x32xbf16> to vector<32x32xbf16>
    %cst_42 = arith.constant dense<0.000000e+00> : vector<256x32xf32>
    %85 = tpu.matmul %82, %84, %cst_42 {dimension_numbers = #tpu.dot_dimension_numbers<[1], [0], [0], [1], [0, 0, 1, 1], [], []>} : vector<256x32xbf16>, vector<32x32xbf16>, vector<256x32xf32> -> vector<256x32xf32>
    %c0_43 = arith.constant 0 : index
    %c0_44 = arith.constant 0 : index
    %c0_45 = arith.constant 0 : index
    %86 = vector.load %arg12[%c0_43, %c0_44, %c0_45] : memref<2x1x32xf32, #tpu.memory_space<vmem>>, vector<1x1x32xf32>
    %87 = vector.shape_cast %86 : vector<1x1x32xf32> to vector<1x32xf32>
    %88 = vector.broadcast %87 : vector<1x32xf32> to vector<256x32xf32>
    %89 = arith.addf %85, %88 : vector<256x32xf32>
    %cst_46 = arith.constant 5.000000e-01 : f32
    %90 = vector.broadcast %cst_46 : f32 to vector<256x32xf32>
    %91 = arith.mulf %90, %89 : vector<256x32xf32>
    %cst_47 = arith.constant 4.471500e-02 : f32
    %92 = vector.broadcast %cst_47 : f32 to vector<256x32xf32>
    %93 = arith.mulf %92, %89 : vector<256x32xf32>
    %94 = arith.mulf %93, %89 : vector<256x32xf32>
    %95 = arith.mulf %94, %89 : vector<256x32xf32>
    %96 = arith.addf %89, %95 : vector<256x32xf32>
    %cst_48 = arith.constant 0.797884583 : f32
    %97 = vector.broadcast %cst_48 : f32 to vector<256x32xf32>
    %98 = arith.mulf %97, %96 : vector<256x32xf32>
    %99 = math.tanh %98 : vector<256x32xf32>
    %cst_49 = arith.constant 1.000000e+00 : f32
    %100 = vector.broadcast %cst_49 : f32 to vector<256x32xf32>
    %101 = arith.addf %100, %99 : vector<256x32xf32>
    %102 = arith.mulf %91, %101 : vector<256x32xf32>
    %103 = arith.truncf %102 : vector<256x32xf32> to vector<256x32xbf16>
    %c0_50 = arith.constant 0 : index
    %c0_51 = arith.constant 0 : index
    %c0_52 = arith.constant 0 : index
    %104 = vector.load %arg13[%c0_50, %c0_51, %c0_52] : memref<2x32x32xbf16, #tpu.memory_space<vmem>>, vector<1x32x32xbf16>
    %105 = vector.shape_cast %104 : vector<1x32x32xbf16> to vector<32x32xbf16>
    %cst_53 = arith.constant dense<0.000000e+00> : vector<256x32xf32>
    %106 = tpu.matmul %103, %105, %cst_53 {dimension_numbers = #tpu.dot_dimension_numbers<[1], [0], [0], [1], [0, 0, 1, 1], [], []>} : vector<256x32xbf16>, vector<32x32xbf16>, vector<256x32xf32> -> vector<256x32xf32>
    %c0_54 = arith.constant 0 : index
    %c0_55 = arith.constant 0 : index
    %c0_56 = arith.constant 0 : index
    %107 = vector.load %arg14[%c0_54, %c0_55, %c0_56] : memref<2x1x32xf32, #tpu.memory_space<vmem>>, vector<1x1x32xf32>
    %108 = vector.shape_cast %107 : vector<1x1x32xf32> to vector<1x32xf32>
    %109 = vector.broadcast %108 : vector<1x32xf32> to vector<256x32xf32>
    %110 = arith.addf %106, %109 : vector<256x32xf32>
    %111 = arith.addf %55, %110 : vector<256x32xf32>
    %c1 = arith.constant 1 : index
    %c0_57 = arith.constant 0 : index
    %c0_58 = arith.constant 0 : index
    %112 = vector.load %arg7[%c1, %c0_57, %c0_58] : memref<2x1x32xf32, #tpu.memory_space<vmem>>, vector<1x1x32xf32>
    %113 = vector.shape_cast %112 : vector<1x1x32xf32> to vector<1x32xf32>
    %c1_59 = arith.constant 1 : index
    %c0_60 = arith.constant 0 : index
    %c0_61 = arith.constant 0 : index
    %114 = vector.load %arg8[%c1_59, %c0_60, %c0_61] : memref<2x1x32xf32, #tpu.memory_space<vmem>>, vector<1x1x32xf32>
    %115 = vector.shape_cast %114 : vector<1x1x32xf32> to vector<1x32xf32>
    %cst_62 = arith.constant dense<0.000000e+00> : vector<256xf32>
    %116 = vector.multi_reduction <add>, %111, %cst_62 [1] : vector<256x32xf32> to vector<256xf32>
    %117 = vector.shape_cast %116 : vector<256xf32> to vector<256x1xf32>
    %cst_63 = arith.constant 3.200000e+01 : f32
    %118 = vector.broadcast %cst_63 : f32 to vector<256x1xf32>
    %119 = arith.divf %117, %118 : vector<256x1xf32>
    %120 = vector.broadcast %119 : vector<256x1xf32> to vector<256x32xf32>
    %121 = arith.subf %111, %120 : vector<256x32xf32>
    %122 = arith.mulf %121, %121 : vector<256x32xf32>
    %cst_64 = arith.constant dense<0.000000e+00> : vector<256xf32>
    %123 = vector.multi_reduction <add>, %122, %cst_64 [1] : vector<256x32xf32> to vector<256xf32>
    %124 = vector.shape_cast %123 : vector<256xf32> to vector<256x1xf32>
    %cst_65 = arith.constant 3.200000e+01 : f32
    %125 = vector.broadcast %cst_65 : f32 to vector<256x1xf32>
    %126 = arith.divf %124, %125 : vector<256x1xf32>
    %127 = vector.broadcast %119 : vector<256x1xf32> to vector<256x32xf32>
    %128 = arith.subf %111, %127 : vector<256x32xf32>
    %cst_66 = arith.constant 9.99999974E-6 : f32
    %129 = vector.broadcast %cst_66 : f32 to vector<256x1xf32>
    %130 = arith.addf %126, %129 : vector<256x1xf32>
    %131 = math.rsqrt %130 : vector<256x1xf32>
    %132 = vector.broadcast %131 : vector<256x1xf32> to vector<256x32xf32>
    %133 = arith.mulf %128, %132 : vector<256x32xf32>
    %134 = vector.broadcast %113 : vector<1x32xf32> to vector<256x32xf32>
    %135 = arith.mulf %133, %134 : vector<256x32xf32>
    %136 = vector.broadcast %115 : vector<1x32xf32> to vector<256x32xf32>
    %137 = arith.addf %135, %136 : vector<256x32xf32>
    %cst_67 = arith.constant dense<0xFF800000> : vector<32xf32>
    %138 = vector.multi_reduction <maximumf>, %137, %cst_67 [0] : vector<256x32xf32> to vector<32xf32>
    %139 = vector.shape_cast %138 : vector<32xf32> to vector<1x32xf32>
    %140 = vector.broadcast %139 : vector<1x32xf32> to vector<256x32xf32>
    %141 = arith.subf %137, %140 : vector<256x32xf32>
    %142 = math.exp %141 : vector<256x32xf32>
    %cst_68 = arith.constant dense<0.000000e+00> : vector<32xf32>
    %143 = vector.multi_reduction <add>, %142, %cst_68 [0] : vector<256x32xf32> to vector<32xf32>
    %144 = vector.shape_cast %143 : vector<32xf32> to vector<1x32xf32>
    %145 = tpu.reciprocal %144 {approx = true} : vector<1x32xf32> -> vector<1x32xf32>
    %146 = vector.broadcast %145 : vector<1x32xf32> to vector<256x32xf32>
    %147 = arith.mulf %142, %146 : vector<256x32xf32>
    %148 = arith.truncf %147 : vector<256x32xf32> to vector<256x32xbf16>
    %cst_69 = arith.constant dense<0.000000e+00> : vector<512x32xf32>
    %149 = tpu.matmul %7, %148, %cst_69 {dimension_numbers = #tpu.dot_dimension_numbers<[1], [0], [0], [1], [0, 0, 1, 1], [], []>} : vector<512x256xbf16>, vector<256x32xbf16>, vector<512x32xf32> -> vector<512x32xf32>
    %150 = vector.extract_strided_slice %149 {offsets = [0, 0], sizes = [256, 32], strides = [1, 1]} : vector<512x32xf32> to vector<256x32xf32>
    %151 = arith.truncf %150 : vector<256x32xf32> to vector<256x32xbf16>
    %cst_70 = arith.constant dense<0.000000e+00> : vector<256x32xf32>
    %152 = tpu.matmul %151, %8, %cst_70 {dimension_numbers = #tpu.dot_dimension_numbers<[1], [0], [0], [1], [0, 0, 1, 1], [], []>} : vector<256x32xbf16>, vector<32x32xbf16>, vector<256x32xf32> -> vector<256x32xf32>
    %153 = vector.extract_strided_slice %149 {offsets = [256, 0], sizes = [256, 32], strides = [1, 1]} : vector<512x32xf32> to vector<256x32xf32>
    %154 = arith.truncf %153 : vector<256x32xf32> to vector<256x32xbf16>
    %cst_71 = arith.constant dense<0.000000e+00> : vector<256x32xf32>
    %155 = tpu.matmul %154, %9, %cst_71 {dimension_numbers = #tpu.dot_dimension_numbers<[1], [0], [0], [1], [0, 0, 1, 1], [], []>} : vector<256x32xbf16>, vector<32x32xbf16>, vector<256x32xf32> -> vector<256x32xf32>
    %156 = arith.addf %152, %155 : vector<256x32xf32>
    %157 = arith.addf %111, %156 : vector<256x32xf32>
    %c1_72 = arith.constant 1 : index
    %c0_73 = arith.constant 0 : index
    %c0_74 = arith.constant 0 : index
    %158 = vector.load %arg9[%c1_72, %c0_73, %c0_74] : memref<2x1x32xf32, #tpu.memory_space<vmem>>, vector<1x1x32xf32>
    %159 = vector.shape_cast %158 : vector<1x1x32xf32> to vector<1x32xf32>
    %c1_75 = arith.constant 1 : index
    %c0_76 = arith.constant 0 : index
    %c0_77 = arith.constant 0 : index
    %160 = vector.load %arg10[%c1_75, %c0_76, %c0_77] : memref<2x1x32xf32, #tpu.memory_space<vmem>>, vector<1x1x32xf32>
    %161 = vector.shape_cast %160 : vector<1x1x32xf32> to vector<1x32xf32>
    %cst_78 = arith.constant dense<0.000000e+00> : vector<256xf32>
    %162 = vector.multi_reduction <add>, %157, %cst_78 [1] : vector<256x32xf32> to vector<256xf32>
    %163 = vector.shape_cast %162 : vector<256xf32> to vector<256x1xf32>
    %cst_79 = arith.constant 3.200000e+01 : f32
    %164 = vector.broadcast %cst_79 : f32 to vector<256x1xf32>
    %165 = arith.divf %163, %164 : vector<256x1xf32>
    %166 = vector.broadcast %165 : vector<256x1xf32> to vector<256x32xf32>
    %167 = arith.subf %157, %166 : vector<256x32xf32>
    %168 = arith.mulf %167, %167 : vector<256x32xf32>
    %cst_80 = arith.constant dense<0.000000e+00> : vector<256xf32>
    %169 = vector.multi_reduction <add>, %168, %cst_80 [1] : vector<256x32xf32> to vector<256xf32>
    %170 = vector.shape_cast %169 : vector<256xf32> to vector<256x1xf32>
    %cst_81 = arith.constant 3.200000e+01 : f32
    %171 = vector.broadcast %cst_81 : f32 to vector<256x1xf32>
    %172 = arith.divf %170, %171 : vector<256x1xf32>
    %173 = vector.broadcast %165 : vector<256x1xf32> to vector<256x32xf32>
    %174 = arith.subf %157, %173 : vector<256x32xf32>
    %cst_82 = arith.constant 9.99999974E-6 : f32
    %175 = vector.broadcast %cst_82 : f32 to vector<256x1xf32>
    %176 = arith.addf %172, %175 : vector<256x1xf32>
    %177 = math.rsqrt %176 : vector<256x1xf32>
    %178 = vector.broadcast %177 : vector<256x1xf32> to vector<256x32xf32>
    %179 = arith.mulf %174, %178 : vector<256x32xf32>
    %180 = vector.broadcast %159 : vector<1x32xf32> to vector<256x32xf32>
    %181 = arith.mulf %179, %180 : vector<256x32xf32>
    %182 = vector.broadcast %161 : vector<1x32xf32> to vector<256x32xf32>
    %183 = arith.addf %181, %182 : vector<256x32xf32>
    %184 = arith.truncf %183 : vector<256x32xf32> to vector<256x32xbf16>
    %c1_83 = arith.constant 1 : index
    %c0_84 = arith.constant 0 : index
    %c0_85 = arith.constant 0 : index
    %185 = vector.load %arg11[%c1_83, %c0_84, %c0_85] : memref<2x32x32xbf16, #tpu.memory_space<vmem>>, vector<1x32x32xbf16>
    %186 = vector.shape_cast %185 : vector<1x32x32xbf16> to vector<32x32xbf16>
    %cst_86 = arith.constant dense<0.000000e+00> : vector<256x32xf32>
    %187 = tpu.matmul %184, %186, %cst_86 {dimension_numbers = #tpu.dot_dimension_numbers<[1], [0], [0], [1], [0, 0, 1, 1], [], []>} : vector<256x32xbf16>, vector<32x32xbf16>, vector<256x32xf32> -> vector<256x32xf32>
    %c1_87 = arith.constant 1 : index
    %c0_88 = arith.constant 0 : index
    %c0_89 = arith.constant 0 : index
    %188 = vector.load %arg12[%c1_87, %c0_88, %c0_89] : memref<2x1x32xf32, #tpu.memory_space<vmem>>, vector<1x1x32xf32>
    %189 = vector.shape_cast %188 : vector<1x1x32xf32> to vector<1x32xf32>
    %190 = vector.broadcast %189 : vector<1x32xf32> to vector<256x32xf32>
    %191 = arith.addf %187, %190 : vector<256x32xf32>
    %cst_90 = arith.constant 5.000000e-01 : f32
    %192 = vector.broadcast %cst_90 : f32 to vector<256x32xf32>
    %193 = arith.mulf %192, %191 : vector<256x32xf32>
    %cst_91 = arith.constant 4.471500e-02 : f32
    %194 = vector.broadcast %cst_91 : f32 to vector<256x32xf32>
    %195 = arith.mulf %194, %191 : vector<256x32xf32>
    %196 = arith.mulf %195, %191 : vector<256x32xf32>
    %197 = arith.mulf %196, %191 : vector<256x32xf32>
    %198 = arith.addf %191, %197 : vector<256x32xf32>
    %cst_92 = arith.constant 0.797884583 : f32
    %199 = vector.broadcast %cst_92 : f32 to vector<256x32xf32>
    %200 = arith.mulf %199, %198 : vector<256x32xf32>
    %201 = math.tanh %200 : vector<256x32xf32>
    %cst_93 = arith.constant 1.000000e+00 : f32
    %202 = vector.broadcast %cst_93 : f32 to vector<256x32xf32>
    %203 = arith.addf %202, %201 : vector<256x32xf32>
    %204 = arith.mulf %193, %203 : vector<256x32xf32>
    %205 = arith.truncf %204 : vector<256x32xf32> to vector<256x32xbf16>
    %c1_94 = arith.constant 1 : index
    %c0_95 = arith.constant 0 : index
    %c0_96 = arith.constant 0 : index
    %206 = vector.load %arg13[%c1_94, %c0_95, %c0_96] : memref<2x32x32xbf16, #tpu.memory_space<vmem>>, vector<1x32x32xbf16>
    %207 = vector.shape_cast %206 : vector<1x32x32xbf16> to vector<32x32xbf16>
    %cst_97 = arith.constant dense<0.000000e+00> : vector<256x32xf32>
    %208 = tpu.matmul %205, %207, %cst_97 {dimension_numbers = #tpu.dot_dimension_numbers<[1], [0], [0], [1], [0, 0, 1, 1], [], []>} : vector<256x32xbf16>, vector<32x32xbf16>, vector<256x32xf32> -> vector<256x32xf32>
    %c1_98 = arith.constant 1 : index
    %c0_99 = arith.constant 0 : index
    %c0_100 = arith.constant 0 : index
    %209 = vector.load %arg14[%c1_98, %c0_99, %c0_100] : memref<2x1x32xf32, #tpu.memory_space<vmem>>, vector<1x1x32xf32>
    %210 = vector.shape_cast %209 : vector<1x1x32xf32> to vector<1x32xf32>
    %211 = vector.broadcast %210 : vector<1x32xf32> to vector<256x32xf32>
    %212 = arith.addf %208, %211 : vector<256x32xf32>
    %213 = arith.addf %157, %212 : vector<256x32xf32>
    %c0_101 = arith.constant 0 : index
    %c0_102 = arith.constant 0 : index
    %c0_103 = arith.constant 0 : index
    %214 = vector.load %arg18[%c0_101, %c0_102, %c0_103] : memref<1x256x32xf32, #tpu.memory_space<vmem>>, vector<1x256x32xf32>
    %215 = vector.shape_cast %214 : vector<1x256x32xf32> to vector<256x32xf32>
    %216 = vector.shape_cast %147 : vector<256x32xf32> to vector<1x256x32xf32>
    tpu.vector_store %arg18[%c0_101, %c0_102, %c0_103], %216 {strides = array<i32>} : memref<1x256x32xf32, #tpu.memory_space<vmem>>, vector<1x256x32xf32>,
    %cst_104 = arith.constant dense<0.000000e+00> : vector<32xf32>
    %217 = vector.multi_reduction <add>, %213, %cst_104 [0] : vector<256x32xf32> to vector<32xf32>
    %218 = vector.shape_cast %217 : vector<32xf32> to vector<1x32xf32>
    %cst_105 = arith.constant 2.560000e+02 : f32
    %219 = vector.broadcast %cst_105 : f32 to vector<1x32xf32>
    %220 = arith.divf %218, %219 : vector<1x32xf32>
    %221 = arith.truncf %220 : vector<1x32xf32> to vector<1x32xbf16>
    %c0_106 = arith.constant 0 : index
    %c0_107 = arith.constant 0 : index
    %222 = vector.load %arg15[%c0_106, %c0_107] : memref<32x128xbf16, #tpu.memory_space<vmem>>, vector<32x128xbf16>
    %cst_108 = arith.constant dense<0.000000e+00> : vector<1x128xf32>
    %223 = tpu.matmul %221, %222, %cst_108 {dimension_numbers = #tpu.dot_dimension_numbers<[1], [0], [0], [1], [0, 0, 1, 1], [], []>} : vector<1x32xbf16>, vector<32x128xbf16>, vector<1x128xf32> -> vector<1x128xf32>
    %c0_109 = arith.constant 0 : index
    %c0_110 = arith.constant 0 : index
    %224 = vector.load %arg16[%c0_109, %c0_110] : memref<1x128xf32, #tpu.memory_space<vmem>>, vector<1x128xf32>
    %225 = arith.addf %223, %224 : vector<1x128xf32>
    %c0_111 = arith.constant 0 : index
    %c0_112 = arith.constant 0 : index
    %c0_113 = arith.constant 0 : index
    %226 = vector.load %arg17[%c0_111, %c0_112, %c0_113] : memref<1x1x128xf32, #tpu.memory_space<vmem>>, vector<1x1x128xf32>
    %227 = vector.shape_cast %226 : vector<1x1x128xf32> to vector<1x128xf32>
    %228 = vector.shape_cast %225 : vector<1x128xf32> to vector<1x1x128xf32>
    tpu.vector_store %arg17[%c0_111, %c0_112, %c0_113], %228 {strides = array<i32>} : memref<1x1x128xf32, #tpu.memory_space<vmem>>, vector<1x1x128xf32>,
    return
  }
  func.func @transform_0(%arg0: i32) -> (i32, i32, i32) {
    %c0_i32 = arith.constant 0 : i32
    %c0_i32_0 = arith.constant 0 : i32
    %c0_i32_1 = arith.constant 0 : i32
    return %arg0, %c0_i32, %c0_i32_0 : i32, i32, i32
  }
  func.func @transform_1(%arg0: i32) -> (i32, i32) {
    %c0_i32 = arith.constant 0 : i32
    %c0_i32_0 = arith.constant 0 : i32
    %c0_i32_1 = arith.constant 0 : i32
    return %c0_i32, %c0_i32_0 : i32, i32
  }
  func.func @transform_2(%arg0: i32) -> (i32, i32) {
    %c0_i32 = arith.constant 0 : i32
    %c0_i32_0 = arith.constant 0 : i32
    %c0_i32_1 = arith.constant 0 : i32
    return %c0_i32, %c0_i32_0 : i32, i32
  }
  func.func @transform_3(%arg0: i32) -> (i32, i32) {
    %c0_i32 = arith.constant 0 : i32
    %c0_i32_0 = arith.constant 0 : i32
    %c0_i32_1 = arith.constant 0 : i32
    return %c0_i32, %c0_i32_0 : i32, i32
  }
  func.func @transform_4(%arg0: i32) -> (i32, i32) {
    %c0_i32 = arith.constant 0 : i32
    %c0_i32_0 = arith.constant 0 : i32
    %c0_i32_1 = arith.constant 0 : i32
    return %c0_i32, %c0_i32_0 : i32, i32
  }
  func.func @transform_5(%arg0: i32) -> (i32, i32) {
    %c0_i32 = arith.constant 0 : i32
    %c0_i32_0 = arith.constant 0 : i32
    %c0_i32_1 = arith.constant 0 : i32
    return %c0_i32, %c0_i32_0 : i32, i32
  }
  func.func @transform_6(%arg0: i32) -> (i32, i32, i32) {
    %c0_i32 = arith.constant 0 : i32
    %c0_i32_0 = arith.constant 0 : i32
    %c0_i32_1 = arith.constant 0 : i32
    %c0_i32_2 = arith.constant 0 : i32
    return %c0_i32, %c0_i32_0, %c0_i32_1 : i32, i32, i32
  }
  func.func @transform_7(%arg0: i32) -> (i32, i32, i32) {
    %c0_i32 = arith.constant 0 : i32
    %c0_i32_0 = arith.constant 0 : i32
    %c0_i32_1 = arith.constant 0 : i32
    %c0_i32_2 = arith.constant 0 : i32
    return %c0_i32, %c0_i32_0, %c0_i32_1 : i32, i32, i32
  }
  func.func @transform_8(%arg0: i32) -> (i32, i32, i32) {
    %c0_i32 = arith.constant 0 : i32
    %c0_i32_0 = arith.constant 0 : i32
    %c0_i32_1 = arith.constant 0 : i32
    %c0_i32_2 = arith.constant 0 : i32
    return %c0_i32, %c0_i32_0, %c0_i32_1 : i32, i32, i32
  }
  func.func @transform_9(%arg0: i32) -> (i32, i32, i32) {
    %c0_i32 = arith.constant 0 : i32
    %c0_i32_0 = arith.constant 0 : i32
    %c0_i32_1 = arith.constant 0 : i32
    %c0_i32_2 = arith.constant 0 : i32
    return %c0_i32, %c0_i32_0, %c0_i32_1 : i32, i32, i32
  }
  func.func @transform_10(%arg0: i32) -> (i32, i32, i32) {
    %c0_i32 = arith.constant 0 : i32
    %c0_i32_0 = arith.constant 0 : i32
    %c0_i32_1 = arith.constant 0 : i32
    %c0_i32_2 = arith.constant 0 : i32
    return %c0_i32, %c0_i32_0, %c0_i32_1 : i32, i32, i32
  }
  func.func @transform_11(%arg0: i32) -> (i32, i32, i32) {
    %c0_i32 = arith.constant 0 : i32
    %c0_i32_0 = arith.constant 0 : i32
    %c0_i32_1 = arith.constant 0 : i32
    %c0_i32_2 = arith.constant 0 : i32
    return %c0_i32, %c0_i32_0, %c0_i32_1 : i32, i32, i32
  }
  func.func @transform_12(%arg0: i32) -> (i32, i32, i32) {
    %c0_i32 = arith.constant 0 : i32
    %c0_i32_0 = arith.constant 0 : i32
    %c0_i32_1 = arith.constant 0 : i32
    %c0_i32_2 = arith.constant 0 : i32
    return %c0_i32, %c0_i32_0, %c0_i32_1 : i32, i32, i32
  }
  func.func @transform_13(%arg0: i32) -> (i32, i32, i32) {
    %c0_i32 = arith.constant 0 : i32
    %c0_i32_0 = arith.constant 0 : i32
    %c0_i32_1 = arith.constant 0 : i32
    %c0_i32_2 = arith.constant 0 : i32
    return %c0_i32, %c0_i32_0, %c0_i32_1 : i32, i32, i32
  }
  func.func @transform_14(%arg0: i32) -> (i32, i32) {
    %c0_i32 = arith.constant 0 : i32
    %c0_i32_0 = arith.constant 0 : i32
    %c0_i32_1 = arith.constant 0 : i32
    return %c0_i32, %c0_i32_0 : i32, i32
  }
  func.func @transform_15(%arg0: i32) -> (i32, i32) {
    %c0_i32 = arith.constant 0 : i32
    %c0_i32_0 = arith.constant 0 : i32
    %c0_i32_1 = arith.constant 0 : i32
    return %c0_i32, %c0_i32_0 : i32, i32
  }
  func.func @transform_16(%arg0: i32) -> (i32, i32, i32) {
    %c0_i32 = arith.constant 0 : i32
    %c0_i32_0 = arith.constant 0 : i32
    %c0_i32_1 = arith.constant 0 : i32
    return %arg0, %c0_i32, %c0_i32_0 : i32, i32, i32
  }
  func.func @transform_17(%arg0: i32) -> (i32, i32, i32) {
    %c0_i32 = arith.constant 0 : i32
    %c0_i32_0 = arith.constant 0 : i32
    %c0_i32_1 = arith.constant 0 : i32
    return %arg0, %c0_i32, %c0_i32_0 : i32, i32, i32
  }
}

</mosaic_0001>

<bundles_post_ra>
// kernel: _lambda_.1
= control target key start
LH: loop header
LB: loop body
LE: loop exit
PB: predicated region body
PF: predicated region fallthrough
CT: control target
= control target key end

     0   :  { %s8804_s24 = smov 0   ;;  %s13378_s0 = inlined_call_operand.vmem [shape: f32[2,256,8], index: 0, kind: input, shape index: {}]   ;;  %s13379_s1 = inlined_call_operand.vmem [shape: bf16[8,32], index: 1, kind: input, shape index: {}]   ;;  %s13380_s2 = inlined_call_operand.vmem [shape: f32[256,32], index: 2, kind: input, shape index: {}]   ;;  %s13381_s3 = inlined_call_operand.vmem [shape: bf16[512,256], index: 3, kind: input, shape index: {}]   ;;  %s13382_s4 = inlined_call_operand.vmem [shape: bf16[32,32], index: 4, kind: input, shape index: {}]   ;;  %s13383_s5 = inlined_call_operand.vmem [shape: bf16[32,32], index: 5, kind: input, shape index: {}]   ;;  %s13384_s6 = inlined_call_operand.vmem [shape: f32[2,1,32], index: 6, kind: input, shape index: {}, may-alias: {6,8}]   ;;  %s13385_s7 = inlined_call_operand.vmem [shape: f32[2,1,32], index: 7, kind: input, shape index: {}, may-alias: {7,9}]   ;;  %s13386_s8 = inlined_call_operand.vmem [shape: f32[2,1,32], index: 8, kind: input, shape index: {}, may-alias: {6,8}]   ;;  %s13387_s9 = inlined_call_operand.vmem [shape: f32[2,1,32], index: 9, kind: input, shape index: {}, may-alias: {7,9}]   ;;  %s13388_s10 = inlined_call_operand.vmem [shape: bf16[2,32,32], index: 10, kind: input, shape index: {}]   ;;  %s13389_s11 = inlined_call_operand.vmem [shape: f32[2,1,32], index: 11, kind: input, shape index: {}]   ;;  %s13390_s12 = inlined_call_operand.vmem [shape: bf16[2,32,32], index: 12, kind: input, shape index: {}]   ;;  %s13391_s13 = inlined_call_operand.vmem [shape: f32[2,1,32], index: 13, kind: input, shape index: {}]   ;;  %s13392_s14 = inlined_call_operand.vmem [shape: bf16[32,128], index: 14, kind: input, shape index: {}]   ;;  %s13393_s15 = inlined_call_operand.vmem [shape: f32[1,128], index: 15, kind: input, shape index: {}]   ;;  %s13394_s16 = inlined_call_operand.vmem [shape: f32[2,1,128], index: 16, kind: output, shape index: {0}]   ;;  %s13395_s17 = inlined_call_operand.vmem [shape: f32[2,256,32], index: 17, kind: output, shape index: {1}]  }
   0x1   :  { %13501 = sst [smem:[#allocation32_spill]] %s13378_s0 }
   0x2   :  { %13502 = sst [smem:[#allocation33_spill]] %s13379_s1 }
   0x3 LB: > { %s7241_s25 = sadd.s32 4294967295, %s8709_s24   ;;  %p7245_p0 = scmp.ge.s32.totalorder %s8709_s24, 1  ;;  %s8709_s24 = sphi %s8804_s24, %s28_s24  }
   0x4   : > { %p490_p1 = scmp.lt.s32.totalorder %s8709_s24, 3 }
   0x6   : > { %p491_p2 = pnand %p7245_p0, %p490_p1 }
   0x8   : > { %494 = sbr.rel (%p491_p2) target bundleno = 4472 (0x1178), region = 84 }
   0xd   : > { %s13503_s28 = sld [smem:[#allocation33_spill]]  ;;  %vm689_vm0 = vcmask 1043456   ;;  %p545_p3 = scmp.lt.s32.totalorder %s7241_s25, 1  ;;  %vm640_vm1 = vcmask 64512   ;;  %v610_v50 = vld [vmem:[%s13380_s2 + $0x10] sm:$0xff]  ;;  %v608_v52 = vld [vmem:[%s13380_s2] sm:$0xff] }
   0xe   : > { %s13504_s18 = sld [smem:[#allocation32_spill]]  ;;  %vm928_vm2 = vcmask 261120   ;;  %v611_v55 = vld [vmem:[%s13380_s2 + $0x18] sm:$0xff]  ;;  %v609_v59 = vld [vmem:[%s13380_s2 + $0x8] sm:$0xff]  ;;  %v614_v63 = vld [vmem:[%s13380_s2 + $0x30] sm:$0xff]  ;;  %vm8713_vm3 = vmmov 0  }
   0xf   : > { %s13718_s25 = smov (!%p545_p3, %s7241_s25), 1 }
  0x10   : > { %s7501_s29 = sshll.u32 %s13718_s25, 8  ;;  %s552_s22 = scalar_lea.vmem %s13394_s16, %s13718_s25 }
  0x11   : > { %s11887_s23 = scalar_lea.vmem %s13395_s17, %s7501_s29 }
  0x13   : > { %v607_v0 = vld [vmem:[%s13503_s28] sm:$0xf] }
  0x14   : > { %7997 = vmatprep.subr.msk.bf16.mxu0 %vm689_vm0, %v607_v0  ;;  %v691_v1 = vsel %vm689_vm0, %v607_v0, 0  ;;  %s8823_s19 = scalar_lea.vmem %s13504_s18, %s7501_s29 }
  0x15   : > { %7668 = vmatpush3.bf16.msra.mxu0 %v691_v1  ;;  %v559_v2 = vld [vmem:[%s8823_s19] sm:$0xff]  ;;  %v560_v3 = vld [vmem:[%s8823_s19 + $0x8] sm:$0xff]  ;;  %v561_v4 = vld [vmem:[%s8823_s19 + $0x10] sm:$0xff] }
  0x16   : > { %v591_v5 = vpack.c.bf16 %v560_v3, %v559_v2  ;;  %v562_v6 = vld [vmem:[%s8823_s19 + $0x18] sm:$0xff]  ;;  %v563_v7 = vld [vmem:[%s8823_s19 + $0x20] sm:$0xff]  ;;  %v564_v8 = vld [vmem:[%s8823_s19 + $0x28] sm:$0xff] }
  0x17   : > { %v592_v9 = vpack.c.bf16 %v562_v6, %v561_v4  ;;  %v593_v10 = vpack.c.bf16 %v564_v8, %v563_v7  ;;  %v565_v11 = vld [vmem:[%s8823_s19 + $0x30] sm:$0xff]  ;;  %v566_v12 = vld [vmem:[%s8823_s19 + $0x38] sm:$0xff]  ;;  %v567_v13 = vld [vmem:[%s8823_s19 + $0x40] sm:$0xff] }
  0x18   : > { %7669 = vmatprep.mubr.msk.bf16.mxu0 %vm640_vm1, %v591_v5  ;;  %v568_v14 = vld [vmem:[%s8823_s19 + $0x48] sm:$0xff]  ;;  %v594_v15 = vpack.c.bf16 %v566_v12, %v565_v11  ;;  %v569_v17 = vld [vmem:[%s8823_s19 + $0x50] sm:$0xff]  ;;  %v570_v18 = vld [vmem:[%s8823_s19 + $0x58] sm:$0xff] }
  0x19   : > { %7670 = vmatmul.mubr.msk.bf16.vlgmr.msra.gmra.mxu0 %vm640_vm1, %v592_v9  ;;  %v595_v16 = vpack.c.bf16 %v568_v14, %v567_v13  ;;  %v571_v19 = vld [vmem:[%s8823_s19 + $0x60] sm:$0xff]  ;;  %v572_v20 = vld [vmem:[%s8823_s19 + $0x68] sm:$0xff]  ;;  %v596_v21 = vpack.c.bf16 %v570_v18, %v569_v17  ;;  %v573_v23 = vld [vmem:[%s8823_s19 + $0x70] sm:$0xff] }
  0x1a   : > { %7673 = vmatprep.mubr.msk.bf16.mxu0 %vm640_vm1, %v593_v10  ;;  %v597_v22 = vpack.c.bf16 %v572_v20, %v571_v19  ;;  %v574_v24 = vld [vmem:[%s8823_s19 + $0x78] sm:$0xff]  ;;  %v575_v25 = vld [vmem:[%s8823_s19 + $0x80] sm:$0xff]  ;;  %v576_v26 = vld [vmem:[%s8823_s19 + $0x88] sm:$0xff] }
  0x1b   : > { %v598_v27 = vpack.c.bf16 %v574_v24, %v573_v23  ;;  %v599_v28 = vpack.c.bf16 %v576_v26, %v575_v25  ;;  %v577_v29 = vld [vmem:[%s8823_s19 + $0x90] sm:$0xff]  ;;  %v578_v30 = vld [vmem:[%s8823_s19 + $0x98] sm:$0xff]  ;;  %v579_v31 = vld [vmem:[%s8823_s19 + $0xa0] sm:$0xff] }
  0x1c   : > { %v580_v32 = vld [vmem:[%s8823_s19 + $0xa8] sm:$0xff]  ;;  %v600_v33 = vpack.c.bf16 %v578_v30, %v577_v29  ;;  %v581_v35 = vld [vmem:[%s8823_s19 + $0xb0] sm:$0xff]  ;;  %v582_v36 = vld [vmem:[%s8823_s19 + $0xb8] sm:$0xff] }
  0x1d   : > { %v601_v34 = vpack.c.bf16 %v580_v32, %v579_v31  ;;  %v583_v37 = vld [vmem:[%s8823_s19 + $0xc0] sm:$0xff]  ;;  %v584_v38 = vld [vmem:[%s8823_s19 + $0xc8] sm:$0xff]  ;;  %v602_v39 = vpack.c.bf16 %v582_v36, %v581_v35  ;;  %v585_v41 = vld [vmem:[%s8823_s19 + $0xd0] sm:$0xff] }
  0x1e   : > { %v603_v40 = vpack.c.bf16 %v584_v38, %v583_v37  ;;  %v586_v42 = vld [vmem:[%s8823_s19 + $0xd8] sm:$0xff]  ;;  %v587_v43 = vld [vmem:[%s8823_s19 + $0xe0] sm:$0xff]  ;;  %v588_v44 = vld [vmem:[%s8823_s19 + $0xe8] sm:$0xff] }
  0x1f   : > { %v604_v45 = vpack.c.bf16 %v586_v42, %v585_v41  ;;  %v605_v46 = vpack.c.bf16 %v588_v44, %v587_v43  ;;  %v589_v47 = vld [vmem:[%s8823_s19 + $0xf0] sm:$0xff]  ;;  %v590_v48 = vld [vmem:[%s8823_s19 + $0xf8] sm:$0xff]  ;;  %v612_v6 = vld [vmem:[%s13380_s2 + $0x20] sm:$0xff] }
  0x20   : > { %v606_v49 = vpack.c.bf16 %v590_v48, %v589_v47  ;;  %v615_v7 = vld [vmem:[%s13380_s2 + $0x38] sm:$0xff]  ;;  %v613_v9 = vld [vmem:[%s13380_s2 + $0x28] sm:$0xff]  ;;  %v618_v14 = vld [vmem:[%s13380_s2 + $0x50] sm:$0xff] }
  0x21   : > { %7674 = vmatmul.mubr.msk.bf16.gmra.mxu0 %vm640_vm1, %v594_v15  ;;  %v617_v25 = vld [vmem:[%s13380_s2 + $0x48] sm:$0xff]  ;;  %v622_v30 = vld [vmem:[%s13380_s2 + $0x70] sm:$0xff]  ;;  %v620_v37 = vld [vmem:[%s13380_s2 + $0x60] sm:$0xff] }
  0x22   : > { %7677 = vmatprep.mubr.msk.bf16.mxu0 %vm640_vm1, %v595_v16  ;;  %v623_v38 = vld [vmem:[%s13380_s2 + $0x78] sm:$0xff]  ;;  %v621_v41 = vld [vmem:[%s13380_s2 + $0x68] sm:$0xff] }
  0x29   : > { %7678 = vmatmul.mubr.msk.bf16.gmra.mxu0 %vm640_vm1, %v596_v21  ;;  %v616_v21 = vld [vmem:[%s13380_s2 + $0x40] sm:$0xff] }
  0x2a   : > { %7681 = vmatprep.mubr.msk.bf16.mxu0 %vm640_vm1, %v597_v22  ;;  %v619_v22 = vld [vmem:[%s13380_s2 + $0x58] sm:$0xff] }
  0x31   : > { %7682 = vmatmul.mubr.msk.bf16.gmra.mxu0 %vm640_vm1, %v598_v27 }
  0x32   : > { %7685 = vmatprep.mubr.msk.bf16.mxu0 %vm640_vm1, %v599_v28 }
  0x39   : > { %7686 = vmatmul.mubr.msk.bf16.gmra.mxu0 %vm640_vm1, %v600_v33 }
  0x3a   : > { %7689 = vmatprep.mubr.msk.bf16.mxu0 %vm640_vm1, %v601_v34 }
  0x41   : > { %7690 = vmatmul.mubr.msk.bf16.gmra.mxu0 %vm640_vm1, %v602_v39 }
  0x42   : > { %7693 = vmatprep.mubr.msk.bf16.mxu0 %vm640_vm1, %v603_v40 }
  0x49   : > { %7694 = vmatmul.mubr.msk.bf16.gmra.mxu0 %vm640_vm1, %v604_v45 }
  0x4a   : > { %7697 = vmatprep.mubr.msk.bf16.mxu0 %vm640_vm1, %v605_v46  ;;  %v626_v46 = vld [vmem:[%s13380_s2 + $0x90] sm:$0xff] }
  0x51   : > { %7698 = vmatmul.mubr.msk.bf16.gmra.mxu0 %vm640_vm1, %v606_v49 }
  0xd9   : > { %v7671_v51 = vpop.f32.mrf.mxu0 }
  0xda   : > { %v8879_v53 = vadd.f32 %v7671_v51, %v610_v50 }
  0xdb   : > { %v727_v54 = vpop.f32.mrf.mxu0 }
  0xdc   : > { %v8884_v56 = vadd.f32 %v727_v54, %v608_v52  ;;  %v935_v57 = vsel %vm928_vm2, %v8879_v53, 0.0  ;;  %v624_v54 = vld [vmem:[%s13380_s2 + $0x80] sm:$0xff] }
  0xdd   : > { %936 = vadd.xlane.f32.xlu1 %v935_v57  ;;  %v7672_v58 = vpop.f32.mrf.mxu0 }
  0xde   : > { %v8891_v60 = vadd.f32 %v7672_v58, %v611_v55  ;;  %v929_v61 = vsel %vm928_vm2, %v8884_v56, 0.0  ;;  %v627_v55 = vld [vmem:[%s13380_s2 + $0x98] sm:$0xff] }
  0xdf   : > { %v730_v62 = vpop.f32.mrf.mxu0  ;;  %930 = vadd.xlane.f32.xlu0 %v929_v61 }
  0xe0   : > { %13505 = vst [vmem:[#allocation2_spill] sm:$0xff] %v8891_v60  ;;  %v8898_v0 = vadd.f32 %v730_v62, %v609_v59  ;;  %v938_v1 = vsel %vm928_vm2, %v8891_v60, 0.0  ;;  %v625_v59 = vld [vmem:[%s13380_s2 + $0x88] sm:$0xff] }
  0xe1   : > { %939 = vadd.xlane.f32.xlu1 %v938_v1  ;;  %v7675_v2 = vpop.f32.mrf.mxu0 }
  0xe2   : > { %v8902_v3 = vadd.f32 %v7675_v2, %v614_v63  ;;  %v932_v4 = vsel %vm928_vm2, %v8898_v0, 0.0  ;;  %v630_v2 = vld [vmem:[%s13380_s2 + $0xb0] sm:$0xff] }
  0xe3   : > { %v743_v5 = vpop.f32.mrf.mxu0  ;;  %933 = vadd.xlane.f32.xlu0 %v932_v4 }
  0xe4   : > { %13506 = vst [vmem:[#allocation3_spill] sm:$0xff] %v8902_v3  ;;  %v8915_v10 = vadd.f32 %v743_v5, %v612_v6  ;;  %v947_v12 = vsel %vm928_vm2, %v8902_v3, 0.0 }
  0xe5   : > { %v7676_v8 = vpop.f32.mrf.mxu0 }
  0xe6   : > { %13507 = vst [vmem:[#allocation4_spill] sm:$0xff] %v8915_v10  ;;  %v8917_v11 = vadd.f32 %v7676_v8, %v615_v7  ;;  %v941_v19 = vsel %vm928_vm2, %v8915_v10, 0.0 }
  0xe7   : > { %v746_v13 = vpop.f32.mrf.mxu0  ;;  %948 = vadd.xlane.f32.xlu0 %v947_v12  ;;  %v628_v12 = vld [vmem:[%s13380_s2 + $0xa0] sm:$0xff] }
  0xe8   : > { %13508 = vst [vmem:[#allocation5_spill] sm:$0xff] %v8917_v11  ;;  %v8924_v15 = vadd.f32 %v746_v13, %v613_v9  ;;  %v950_v16 = vsel %vm928_vm2, %v8917_v11, 0.0  ;;  %v631_v13 = vld [vmem:[%s13380_s2 + $0xb8] sm:$0xff] }
  0xe9   : > { %951 = vadd.xlane.f32.xlu1 %v950_v16  ;;  %v7679_v17 = vpop.f32.mrf.mxu0 }
  0xea   : > { %13509 = vst [vmem:[#allocation6_spill] sm:$0xff] %v8924_v15  ;;  %v8928_v18 = vadd.f32 %v7679_v17, %v618_v14  ;;  %v944_v23 = vsel %vm928_vm2, %v8924_v15, 0.0  ;;  %v629_v17 = vld [vmem:[%s13380_s2 + $0xa8] sm:$0xff] }
  0xeb   : > { %v759_v20 = vpop.f32.mrf.mxu0  ;;  %942 = vadd.xlane.f32.xlu0 %v941_v19 }
  0xec   : > { %13510 = vst [vmem:[#allocation7_spill] sm:$0xff] %v8928_v18  ;;  %v8943_v26 = vadd.f32 %v759_v20, %v616_v21  ;;  %v959_v28 = vsel %vm928_vm2, %v8928_v18, 0.0 }
  0xed   : > { %v7680_v24 = vpop.f32.mrf.mxu0  ;;  %945 = vadd.xlane.f32.xlu1 %v944_v23  ;;  %v634_v23 = vld [vmem:[%s13380_s2 + $0xd0] sm:$0xff] }
  0xee   : > { %13511 = vst [vmem:[#allocation8_spill] sm:$0xff] %v8943_v26  ;;  %v8945_v27 = vadd.f32 %v7680_v24, %v619_v22  ;;  %v953_v35 = vsel %vm928_vm2, %v8943_v26, 0.0 }
  0xef   : > { %v762_v29 = vpop.f32.mrf.mxu0  ;;  %960 = vadd.xlane.f32.xlu0 %v959_v28 }
  0xf0   : > { %13512 = vst [vmem:[#allocation9_spill] sm:$0xff] %v8945_v27  ;;  %v8952_v31 = vadd.f32 %v762_v29, %v617_v25  ;;  %v962_v32 = vsel %vm928_vm2, %v8945_v27, 0.0 }
  0xf1   : > { %v7683_v33 = vpop.f32.mrf.mxu0  ;;  %963 = vadd.xlane.f32.xlu1 %v962_v32 }
  0xf2   : > { %13513 = vst [vmem:[#allocation10_spill] sm:$0xff] %v8952_v31  ;;  %v8956_v34 = vadd.f32 %v7683_v33, %v622_v30  ;;  %v956_v39 = vsel %vm928_vm2, %v8952_v31, 0.0  ;;  %v632_v33 = vld [vmem:[%s13380_s2 + $0xc0] sm:$0xff] }
  0xf3   : > { %v775_v36 = vpop.f32.mrf.mxu0  ;;  %954 = vadd.xlane.f32.xlu0 %v953_v35  ;;  %v635_v35 = vld [vmem:[%s13380_s2 + $0xd8] sm:$0xff] }
  0xf4   : > { %13514 = vst [vmem:[#allocation11_spill] sm:$0xff] %v8956_v34  ;;  %v8971_v42 = vadd.f32 %v775_v36, %v620_v37  ;;  %v971_v44 = vsel %vm928_vm2, %v8956_v34, 0.0 }
  0xf5   : > { %v7684_v40 = vpop.f32.mrf.mxu0  ;;  %957 = vadd.xlane.f32.xlu1 %v956_v39 }
  0xf6   : > { %13515 = vst [vmem:[#allocation12_spill] sm:$0xff] %v8971_v42  ;;  %v8973_v43 = vadd.f32 %v7684_v40, %v623_v38  ;;  %v965_v51 = vsel %vm928_vm2, %v8971_v42, 0.0  ;;  %v633_v38 = vld [vmem:[%s13380_s2 + $0xc8] sm:$0xff] }
  0xf7   : > { %v778_v45 = vpop.f32.mrf.mxu0  ;;  %972 = vadd.xlane.f32.xlu0 %v971_v44 }
  0xf8   : > { %13516 = vst [vmem:[#allocation13_spill] sm:$0xff] %v8973_v43  ;;  %v8980_v47 = vadd.f32 %v778_v45, %v621_v41  ;;  %v974_v48 = vsel %vm928_vm2, %v8973_v43, 0.0 }
  0xf9   : > { %v7687_v49 = vpop.f32.mrf.mxu0  ;;  %975 = vadd.xlane.f32.xlu1 %v974_v48 }
  0xfa   : > { %13517 = vst [vmem:[#allocation14_spill] sm:$0xff] %v8980_v47  ;;  %v8984_v50 = vadd.f32 %v7687_v49, %v626_v46  ;;  %v968_v57 = vsel %vm928_vm2, %v8980_v47, 0.0  ;;  %v636_v49 = vld [vmem:[%s13380_s2 + $0xe0] sm:$0xff] }
  0xfb   : > { %v791_v52 = vpop.f32.mrf.mxu0  ;;  %966 = vadd.xlane.f32.xlu0 %v965_v51 }
  0xfc   : > { %13518 = vst [vmem:[#allocation15_spill] sm:$0xff] %v8984_v50  ;;  %v8999_v61 = vadd.f32 %v791_v52, %v624_v54  ;;  %v983_v63 = vsel %vm928_vm2, %v8984_v50, 0.0  ;;  %v638_v52 = vld [vmem:[%s13380_s2 + $0xf0] sm:$0xff] }
  0xfd   : > { %v7688_v58 = vpop.f32.mrf.mxu0  ;;  %969 = vadd.xlane.f32.xlu1 %v968_v57 }
  0xfe   : > { %13519 = vst [vmem:[#allocation16_spill] sm:$0xff] %v8999_v61  ;;  %v9001_v62 = vadd.f32 %v7688_v58, %v627_v55  ;;  %v977_v8 = vsel %vm928_vm2, %v8999_v61, 0.0 }
  0xff   : > { %v794_v1 = vpop.f32.mrf.mxu0  ;;  %984 = vadd.xlane.f32.xlu0 %v983_v63 }
 0x100   : > { %13520 = vst [vmem:[#allocation17_spill] sm:$0xff] %v9001_v62  ;;  %v9008_v4 = vadd.f32 %v794_v1, %v625_v59  ;;  %v986_v5 = vsel %vm928_vm2, %v9001_v62, 0.0  ;;  %v637_v59 = vld [vmem:[%s13380_s2 + $0xe8] sm:$0xff] }
 0x101   : > { %v7691_v6 = vpop.f32.mrf.mxu0  ;;  %987 = vadd.xlane.f32.xlu1 %v986_v5 }
 0x102   : > { %13521 = vst [vmem:[#allocation18_spill] sm:$0xff] %v9008_v4  ;;  %v9012_v7 = vadd.f32 %v7691_v6, %v630_v2  ;;  %v980_v14 = vsel %vm928_vm2, %v9008_v4, 0.0  ;;  %v639_v2 = vld [vmem:[%s13380_s2 + $0xf8] sm:$0xff] }
 0x103   : > { %v807_v9 = vpop.f32.mrf.mxu0  ;;  %978 = vadd.xlane.f32.xlu0 %v977_v8 }
 0x104   : > { %13522 = vst [vmem:[#allocation19_spill] sm:$0xff] %v9012_v7  ;;  %v9027_v19 = vadd.f32 %v807_v9, %v628_v12  ;;  %v995_v21 = vsel %vm928_vm2, %v9012_v7, 0.0 }
 0x105   : > { %v7692_v16 = vpop.f32.mrf.mxu0  ;;  %981 = vadd.xlane.f32.xlu1 %v980_v14 }
 0x106   : > { %13523 = vst [vmem:[#allocation20_spill] sm:$0xff] %v9027_v19  ;;  %v9029_v20 = vadd.f32 %v7692_v16, %v631_v13  ;;  %v989_v30 = vsel %vm928_vm2, %v9027_v19, 0.0 }
 0x107   : > { %v810_v22 = vpop.f32.mrf.mxu0  ;;  %996 = vadd.xlane.f32.xlu0 %v995_v21 }
 0x108   : > { %13524 = vst [vmem:[#allocation21_spill] sm:$0xff] %v9029_v20  ;;  %v9036_v24 = vadd.f32 %v810_v22, %v629_v17  ;;  %v998_v25 = vsel %vm928_vm2, %v9029_v20, 0.0 }
 0x109   : > { %v7695_v28 = vpop.f32.mrf.mxu0  ;;  %999 = vadd.xlane.f32.xlu1 %v998_v25 }
 0x10a   : > { %13525 = vst [vmem:[#allocation22_spill] sm:$0xff] %v9036_v24  ;;  %v9040_v29 = vadd.f32 %v7695_v28, %v634_v23  ;;  %v992_v36 = vsel %vm928_vm2, %v9036_v24, 0.0 }
 0x10b   : > { %v823_v32 = vpop.f32.mrf.mxu0  ;;  %990 = vadd.xlane.f32.xlu0 %v989_v30 }
 0x10c   : > { %13526 = vst [vmem:[#allocation23_spill] sm:$0xff] %v9040_v29  ;;  %v9055_v39 = vadd.f32 %v823_v32, %v632_v33  ;;  %v1007_v41 = vsel %vm928_vm2, %v9040_v29, 0.0 }
 0x10d   : > { %v7696_v37 = vpop.f32.mrf.mxu0  ;;  %993 = vadd.xlane.f32.xlu1 %v992_v36 }
 0x10e   : > { %13527 = vst [vmem:[#allocation24_spill] sm:$0xff] %v9055_v39  ;;  %v9057_v40 = vadd.f32 %v7696_v37, %v635_v35  ;;  %v1001_v51 = vsel %vm928_vm2, %v9055_v39, 0.0 }
 0x10f   : > { %v826_v44 = vpop.f32.mrf.mxu0  ;;  %1008 = vadd.xlane.f32.xlu0 %v1007_v41 }
 0x110   : > { %13528 = vst [vmem:[#allocation25_spill] sm:$0xff] %v9057_v40  ;;  %v9061_v45 = vadd.f32 %v826_v44, %v633_v38  ;;  %v1010_v46 = vsel %vm928_vm2, %v9057_v40, 0.0 }
 0x111   : > { %v7699_v48 = vpop.f32.mrf.mxu0  ;;  %1011 = vadd.xlane.f32.xlu1 %v1010_v46 }
 0x112   : > { %13529 = vst [vmem:[#allocation26_spill] sm:$0xff] %v9061_v45  ;;  %v1004_v57 = vsel %vm928_vm2, %v9061_v45, 0.0  ;;  %v9080_v63 = vadd.f32 %v7699_v48, %v638_v52 }
 0x113   : > { %v839_v54 = vpop.f32.mrf.mxu0  ;;  %1002 = vadd.xlane.f32.xlu0 %v1001_v51 }
 0x114   : > { %v9073_v55 = vadd.f32 %v839_v54, %v636_v49  ;;  %13531 = vst [vmem:[#allocation28_spill] sm:$0xff] %v9080_v63  ;;  %v1019_v12 = vsel %vm928_vm2, %v9080_v63, 0.0 }
 0x115   : > { %v7700_v58 = vpop.f32.mrf.mxu0  ;;  %1005 = vadd.xlane.f32.xlu1 %v1004_v57 }
 0x116   : > { %13530 = vst [vmem:[#allocation27_spill] sm:$0xff] %v9073_v55  ;;  %v1013_v1 = vsel %vm928_vm2, %v9073_v55, 0.0  ;;  %v9089_v8 = vadd.f32 %v7700_v58, %v639_v2 }
 0x117   : > { %v842_v5 = vpop.f32.mrf.mxu0  ;;  %1014 = vadd.xlane.f32.xlu0 %v1013_v1 }
 0x118   : > { %v9087_v6 = vadd.f32 %v842_v5, %v637_v59  ;;  %13533 = vst [vmem:[#allocation30_spill] sm:$0xff] %v9089_v8  ;;  %v1022_v13 = vsel %vm928_vm2, %v9089_v8, 0.0 }
 0x11a   : > { %13532 = vst [vmem:[#allocation29_spill] sm:$0xff] %v9087_v6  ;;  %v1016_v9 = vsel %vm928_vm2, %v9087_v6, 0.0 }
 0x11b   : > { %1017 = vadd.xlane.f32.xlu1 %v1016_v9  ;;  %1020 = vadd.xlane.f32.xlu0 %v1019_v12 }
 0x11f   : > { %1023 = vadd.xlane.f32.xlu1 %v1022_v13 }
 0x166   : > { %v937_v14 = vpop.xlane.xlu1 %936 }
 0x167   : > { %v1028_v16 = vmul.f32 0.03125, %v937_v14 }
 0x168   : > { %v931_v17 = vpop.xlane.xlu0 %930 }
 0x169   : > { %v9098_v21 = vsub.f32 %v8879_v53, %v1028_v16  ;;  %v1026_v22 = vmul.f32 0.03125, %v931_v17 }
 0x16a   : > { %v940_v23 = vpop.xlane.xlu1 %939 }
 0x16b   : > { %v9101_v25 = vsub.f32 %v8884_v56, %v1026_v22  ;;  %v1029_v28 = vmul.f32 0.03125, %v940_v23  ;;  %v1092_v30 = vmul.f32 %v9098_v21, %v9098_v21 }
 0x16c   : > { %v934_v32 = vpop.xlane.xlu0 %933 }
 0x16d   : > { %v9106_v33 = vsub.f32 %v8891_v60, %v1029_v28  ;;  %v1027_v35 = vmul.f32 0.03125, %v934_v32  ;;  %v1128_v36 = vsel %vm928_vm2, %v1092_v30, 0.0  ;;  %v1090_v37 = vmul.f32 %v9101_v25, %v9101_v25 }
 0x16e   : > { %1129 = vadd.xlane.f32.xlu0 %v1128_v36 }
 0x16f   : > { %v9112_v38 = vsub.f32 %v8898_v0, %v1027_v35  ;;  %v1093_v41 = vmul.f32 %v9106_v33, %v9106_v33  ;;  %v1122_v49 = vsel %vm928_vm2, %v1090_v37, 0.0 }
 0x170   : > { %v949_v44 = vpop.xlane.xlu0 %948 }
 0x171   : > { %v1032_v46 = vmul.f32 0.03125, %v949_v44  ;;  %v1131_v48 = vsel %vm928_vm2, %v1093_v41, 0.0  ;;  %v1091_v51 = vmul.f32 %v9112_v38, %v9112_v38 }
 0x172   : > { %v952_v52 = vpop.xlane.xlu1 %951  ;;  %1132 = vadd.xlane.f32.xlu1 %v1131_v48  ;;  %1123 = vadd.xlane.f32.xlu0 %v1122_v49 }
 0x173   : > { %v9121_v54 = vsub.f32 %v8902_v3, %v1032_v46  ;;  %v1033_v57 = vmul.f32 0.03125, %v952_v52  ;;  %v1125_v2 = vsel %vm928_vm2, %v1091_v51, 0.0 }
 0x174   : > { %v943_v58 = vpop.xlane.xlu0 %942 }
 0x175   : > { %v9124_v59 = vsub.f32 %v8917_v11, %v1033_v57  ;;  %v1030_v1 = vmul.f32 0.03125, %v943_v58  ;;  %v1096_v5 = vmul.f32 %v9121_v54, %v9121_v54 }
 0x176   : > { %v946_v9 = vpop.xlane.xlu1 %945  ;;  %1126 = vadd.xlane.f32.xlu1 %v1125_v2 }
 0x177   : > { %v9130_v12 = vsub.f32 %v8915_v10, %v1030_v1  ;;  %v1031_v13 = vmul.f32 0.03125, %v946_v9  ;;  %v1140_v14 = vsel %vm928_vm2, %v1096_v5, 0.0  ;;  %v1097_v16 = vmul.f32 %v9124_v59, %v9124_v59 }
 0x178   : > { %1141 = vadd.xlane.f32.xlu0 %v1140_v14  ;;  %v961_v17 = vpop.xlane.xlu0 %960 }
 0x179   : > { %v9136_v22 = vsub.f32 %v8924_v15, %v1031_v13  ;;  %v1036_v23 = vmul.f32 0.03125, %v961_v17  ;;  %v1143_v28 = vsel %vm928_vm2, %v1097_v16, 0.0  ;;  %v1094_v30 = vmul.f32 %v9130_v12, %v9130_v12 }
 0x17a   : > { %v964_v32 = vpop.xlane.xlu1 %963  ;;  %1144 = vadd.xlane.f32.xlu1 %v1143_v28 }
 0x17b   : > { %v9142_v35 = vsub.f32 %v8928_v18, %v1036_v23  ;;  %v1037_v36 = vmul.f32 0.03125, %v964_v32  ;;  %v1134_v37 = vsel %vm928_vm2, %v1094_v30, 0.0  ;;  %v1095_v41 = vmul.f32 %v9136_v22, %v9136_v22 }
 0x17c   : > { %1135 = vadd.xlane.f32.xlu0 %v1134_v37  ;;  %v955_v44 = vpop.xlane.xlu0 %954 }
 0x17d   : > { %v9148_v46 = vsub.f32 %v8945_v27, %v1037_v36  ;;  %v1034_v48 = vmul.f32 0.03125, %v955_v44  ;;  %v1137_v49 = vsel %vm928_vm2, %v1095_v41, 0.0  ;;  %v1100_v51 = vmul.f32 %v9142_v35, %v9142_v35 }
 0x17e   : > { %v958_v52 = vpop.xlane.xlu1 %957  ;;  %1138 = vadd.xlane.f32.xlu1 %v1137_v49 }
 0x17f   : > { %v9154_v57 = vsub.f32 %v8943_v26, %v1034_v48  ;;  %v1035_v58 = vmul.f32 0.03125, %v958_v52  ;;  %v1152_v1 = vsel %vm928_vm2, %v1100_v51, 0.0  ;;  %v1101_v2 = vmul.f32 %v9148_v46, %v9148_v46 }
 0x180   : > { %1153 = vadd.xlane.f32.xlu0 %v1152_v1  ;;  %v973_v5 = vpop.xlane.xlu0 %972 }
 0x181   : > { %v9160_v9 = vsub.f32 %v8952_v31, %v1035_v58  ;;  %v1040_v13 = vmul.f32 0.03125, %v973_v5  ;;  %v1155_v14 = vsel %vm928_vm2, %v1101_v2, 0.0  ;;  %v1098_v16 = vmul.f32 %v9154_v57, %v9154_v57 }
 0x182   : > { %v976_v17 = vpop.xlane.xlu1 %975  ;;  %1156 = vadd.xlane.f32.xlu1 %v1155_v14 }
 0x183   : > { %v9166_v23 = vsub.f32 %v8956_v34, %v1040_v13  ;;  %v1041_v28 = vmul.f32 0.03125, %v976_v17  ;;  %v1146_v30 = vsel %vm928_vm2, %v1098_v16, 0.0  ;;  %v1099_v32 = vmul.f32 %v9160_v9, %v9160_v9 }
 0x184   : > { %1147 = vadd.xlane.f32.xlu0 %v1146_v30  ;;  %v967_v36 = vpop.xlane.xlu0 %966 }
 0x185   : > { %v9172_v37 = vsub.f32 %v8973_v43, %v1041_v28  ;;  %v1038_v41 = vmul.f32 0.03125, %v967_v36  ;;  %v1149_v44 = vsel %vm928_vm2, %v1099_v32, 0.0  ;;  %v1104_v48 = vmul.f32 %v9166_v23, %v9166_v23 }
 0x186   : > { %v970_v49 = vpop.xlane.xlu1 %969  ;;  %1150 = vadd.xlane.f32.xlu1 %v1149_v44 }
 0x187   : > { %v9178_v51 = vsub.f32 %v8971_v42, %v1038_v41  ;;  %v1039_v52 = vmul.f32 0.03125, %v970_v49  ;;  %v1164_v58 = vsel %vm928_vm2, %v1104_v48, 0.0  ;;  %v1105_v1 = vmul.f32 %v9172_v37, %v9172_v37 }
 0x188   : > { %1165 = vadd.xlane.f32.xlu0 %v1164_v58  ;;  %v985_v2 = vpop.xlane.xlu0 %984 }
 0x189   : > { %v9184_v5 = vsub.f32 %v8980_v47, %v1039_v52  ;;  %v1044_v13 = vmul.f32 0.03125, %v985_v2  ;;  %v1167_v14 = vsel %vm928_vm2, %v1105_v1, 0.0  ;;  %v1102_v16 = vmul.f32 %v9178_v51, %v9178_v51 }
 0x18a   : > { %v988_v17 = vpop.xlane.xlu1 %987  ;;  %1168 = vadd.xlane.f32.xlu1 %v1167_v14 }
 0x18b   : > { %v9190_v28 = vsub.f32 %v8984_v50, %v1044_v13  ;;  %v1045_v30 = vmul.f32 0.03125, %v988_v17  ;;  %v1158_v32 = vsel %vm928_vm2, %v1102_v16, 0.0  ;;  %v1103_v36 = vmul.f32 %v9184_v5, %v9184_v5 }
 0x18c   : > { %1159 = vadd.xlane.f32.xlu0 %v1158_v32  ;;  %v979_v41 = vpop.xlane.xlu0 %978 }
 0x18d   : > { %v9196_v44 = vsub.f32 %v9001_v62, %v1045_v30  ;;  %v1042_v48 = vmul.f32 0.03125, %v979_v41  ;;  %v1161_v49 = vsel %vm928_vm2, %v1103_v36, 0.0  ;;  %v1108_v52 = vmul.f32 %v9190_v28, %v9190_v28 }
 0x18e   : > { %v982_v58 = vpop.xlane.xlu1 %981  ;;  %1162 = vadd.xlane.f32.xlu1 %v1161_v49 }
 0x18f   : > { %v9202_v1 = vsub.f32 %v8999_v61, %v1042_v48  ;;  %v1043_v2 = vmul.f32 0.03125, %v982_v58  ;;  %v1176_v13 = vsel %vm928_vm2, %v1108_v52, 0.0  ;;  %v1109_v14 = vmul.f32 %v9196_v44, %v9196_v44 }
 0x190   : > { %1177 = vadd.xlane.f32.xlu0 %v1176_v13  ;;  %v997_v16 = vpop.xlane.xlu0 %996 }
 0x191   : > { %v9208_v17 = vsub.f32 %v9008_v4, %v1043_v2  ;;  %v1048_v30 = vmul.f32 0.03125, %v997_v16  ;;  %v1179_v32 = vsel %vm928_vm2, %v1109_v14, 0.0  ;;  %v1106_v36 = vmul.f32 %v9202_v1, %v9202_v1 }
 0x192   : > { %v1000_v41 = vpop.xlane.xlu1 %999  ;;  %1180 = vadd.xlane.f32.xlu1 %v1179_v32 }
 0x193   : > { %v9214_v48 = vsub.f32 %v9012_v7, %v1048_v30  ;;  %v1049_v49 = vmul.f32 0.03125, %v1000_v41  ;;  %v1170_v52 = vsel %vm928_vm2, %v1106_v36, 0.0  ;;  %v1107_v58 = vmul.f32 %v9208_v17, %v9208_v17 }
 0x194   : > { %1171 = vadd.xlane.f32.xlu0 %v1170_v52  ;;  %v991_v2 = vpop.xlane.xlu0 %990 }
 0x195   : > { %v9220_v13 = vsub.f32 %v9029_v20, %v1049_v49  ;;  %v1046_v14 = vmul.f32 0.03125, %v991_v2  ;;  %v1173_v16 = vsel %vm928_vm2, %v1107_v58, 0.0  ;;  %v1112_v32 = vmul.f32 %v9214_v48, %v9214_v48 }
 0x196   : > { %v994_v62 = vpop.xlane.xlu1 %993  ;;  %1174 = vadd.xlane.f32.xlu1 %v1173_v16 }
 0x197   : > { %v9226_v30 = vsub.f32 %v9027_v19, %v1046_v14  ;;  %v1047_v36 = vmul.f32 0.03125, %v994_v62  ;;  %v1188_v41 = vsel %vm928_vm2, %v1112_v32, 0.0  ;;  %v1113_v52 = vmul.f32 %v9220_v13, %v9220_v13 }
 0x198   : > { %1189 = vadd.xlane.f32.xlu0 %v1188_v41  ;;  %v1009_v49 = vpop.xlane.xlu0 %1008 }
 0x199   : > { %v9232_v2 = vsub.f32 %v9036_v24, %v1047_v36  ;;  %v1052_v58 = vmul.f32 0.03125, %v1009_v49  ;;  %v1191_v20 = vsel %vm928_vm2, %v1113_v52, 0.0  ;;  %v1110_v16 = vmul.f32 %v9226_v30, %v9226_v30 }
 0x19a   : > { %v1012_v7 = vpop.xlane.xlu1 %1011  ;;  %1192 = vadd.xlane.f32.xlu1 %v1191_v20 }
 0x19b   : > { %v9238_v62 = vsub.f32 %v9040_v29, %v1052_v58  ;;  %v1053_v14 = vmul.f32 0.03125, %v1012_v7  ;;  %v1182_v32 = vsel %vm928_vm2, %v1110_v16, 0.0  ;;  %v1111_v41 = vmul.f32 %v9232_v2, %v9232_v2 }
 0x19c   : > { %1183 = vadd.xlane.f32.xlu0 %v1182_v32  ;;  %v1003_v36 = vpop.xlane.xlu0 %1002 }
 0x19d   : > { %v9244_v49 = vsub.f32 %v9057_v40, %v1053_v14  ;;  %v1050_v52 = vmul.f32 0.03125, %v1003_v36  ;;  %v1185_v24 = vsel %vm928_vm2, %v1111_v41, 0.0  ;;  %v1116_v20 = vmul.f32 %v9238_v62, %v9238_v62 }
 0x19e   : > { %v1006_v19 = vpop.xlane.xlu1 %1005  ;;  %1186 = vadd.xlane.f32.xlu1 %v1185_v24 }
 0x19f   : > { %v9250_v7 = vsub.f32 %v9055_v39, %v1050_v52  ;;  %v1051_v58 = vmul.f32 0.03125, %v1006_v19  ;;  %v1200_v16 = vsel %vm928_vm2, %v1116_v20, 0.0  ;;  %v1117_v32 = vmul.f32 %v9244_v49, %v9244_v49 }
 0x1a0   : > { %1201 = vadd.xlane.f32.xlu0 %v1200_v16  ;;  %v1015_v14 = vpop.xlane.xlu0 %1014 }
 0x1a1   : > { %v9256_v36 = vsub.f32 %v9061_v45, %v1051_v58  ;;  %v1054_v41 = vmul.f32 0.03125, %v1015_v14  ;;  %v1203_v40 = vsel %vm928_vm2, %v1117_v32, 0.0  ;;  %v1114_v24 = vmul.f32 %v9250_v7, %v9250_v7 }
 0x1a2   : > { %1204 = vadd.xlane.f32.xlu1 %v1203_v40 }
 0x1a3   : > { %v9262_v52 = vsub.f32 %v9073_v55, %v1054_v41  ;;  %v1194_v19 = vsel %vm928_vm2, %v1114_v24, 0.0  ;;  %v1115_v20 = vmul.f32 %v9256_v36, %v9256_v36 }
 0x1a4   : > { %v1018_v16 = vpop.xlane.xlu1 %1017  ;;  %1195 = vadd.xlane.f32.xlu0 %v1194_v19  ;;  %v1021_v29 = vpop.xlane.xlu0 %1020 }
 0x1a5   : > { %v1055_v58 = vmul.f32 0.03125, %v1018_v16  ;;  %v1056_v45 = vmul.f32 0.03125, %v1021_v29  ;;  %v1197_v14 = vsel %vm928_vm2, %v1115_v20, 0.0  ;;  %v1118_v32 = vmul.f32 %v9262_v52, %v9262_v52 }
 0x1a6   : > { %1198 = vadd.xlane.f32.xlu1 %v1197_v14 }
 0x1a7   : > { %v9271_v40 = vsub.f32 %v9087_v6, %v1055_v58  ;;  %v9274_v41 = vsub.f32 %v9080_v63, %v1056_v45  ;;  %v1206_v24 = vsel %vm928_vm2, %v1118_v32, 0.0 }
 0x1a8   : > { %v1024_v55 = vpop.xlane.xlu1 %1023  ;;  %1207 = vadd.xlane.f32.xlu0 %v1206_v24 }
 0x1a9   : > { %v1057_v19 = vmul.f32 0.03125, %v1024_v55  ;;  %v1119_v29 = vmul.f32 %v9271_v40, %v9271_v40  ;;  %v1120_v20 = vmul.f32 %v9274_v41, %v9274_v41 }
 0x1ab   : > { %v9282_v16 = vsub.f32 %v9089_v8, %v1057_v19  ;;  %v1209_v58 = vsel %vm928_vm2, %v1119_v29, 0.0  ;;  %v1212_v14 = vsel %vm928_vm2, %v1120_v20, 0.0 }
 0x1ac   : > { %1210 = vadd.xlane.f32.xlu1 %v1209_v58  ;;  %1213 = vadd.xlane.f32.xlu0 %v1212_v14 }
 0x1ad   : > { %v1121_v45 = vmul.f32 %v9282_v16, %v9282_v16 }
 0x1af   : > { %v1215_v55 = vsel %vm928_vm2, %v1121_v45, 0.0 }
 0x1b0   : > { %1216 = vadd.xlane.f32.xlu1 %v1215_v55 }
 0x1f7   : > { %v1130_v32 = vpop.xlane.xlu0 %1129 }
 0x1f8   : > { %v1220_v6 = vmul.f32 0.03125, %v1130_v32 }
 0x1fa   : > { %v1252_v4 = vadd.f32 1e-05, %v1220_v6 }
 0x1fb   : > { %v1133_v24 = vpop.xlane.xlu1 %1132  ;;  %v1124_v63 = vpop.xlane.xlu0 %1123 }
 0x1fc   : > { %8119 = vrsqrt.f32 %v1252_v4  ;;  %v1221_v29 = vmul.f32 0.03125, %v1133_v24  ;;  %v1218_v20 = vmul.f32 0.03125, %v1124_v63 }
 0x1fe   : > { %v1253_v61 = vadd.f32 1e-05, %v1221_v29  ;;  %v1250_v34 = vadd.f32 1e-05, %v1218_v20 }
 0x1ff   : > { %v1127_v39 = vpop.xlane.xlu1 %1126 }
 0x200   : > { %v1219_v14 = vmul.f32 0.03125, %v1127_v39  ;;  %8121 = vrsqrt.f32 %v1253_v61 }
 0x201   : > { %v1142_v19 = vpop.xlane.xlu0 %1141  ;;  %8123 = vrsqrt.f32 %v1250_v34  ;;  %v9293_v34 = vld [vmem:[%s13384_s6] ss:$0 sm:$0xff] }
 0x202   : > { %v1224_v43 = vmul.f32 0.03125, %v1142_v19  ;;  %v1251_v27 = vadd.f32 1e-05, %v1219_v14 }
 0x203   : > { %v1145_v8 = vpop.xlane.xlu1 %1144 }
 0x204   : > { %v1225_v45 = vmul.f32 0.03125, %v1145_v8  ;;  %v1256_v31 = vadd.f32 1e-05, %v1224_v43  ;;  %8125 = vrsqrt.f32 %v1251_v27 }
 0x205   : > { %v1136_v50 = vpop.xlane.xlu0 %1135 }
 0x206   : > { %v1222_v55 = vmul.f32 0.03125, %v1136_v50  ;;  %v1257_v18 = vadd.f32 1e-05, %v1225_v45  ;;  %8127 = vrsqrt.f32 %v1256_v31 }
 0x207   : > { %v1139_v58 = vpop.xlane.xlu1 %1138 }
 0x208   : > { %v1223_v32 = vmul.f32 0.03125, %v1139_v58  ;;  %v1254_v4 = vadd.f32 1e-05, %v1222_v55  ;;  %8129 = vrsqrt.f32 %v1257_v18 }
 0x209   : > { %v1154_v47 = vpop.xlane.xlu0 %1153  ;;  %v8120_v19 = vpop.eup %8119 }
 0x20a   : > { %v1255_v63 = vadd.f32 1e-05, %v1223_v32  ;;  %v1228_v39 = vmul.f32 0.03125, %v1154_v47  ;;  %8131 = vrsqrt.f32 %v1254_v4  ;;  %v1316_v50 = vmul.f32 %v8120_v19, %v9098_v21  ;;  %v9299_v21 = vld [vmem:[%s13385_s7] ss:$0 sm:$0xff] }
 0x20b   : > { %v1157_v42 = vpop.xlane.xlu1 %1156 }
 0x20c   : > { %8133 = vrsqrt.f32 %v1255_v63  ;;  %v1260_v20 = vadd.f32 1e-05, %v1228_v39  ;;  %v1229_v61 = vmul.f32 0.03125, %v1157_v42  ;;  %v1354_v47 = vmul.f32 %v9293_v34, %v1316_v50 }
 0x20d   : > { %v1148_v6 = vpop.xlane.xlu0 %1147  ;;  %v8122_v45 = vpop.eup %8121 }
 0x20e   : > { %v1226_v27 = vmul.f32 0.03125, %v1148_v6  ;;  %8135 = vrsqrt.f32 %v1260_v20  ;;  %v1261_v18 = vadd.f32 1e-05, %v1229_v61  ;;  %v8124_v32 = vpop.eup %8123  ;;  %v9302_v19 = vadd.f32 %v9299_v21, %v1354_v47 }
 0x20f   : > { %v1151_v24 = vpop.xlane.xlu1 %1150  ;;  %v1317_v50 = vmul.f32 %v8122_v45, %v9106_v33  ;;  %v1314_v11 = vmul.f32 %v8124_v32, %v9101_v25 }
 0x210   : > { %v1227_v58 = vmul.f32 0.03125, %v1151_v24  ;;  %v1258_v42 = vadd.f32 1e-05, %v1226_v27  ;;  %8137 = vrsqrt.f32 %v1261_v18  ;;  %v9308_v33 = vsel %vm928_vm2, %v9302_v19, -inf }
 0x211   : > { %v1166_v29 = vpop.xlane.xlu0 %1165  ;;  %v8126_v24 = vpop.eup %8125 }
 0x212   : > { %v1232_v55 = vmul.f32 0.03125, %v1166_v29  ;;  %v1259_v4 = vadd.f32 1e-05, %v1227_v58  ;;  %8139 = vrsqrt.f32 %v1258_v42  ;;  %v1352_v42 = vmul.f32 %v9293_v34, %v1314_v11 }
 0x213   : > { %v1169_v8 = vpop.xlane.xlu1 %1168  ;;  %v8128_v26 = vpop.eup %8127 }
 0x214   : > { %v1233_v63 = vmul.f32 0.03125, %v1169_v8  ;;  %v1264_v27 = vadd.f32 1e-05, %v1232_v55  ;;  %8141 = vrsqrt.f32 %v1259_v4  ;;  %v1315_v55 = vmul.f32 %v8126_v24, %v9112_v38 }
 0x215   : > { %v1160_v43 = vpop.xlane.xlu0 %1159  ;;  %v8130_v29 = vpop.eup %8129  ;;  %v1320_v32 = vmul.f32 %v8128_v26, %v9121_v54  ;;  %v9321_v26 = vadd.f32 %v9299_v21, %v1352_v42 }
 0x216   : > { %v1230_v6 = vmul.f32 0.03125, %v1160_v43  ;;  %v1265_v58 = vadd.f32 1e-05, %v1233_v63  ;;  %8143 = vrsqrt.f32 %v1264_v27  ;;  %v1321_v4 = vmul.f32 %v8130_v29, %v9124_v59 }
 0x217   : > { %v1163_v31 = vpop.xlane.xlu1 %1162  ;;  %v8132_v43 = vpop.eup %8131  ;;  %v1353_v27 = vmul.f32 %v9293_v34, %v1315_v55 }
 0x218   : > { %v1231_v20 = vmul.f32 0.03125, %v1163_v31  ;;  %v1262_v3 = vadd.f32 1e-05, %v1230_v6  ;;  %v1355_v31 = vmul.f32 %v9293_v34, %v1317_v50  ;;  %8145 = vrsqrt.f32 %v1265_v58 }
 0x219   : > { %v1178_v14 = vpop.xlane.xlu0 %1177  ;;  %v8134_v47 = vpop.eup %8133  ;;  %v1318_v6 = vmul.f32 %v8132_v43, %v9130_v12  ;;  %v1358_v12 = vmul.f32 %v9293_v34, %v1320_v32  ;;  %v9336_v32 = vsel %vm928_vm2, %v9321_v26, -inf }
 0x21a   : > { %v1236_v8 = vmul.f32 0.03125, %v1178_v14  ;;  %v1263_v18 = vadd.f32 1e-05, %v1231_v20  ;;  %v1319_v50 = vmul.f32 %v8134_v47, %v9136_v22  ;;  %8147 = vrsqrt.f32 %v1262_v3 }
 0x21b   : > { %v1181_v39 = vpop.xlane.xlu1 %1180  ;;  %v8136_v24 = vpop.eup %8135  ;;  %v1359_v3 = vmul.f32 %v9293_v34, %v1321_v4  ;;  %v13424_v22 = vmov 0   ;;  %v1356_v29 = vmul.f32 %v9293_v34, %v1318_v6  ;;  %v9339_v4 = vadd.f32 %v9299_v21, %v1353_v27 }
 0x21c   : > { %v1237_v10 = vmul.f32 0.03125, %v1181_v39  ;;  %v1268_v63 = vadd.f32 1e-05, %v1236_v8  ;;  %8149 = vrsqrt.f32 %v1263_v18  ;;  %2025 = vmatprep.subr.bf16.mxu1 %v13424_v22  ;;  %v1357_v58 = vmul.f32 %v9293_v34, %v1319_v50 }
 0x21d   : > { %v1172_v61 = vpop.xlane.xlu0 %1171  ;;  %v1324_v43 = vmul.f32 %v8136_v24, %v9142_v35  ;;  %v9342_v35 = vadd.f32 %v9299_v21, %v1358_v12  ;;  %v9345_v50 = vadd.f32 %v9299_v21, %v1359_v3 }
 0x21e   : > { %v1234_v45 = vmul.f32 0.03125, %v1172_v61  ;;  %v1269_v20 = vadd.f32 1e-05, %v1237_v10  ;;  %v9318_v61 = vadd.f32 %v9299_v21, %v1355_v31  ;;  %8151 = vrsqrt.f32 %v1268_v63 }
 0x21f   : > { %v1175_v15 = vpop.xlane.xlu1 %1174  ;;  %v1362_v24 = vmul.f32 %v9293_v34, %v1324_v43 }
 0x220   : > { %v1235_v14 = vmul.f32 0.03125, %v1175_v15  ;;  %v1266_v11 = vadd.f32 1e-05, %v1234_v45  ;;  %8153 = vrsqrt.f32 %v1269_v20  ;;  %v8138_v45 = vpop.eup %8137  ;;  %v9348_v20 = vadd.f32 %v9299_v21, %v1356_v29 }
 0x221   : > { %v1190_v25 = vpop.xlane.xlu0 %1189  ;;  %v1325_v27 = vmul.f32 %v8138_v45, %v9148_v46  ;;  %v9357_v29 = vsel %vm928_vm2, %v9339_v4, -inf }
 0x222   : > { %v1240_v38 = vmul.f32 0.03125, %v1190_v25  ;;  %v1267_v54 = vadd.f32 1e-05, %v1235_v14  ;;  %8155 = vrsqrt.f32 %v1266_v11  ;;  %v9332_v25 = vsel %vm928_vm2, %v9318_v61, -inf  ;;  %v8140_v14 = vpop.eup %8139 }
 0x223   : > { %v1193_v39 = vpop.xlane.xlu1 %1192  ;;  %v8142_v6 = vpop.eup %8141 }
 0x224   : > { %v1241_v59 = vmul.f32 0.03125, %v1193_v39  ;;  %v1272_v47 = vadd.f32 1e-05, %v1240_v38  ;;  %8157 = vrsqrt.f32 %v1267_v54  ;;  %v8144_v3 = vpop.eup %8143 }
 0x225   : > { %v1184_v15 = vpop.xlane.xlu0 %1183  ;;  %v8146_v43 = vpop.eup %8145 }
 0x226   : > { %v1238_v8 = vmul.f32 0.03125, %v1184_v15  ;;  %v1273_v42 = vadd.f32 1e-05, %v1241_v59  ;;  %v9351_v15 = vadd.f32 %v9299_v21, %v1357_v58  ;;  %8159 = vrsqrt.f32 %v1272_v47 }
 0x227   : > { %v1187_v10 = vpop.xlane.xlu1 %1186  ;;  %v1323_v58 = vmul.f32 %v8142_v6, %v9160_v9  ;;  %v1430_v47 = vsel %vm928_vm2, %v9342_v35, -inf  ;;  %v8148_v45 = vpop.eup %8147 }
 0x228   : > { %v1239_v31 = vmul.f32 0.03125, %v1187_v10  ;;  %v1270_v11 = vadd.f32 1e-05, %v1238_v8  ;;  %8161 = vrsqrt.f32 %v1273_v42  ;;  %v1322_v8 = vmul.f32 %v8140_v14, %v9154_v57 }
 0x229   : > { %v1202_v18 = vpop.xlane.xlu0 %1201  ;;  %v9365_v42 = vsel %vm928_vm2, %v9345_v50, -inf  ;;  %v9373_v57 = vsel %vm928_vm2, %v9351_v15, -inf  ;;  %v8150_v14 = vpop.eup %8149  ;;  %v1326_v22 = vmul.f32 %v8148_v45, %v9178_v51  ;;  %v1431_v60 = vmax.f32 %v9308_v33, %v1430_v47 }
 0x22a   : > { %v1244_v55 = vmul.f32 0.03125, %v1202_v18  ;;  %v1271_v63 = vadd.f32 1e-05, %v1239_v31 }
 0x22b   : > { %v1205_v39 = vpop.xlane.xlu1 %1204  ;;  %v1364_v45 = vmul.f32 %v9293_v34, %v1326_v22 }
 0x22c   : > { %v1245_v38 = vmul.f32 0.03125, %v1205_v39  ;;  %v1276_v54 = vadd.f32 1e-05, %v1244_v55  ;;  %8163 = vrsqrt.f32 %v1271_v63  ;;  %v9369_v55 = vsel %vm928_vm2, %v9348_v20, -inf }
 0x22d   : > { %v1196_v59 = vpop.xlane.xlu0 %1195  ;;  %8165 = vrsqrt.f32 %v1270_v11  ;;  %v9376_v63 = vadd.f32 %v9299_v21, %v1362_v24  ;;  %v1363_v39 = vmul.f32 %v9293_v34, %v1325_v27  ;;  %v1360_v11 = vmul.f32 %v9293_v34, %v1322_v8 }
 0x22e   : > { %v1277_v12 = vadd.f32 1e-05, %v1245_v38  ;;  %v1242_v10 = vmul.f32 0.03125, %v1196_v59  ;;  %8167 = vrsqrt.f32 %v1276_v54  ;;  %v1361_v38 = vmul.f32 %v9293_v34, %v1323_v58 }
 0x22f   : > { %v1199_v31 = vpop.xlane.xlu1 %1198  ;;  %v1329_v54 = vmul.f32 %v8146_v43, %v9172_v37  ;;  %v1433_v27 = vmax.f32 %v9332_v25, %v9365_v42  ;;  %v1429_v37 = vmax.f32 %v9357_v29, %v9373_v57  ;;  %v1438_v33 = vsel %vm928_vm2, %v9376_v63, -inf }
 0x230   : > { %v1274_v46 = vadd.f32 1e-05, %v1242_v10  ;;  %v1243_v18 = vmul.f32 0.03125, %v1199_v31  ;;  %8169 = vrsqrt.f32 %v1277_v12  ;;  %v8152_v10 = vpop.eup %8151  ;;  %v1328_v31 = vmul.f32 %v8144_v3, %v9166_v23 }
 0x231   : > { %v1208_v9 = vpop.xlane.xlu0 %1207  ;;  %v8154_v24 = vpop.eup %8153  ;;  %v1327_v12 = vmul.f32 %v8150_v14, %v9184_v5  ;;  %v1427_v23 = vmax.f32 %v9336_v32, %v9369_v55  ;;  %v9395_v25 = vadd.f32 %v9299_v21, %v1363_v39  ;;  %v9398_v5 = vadd.f32 %v9299_v21, %v1360_v11 }
 0x232   : > { %v1275_v6 = vadd.f32 1e-05, %v1243_v18  ;;  %8171 = vrsqrt.f32 %v1274_v46  ;;  %v1246_v59 = vmul.f32 0.03125, %v1208_v9  ;;  %v8156_v18 = vpop.eup %8155  ;;  %v9401_v47 = vadd.f32 %v9299_v21, %v1361_v38 }
 0x233   : > { %v8158_v43 = vpop.eup %8157  ;;  %v1366_v32 = vmul.f32 %v9293_v34, %v1328_v31  ;;  %v1367_v29 = vmul.f32 %v9293_v34, %v1329_v54  ;;  %v1365_v42 = vmul.f32 %v9293_v34, %v1327_v12  ;;  %v1332_v55 = vmul.f32 %v8152_v10, %v9190_v28 }
 0x234   : > { %8173 = vrsqrt.f32 %v1275_v6  ;;  %v1278_v8 = vadd.f32 1e-05, %v1246_v59  ;;  %v8160_v39 = vpop.eup %8159  ;;  %v1333_v6 = vmul.f32 %v8154_v24, %v9196_v44  ;;  %v1330_v11 = vmul.f32 %v8156_v18, %v9202_v1 }
 0x235   : > { %v1211_v58 = vpop.xlane.xlu1 %1210  ;;  %v1214_v46 = vpop.xlane.xlu0 %1213  ;;  %v1331_v38 = vmul.f32 %v8158_v43, %v9208_v17  ;;  %v1440_v22 = vsel %vm928_vm2, %v9395_v25, -inf  ;;  %v1434_v28 = vsel %vm928_vm2, %v9398_v5, -inf  ;;  %v1436_v54 = vsel %vm928_vm2, %v9401_v47, -inf }
 0x236   : > { %v1247_v51 = vmul.f32 0.03125, %v1211_v58  ;;  %v1248_v3 = vmul.f32 0.03125, %v1214_v46  ;;  %8175 = vrsqrt.f32 %v1278_v8  ;;  %v8162_v31 = vpop.eup %8161  ;;  %v9411_v8 = vmax.f32 %v1431_v60, %v1438_v33 }
 0x237   : > { %v9420_v44 = vadd.f32 %v9299_v21, %v1367_v29  ;;  %v9423_v1 = vadd.f32 %v9299_v21, %v1366_v32  ;;  %v9426_v17 = vadd.f32 %v9299_v21, %v1364_v45  ;;  %v9429_v24 = vadd.f32 %v9299_v21, %v1365_v42 }
 0x238   : > { %v1279_v57 = vadd.f32 1e-05, %v1247_v51  ;;  %v1280_v9 = vadd.f32 1e-05, %v1248_v3  ;;  %v1370_v12 = vmul.f32 %v9293_v34, %v1332_v55  ;;  %v1441_v18 = vmax.f32 %v1433_v27, %v1440_v22 }
 0x239   : > { %v1217_v14 = vpop.xlane.xlu1 %1216  ;;  %v8164_v10 = vpop.eup %8163  ;;  %v1371_v51 = vmul.f32 %v9293_v34, %v1333_v6  ;;  %v1368_v3 = vmul.f32 %v9293_v34, %v1330_v11  ;;  %v1369_v43 = vmul.f32 %v9293_v34, %v1331_v38  ;;  %v1435_v32 = vmax.f32 %v1427_v23, %v1434_v28 }
 0x23a   : > { %v1249_v59 = vmul.f32 0.03125, %v1217_v14  ;;  %8177 = vrsqrt.f32 %v1279_v57  ;;  %v8166_v60 = vpop.eup %8165  ;;  %v1437_v29 = vmax.f32 %v1429_v37, %v1436_v54  ;;  %v1335_v45 = vmul.f32 %v8164_v10, %v9232_v2 }
 0x23b   : > { %8179 = vrsqrt.f32 %v1280_v9  ;;  %v8168_v46 = vpop.eup %8167  ;;  %v1336_v42 = vmul.f32 %v8160_v39, %v9214_v48  ;;  %v1337_v55 = vmul.f32 %v8162_v31, %v9220_v13  ;;  %v1334_v9 = vmul.f32 %v8166_v60, %v9226_v30 }
 0x23c   : > { %v1281_v58 = vadd.f32 1e-05, %v1249_v59  ;;  %v1446_v27 = vsel %vm928_vm2, %v9423_v1, -inf  ;;  %v1442_v6 = vsel %vm928_vm2, %v9426_v17, -inf  ;;  %v1444_v23 = vsel %vm928_vm2, %v9429_v24, -inf }
 0x23d   : > { %v8170_v33 = vpop.eup %8169  ;;  %v9446_v2 = vadd.f32 %v9299_v21, %v1370_v12  ;;  %v1448_v48 = vsel %vm928_vm2, %v9420_v44, -inf  ;;  %v9451_v13 = vadd.f32 %v9299_v21, %v1371_v51  ;;  %v9454_v30 = vadd.f32 %v9299_v21, %v1368_v3 }
 0x23e   : > { %8181 = vrsqrt.f32 %v1281_v58  ;;  %v9457_v37 = vadd.f32 %v9299_v21, %v1369_v43  ;;  %v1340_v39 = vmul.f32 %v8168_v46, %v9238_v62  ;;  %v1373_v11 = vmul.f32 %v9293_v34, %v1335_v45 }
 0x23f   : > { %v8172_v57 = vpop.eup %8171  ;;  %v1341_v38 = vmul.f32 %v8170_v33, %v9244_v49  ;;  %v1443_v28 = vmax.f32 %v1435_v32, %v1442_v6  ;;  %v1374_v10 = vmul.f32 %v9293_v34, %v1336_v42  ;;  %v1375_v54 = vmul.f32 %v9293_v34, %v1337_v55 }
 0x240   : > { %v1338_v59 = vmul.f32 %v8172_v57, %v9250_v7  ;;  %v1372_v60 = vmul.f32 %v9293_v34, %v1334_v9  ;;  %v1445_v12 = vmax.f32 %v1437_v29, %v1444_v23  ;;  %v1454_v62 = vsel %vm928_vm2, %v9446_v2, -inf }
 0x241   : > { %v8174_v14 = vpop.eup %8173  ;;  %v1456_v7 = vsel %vm928_vm2, %v9451_v13, -inf  ;;  %v1378_v46 = vmul.f32 %v9293_v34, %v1340_v39  ;;  %v1449_v51 = vmax.f32 %v1441_v18, %v1448_v48  ;;  %v1452_v3 = vsel %vm928_vm2, %v9457_v37, -inf }
 0x242   : > { %v1339_v31 = vmul.f32 %v8174_v14, %v9256_v36  ;;  %v1450_v36 = vsel %vm928_vm2, %v9454_v30, -inf  ;;  %v9479_v43 = vadd.f32 %v9299_v21, %v1373_v11  ;;  %v1379_v33 = vmul.f32 %v9293_v34, %v1341_v38 }
 0x243   : > { %v8176_v22 = vpop.eup %8175  ;;  %v1376_v32 = vmul.f32 %v9293_v34, %v1338_v59  ;;  %v9484_v29 = vadd.f32 %v9299_v21, %v1374_v10  ;;  %v9487_v45 = vadd.f32 %v9299_v21, %v1375_v54  ;;  %v9490_v57 = vadd.f32 %v9299_v21, %v1372_v60 }
 0x244   : > { %v1377_v58 = vmul.f32 %v9293_v34, %v1339_v31  ;;  %v1342_v49 = vmul.f32 %v8176_v22, %v9262_v52  ;;  %v1447_v18 = vmax.f32 %v9411_v8, %v1446_v27  ;;  %v1457_v6 = vmax.f32 %v1449_v51, %v1456_v7 }
 0x245   : > { %v1451_v23 = vmax.f32 %v1443_v28, %v1450_v36  ;;  %v1453_v48 = vmax.f32 %v1445_v12, %v1452_v3  ;;  %v9499_v39 = vadd.f32 %v9299_v21, %v1378_v46  ;;  %v1460_v38 = vsel %vm928_vm2, %v9479_v43, -inf }
 0x246   : > { %v9494_v55 = vadd.f32 %v9299_v21, %v1377_v58  ;;  %v1380_v9 = vmul.f32 %v9293_v34, %v1342_v49  ;;  %v9505_v8 = vadd.f32 %v9299_v21, %v1379_v33  ;;  %v9508_v27 = vadd.f32 %v9299_v21, %v1376_v32 }
 0x247   : > { %v8178_v52 = vpop.eup %8177  ;;  %v1462_v31 = vsel %vm928_vm2, %v9484_v29, -inf  ;;  %v1464_v22 = vsel %vm928_vm2, %v9487_v45, -inf  ;;  %v1461_v58 = vmax.f32 %v1453_v48, %v1460_v38  ;;  %v1470_v49 = vsel %vm928_vm2, %v9499_v39, -inf }
 0x248   : > { %v8180_v42 = vpop.eup %8179  ;;  %v1343_v14 = vmul.f32 %v8178_v52, %v9271_v40  ;;  %v1468_v10 = vsel %vm928_vm2, %v9494_v55, -inf  ;;  %v9521_v54 = vadd.f32 %v9299_v21, %v1380_v9  ;;  %v1455_v36 = vmax.f32 %v1447_v18, %v1454_v62 }
 0x249   : > { %v1344_v11 = vmul.f32 %v8180_v42, %v9274_v41  ;;  %v1458_v41 = vsel %vm928_vm2, %v9490_v57, -inf  ;;  %v1472_v46 = vsel %vm928_vm2, %v9505_v8, -inf  ;;  %v1466_v51 = vsel %vm928_vm2, %v9508_v27, -inf }
 0x24a   : > { %v1381_v59 = vmul.f32 %v9293_v34, %v1343_v14  ;;  %v1469_v32 = vmax.f32 %v1461_v58, %v1468_v10  ;;  %v1465_v52 = vmax.f32 %v1457_v6, %v1464_v22  ;;  %v1463_v42 = vmax.f32 %v1455_v36, %v1462_v31 }
 0x24b   : > { %v8182_v40 = vpop.eup %8181  ;;  %v1382_v28 = vmul.f32 %v9293_v34, %v1344_v11  ;;  %v1474_v9 = vsel %vm928_vm2, %v9521_v54, -inf }
 0x24c   : > { %v9524_v60 = vadd.f32 %v9299_v21, %v1381_v59  ;;  %v1345_v12 = vmul.f32 %v8182_v40, %v9282_v16  ;;  %v1459_v16 = vmax.f32 %v1451_v23, %v1458_v41  ;;  %v1473_v11 = vmax.f32 %v1465_v52, %v1472_v46 }
 0x24d   : > { %v9530_v7 = vadd.f32 %v9299_v21, %v1382_v28  ;;  %v1471_v38 = vmax.f32 %v1463_v42, %v1470_v49 }
 0x24e   : > { %v1476_v3 = vsel %vm928_vm2, %v9524_v60, -inf  ;;  %v1383_v33 = vmul.f32 %v9293_v34, %v1345_v12  ;;  %v1467_v14 = vmax.f32 %v1459_v16, %v1466_v51 }
 0x24f   : > { %v1478_v62 = vsel %vm928_vm2, %v9530_v7, -inf  ;;  %v1477_v48 = vmax.f32 %v1469_v32, %v1476_v3 }
 0x250   : > { %v9544_v18 = vadd.f32 %v9299_v21, %v1383_v33  ;;  %v1475_v23 = vmax.f32 %v1467_v14, %v1474_v9  ;;  %v1479_v59 = vmax.f32 %v1471_v38, %v1478_v62 }
 0x252   : > { %v1480_v34 = vsel %vm928_vm2, %v9544_v18, -inf  ;;  %v1482_v40 = vmax.f32 %v1475_v23, %v1477_v48 }
 0x253   : > { %v1481_v6 = vmax.f32 %v1473_v11, %v1480_v34 }
 0x255   : > { %v1483_v31 = vmax.f32 %v1479_v59, %v1481_v6 }
 0x257   : > { %v1484_v22 = vmax.f32 %v1482_v40, %v1483_v31 }
 0x259   : > { %v1485_v41 = vrot.slane %v1484_v22, 4 }
 0x25b   : > { %v1486_v28 = vmax.f32 %v1484_v22, %v1485_v41 }
 0x25d   : > { %v1487_v10 = vrot.slane %v1486_v28, 2 }
 0x25f   : > { %v1488_v12 = vmax.f32 %v1486_v28, %v1487_v10 }
 0x261   : > { %v1489_v58 = vrot.slane %v1488_v12, 1 }
 0x263   : > { %v9548_v21 = vmax.f32 %v1488_v12, %v1489_v58 }
 0x265   : > { %v1491_v36 = vsub.f32 %v9321_v26, %v9548_v21  ;;  %v1492_v49 = vsub.f32 %v9339_v4, %v9548_v21  ;;  %v1493_v46 = vsub.f32 %v9302_v19, %v9548_v21  ;;  %v1494_v51 = vsub.f32 %v9318_v61, %v9548_v21 }
 0x266   : > { %v1495_v3 = vsub.f32 %v9348_v20, %v9548_v21  ;;  %v1496_v52 = vsub.f32 %v9351_v15, %v9548_v21  ;;  %v1497_v26 = vsub.f32 %v9342_v35, %v9548_v21  ;;  %v1498_v19 = vsub.f32 %v9345_v50, %v9548_v21 }
 0x267   : > { %v1523_v33 = vmul.f32 1.442695, %v1491_v36  ;;  %v1525_v16 = vmul.f32 1.442695, %v1492_v49  ;;  %v1527_v32 = vmul.f32 1.442695, %v1493_v46  ;;  %v1499_v20 = vsub.f32 %v9398_v5, %v9548_v21 }
 0x268   : > { %v1529_v42 = vmul.f32 1.442695, %v1494_v51  ;;  %v1531_v4 = vmul.f32 1.442695, %v1495_v3  ;;  %v1533_v61 = vmul.f32 1.442695, %v1496_v52  ;;  %v1500_v15 = vsub.f32 %v9401_v47, %v9548_v21 }
 0x269   : > { %8183 = vpow2.f32 %v1523_v33  ;;  %v1535_v9 = vmul.f32 1.442695, %v1497_v26  ;;  %v1537_v62 = vmul.f32 1.442695, %v1498_v19  ;;  %v1501_v35 = vsub.f32 %v9376_v63, %v9548_v21 }
 0x26a   : > { %8185 = vpow2.f32 %v1525_v16  ;;  %v1539_v14 = vmul.f32 1.442695, %v1499_v20  ;;  %v1502_v50 = vsub.f32 %v9395_v25, %v9548_v21  ;;  %v1541_v48 = vmul.f32 1.442695, %v1500_v15 }
 0x26b   : > { %8187 = vpow2.f32 %v1527_v32  ;;  %v1503_v5 = vsub.f32 %v9426_v17, %v9548_v21  ;;  %v1543_v38 = vmul.f32 1.442695, %v1501_v35  ;;  %v1504_v23 = vsub.f32 %v9429_v24, %v9548_v21 }
 0x26c   : > { %8189 = vpow2.f32 %v1529_v42  ;;  %v1545_v25 = vmul.f32 1.442695, %v1502_v50  ;;  %v1505_v36 = vsub.f32 %v9423_v1, %v9548_v21  ;;  %v1506_v51 = vsub.f32 %v9420_v44, %v9548_v21 }
 0x26d   : > { %8191 = vpow2.f32 %v1531_v4  ;;  %v1547_v40 = vmul.f32 1.442695, %v1503_v5  ;;  %v1549_v28 = vmul.f32 1.442695, %v1504_v23  ;;  %v1507_v3 = vsub.f32 %v9454_v30, %v9548_v21 }
 0x26e   : > { %8193 = vpow2.f32 %v1533_v61  ;;  %v1508_v52 = vsub.f32 %v9457_v37, %v9548_v21  ;;  %v1551_v42 = vmul.f32 1.442695, %v1505_v36  ;;  %v1553_v4 = vmul.f32 1.442695, %v1506_v51 }
 0x26f   : > { %8195 = vpow2.f32 %v1535_v9  ;;  %v1509_v30 = vsub.f32 %v9446_v2, %v9548_v21  ;;  %v1555_v19 = vmul.f32 1.442695, %v1507_v3  ;;  %v1510_v37 = vsub.f32 %v9451_v13, %v9548_v21 }
 0x270   : > { %8197 = vpow2.f32 %v1537_v62  ;;  %v1557_v15 = vmul.f32 1.442695, %v1508_v52  ;;  %v1511_v2 = vsub.f32 %v9490_v57, %v9548_v21  ;;  %v1513_v57 = vsub.f32 %v9484_v29, %v9548_v21 }
 0x271   : > { %8199 = vpow2.f32 %v1539_v14  ;;  %v1559_v50 = vmul.f32 1.442695, %v1509_v30  ;;  %v1515_v29 = vsub.f32 %v9508_v27, %v9548_v21  ;;  %v1516_v51 = vsub.f32 %v9494_v55, %v9548_v21 }
 0x272   : > { %8201 = vpow2.f32 %v1541_v48  ;;  %v1517_v27 = vsub.f32 %v9499_v39, %v9548_v21 }
 0x273   : > { %8203 = vpow2.f32 %v1543_v38  ;;  %v1512_v38 = vsub.f32 %v9479_v43, %v9548_v21  ;;  %v1514_v43 = vsub.f32 %v9487_v45, %v9548_v21  ;;  %v1571_v52 = vmul.f32 1.442695, %v1515_v29 }
 0x274   : > { %8205 = vpow2.f32 %v1545_v25 }
 0x275   : > { %8207 = vpow2.f32 %v1547_v40  ;;  %v1569_v45 = vmul.f32 1.442695, %v1514_v43 }
 0x276   : > { %v9574_v11 = vpop.eup %8183  ;;  %8209 = vpow2.f32 %v1549_v28  ;;  %v1565_v28 = vmul.f32 1.442695, %v1512_v38 }
 0x277   : > { %v9578_v47 = vpop.eup %8185  ;;  %v1587_v34 = vsel %vm928_vm2, %v9574_v11, 0.0  ;;  %8211 = vpow2.f32 %v1551_v42 }
 0x278   : > { %v9582_v63 = vpop.eup %8187  ;;  %v1588_v59 = vsel %vm928_vm2, %v9578_v47, 0.0  ;;  %8213 = vpow2.f32 %v1553_v4  ;;  %v1573_v4 = vmul.f32 1.442695, %v1516_v51 }
 0x279   : > { %v9588_v6 = vpop.eup %8189  ;;  %v1589_v17 = vadd.f32 %v1588_v59, %v1587_v34  ;;  %v1590_v31 = vsel %vm928_vm2, %v9582_v63, 0.0  ;;  %8215 = vpow2.f32 %v1555_v19  ;;  %v1561_v34 = vmul.f32 1.442695, %v1510_v37 }
 0x27a   : > { %v9592_v22 = vpop.eup %8191  ;;  %v1592_v24 = vsel %vm928_vm2, %v9588_v6, 0.0  ;;  %8217 = vpow2.f32 %v1557_v15 }
 0x27b   : > { %v1591_v41 = vadd.f32 %v1590_v31, %v1589_v17  ;;  %v9596_v10 = vpop.eup %8193  ;;  %v1594_v58 = vsel %vm928_vm2, %v9592_v22, 0.0  ;;  %8219 = vpow2.f32 %v1559_v50  ;;  %v1563_v17 = vmul.f32 1.442695, %v1511_v2 }
 0x27c   : > { %v9602_v49 = vpop.eup %8195  ;;  %v1596_v33 = vsel %vm928_vm2, %v9596_v10, 0.0  ;;  %8221 = vpow2.f32 %v1561_v34 }
 0x27d   : > { %v1593_v12 = vadd.f32 %v1592_v24, %v1591_v41  ;;  %v9610_v16 = vpop.eup %8197  ;;  %v1598_v1 = vsel %vm928_vm2, %v9602_v49, 0.0  ;;  %8223 = vpow2.f32 %v1563_v17 }
 0x27e   : > { %v9616_v26 = vpop.eup %8199  ;;  %v1600_v61 = vsel %vm928_vm2, %v9610_v16, 0.0  ;;  %8225 = vpow2.f32 %v1565_v28 }
 0x27f   : > { %v1595_v46 = vadd.f32 %v1594_v58, %v1593_v12  ;;  %v9622_v20 = vpop.eup %8201  ;;  %v1602_v62 = vsel %vm928_vm2, %v9616_v26, 0.0  ;;  %v1567_v58 = vmul.f32 1.442695, %v1513_v57 }
 0x280   : > { %v9628_v35 = vpop.eup %8203  ;;  %v1604_v48 = vsel %vm928_vm2, %v9622_v20, 0.0 }
 0x281   : > { %v1597_v32 = vadd.f32 %v1596_v33, %v1595_v46  ;;  %v9634_v5 = vpop.eup %8205  ;;  %v1606_v23 = vsel %vm928_vm2, %v9628_v35, 0.0  ;;  %v9663_v33 = vld [vmem:[%s13381_s3 + $0x4] ss:$8 sps:$4 sm:$0xff]   ;;  %8227 = vpow2.f32 %v1567_v58 }
 0x282   : > { %v9640_v25 = vpop.eup %8207  ;;  %v1608_v40 = vsel %vm928_vm2, %v9634_v5, 0.0  ;;  %2057 = vmatprep.mubr.bf16.mxu1 %v9663_v33  ;;  %8229 = vpow2.f32 %v1569_v45 }
 0x283   : > { %v1599_v44 = vadd.f32 %v1598_v1, %v1597_v32  ;;  %v9646_v31 = vpop.eup %8209  ;;  %v1610_v24 = vsel %vm928_vm2, %v9640_v25, 0.0  ;;  %8231 = vpow2.f32 %v1571_v52 }
 0x284   : > { %v1612_v36 = vsel %vm928_vm2, %v9646_v31, 0.0  ;;  %v9658_v3 = vpop.eup %8211  ;;  %8233 = vpow2.f32 %v1573_v4 }
 0x285   : > { %v1601_v9 = vadd.f32 %v1600_v61, %v1599_v44  ;;  %v9665_v32 = vpop.eup %8213  ;;  %v1614_v1 = vsel %vm928_vm2, %v9658_v3, 0.0  ;;  %v1518_v44 = vsub.f32 %v9505_v8, %v9548_v21  ;;  %v1519_v61 = vsub.f32 %v9521_v54, %v9548_v21 }
 0x286   : > { %v9671_v55 = vpop.eup %8215  ;;  %v1616_v30 = vsel %vm928_vm2, %v9665_v32, 0.0  ;;  %v1520_v8 = vsub.f32 %v9524_v60, %v9548_v21  ;;  %v1521_v54 = vsub.f32 %v9530_v7, %v9548_v21  ;;  %v1522_v60 = vsub.f32 %v9544_v18, %v9548_v21 }
 0x287   : > { %v1603_v14 = vadd.f32 %v1602_v62, %v1601_v9  ;;  %v9678_v19 = vpop.eup %8217  ;;  %v1575_v9 = vmul.f32 1.442695, %v1517_v27  ;;  %v1618_v37 = vsel %vm928_vm2, %v9671_v55, 0.0 }
 0x288   : > { %v9684_v15 = vpop.eup %8219  ;;  %v1620_v2 = vsel %vm928_vm2, %v9678_v19, 0.0  ;;  %v1583_v7 = vmul.f32 1.442695, %v1521_v54 }
 0x289   : > { %v1605_v13 = vadd.f32 %v1604_v48, %v1603_v14  ;;  %v1577_v14 = vmul.f32 1.442695, %v1518_v44  ;;  %v9690_v50 = vpop.eup %8221  ;;  %8235 = vpow2.f32 %v1575_v9  ;;  %v1622_v38 = vsel %vm928_vm2, %v9684_v15, 0.0 }
 0x28a   : > { %v9696_v34 = vpop.eup %8223  ;;  %v1624_v57 = vsel %vm928_vm2, %v9690_v50, 0.0 }
 0x28b   : > { %v1607_v59 = vadd.f32 %v1606_v23, %v1605_v13  ;;  %v1579_v13 = vmul.f32 1.442695, %v1519_v61  ;;  %8237 = vpow2.f32 %v1577_v14  ;;  %v9702_v17 = vpop.eup %8225 }
 0x28c   : > { %v1628_v18 = vsel %vm928_vm2, %v9702_v17, 0.0 }
 0x28d   : > { %v1609_v41 = vadd.f32 %v1608_v40, %v1607_v59  ;;  %v1581_v59 = vmul.f32 1.442695, %v1520_v8  ;;  %8239 = vpow2.f32 %v1579_v13 }
 0x28e   : > { %v9706_v43 = vpop.eup %8227 }
 0x28f   : > { %v1611_v12 = vadd.f32 %v1610_v24, %v1609_v41  ;;  %v1626_v41 = vsel %vm928_vm2, %v9696_v34, 0.0  ;;  %v1585_v24 = vmul.f32 1.442695, %v1522_v60  ;;  %8241 = vpow2.f32 %v1581_v59  ;;  %v9710_v21 = vpop.eup %8229 }
 0x290   : > { %8243 = vpow2.f32 %v1583_v7  ;;  %v1630_v29 = vsel %vm928_vm2, %v9706_v43, 0.0  ;;  %v9714_v58 = vpop.eup %8231 }
 0x291   : > { %v1613_v46 = vadd.f32 %v1612_v36, %v1611_v12  ;;  %8245 = vpow2.f32 %v1585_v24  ;;  %v9718_v51 = vpop.eup %8233  ;;  %v1634_v27 = vsel %vm928_vm2, %v9714_v58, 0.0 }
 0x293   : > { %v1615_v42 = vadd.f32 %v1614_v1, %v1613_v46  ;;  %v1632_v46 = vsel %vm928_vm2, %v9710_v21, 0.0 }
 0x295   : > { %v1617_v39 = vadd.f32 %v1616_v30, %v1615_v42  ;;  %v1636_v42 = vsel %vm928_vm2, %v9718_v51, 0.0 }
 0x296   : > { %v9722_v52 = vpop.eup %8235 }
 0x297   : > { %v1619_v62 = vadd.f32 %v1618_v37, %v1617_v39  ;;  %v1638_v30 = vsel %vm928_vm2, %v9722_v52, 0.0 }
 0x298   : > { %v9726_v44 = vpop.eup %8237 }
 0x299   : > { %v1621_v48 = vadd.f32 %v1620_v2, %v1619_v62  ;;  %v1640_v9 = vsel %vm928_vm2, %v9726_v44, 0.0 }
 0x29a   : > { %v9730_v39 = vpop.eup %8239 }
 0x29b   : > { %v1623_v23 = vadd.f32 %v1622_v38, %v1621_v48  ;;  %v1642_v8 = vsel %vm928_vm2, %v9730_v39, 0.0 }
 0x29c   : > { %v9734_v37 = vpop.eup %8241 }
 0x29d   : > { %v1625_v40 = vadd.f32 %v1624_v57, %v1623_v23  ;;  %v8244_v14 = vpop.eup %8243  ;;  %v1644_v48 = vsel %vm928_vm2, %v9734_v37, 0.0 }
 0x29e   : > { %v8246_v54 = vpop.eup %8245  ;;  %v1646_v38 = vsel %vm928_vm2, %v8244_v14, 0.0 }
 0x29f   : > { %v1627_v28 = vadd.f32 %v1626_v41, %v1625_v40  ;;  %v1648_v60 = vsel %vm928_vm2, %v8246_v54, 0.0 }
 0x2a1   : > { %v1629_v12 = vadd.f32 %v1628_v18, %v1627_v28 }
 0x2a3   : > { %v1631_v36 = vadd.f32 %v1630_v29, %v1629_v12 }
 0x2a5   : > { %v1633_v45 = vadd.f32 %v1632_v46, %v1631_v36 }
 0x2a7   : > { %v1635_v1 = vadd.f32 %v1634_v27, %v1633_v45  ;;  %v13534_v27 = vmov 0  }
 0x2a9   : > { %v1637_v4 = vadd.f32 %v1636_v42, %v1635_v1 }
 0x2ab   : > { %v1639_v61 = vadd.f32 %v1638_v30, %v1637_v4 }
 0x2ad   : > { %v1641_v62 = vadd.f32 %v1640_v9, %v1639_v61 }
 0x2af   : > { %v1643_v2 = vadd.f32 %v1642_v8, %v1641_v62 }
 0x2b1   : > { %v1645_v13 = vadd.f32 %v1644_v48, %v1643_v2 }
 0x2b3   : > { %v1647_v23 = vadd.f32 %v1646_v38, %v1645_v13 }
 0x2b5   : > { %v1649_v59 = vadd.f32 %v1648_v60, %v1647_v23 }
 0x2b7   : > { %v1650_v57 = vrot.slane %v1649_v59, 4 }
 0x2b9   : > { %v1651_v40 = vadd.f32 %v1650_v57, %v1649_v59  ;;  %v8017_v57 = vld [vmem:[%s13381_s3 + $0x20] ss:$8 sps:$4 sm:$0xff]  }
 0x2bb   : > { %v1652_v7 = vrot.slane %v1651_v40, 2 }
 0x2bd   : > { %v1653_v41 = vadd.f32 %v1652_v7, %v1651_v40  ;;  %v8018_v40 = vld [vmem:[%s13381_s3 + $0x34] ss:$8 sps:$4 sm:$0xff]   ;;  %v8020_v7 = vld [vmem:[%s13381_s3 + $0x30] ss:$8 sps:$4 sm:$0xff]  }
 0x2bf   : > { %v1654_v28 = vrot.slane %v1653_v41, 1 }
 0x2c1   : > { %v1655_v24 = vadd.f32 %v1654_v28, %v1653_v41  ;;  %v8021_v41 = vld [vmem:[%s13381_s3 + $0x44] ss:$8 sps:$4 sm:$0xff]   ;;  %v8023_v28 = vld [vmem:[%s13381_s3 + $0x40] ss:$8 sps:$4 sm:$0xff]  }
 0x2c3   : > { %8247 = vrcp.f32 %v1655_v24  ;;  %v8024_v24 = vld [vmem:[%s13381_s3 + $0x54] ss:$8 sps:$4 sm:$0xff]  }
 0x2d0   : > { %v9742_v18 = vpop.eup %8247 }
 0x2d1   : > { %v1671_v12 = vmul.f32 %v9742_v18, %v9658_v3  ;;  %v1672_v29 = vmul.f32 %v9742_v18, %v9665_v32  ;;  %v1669_v46 = vmul.f32 %v9742_v18, %v9640_v25  ;;  %v1670_v45 = vmul.f32 %v9742_v18, %v9646_v31 }
 0x2d2   : > { %v1687_v1 = vmul.f32 %v9742_v18, %v8244_v14  ;;  %v1688_v42 = vmul.f32 %v9742_v18, %v8246_v54  ;;  %v1667_v3 = vmul.f32 %v9742_v18, %v9628_v35  ;;  %v1668_v32 = vmul.f32 %v9742_v18, %v9634_v5 }
 0x2d3   : > { %v1696_v36 = vpack.c.bf16 %v1672_v29, %v1671_v12  ;;  %v1695_v4 = vpack.c.bf16 %v1670_v45, %v1669_v46  ;;  %v1665_v31 = vmul.f32 %v9742_v18, %v9616_v26  ;;  %v1666_v61 = vmul.f32 %v9742_v18, %v9622_v20  ;;  %v8027_v12 = vld [vmem:[%s13381_s3 + $0x64] ss:$8 sps:$4 sm:$0xff]   ;;  %v8029_v29 = vld [vmem:[%s13381_s3 + $0x60] ss:$8 sps:$4 sm:$0xff]   ;;  %v8032_v46 = vld [vmem:[%s13381_s3 + $0x70] ss:$8 sps:$4 sm:$0xff]  }
 0x2d4   : > { %v1704_v30 = vpack.c.bf16 %v1688_v42, %v1687_v1  ;;  %v1694_v25 = vpack.c.bf16 %v1668_v32, %v1667_v3  ;;  %v1663_v35 = vmul.f32 %v9742_v18, %v9602_v49  ;;  %v1664_v5 = vmul.f32 %v9742_v18, %v9610_v16  ;;  %v8033_v45 = vld [vmem:[%s13381_s3 + $0x84] ss:$8 sps:$4 sm:$0xff]   ;;  %v8035_v1 = vld [vmem:[%s13381_s3 + $0x80] ss:$8 sps:$4 sm:$0xff]   ;;  %v8036_v42 = vld [vmem:[%s13381_s3 + $0x94] ss:$8 sps:$4 sm:$0xff]  }
 0x2d5   : > { %2026 = vmatpush1.bf16.msra.mxu1 %v1696_v36  ;;  %v1693_v9 = vpack.c.bf16 %v1666_v61, %v1665_v31  ;;  %v1661_v26 = vmul.f32 %v9742_v18, %v9592_v22  ;;  %v1662_v20 = vmul.f32 %v9742_v18, %v9596_v10  ;;  %v1659_v49 = vmul.f32 %v9742_v18, %v9582_v63  ;;  %v8030_v36 = vld [vmem:[%s13381_s3 + $0x74] ss:$8 sps:$4 sm:$0xff]   ;;  %v8039_v3 = vld [vmem:[%s13381_s3 + $0xa4] ss:$8 sps:$4 sm:$0xff]   ;;  %v8041_v32 = vld [vmem:[%s13381_s3 + $0xa0] ss:$8 sps:$4 sm:$0xff]  }
 0x2d6   : > { %2027 = vmatprep.subr.bf16.mxu1 %v13534_v27  ;;  %v1692_v62 = vpack.c.bf16 %v1664_v5, %v1663_v35  ;;  %v1660_v16 = vmul.f32 %v9742_v18, %v9588_v6  ;;  %v1657_v22 = vmul.f32 %v9742_v18, %v9574_v11  ;;  %v1658_v10 = vmul.f32 %v9742_v18, %v9578_v47  ;;  %v8045_v31 = vld [vmem:[%s13381_s3 + $0xc4] ss:$8 sps:$4 sm:$0xff]   ;;  %v8047_v61 = vld [vmem:[%s13381_s3 + $0xc0] ss:$8 sps:$4 sm:$0xff]   ;;  %v8050_v35 = vld [vmem:[%s13381_s3 + $0xd0] ss:$8 sps:$4 sm:$0xff]  }
 0x2d7   : > { %v1691_v8 = vpack.c.bf16 %v1662_v20, %v1661_v26  ;;  %v1685_v63 = vmul.f32 %v9742_v18, %v9730_v39  ;;  %v1686_v6 = vmul.f32 %v9742_v18, %v9734_v37  ;;  %v1683_v47 = vmul.f32 %v9742_v18, %v9722_v52  ;;  %v8051_v5 = vld [vmem:[%s13381_s3 + $0xe4] ss:$8 sps:$4 sm:$0xff]   ;;  %v8054_v26 = vld [vmem:[%s13381_s3 + $0xf4] ss:$8 sps:$4 sm:$0xff]   ;;  %v8056_v20 = vld [vmem:[%s13381_s3 + $0xf0] ss:$8 sps:$4 sm:$0xff]  }
 0x2d8   : > { %v1690_v14 = vpack.c.bf16 %v1660_v16, %v1659_v49  ;;  %v1689_v2 = vpack.c.bf16 %v1658_v10, %v1657_v22  ;;  %v1684_v48 = vmul.f32 %v9742_v18, %v9726_v44  ;;  %v1681_v39 = vmul.f32 %v9742_v18, %v9714_v58  ;;  %v8059_v49 = vld [vmem:[%s13381_s3 + $0x100] ss:$8 sps:$4 sm:$0xff]   ;;  %v8060_v16 = vld [vmem:[%s13381_s3 + $0x114] ss:$8 sps:$4 sm:$0xff]   ;;  %v8063_v22 = vld [vmem:[%s13381_s3 + $0x124] ss:$8 sps:$4 sm:$0xff]  }
 0x2d9   : > { %2028 = vmatpush1.bf16.msra.mxu1 %v1695_v4  ;;  %v1703_v11 = vpack.c.bf16 %v1686_v6, %v1685_v63  ;;  %v1682_v37 = vmul.f32 %v9742_v18, %v9718_v51  ;;  %v1679_v52 = vmul.f32 %v9742_v18, %v9706_v43  ;;  %v1680_v44 = vmul.f32 %v9742_v18, %v9710_v21  ;;  %v8038_v4 = vld [vmem:[%s13381_s3 + $0x90] ss:$8 sps:$4 sm:$0xff]   ;;  %v8065_v10 = vld [vmem:[%s13381_s3 + $0x120] ss:$8 sps:$4 sm:$0xff]   ;;  %v8069_v6 = vld [vmem:[%s13381_s3 + $0x144] ss:$8 sps:$4 sm:$0xff]  }
 0x2da   : > { %2029 = vmatprep.subr.bf16.mxu1 %v13534_v27  ;;  %v1702_v54 = vpack.c.bf16 %v1684_v48, %v1683_v47  ;;  %v1677_v58 = vmul.f32 %v9742_v18, %v9696_v34  ;;  %v1678_v51 = vmul.f32 %v9742_v18, %v9702_v17  ;;  %v1675_v43 = vmul.f32 %v9742_v18, %v9684_v15  ;;  %v8009_v15 = vld [vmem:[%s13381_s3] ss:$8 sps:$4 sm:$0xff]   ;;  %v8068_v63 = vld [vmem:[%s13381_s3 + $0x130] ss:$8 sps:$4 sm:$0xff]   ;;  %v8072_v47 = vld [vmem:[%s13381_s3 + $0x154] ss:$8 sps:$4 sm:$0xff]  }
 0x2db   : > { %v1701_v13 = vpack.c.bf16 %v1682_v37, %v1681_v39  ;;  %v1700_v38 = vpack.c.bf16 %v1680_v44, %v1679_v52  ;;  %v1676_v21 = vmul.f32 %v9742_v18, %v9690_v50  ;;  %v1673_v34 = vmul.f32 %v9742_v18, %v9671_v55  ;;  %v8012_v50 = vld [vmem:[%s13381_s3 + $0x14] ss:$8 sps:$4 sm:$0xff]   ;;  %v8014_v55 = vld [vmem:[%s13381_s3 + $0x10] ss:$8 sps:$4 sm:$0xff]   ;;  %v8077_v39 = vld [vmem:[%s13381_s3 + $0x160] ss:$8 sps:$4 sm:$0xff]  }
 0x2dc   : > { %v1699_v23 = vpack.c.bf16 %v1678_v51, %v1677_v58  ;;  %v1674_v17 = vmul.f32 %v9742_v18, %v9678_v19  ;;  %v8015_v19 = vld [vmem:[%s13381_s3 + $0x24] ss:$8 sps:$4 sm:$0xff]   ;;  %v8026_v18 = vld [vmem:[%s13381_s3 + $0x50] ss:$8 sps:$4 sm:$0xff]   ;;  %v8078_v37 = vld [vmem:[%s13381_s3 + $0x174] ss:$8 sps:$4 sm:$0xff]  }
 0x2dd   : > { %2030 = vmatpush1.bf16.msra.mxu1 %v1694_v25  ;;  %v1698_v60 = vpack.c.bf16 %v1676_v21, %v1675_v43  ;;  %v8044_v25 = vld [vmem:[%s13381_s3 + $0xb0] ss:$8 sps:$4 sm:$0xff]   ;;  %v8081_v52 = vld [vmem:[%s13381_s3 + $0x184] ss:$8 sps:$4 sm:$0xff]   ;;  %v8083_v44 = vld [vmem:[%s13381_s3 + $0x180] ss:$8 sps:$4 sm:$0xff]  }
 0x2de   : > { %2031 = vmatprep.subr.bf16.mxu1 %v13534_v27  ;;  %v1697_v59 = vpack.c.bf16 %v1674_v17, %v1673_v34  ;;  %v8074_v48 = vld [vmem:[%s13381_s3 + $0x150] ss:$8 sps:$4 sm:$0xff]   ;;  %v8105_v17 = vld [vmem:[%s13383_s5 + $0x8] sm:$0xff]  }
 0x2df   : > { %v8086_v43 = vld [vmem:[%s13381_s3 + $0x190] ss:$8 sps:$4 sm:$0xff]   ;;  %7701 = vmatprep.subr.bf16.mxu0 %v8105_v17 }
 0x2e0   : > { %7702 = vmatpush3.bf16.msra.mxu0 %v8105_v17 }
 0x2e1   : > { %2032 = vmatpush1.bf16.msra.mxu1 %v1693_v9  ;;  %v8048_v9 = vld [vmem:[%s13381_s3 + $0xd4] ss:$8 sps:$4 sm:$0xff]  }
 0x2e2   : > { %2033 = vmatprep.subr.bf16.mxu1 %v13534_v27 }
 0x2e5   : > { %2034 = vmatpush1.bf16.msra.mxu1 %v1692_v62  ;;  %v8053_v62 = vld [vmem:[%s13381_s3 + $0xe0] ss:$8 sps:$4 sm:$0xff]  }
 0x2e6   : > { %2035 = vmatprep.subr.bf16.mxu1 %v13534_v27 }
 0x2e9   : > { %2036 = vmatpush1.bf16.msra.mxu1 %v1691_v8  ;;  %v8057_v8 = vld [vmem:[%s13381_s3 + $0x104] ss:$8 sps:$4 sm:$0xff]  }
 0x2ea   : > { %2037 = vmatprep.subr.bf16.mxu1 %v13534_v27 }
 0x2ed   : > { %2038 = vmatpush1.bf16.msra.mxu1 %v1690_v14  ;;  %v8062_v14 = vld [vmem:[%s13381_s3 + $0x110] ss:$8 sps:$4 sm:$0xff]  }
 0x2ee   : > { %2039 = vmatprep.subr.bf16.mxu1 %v13534_v27 }
 0x2f1   : > { %2040 = vmatpush1.bf16.msra.mxu1 %v1689_v2  ;;  %v8066_v2 = vld [vmem:[%s13381_s3 + $0x134] ss:$8 sps:$4 sm:$0xff]  }
 0x2f2   : > { %2041 = vmatprep.subr.bf16.mxu1 %v13534_v27 }
 0x2f5   : > { %2042 = vmatpush2.bf16.msra.mxu1 %v1704_v30  ;;  %v8042_v30 = vld [vmem:[%s13381_s3 + $0xb4] ss:$8 sps:$4 sm:$0xff]  }
 0x2f6   : > { %2043 = vmatprep.subr.bf16.mxu1 %v13534_v27 }
 0x2f9   : > { %2044 = vmatpush2.bf16.msra.mxu1 %v1703_v11  ;;  %v8071_v11 = vld [vmem:[%s13381_s3 + $0x140] ss:$8 sps:$4 sm:$0xff]  }
 0x2fa   : > { %2045 = vmatprep.subr.bf16.mxu1 %v13534_v27 }
 0x2fd   : > { %2046 = vmatpush2.bf16.msra.mxu1 %v1702_v54  ;;  %v8075_v54 = vld [vmem:[%s13381_s3 + $0x164] ss:$8 sps:$4 sm:$0xff]  }
 0x2fe   : > { %2047 = vmatprep.subr.bf16.mxu1 %v13534_v27 }
 0x301   : > { %2048 = vmatpush2.bf16.msra.mxu1 %v1701_v13  ;;  %v8080_v13 = vld [vmem:[%s13381_s3 + $0x170] ss:$8 sps:$4 sm:$0xff]  }
 0x302   : > { %2049 = vmatprep.subr.bf16.mxu1 %v13534_v27 }
 0x305   : > { %2050 = vmatpush2.bf16.msra.mxu1 %v1700_v38  ;;  %v8084_v38 = vld [vmem:[%s13381_s3 + $0x194] ss:$8 sps:$4 sm:$0xff]  }
 0x306   : > { %2051 = vmatprep.subr.bf16.mxu1 %v13534_v27 }
 0x309   : > { %2052 = vmatpush2.bf16.msra.mxu1 %v1699_v23 }
 0x30a   : > { %2053 = vmatprep.subr.bf16.mxu1 %v13534_v27 }
 0x30d   : > { %2054 = vmatpush2.bf16.msra.mxu1 %v1698_v60  ;;  %v8087_v60 = vld [vmem:[%s13381_s3 + $0x1a4] ss:$8 sps:$4 sm:$0xff]  }
 0x30e   : > { %2055 = vmatprep.subr.bf16.mxu1 %v13534_v27 }
 0x311   : > { %2056 = vmatpush2.bf16.msra.mxu1 %v1697_v59 }
 0x312   : > { %4909 = vmatprep.subr.bf16.mxu1 %v13534_v27 }
 0x314   : > { %2058 = vmatmul.mubr.bf16.vlgmr.msra.gmra.mxu1 %v8009_v15 }
 0x315   : > { %2065 = vmatprep.mubr.bf16.mxu1 %v8012_v50  ;;  %v8106_v50 = vld [vmem:[%s13383_s5] sm:$0xff]  }
 0x316   : > { %7703 = vmatprep.subr.bf16.mxu0 %v8106_v50 }
 0x317   : > { %7704 = vmatpush3.bf16.msra.mxu0 %v8106_v50 }
 0x31c   : > { %2066 = vmatmul.mubr.bf16.gmra.mxu1 %v8014_v55 }
 0x31d   : > { %2073 = vmatprep.mubr.bf16.mxu1 %v8015_v19  ;;  %v8089_v19 = vld [vmem:[%s13381_s3 + $0x1a0] ss:$8 sps:$4 sm:$0xff]  }
 0x324   : > { %2074 = vmatmul.mubr.bf16.gmra.mxu1 %v8017_v57 }
 0x325   : > { %2081 = vmatprep.mubr.bf16.mxu1 %v8018_v40  ;;  %v8090_v40 = vld [vmem:[%s13381_s3 + $0x1b4] ss:$8 sps:$4 sm:$0xff]  }
 0x32c   : > { %2082 = vmatmul.mubr.bf16.gmra.mxu1 %v8020_v7 }
 0x32d   : > { %2089 = vmatprep.mubr.bf16.mxu1 %v8021_v41 }
 0x334   : > { %2090 = vmatmul.mubr.bf16.gmra.mxu1 %v8023_v28 }
 0x335   : > { %2097 = vmatprep.mubr.bf16.mxu1 %v8024_v24 }
 0x33c   : > { %2098 = vmatmul.mubr.bf16.gmra.mxu1 %v8026_v18  ;;  %v8092_v18 = vld [vmem:[%s13381_s3 + $0x1b0] ss:$8 sps:$4 sm:$0xff]  }
 0x33d   : > { %2105 = vmatprep.mubr.bf16.mxu1 %v8027_v12 }
 0x344   : > { %2106 = vmatmul.mubr.bf16.gmra.mxu1 %v8029_v29  ;;  %v8095_v29 = vld [vmem:[%s13381_s3 + $0x1c4] ss:$8 sps:$4 sm:$0xff]  }
 0x345   : > { %2113 = vmatprep.mubr.bf16.mxu1 %v8030_v36 }
 0x34c   : > { %2114 = vmatmul.mubr.bf16.gmra.mxu1 %v8032_v46 }
 0x34d   : > { %2121 = vmatprep.mubr.bf16.mxu1 %v8033_v45 }
 0x354   : > { %2122 = vmatmul.mubr.bf16.gmra.mxu1 %v8035_v1 }
 0x355   : > { %2129 = vmatprep.mubr.bf16.mxu1 %v8036_v42  ;;  %v8093_v42 = vld [vmem:[%s13381_s3 + $0x1c0] ss:$8 sps:$4 sm:$0xff]  }
 0x35c   : > { %2130 = vmatmul.mubr.bf16.gmra.mxu1 %v8038_v4 }
 0x35d   : > { %2137 = vmatprep.mubr.bf16.mxu1 %v8039_v3  ;;  %v8098_v3 = vld [vmem:[%s13381_s3 + $0x1d4] ss:$8 sps:$4 sm:$0xff]  }
 0x364   : > { %2138 = vmatmul.mubr.bf16.gmra.mxu1 %v8041_v32 }
 0x365   : > { %2145 = vmatprep.mubr.bf16.mxu1 %v8042_v30 }
 0x36c   : > { %2146 = vmatmul.mubr.bf16.gmra.mxu1 %v8044_v25 }
 0x36d   : > { %2153 = vmatprep.mubr.bf16.mxu1 %v8045_v31 }
 0x374   : > { %2154 = vmatmul.mubr.bf16.gmra.mxu1 %v8047_v61  ;;  %v8096_v61 = vld [vmem:[%s13381_s3 + $0x1d0] ss:$8 sps:$4 sm:$0xff]  }
 0x375   : > { %2161 = vmatprep.mubr.bf16.mxu1 %v8048_v9 }
 0x37c   : > { %2162 = vmatmul.mubr.bf16.gmra.mxu1 %v8050_v35  ;;  %v8101_v35 = vld [vmem:[%s13381_s3 + $0x1e4] ss:$8 sps:$4 sm:$0xff]  }
 0x37d   : > { %2169 = vmatprep.mubr.bf16.mxu1 %v8051_v5 }
 0x384   : > { %2170 = vmatmul.mubr.bf16.gmra.mxu1 %v8053_v62 }
 0x385   : > { %2177 = vmatprep.mubr.bf16.mxu1 %v8054_v26 }
 0x38c   : > { %2178 = vmatmul.mubr.bf16.gmra.mxu1 %v8056_v20 }
 0x38d   : > { %2185 = vmatprep.mubr.bf16.mxu1 %v8057_v8  ;;  %v8099_v8 = vld [vmem:[%s13381_s3 + $0x1e0] ss:$8 sps:$4 sm:$0xff]  }
 0x394   : > { %2186 = vmatmul.mubr.bf16.gmra.mxu1 %v8059_v49 }
 0x395   : > { %2193 = vmatprep.mubr.bf16.mxu1 %v8060_v16  ;;  %v8104_v16 = vld [vmem:[%s13381_s3 + $0x1f4] ss:$8 sps:$4 sm:$0xff]  }
 0x39c   : > { %2194 = vmatmul.mubr.bf16.gmra.mxu1 %v8062_v14 }
 0x39d   : > { %2201 = vmatprep.mubr.bf16.mxu1 %v8063_v22 }
 0x3a4   : > { %2202 = vmatmul.mubr.bf16.gmra.mxu1 %v8065_v10 }
 0x3a5   : > { %2209 = vmatprep.mubr.bf16.mxu1 %v8066_v2 }
 0x3ac   : > { %2210 = vmatmul.mubr.bf16.gmra.mxu1 %v8068_v63  ;;  %v8102_v63 = vld [vmem:[%s13381_s3 + $0x1f0] ss:$8 sps:$4 sm:$0xff]  }
 0x3ad   : > { %2217 = vmatprep.mubr.bf16.mxu1 %v8069_v6 }
 0x3b4   : > { %2218 = vmatmul.mubr.bf16.gmra.mxu1 %v8071_v11 }
 0x3b5   : > { %2225 = vmatprep.mubr.bf16.mxu1 %v8072_v47 }
 0x3bc   : > { %2226 = vmatmul.mubr.bf16.gmra.mxu1 %v8074_v48 }
 0x3bd   : > { %2233 = vmatprep.mubr.bf16.mxu1 %v8075_v54 }
 0x3c4   : > { %2234 = vmatmul.mubr.bf16.gmra.mxu1 %v8077_v39 }
 0x3c5   : > { %2241 = vmatprep.mubr.bf16.mxu1 %v8078_v37 }
 0x3cc   : > { %2242 = vmatmul.mubr.bf16.gmra.mxu1 %v8080_v13 }
 0x3cd   : > { %2249 = vmatprep.mubr.bf16.mxu1 %v8081_v52 }
 0x3d4   : > { %v9972_v58 = vpop.f32.mrf.mxu1  ;;  %2250 = vmatmul.mubr.bf16.gmra.mxu1 %v8083_v44 }
 0x3d5   : > { %2257 = vmatprep.mubr.bf16.mxu1 %v8084_v38 }
 0x3d6   : > { %v2061_v51 = vpop.f32.mrf.mxu1 }
 0x3d8   : > { %v9974_v23 = vpop.f32.mrf.mxu1 }
 0x3d9   : > { %v2314_v21 = vpack.c.bf16 %v9974_v23, %v9972_v58 }
 0x3da   : > { %v2064_v34 = vpop.f32.mrf.mxu1 }
 0x3dc   : > { %v9987_v59 = vpop.f32.mrf.mxu1  ;;  %2258 = vmatmul.mubr.bf16.gmra.mxu1 %v8086_v43 }
 0x3dd   : > { %2265 = vmatprep.mubr.bf16.mxu1 %v8087_v60 }
 0x3de   : > { %v2069_v15 = vpop.f32.mrf.mxu1 }
 0x3e0   : > { %v9992_v55 = vpop.f32.mrf.mxu1 }
 0x3e1   : > { %v2315_v57 = vpack.c.bf16 %v9992_v55, %v9987_v59 }
 0x3e2   : > { %v2072_v7 = vpop.f32.mrf.mxu1 }
 0x3e4   : > { %v10002_v41 = vpop.f32.mrf.mxu1  ;;  %2266 = vmatmul.mubr.bf16.gmra.mxu1 %v8089_v19 }
 0x3e5   : > { %2273 = vmatprep.mubr.bf16.mxu1 %v8090_v40 }
 0x3e6   : > { %v2077_v28 = vpop.f32.mrf.mxu1 }
 0x3e8   : > { %v10004_v24 = vpop.f32.mrf.mxu1 }
 0x3e9   : > { %v2316_v12 = vpack.c.bf16 %v10004_v24, %v10002_v41 }
 0x3ea   : > { %v2080_v36 = vpop.f32.mrf.mxu1 }
 0x3ec   : > { %v10014_v46 = vpop.f32.mrf.mxu1  ;;  %2274 = vmatmul.mubr.bf16.gmra.mxu1 %v8092_v18 }
 0x3ed   : > { %2281 = vmatprep.mubr.bf16.mxu1 %v8095_v29 }
 0x3ee   : > { %v2085_v45 = vpop.f32.mrf.mxu1 }
 0x3f0   : > { %v10016_v1 = vpop.f32.mrf.mxu1 }
 0x3f1   : > { %v2317_v4 = vpack.c.bf16 %v10016_v1, %v10014_v46 }
 0x3f2   : > { %v2088_v32 = vpop.f32.mrf.mxu1 }
 0x3f4   : > { %v10026_v30 = vpop.f32.mrf.mxu1  ;;  %2282 = vmatmul.mubr.bf16.gmra.mxu1 %v8093_v42 }
 0x3f5   : > { %2289 = vmatprep.mubr.bf16.mxu1 %v8098_v3 }
 0x3f6   : > { %v2093_v25 = vpop.f32.mrf.mxu1 }
 0x3f8   : > { %v10028_v31 = vpop.f32.mrf.mxu1 }
 0x3f9   : > { %v2318_v9 = vpack.c.bf16 %v10028_v31, %v10026_v30 }
 0x3fa   : > { %v2096_v5 = vpop.f32.mrf.mxu1 }
 0x3fc   : > { %v10038_v62 = vpop.f32.mrf.mxu1  ;;  %2290 = vmatmul.mubr.bf16.gmra.mxu1 %v8096_v61 }
 0x3fd   : > { %2297 = vmatprep.mubr.bf16.mxu1 %v8101_v35 }
 0x3fe   : > { %v2101_v26 = vpop.f32.mrf.mxu1 }
 0x400   : > { %v10040_v20 = vpop.f32.mrf.mxu1 }
 0x401   : > { %v2319_v49 = vpack.c.bf16 %v10040_v20, %v10038_v62 }
 0x402   : > { %v2104_v14 = vpop.f32.mrf.mxu1 }
 0x404   : > { %v10050_v22 = vpop.f32.mrf.mxu1  ;;  %2298 = vmatmul.mubr.bf16.gmra.mxu1 %v8099_v8 }
 0x405   : > { %2305 = vmatprep.mubr.bf16.mxu1 %v8104_v16 }
 0x406   : > { %v2109_v10 = vpop.f32.mrf.mxu1 }
 0x408   : > { %v10052_v2 = vpop.f32.mrf.mxu1 }
 0x409   : > { %v2320_v6 = vpack.c.bf16 %v10052_v2, %v10050_v22 }
 0x40a   : > { %v2112_v11 = vpop.f32.mrf.mxu1 }
 0x40c   : > { %v10059_v47 = vpop.f32.mrf.mxu1  ;;  %2306 = vmatmul.mubr.bf16.gmra.mxu1 %v8102_v63 }
 0x40d   : > { %4941 = vmatprep.mubr.bf16.mxu1 %v9663_v33 }
 0x40e   : > { %v2117_v48 = vpop.f32.mrf.mxu1 }
 0x410   : > { %v10062_v54 = vpop.f32.mrf.mxu1 }
 0x411   : > { %v2321_v39 = vpack.c.bf16 %v10062_v54, %v10059_v47 }
 0x412   : > { %v2120_v37 = vpop.f32.mrf.mxu1 }
 0x414   : > { %v10066_v13 = vpop.f32.mrf.mxu1 }
 0x416   : > { %v2125_v52 = vpop.f32.mrf.mxu1 }
 0x418   : > { %v10068_v44 = vpop.f32.mrf.mxu1 }
 0x419   : > { %v2322_v38 = vpack.c.bf16 %v10068_v44, %v10066_v13 }
 0x41a   : > { %v2128_v51 = vpop.f32.mrf.mxu1 }
 0x41c   : > { %v10072_v43 = vpop.f32.mrf.mxu1 }
 0x41e   : > { %v2133_v60 = vpop.f32.mrf.mxu1 }
 0x420   : > { %v10074_v33 = vpop.f32.mrf.mxu1 }
 0x421   : > { %v2323_v34 = vpack.c.bf16 %v10074_v33, %v10072_v43 }
 0x422   : > { %v2136_v17 = vpop.f32.mrf.mxu1 }
 0x424   : > { %v10078_v15 = vpop.f32.mrf.mxu1 }
 0x426   : > { %v2141_v50 = vpop.f32.mrf.mxu1 }
 0x427   : > { %v8107_v50 = vld [vmem:[%s13382_s4 + $0x8] sm:$0xff]  }
 0x428   : > { %v10080_v19 = vpop.f32.mrf.mxu1  ;;  %7737 = vmatprep.subr.bf16.mxu0 %v8107_v50 }
 0x429   : > { %v2324_v40 = vpack.c.bf16 %v10080_v19, %v10078_v15 }
 0x42a   : > { %v2144_v7 = vpop.f32.mrf.mxu1 }
 0x42c   : > { %v10084_v28 = vpop.f32.mrf.mxu1 }
 0x42e   : > { %v2149_v18 = vpop.f32.mrf.mxu1 }
 0x430   : > { %v10086_v29 = vpop.f32.mrf.mxu1 }
 0x431   : > { %v2325_v36 = vpack.c.bf16 %v10086_v29, %v10084_v28 }
 0x432   : > { %v2152_v45 = vpop.f32.mrf.mxu1 }
 0x434   : > { %v10090_v42 = vpop.f32.mrf.mxu1 }
 0x436   : > { %v2157_v3 = vpop.f32.mrf.mxu1 }
 0x438   : > { %v10092_v32 = vpop.f32.mrf.mxu1 }
 0x439   : > { %v13535_v58 = vpack.c.bf16 %v10092_v32, %v10090_v42 }
 0x43a   : > { %v2160_v61 = vpop.f32.mrf.mxu1 }
 0x43c   : > { %v10096_v35 = vpop.f32.mrf.mxu1 }
 0x43e   : > { %v2165_v5 = vpop.f32.mrf.mxu1 }
 0x440   : > { %v10098_v26 = vpop.f32.mrf.mxu1 }
 0x441   : > { %v13536_v23 = vpack.c.bf16 %v10098_v26, %v10096_v35 }
 0x442   : > { %v2168_v16 = vpop.f32.mrf.mxu1 }
 0x444   : > { %v10102_v14 = vpop.f32.mrf.mxu1 }
 0x446   : > { %v2173_v10 = vpop.f32.mrf.mxu1 }
 0x448   : > { %v10104_v63 = vpop.f32.mrf.mxu1 }
 0x44a   : > { %v2176_v48 = vpop.f32.mrf.mxu1 }
 0x44c   : > { %v10108_v37 = vpop.f32.mrf.mxu1 }
 0x44e   : > { %v2181_v52 = vpop.f32.mrf.mxu1 }
 0x44f   : > { %v8108_v52 = vld [vmem:[%s13382_s4] sm:$0xff]  }
 0x450   : > { %v10110_v51 = vpop.f32.mrf.mxu1 }
 0x451   : > { %v13538_v59 = vpack.c.bf16 %v10110_v51, %v10108_v37 }
 0x452   : > { %v2184_v17 = vpop.f32.mrf.mxu1 }
 0x454   : > { %v2187_v7 = vpop.f32.mrf.mxu1 }
 0x456   : > { %v2189_v18 = vpop.f32.mrf.mxu1 }
 0x458   : > { %v2190_v45 = vpop.f32.mrf.mxu1 }
 0x459   : > { %v2330_v3 = vpack.c.bf16 %v2190_v45, %v2187_v7 }
 0x45a   : > { %v2192_v61 = vpop.f32.mrf.mxu1 }
 0x45b   : > { %7705 = vmatprep.mubr.msk.bf16.mxu0 %vm928_vm2, %v2330_v3 }
 0x45c   : > { %v2195_v5 = vpop.f32.mrf.mxu1 }
 0x45e   : > { %v2197_v16 = vpop.f32.mrf.mxu1 }
 0x460   : > { %v2198_v10 = vpop.f32.mrf.mxu1 }
 0x461   : > { %v2331_v48 = vpack.c.bf16 %v2198_v10, %v2195_v5 }
 0x462   : > { %v2200_v17 = vpop.f32.mrf.mxu1 }
 0x463   : > { %7706 = vmatmul.mubr.msk.bf16.vlgmr.msra.gmra.mxu0 %vm928_vm2, %v2331_v48 }
 0x464   : > { %v2203_v60 = vpop.f32.mrf.mxu1  ;;  %7738 = vmatpush3.bf16.msra.mxu0 %v8107_v50 }
 0x465   : > { %7739 = vmatprep.subr.bf16.mxu0 %v8108_v52 }
 0x466   : > { %v2205_v18 = vpop.f32.mrf.mxu1 }
 0x468   : > { %v2206_v11 = vpop.f32.mrf.mxu1  ;;  %7740 = vmatpush3.bf16.msra.mxu0 %v8108_v52 }
 0x469   : > { %v2332_v7 = vpack.c.bf16 %v2206_v11, %v2203_v60 }
 0x46a   : > { %v2208_v45 = vpop.f32.mrf.mxu1 }
 0x46b   : > { %7709 = vmatprep.mubr.msk.bf16.mxu0 %vm928_vm2, %v2332_v7 }
 0x46c   : > { %v2211_v3 = vpop.f32.mrf.mxu1 }
 0x46e   : > { %v2213_v61 = vpop.f32.mrf.mxu1 }
 0x470   : > { %v2214_v5 = vpop.f32.mrf.mxu1 }
 0x471   : > { %v2333_v16 = vpack.c.bf16 %v2214_v5, %v2211_v3 }
 0x472   : > { %v2216_v10 = vpop.f32.mrf.mxu1 }
 0x473   : > { %7710 = vmatmul.mubr.msk.bf16.gmra.mxu0 %vm928_vm2, %v2333_v16 }
 0x474   : > { %v2219_v17 = vpop.f32.mrf.mxu1 }
 0x476   : > { %v2221_v8 = vpop.f32.mrf.mxu1 }
 0x478   : > { %v2222_v48 = vpop.f32.mrf.mxu1 }
 0x479   : > { %v2334_v25 = vpack.c.bf16 %v2222_v48, %v2219_v17 }
 0x47a   : > { %v2224_v50 = vpop.f32.mrf.mxu1 }
 0x47b   : > { %7713 = vmatprep.mubr.msk.bf16.mxu0 %vm928_vm2, %v2334_v25 }
 0x47c   : > { %v2227_v18 = vpop.f32.mrf.mxu1 }
 0x47e   : > { %v2229_v52 = vpop.f32.mrf.mxu1 }
 0x480   : > { %v2230_v11 = vpop.f32.mrf.mxu1 }
 0x481   : > { %v2335_v60 = vpack.c.bf16 %v2230_v11, %v2227_v18 }
 0x482   : > { %v2232_v45 = vpop.f32.mrf.mxu1 }
 0x483   : > { %7714 = vmatmul.mubr.msk.bf16.gmra.mxu0 %vm928_vm2, %v2335_v60 }
 0x484   : > { %v2235_v7 = vpop.f32.mrf.mxu1 }
 0x486   : > { %v2237_v61 = vpop.f32.mrf.mxu1 }
 0x488   : > { %v2238_v3 = vpop.f32.mrf.mxu1 }
 0x489   : > { %v2336_v5 = vpack.c.bf16 %v2238_v3, %v2235_v7 }
 0x48a   : > { %v2240_v10 = vpop.f32.mrf.mxu1 }
 0x48b   : > { %7717 = vmatprep.mubr.msk.bf16.mxu0 %vm928_vm2, %v2336_v5 }
 0x48c   : > { %v2243_v8 = vpop.f32.mrf.mxu1 }
 0x48e   : > { %v2245_v16 = vpop.f32.mrf.mxu1 }
 0x490   : > { %v2246_v17 = vpop.f32.mrf.mxu1 }
 0x491   : > { %v2337_v48 = vpack.c.bf16 %v2246_v17, %v2243_v8 }
 0x492   : > { %v2248_v50 = vpop.f32.mrf.mxu1 }
 0x493   : > { %7718 = vmatmul.mubr.msk.bf16.gmra.mxu0 %vm928_vm2, %v2337_v48 }
 0x494   : > { %v2251_v25 = vpop.f32.mrf.mxu1 }
 0x496   : > { %v2253_v52 = vpop.f32.mrf.mxu1 }
 0x498   : > { %v2254_v18 = vpop.f32.mrf.mxu1 }
 0x499   : > { %v2338_v11 = vpack.c.bf16 %v2254_v18, %v2251_v25 }
 0x49a   : > { %v2256_v45 = vpop.f32.mrf.mxu1 }
 0x49b   : > { %7721 = vmatprep.mubr.msk.bf16.mxu0 %vm928_vm2, %v2338_v11 }
 0x49c   : > { %v2259_v60 = vpop.f32.mrf.mxu1 }
 0x49e   : > { %v2261_v61 = vpop.f32.mrf.mxu1 }
 0x4a0   : > { %v2262_v7 = vpop.f32.mrf.mxu1 }
 0x4a1   : > { %v2339_v3 = vpack.c.bf16 %v2262_v7, %v2259_v60 }
 0x4a2   : > { %v2264_v10 = vpop.f32.mrf.mxu1 }
 0x4a3   : > { %7722 = vmatmul.mubr.msk.bf16.gmra.mxu0 %vm928_vm2, %v2339_v3 }
 0x4a4   : > { %v2267_v5 = vpop.f32.mrf.mxu1 }
 0x4a6   : > { %v2269_v16 = vpop.f32.mrf.mxu1 }
 0x4a8   : > { %v2270_v8 = vpop.f32.mrf.mxu1 }
 0x4a9   : > { %v2340_v17 = vpack.c.bf16 %v2270_v8, %v2267_v5 }
 0x4aa   : > { %v2272_v50 = vpop.f32.mrf.mxu1 }
 0x4ab   : > { %7725 = vmatprep.mubr.msk.bf16.mxu0 %vm928_vm2, %v2340_v17 }
 0x4ac   : > { %v2275_v48 = vpop.f32.mrf.mxu1 }
 0x4ae   : > { %v2277_v52 = vpop.f32.mrf.mxu1 }
 0x4b0   : > { %v2278_v25 = vpop.f32.mrf.mxu1 }
 0x4b1   : > { %v2341_v18 = vpack.c.bf16 %v2278_v25, %v2275_v48 }
 0x4b2   : > { %v2280_v45 = vpop.f32.mrf.mxu1 }
 0x4b3   : > { %7726 = vmatmul.mubr.msk.bf16.gmra.mxu0 %vm928_vm2, %v2341_v18 }
 0x4b4   : > { %v2283_v11 = vpop.f32.mrf.mxu1 }
 0x4b6   : > { %v2285_v61 = vpop.f32.mrf.mxu1 }
 0x4b8   : > { %v2286_v60 = vpop.f32.mrf.mxu1 }
 0x4b9   : > { %v2342_v7 = vpack.c.bf16 %v2286_v60, %v2283_v11 }
 0x4ba   : > { %v2288_v10 = vpop.f32.mrf.mxu1 }
 0x4bb   : > { %7729 = vmatprep.mubr.msk.bf16.mxu0 %vm928_vm2, %v2342_v7 }
 0x4bc   : > { %v2291_v3 = vpop.f32.mrf.mxu1 }
 0x4be   : > { %v2293_v16 = vpop.f32.mrf.mxu1 }
 0x4c0   : > { %v2294_v5 = vpop.f32.mrf.mxu1 }
 0x4c1   : > { %v2343_v8 = vpack.c.bf16 %v2294_v5, %v2291_v3 }
 0x4c2   : > { %v2296_v50 = vpop.f32.mrf.mxu1 }
 0x4c3   : > { %7730 = vmatmul.mubr.msk.bf16.gmra.mxu0 %vm928_vm2, %v2343_v8  ;;  %v13539_v50 = vld [vmem:[#allocation2_spill] sm:$0xff] }
 0x4c4   : > { %v2299_v17 = vpop.f32.mrf.mxu1 }
 0x4c6   : > { %v2301_v52 = vpop.f32.mrf.mxu1 }
 0x4c8   : > { %v2302_v48 = vpop.f32.mrf.mxu1 }
 0x4c9   : > { %v2344_v25 = vpack.c.bf16 %v2302_v48, %v2299_v17 }
 0x4ca   : > { %v2304_v45 = vpop.f32.mrf.mxu1 }
 0x4cb   : > { %7733 = vmatprep.mubr.msk.bf16.mxu0 %vm928_vm2, %v2344_v25 }
 0x4cc   : > { %v2307_v18 = vpop.f32.mrf.mxu1 }
 0x4ce   : > { %v2309_v61 = vpop.f32.mrf.mxu1 }
 0x4d0   : > { %v2310_v11 = vpop.f32.mrf.mxu1 }
 0x4d1   : > { %v2345_v60 = vpack.c.bf16 %v2310_v11, %v2307_v18  ;;  %v13540_v18 = vld [vmem:[#allocation4_spill] sm:$0xff] }
 0x4d2   : > { %v2312_v10 = vpop.f32.mrf.mxu1 }
 0x4d3   : > { %7734 = vmatmul.mubr.msk.bf16.gmra.mxu0 %vm928_vm2, %v2345_v60  ;;  %v13541_v60 = vld [vmem:[#allocation3_spill] sm:$0xff] }
 0x4d4   : > { %7741 = vmatprep.mubr.msk.bf16.mxu0 %vm928_vm2, %v2314_v21  ;;  %v13537_v21 = vpack.c.bf16 %v10104_v63, %v10102_v14 }
 0x4db   : > { %7742 = vmatmul.mubr.msk.bf16.vlgmr.msra.gmra.mxu0 %vm928_vm2, %v2315_v57 }
 0x4dc   : > { %7745 = vmatprep.mubr.msk.bf16.mxu0 %vm928_vm2, %v2316_v12 }
 0x4e3   : > { %7746 = vmatmul.mubr.msk.bf16.gmra.mxu0 %vm928_vm2, %v2317_v4 }
 0x4e4   : > { %7749 = vmatprep.mubr.msk.bf16.mxu0 %vm928_vm2, %v2318_v9 }
 0x4eb   : > { %7750 = vmatmul.mubr.msk.bf16.gmra.mxu0 %vm928_vm2, %v2319_v49 }
 0x4ec   : > { %7753 = vmatprep.mubr.msk.bf16.mxu0 %vm928_vm2, %v2320_v6 }
 0x4f3   : > { %7754 = vmatmul.mubr.msk.bf16.gmra.mxu0 %vm928_vm2, %v2321_v39 }
 0x4f4   : > { %7757 = vmatprep.mubr.msk.bf16.mxu0 %vm928_vm2, %v2322_v38 }
 0x4fb   : > { %7758 = vmatmul.mubr.msk.bf16.gmra.mxu0 %vm928_vm2, %v2323_v34 }
 0x4fc   : > { %7761 = vmatprep.mubr.msk.bf16.mxu0 %vm928_vm2, %v2324_v40 }
 0x503   : > { %7762 = vmatmul.mubr.msk.bf16.gmra.mxu0 %vm928_vm2, %v2325_v36 }
 0x504   : > { %7765 = vmatprep.mubr.msk.bf16.mxu0 %vm928_vm2, %v13535_v58 }
 0x50b   : > { %7766 = vmatmul.mubr.msk.bf16.gmra.mxu0 %vm928_vm2, %v13536_v23 }
 0x50c   : > { %7769 = vmatprep.mubr.msk.bf16.mxu0 %vm928_vm2, %v13537_v21 }
 0x513   : > { %7770 = vmatmul.mubr.msk.bf16.gmra.mxu0 %vm928_vm2, %v13538_v59 }
 0x523   : > { %v7707_v55 = vpop.f32.mrf.mxu0 }
 0x525   : > { %v2440_v57 = vpop.f32.mrf.mxu0 }
 0x527   : > { %v7708_v41 = vpop.f32.mrf.mxu0 }
 0x529   : > { %v2443_v24 = vpop.f32.mrf.mxu0 }
 0x533   : > { %v7711_v12 = vpop.f32.mrf.mxu0 }
 0x535   : > { %v2456_v46 = vpop.f32.mrf.mxu0 }
 0x537   : > { %v7712_v1 = vpop.f32.mrf.mxu0 }
 0x539   : > { %v2459_v4 = vpop.f32.mrf.mxu0 }
 0x543   : > { %v7715_v30 = vpop.f32.mrf.mxu0 }
 0x545   : > { %v2472_v31 = vpop.f32.mrf.mxu0 }
 0x547   : > { %v10200_v9 = vpop.f32.mrf.mxu0 }
 0x549   : > { %v10202_v62 = vpop.f32.mrf.mxu0 }
 0x553   : > { %v10204_v20 = vpop.f32.mrf.mxu0 }
 0x555   : > { %v10206_v49 = vpop.f32.mrf.mxu0 }
 0x557   : > { %v10208_v22 = vpop.f32.mrf.mxu0 }
 0x559   : > { %v10210_v2 = vpop.f32.mrf.mxu0 }
 0x563   : > { %v10212_v6 = vpop.f32.mrf.mxu0 }
 0x565   : > { %v10214_v47 = vpop.f32.mrf.mxu0 }
 0x567   : > { %v10216_v54 = vpop.f32.mrf.mxu0 }
 0x569   : > { %v10218_v39 = vpop.f32.mrf.mxu0 }
 0x573   : > { %v10220_v13 = vpop.f32.mrf.mxu0 }
 0x575   : > { %v10222_v44 = vpop.f32.mrf.mxu0 }
 0x577   : > { %v10224_v38 = vpop.f32.mrf.mxu0 }
 0x579   : > { %v10226_v43 = vpop.f32.mrf.mxu0 }
 0x583   : > { %v10228_v33 = vpop.f32.mrf.mxu0 }
 0x585   : > { %v10230_v34 = vpop.f32.mrf.mxu0 }
 0x587   : > { %v10232_v15 = vpop.f32.mrf.mxu0 }
 0x589   : > { %v10234_v19 = vpop.f32.mrf.mxu0 }
 0x593   : > { %v10236_v40 = vpop.f32.mrf.mxu0 }
 0x595   : > { %v10238_v28 = vpop.f32.mrf.mxu0 }
 0x597   : > { %v10240_v29 = vpop.f32.mrf.mxu0 }
 0x599   : > { %v10242_v36 = vpop.f32.mrf.mxu0 }
 0x59b   : > { %v7743_v42 = vpop.f32.mrf.mxu0 }
 0x59c   : > { %v2670_v35 = vadd.f32 %v7743_v42, %v7707_v55  ;;  %v13542_v55 = vld [vmem:[#allocation6_spill] sm:$0xff] }
 0x59d   : > { %v2661_v32 = vpop.f32.mrf.mxu0 }
 0x59e   : > { %v2662_v26 = vadd.f32 %v2661_v32, %v2440_v57  ;;  %v10248_v7 = vadd.f32 %v2670_v35, %v8879_v53  ;;  %v13544_v35 = vld [vmem:[#allocation8_spill] sm:$0xff] }
 0x59f   : > { %v7744_v14 = vpop.f32.mrf.mxu0 }
 0x5a0   : > { %v10245_v63 = vadd.f32 %v2662_v26, %v8884_v56  ;;  %v2673_v37 = vadd.f32 %v7744_v14, %v7708_v41  ;;  %v2828_v53 = vsel %vm928_vm2, %v10248_v7, 0.0  ;;  %v13546_v14 = vld [vmem:[#allocation7_spill] sm:$0xff] }
 0x5a1   : > { %v2664_v51 = vpop.f32.mrf.mxu0 }
 0x5a2   : > { %v2665_v3 = vadd.f32 %v2664_v51, %v2443_v24  ;;  %v2822_v16 = vsel %vm928_vm2, %v10245_v63, 0.0  ;;  %v10256_v17 = vadd.f32 %v2673_v37, %v13539_v50  ;;  %v13547_v50 = vld [vmem:[#allocation10_spill] sm:$0xff] }
 0x5a3   : > { %v7747_v5 = vpop.f32.mrf.mxu0  ;;  %2823 = vadd.xlane.f32.xlu0 %v2822_v16 }
 0x5a4   : > { %v10253_v8 = vadd.f32 %v2665_v3, %v8898_v0  ;;  %v2686_v56 = vadd.f32 %v7747_v5, %v7711_v12  ;;  %v2831_v11 = vsel %vm928_vm2, %v10256_v17, 0.0  ;;  %v13543_v12 = vld [vmem:[#allocation5_spill] sm:$0xff] }
 0x5a5   : > { %v2677_v52 = vpop.f32.mrf.mxu0 }
 0x5a6   : > { %v2678_v48 = vadd.f32 %v2677_v52, %v2456_v46  ;;  %v2825_v25 = vsel %vm928_vm2, %v10253_v8, 0.0  ;;  %v10268_v10 = vadd.f32 %v2686_v56, %v13541_v60 }
 0x5a7   : > { %v7748_v45 = vpop.f32.mrf.mxu0  ;;  %2826 = vadd.xlane.f32.xlu1 %v2825_v25  ;;  %2829 = vadd.xlane.f32.xlu0 %v2828_v53  ;;  %v13549_v25 = vld [vmem:[#allocation9_spill] sm:$0xff] }
 0x5a8   : > { %v10263_v61 = vadd.f32 %v2678_v48, %v13540_v18  ;;  %v2689_v58 = vadd.f32 %v7748_v45, %v7712_v1  ;;  %v2840_v1 = vsel %vm928_vm2, %v10268_v10, 0.0 }
 0x5a9   : > { %v2680_v0 = vpop.f32.mrf.mxu0 }
 0x5aa   : > { %v2681_v23 = vadd.f32 %v2680_v0, %v2459_v4  ;;  %v2834_v21 = vsel %vm928_vm2, %v10263_v61, 0.0  ;;  %v10276_v46 = vadd.f32 %v2689_v58, %v13543_v12  ;;  %v13551_v0 = vld [vmem:[#allocation12_spill] sm:$0xff]  ;;  %v13557_v12 = vld [vmem:[#allocation13_spill] sm:$0xff] }
 0x5ab   : > { %v7751_v59 = vpop.f32.mrf.mxu0  ;;  %2832 = vadd.xlane.f32.xlu1 %v2831_v11  ;;  %2835 = vadd.xlane.f32.xlu0 %v2834_v21 }
 0x5ac   : > { %v10273_v57 = vadd.f32 %v2681_v23, %v13542_v55  ;;  %v2702_v41 = vadd.f32 %v7751_v59, %v7715_v30  ;;  %v2843_v3 = vsel %vm928_vm2, %v10276_v46, 0.0  ;;  %v13553_v23 = vld [vmem:[#allocation11_spill] sm:$0xff] }
 0x5ad   : > { %v2693_v24 = vpop.f32.mrf.mxu0 }
 0x5ae   : > { %v2694_v42 = vadd.f32 %v2693_v24, %v2472_v31  ;;  %v2837_v32 = vsel %vm928_vm2, %v10273_v57, 0.0  ;;  %v10286_v37 = vadd.f32 %v2702_v41, %v13546_v14  ;;  %v13555_v41 = vld [vmem:[#allocation14_spill] sm:$0xff]  ;;  %v13559_v14 = vld [vmem:[#allocation16_spill] sm:$0xff] }
 0x5af   : > { %v7752_v4 = vpop.f32.mrf.mxu0  ;;  %2838 = vadd.xlane.f32.xlu1 %v2837_v32  ;;  %2841 = vadd.xlane.f32.xlu0 %v2840_v1 }
 0x5b0   : > { %v10283_v26 = vadd.f32 %v2694_v42, %v13544_v35  ;;  %v2705_v51 = vadd.f32 %v7752_v4, %v10200_v9  ;;  %v2852_v48 = vsel %vm928_vm2, %v10286_v37, 0.0 }
 0x5b1   : > { %v2696_v30 = vpop.f32.mrf.mxu0 }
 0x5b2   : > { %13545 = vst [vmem:[#allocation2_spill] sm:$0xff] %v10283_v26  ;;  %v2697_v31 = vadd.f32 %v2696_v30, %v10202_v62  ;;  %v2846_v16 = vsel %vm928_vm2, %v10283_v26, 0.0  ;;  %v10300_v9 = vadd.f32 %v2705_v51, %v13549_v25 }
 0x5b3   : > { %v7755_v5 = vpop.f32.mrf.mxu0  ;;  %2844 = vadd.xlane.f32.xlu1 %v2843_v3  ;;  %2847 = vadd.xlane.f32.xlu0 %v2846_v16  ;;  %v13561_v3 = vld [vmem:[#allocation15_spill] sm:$0xff] }
 0x5b4   : > { %v10295_v52 = vadd.f32 %v2697_v31, %v13547_v50  ;;  %13550 = vst [vmem:[#allocation3_spill] sm:$0xff] %v10300_v9  ;;  %v2718_v62 = vadd.f32 %v7755_v5, %v10204_v20  ;;  %v2855_v20 = vsel %vm928_vm2, %v10300_v9, 0.0 }
 0x5b5   : > { %v2709_v56 = vpop.f32.mrf.mxu0 }
 0x5b6   : > { %13548 = vst [vmem:[#allocation4_spill] sm:$0xff] %v10295_v52  ;;  %v2710_v53 = vadd.f32 %v2709_v56, %v10206_v49  ;;  %v2849_v45 = vsel %vm928_vm2, %v10295_v52, 0.0  ;;  %v10311_v21 = vadd.f32 %v2718_v62, %v13553_v23  ;;  %v13563_v56 = vld [vmem:[#allocation18_spill] sm:$0xff]  ;;  %v13569_v23 = vld [vmem:[#allocation19_spill] sm:$0xff] }
 0x5b7   : > { %v7756_v18 = vpop.f32.mrf.mxu0  ;;  %2850 = vadd.xlane.f32.xlu1 %v2849_v45  ;;  %2853 = vadd.xlane.f32.xlu0 %v2852_v48 }
 0x5b8   : > { %v10307_v11 = vadd.f32 %v2710_v53, %v13551_v0  ;;  %v2721_v60 = vadd.f32 %v7756_v18, %v10208_v22  ;;  %13554 = vst [vmem:[#allocation5_spill] sm:$0xff] %v10311_v21  ;;  %v2864_v4 = vsel %vm928_vm2, %v10311_v21, 0.0  ;;  %v13565_v53 = vld [vmem:[#allocation17_spill] sm:$0xff] }
 0x5b9   : > { %v2712_v58 = vpop.f32.mrf.mxu0 }
 0x5ba   : > { %13552 = vst [vmem:[#allocation6_spill] sm:$0xff] %v10307_v11  ;;  %v2713_v59 = vadd.f32 %v2712_v58, %v10210_v2  ;;  %v2858_v49 = vsel %vm928_vm2, %v10307_v11, 0.0  ;;  %v10322_v22 = vadd.f32 %v2721_v60, %v13557_v12  ;;  %v13567_v60 = vld [vmem:[#allocation20_spill] sm:$0xff]  ;;  %v13571_v12 = vld [vmem:[#allocation22_spill] sm:$0xff] }
 0x5bb   : > { %v7759_v55 = vpop.f32.mrf.mxu0  ;;  %2856 = vadd.xlane.f32.xlu1 %v2855_v20  ;;  %2859 = vadd.xlane.f32.xlu0 %v2858_v49 }
 0x5bc   : > { %v10319_v24 = vadd.f32 %v2713_v59, %v13555_v41  ;;  %13558 = vst [vmem:[#allocation7_spill] sm:$0xff] %v10322_v22  ;;  %v2734_v32 = vadd.f32 %v7759_v55, %v10212_v6  ;;  %v2867_v31 = vsel %vm928_vm2, %v10322_v22, 0.0 }
 0x5bd   : > { %v2725_v42 = vpop.f32.mrf.mxu0 }
 0x5be   : > { %13556 = vst [vmem:[#allocation8_spill] sm:$0xff] %v10319_v24  ;;  %v2726_v2 = vadd.f32 %v2725_v42, %v10214_v47  ;;  %v2861_v1 = vsel %vm928_vm2, %v10319_v24, 0.0  ;;  %v10336_v6 = vadd.f32 %v2734_v32, %v13561_v3 }
 0x5bf   : > { %v7760_v35 = vpop.f32.mrf.mxu0  ;;  %2862 = vadd.xlane.f32.xlu1 %v2861_v1  ;;  %2865 = vadd.xlane.f32.xlu0 %v2864_v4  ;;  %v13573_v1 = vld [vmem:[#allocation21_spill] sm:$0xff] }
 0x5c0   : > { %v10331_v30 = vadd.f32 %v2726_v2, %v13559_v14  ;;  %13562 = vst [vmem:[#allocation9_spill] sm:$0xff] %v10336_v6  ;;  %v2737_v47 = vadd.f32 %v7760_v35, %v10216_v54 }
 0x5c1   : > { %v2728_v51 = vpop.f32.mrf.mxu0 }
 0x5c2   : > { %13560 = vst [vmem:[#allocation10_spill] sm:$0xff] %v10331_v30  ;;  %v2729_v16 = vadd.f32 %v2728_v51, %v10218_v39  ;;  %v2870_v5 = vsel %vm928_vm2, %v10331_v30, 0.0  ;;  %v10347_v45 = vadd.f32 %v2737_v47, %v13565_v53  ;;  %v2876_v39 = vsel %vm928_vm2, %v10336_v6, 0.0  ;;  %v13575_v51 = vld [vmem:[#allocation24_spill] sm:$0xff]  ;;  %v13581_v53 = vld [vmem:[#allocation25_spill] sm:$0xff] }
 0x5c3   : > { %v7763_v50 = vpop.f32.mrf.mxu0  ;;  %2868 = vadd.xlane.f32.xlu1 %v2867_v31  ;;  %2871 = vadd.xlane.f32.xlu0 %v2870_v5 }
 0x5c4   : > { %v10343_v48 = vadd.f32 %v2729_v16, %v13563_v56  ;;  %v2750_v25 = vadd.f32 %v7763_v50, %v10220_v13  ;;  %13566 = vst [vmem:[#allocation11_spill] sm:$0xff] %v10347_v45  ;;  %v2879_v49 = vsel %vm928_vm2, %v10347_v45, 0.0  ;;  %v13577_v16 = vld [vmem:[#allocation23_spill] sm:$0xff] }
 0x5c5   : > { %v2741_v62 = vpop.f32.mrf.mxu0 }
 0x5c6   : > { %13564 = vst [vmem:[#allocation12_spill] sm:$0xff] %v10343_v48  ;;  %v2742_v18 = vadd.f32 %v2741_v62, %v10222_v44  ;;  %v2873_v54 = vsel %vm928_vm2, %v10343_v48, 0.0  ;;  %v10358_v13 = vadd.f32 %v2750_v25, %v13569_v23  ;;  %v13579_v25 = vld [vmem:[#allocation26_spill] sm:$0xff]  ;;  %v13583_v23 = vld [vmem:[#allocation27_spill] sm:$0xff] }
 0x5c7   : > { %v7764_v0 = vpop.f32.mrf.mxu0  ;;  %2874 = vadd.xlane.f32.xlu1 %v2873_v54  ;;  %2877 = vadd.xlane.f32.xlu0 %v2876_v39 }
 0x5c8   : > { %v10355_v58 = vadd.f32 %v2742_v18, %v13567_v60  ;;  %13570 = vst [vmem:[#allocation13_spill] sm:$0xff] %v10358_v13  ;;  %v2753_v20 = vadd.f32 %v7764_v0, %v10224_v38  ;;  %v2888_v2 = vsel %vm928_vm2, %v10358_v13, 0.0 }
 0x5c9   : > { %v2744_v59 = vpop.f32.mrf.mxu0 }
 0x5ca   : > { %13568 = vst [vmem:[#allocation14_spill] sm:$0xff] %v10355_v58  ;;  %v2745_v44 = vadd.f32 %v2744_v59, %v10226_v43  ;;  %v2882_v55 = vsel %vm928_vm2, %v10355_v58, 0.0  ;;  %v10372_v38 = vadd.f32 %v2753_v20, %v13573_v1 }
 0x5cb   : > { %v7767_v41 = vpop.f32.mrf.mxu0  ;;  %2880 = vadd.xlane.f32.xlu1 %v2879_v49  ;;  %2883 = vadd.xlane.f32.xlu0 %v2882_v55  ;;  %v13585_v49 = vld [vmem:[#allocation28_spill] sm:$0xff] }
 0x5cc   : > { %v10367_v42 = vadd.f32 %v2745_v44, %v13571_v12  ;;  %13574 = vst [vmem:[#allocation15_spill] sm:$0xff] %v10372_v38  ;;  %v2766_v43 = vadd.f32 %v7767_v41, %v10228_v33  ;;  %v2891_v33 = vsel %vm928_vm2, %v10372_v38, 0.0  ;;  %v13587_v12 = vld [vmem:[#allocation29_spill] sm:$0xff] }
 0x5cd   : > { %v2757_v32 = vpop.f32.mrf.mxu0 }
 0x5ce   : > { %13572 = vst [vmem:[#allocation16_spill] sm:$0xff] %v10367_v42  ;;  %v2758_v4 = vadd.f32 %v2757_v32, %v10230_v34  ;;  %v2885_v35 = vsel %vm928_vm2, %v10367_v42, 0.0  ;;  %v10383_v5 = vadd.f32 %v2766_v43, %v13577_v16 }
 0x5cf   : > { %v7768_v14 = vpop.f32.mrf.mxu0  ;;  %2886 = vadd.xlane.f32.xlu1 %v2885_v35  ;;  %2889 = vadd.xlane.f32.xlu0 %v2888_v2  ;;  %v13589_v2 = vld [vmem:[#allocation30_spill] sm:$0xff] }
 0x5d0   : > { %v10379_v31 = vadd.f32 %v2758_v4, %v13575_v51  ;;  %v2769_v3 = vadd.f32 %v7768_v14, %v10232_v15  ;;  %13578 = vst [vmem:[#allocation17_spill] sm:$0xff] %v10383_v5  ;;  %v2900_v0 = vsel %vm928_vm2, %v10383_v5, 0.0 }
 0x5d1   : > { %v2760_v47 = vpop.f32.mrf.mxu0 }
 0x5d2   : > { %13576 = vst [vmem:[#allocation18_spill] sm:$0xff] %v10379_v31  ;;  %v2761_v50 = vadd.f32 %v2760_v47, %v10234_v19  ;;  %v2894_v34 = vsel %vm928_vm2, %v10379_v31, 0.0  ;;  %v10394_v15 = vadd.f32 %v2769_v3, %v13581_v53 }
 0x5d3   : > { %v7771_v56 = vpop.f32.mrf.mxu0  ;;  %2892 = vadd.xlane.f32.xlu1 %v2891_v33  ;;  %2895 = vadd.xlane.f32.xlu0 %v2894_v34 }
 0x5d4   : > { %v10391_v62 = vadd.f32 %v2761_v50, %v13579_v25  ;;  %13582 = vst [vmem:[#allocation19_spill] sm:$0xff] %v10394_v15  ;;  %v2782_v54 = vadd.f32 %v7771_v56, %v10236_v40  ;;  %v2903_v44 = vsel %vm928_vm2, %v10394_v15, 0.0 }
 0x5d5   : > { %v2773_v18 = vpop.f32.mrf.mxu0 }
 0x5d6   : > { %13580 = vst [vmem:[#allocation20_spill] sm:$0xff] %v10391_v62  ;;  %v2774_v19 = vadd.f32 %v2773_v18, %v10238_v28  ;;  %v2897_v39 = vsel %vm928_vm2, %v10391_v62, 0.0  ;;  %v10408_v40 = vadd.f32 %v2782_v54, %v13585_v49 }
 0x5d7   : > { %v7772_v60 = vpop.f32.mrf.mxu0  ;;  %2898 = vadd.xlane.f32.xlu1 %v2897_v39  ;;  %2901 = vadd.xlane.f32.xlu0 %v2900_v0 }
 0x5d8   : > { %v10403_v59 = vadd.f32 %v2774_v19, %v13583_v23  ;;  %13586 = vst [vmem:[#allocation21_spill] sm:$0xff] %v10408_v40  ;;  %v2785_v28 = vadd.f32 %v7772_v60, %v10240_v29  ;;  %v2912_v4 = vsel %vm928_vm2, %v10408_v40, 0.0 }
 0x5d9   : > { %v2776_v20 = vpop.f32.mrf.mxu0 }
 0x5da   : > { %13584 = vst [vmem:[#allocation22_spill] sm:$0xff] %v10403_v59  ;;  %v2777_v55 = vadd.f32 %v2776_v20, %v10242_v36  ;;  %v2906_v41 = vsel %vm928_vm2, %v10403_v59, 0.0  ;;  %v10418_v1 = vadd.f32 %v2785_v28, %v13589_v2 }
 0x5db   : > { %2904 = vadd.xlane.f32.xlu1 %v2903_v44  ;;  %2907 = vadd.xlane.f32.xlu0 %v2906_v41 }
 0x5dc   : > { %v10415_v32 = vadd.f32 %v2777_v55, %v13587_v12  ;;  %13590 = vst [vmem:[#allocation23_spill] sm:$0xff] %v10418_v1  ;;  %v2915_v29 = vsel %vm928_vm2, %v10418_v1, 0.0 }
 0x5de   : > { %13588 = vst [vmem:[#allocation24_spill] sm:$0xff] %v10415_v32  ;;  %v2909_v43 = vsel %vm928_vm2, %v10415_v32, 0.0 }
 0x5df   : > { %2910 = vadd.xlane.f32.xlu1 %v2909_v43  ;;  %2913 = vadd.xlane.f32.xlu0 %v2912_v4 }
 0x5e3   : > { %2916 = vadd.xlane.f32.xlu1 %v2915_v29 }
 0x62c   : > { %v2824_v36 = vpop.xlane.xlu0 %2823 }
 0x62d   : > { %v2918_v35 = vmul.f32 0.03125, %v2824_v36 }
 0x62f   : > { %v10427_v14 = vsub.f32 %v10245_v63, %v2918_v35 }
 0x630   : > { %v2827_v51 = vpop.xlane.xlu1 %2826  ;;  %v2830_v3 = vpop.xlane.xlu0 %2829 }
 0x631   : > { %v2919_v47 = vmul.f32 0.03125, %v2827_v51  ;;  %v2920_v16 = vmul.f32 0.03125, %v2830_v3  ;;  %v2982_v50 = vmul.f32 %v10427_v14, %v10427_v14 }
 0x633   : > { %v10432_v33 = vsub.f32 %v10253_v8, %v2919_v47  ;;  %v10435_v34 = vsub.f32 %v10248_v7, %v2920_v16  ;;  %v3014_v56 = vsel %vm928_vm2, %v2982_v50, 0.0 }
 0x634   : > { %v2833_v25 = vpop.xlane.xlu1 %2832  ;;  %3015 = vadd.xlane.f32.xlu0 %v3014_v56  ;;  %v2836_v53 = vpop.xlane.xlu0 %2835 }
 0x635   : > { %v2921_v18 = vmul.f32 0.03125, %v2833_v25  ;;  %v2922_v54 = vmul.f32 0.03125, %v2836_v53  ;;  %v2983_v19 = vmul.f32 %v10432_v33, %v10432_v33  ;;  %v2984_v39 = vmul.f32 %v10435_v34, %v10435_v34 }
 0x637   : > { %v10443_v0 = vsub.f32 %v10256_v17, %v2921_v18  ;;  %v10446_v60 = vsub.f32 %v10263_v61, %v2922_v54  ;;  %v3017_v23 = vsel %vm928_vm2, %v2983_v19, 0.0  ;;  %v3020_v20 = vsel %vm928_vm2, %v2984_v39, 0.0 }
 0x638   : > { %3018 = vadd.xlane.f32.xlu1 %v3017_v23  ;;  %v2839_v44 = vpop.xlane.xlu1 %2838  ;;  %3021 = vadd.xlane.f32.xlu0 %v3020_v20  ;;  %v2842_v49 = vpop.xlane.xlu0 %2841 }
 0x639   : > { %v2923_v28 = vmul.f32 0.03125, %v2839_v44  ;;  %v2924_v55 = vmul.f32 0.03125, %v2842_v49  ;;  %v2985_v41 = vmul.f32 %v10443_v0, %v10443_v0  ;;  %v2986_v12 = vmul.f32 %v10446_v60, %v10446_v60 }
 0x63b   : > { %v10455_v2 = vsub.f32 %v10273_v57, %v2923_v28  ;;  %v10458_v43 = vsub.f32 %v10268_v10, %v2924_v55  ;;  %v3023_v4 = vsel %vm928_vm2, %v2985_v41, 0.0  ;;  %v3026_v29 = vsel %vm928_vm2, %v2986_v12, 0.0 }
 0x63c   : > { %3024 = vadd.xlane.f32.xlu1 %v3023_v4  ;;  %v2845_v36 = vpop.xlane.xlu1 %2844  ;;  %3027 = vadd.xlane.f32.xlu0 %v3026_v29  ;;  %v2848_v35 = vpop.xlane.xlu0 %2847 }
 0x63d   : > { %v2925_v51 = vmul.f32 0.03125, %v2845_v36  ;;  %v2926_v3 = vmul.f32 0.03125, %v2848_v35  ;;  %v2987_v47 = vmul.f32 %v10455_v2, %v10455_v2  ;;  %v2988_v16 = vmul.f32 %v10458_v43, %v10458_v43 }
 0x63f   : > { %v10467_v50 = vsub.f32 %v10276_v46, %v2925_v51  ;;  %v10470_v56 = vsub.f32 %v10283_v26, %v2926_v3  ;;  %v3029_v25 = vsel %vm928_vm2, %v2987_v47, 0.0  ;;  %v3032_v53 = vsel %vm928_vm2, %v2988_v16, 0.0 }
 0x640   : > { %3030 = vadd.xlane.f32.xlu1 %v3029_v25  ;;  %v2851_v18 = vpop.xlane.xlu1 %2850  ;;  %3033 = vadd.xlane.f32.xlu0 %v3032_v53  ;;  %v2854_v54 = vpop.xlane.xlu0 %2853 }
 0x641   : > { %v2927_v19 = vmul.f32 0.03125, %v2851_v18  ;;  %v2928_v39 = vmul.f32 0.03125, %v2854_v54  ;;  %v2989_v23 = vmul.f32 %v10467_v50, %v10467_v50  ;;  %v2990_v20 = vmul.f32 %v10470_v56, %v10470_v56 }
 0x643   : > { %v10479_v44 = vsub.f32 %v10295_v52, %v2927_v19  ;;  %v10482_v49 = vsub.f32 %v10286_v37, %v2928_v39  ;;  %v3035_v28 = vsel %vm928_vm2, %v2989_v23, 0.0  ;;  %v3038_v55 = vsel %vm928_vm2, %v2990_v20, 0.0 }
 0x644   : > { %3036 = vadd.xlane.f32.xlu1 %v3035_v28  ;;  %v2857_v41 = vpop.xlane.xlu1 %2856  ;;  %3039 = vadd.xlane.f32.xlu0 %v3038_v55  ;;  %v2860_v12 = vpop.xlane.xlu0 %2859 }
 0x645   : > { %v2929_v4 = vmul.f32 0.03125, %v2857_v41  ;;  %v2930_v29 = vmul.f32 0.03125, %v2860_v12  ;;  %v2991_v36 = vmul.f32 %v10479_v44, %v10479_v44  ;;  %v2992_v35 = vmul.f32 %v10482_v49, %v10482_v49 }
 0x647   : > { %v10491_v51 = vsub.f32 %v10300_v9, %v2929_v4  ;;  %v10494_v3 = vsub.f32 %v10307_v11, %v2930_v29  ;;  %v3041_v47 = vsel %vm928_vm2, %v2991_v36, 0.0  ;;  %v3044_v16 = vsel %vm928_vm2, %v2992_v35, 0.0 }
 0x648   : > { %3042 = vadd.xlane.f32.xlu1 %v3041_v47  ;;  %v2863_v25 = vpop.xlane.xlu1 %2862  ;;  %3045 = vadd.xlane.f32.xlu0 %v3044_v16  ;;  %v2866_v53 = vpop.xlane.xlu0 %2865 }
 0x649   : > { %v2931_v18 = vmul.f32 0.03125, %v2863_v25  ;;  %v2932_v54 = vmul.f32 0.03125, %v2866_v53  ;;  %v2993_v19 = vmul.f32 %v10491_v51, %v10491_v51  ;;  %v2994_v39 = vmul.f32 %v10494_v3, %v10494_v3 }
 0x64b   : > { %v10503_v23 = vsub.f32 %v10319_v24, %v2931_v18  ;;  %v10506_v20 = vsub.f32 %v10311_v21, %v2932_v54  ;;  %v3047_v28 = vsel %vm928_vm2, %v2993_v19, 0.0  ;;  %v3050_v55 = vsel %vm928_vm2, %v2994_v39, 0.0 }
 0x64c   : > { %3048 = vadd.xlane.f32.xlu1 %v3047_v28  ;;  %v2869_v41 = vpop.xlane.xlu1 %2868  ;;  %3051 = vadd.xlane.f32.xlu0 %v3050_v55  ;;  %v2872_v12 = vpop.xlane.xlu0 %2871 }
 0x64d   : > { %v2933_v4 = vmul.f32 0.03125, %v2869_v41  ;;  %v2934_v29 = vmul.f32 0.03125, %v2872_v12  ;;  %v2995_v36 = vmul.f32 %v10503_v23, %v10503_v23  ;;  %v2996_v35 = vmul.f32 %v10506_v20, %v10506_v20 }
 0x64f   : > { %v10515_v47 = vsub.f32 %v10322_v22, %v2933_v4  ;;  %v10518_v16 = vsub.f32 %v10331_v30, %v2934_v29  ;;  %v3053_v25 = vsel %vm928_vm2, %v2995_v36, 0.0  ;;  %v3056_v53 = vsel %vm928_vm2, %v2996_v35, 0.0 }
 0x650   : > { %3054 = vadd.xlane.f32.xlu1 %v3053_v25  ;;  %v2875_v18 = vpop.xlane.xlu1 %2874  ;;  %3057 = vadd.xlane.f32.xlu0 %v3056_v53  ;;  %v2878_v54 = vpop.xlane.xlu0 %2877 }
 0x651   : > { %v2935_v19 = vmul.f32 0.03125, %v2875_v18  ;;  %v2936_v39 = vmul.f32 0.03125, %v2878_v54  ;;  %v2997_v28 = vmul.f32 %v10515_v47, %v10515_v47  ;;  %v2998_v55 = vmul.f32 %v10518_v16, %v10518_v16 }
 0x653   : > { %v10527_v41 = vsub.f32 %v10343_v48, %v2935_v19  ;;  %v10530_v12 = vsub.f32 %v10336_v6, %v2936_v39  ;;  %v3059_v4 = vsel %vm928_vm2, %v2997_v28, 0.0  ;;  %v3062_v29 = vsel %vm928_vm2, %v2998_v55, 0.0 }
 0x654   : > { %3060 = vadd.xlane.f32.xlu1 %v3059_v4  ;;  %v2881_v36 = vpop.xlane.xlu1 %2880  ;;  %3063 = vadd.xlane.f32.xlu0 %v3062_v29  ;;  %v2884_v35 = vpop.xlane.xlu0 %2883 }
 0x655   : > { %v2937_v25 = vmul.f32 0.03125, %v2881_v36  ;;  %v2938_v53 = vmul.f32 0.03125, %v2884_v35  ;;  %v2999_v18 = vmul.f32 %v10527_v41, %v10527_v41  ;;  %v3000_v54 = vmul.f32 %v10530_v12, %v10530_v12 }
 0x657   : > { %v10539_v19 = vsub.f32 %v10347_v45, %v2937_v25  ;;  %v10542_v39 = vsub.f32 %v10355_v58, %v2938_v53  ;;  %v3065_v28 = vsel %vm928_vm2, %v2999_v18, 0.0  ;;  %v3068_v55 = vsel %vm928_vm2, %v3000_v54, 0.0 }
 0x658   : > { %3066 = vadd.xlane.f32.xlu1 %v3065_v28  ;;  %v2887_v4 = vpop.xlane.xlu1 %2886  ;;  %3069 = vadd.xlane.f32.xlu0 %v3068_v55  ;;  %v2890_v29 = vpop.xlane.xlu0 %2889  ;;  %v8109_v28 = vld [vmem:[%s13388_s10 + $0x8] sm:$0xff]  }
 0x659   : > { %v2939_v36 = vmul.f32 0.03125, %v2887_v4  ;;  %v2940_v35 = vmul.f32 0.03125, %v2890_v29  ;;  %v3001_v27 = vmul.f32 %v10539_v19, %v10539_v19  ;;  %v3002_v25 = vmul.f32 %v10542_v39, %v10542_v39  ;;  %7773 = vmatprep.subr.bf16.mxu0 %v8109_v28 }
 0x65a   : > { %7774 = vmatpush3.bf16.msra.mxu0 %v8109_v28 }
 0x65b   : > { %v10551_v48 = vsub.f32 %v10367_v42, %v2939_v36  ;;  %v10554_v53 = vsub.f32 %v10358_v13, %v2940_v35  ;;  %v3071_v18 = vsel %vm928_vm2, %v3001_v27, 0.0  ;;  %v3074_v54 = vsel %vm928_vm2, %v3002_v25, 0.0 }
 0x65c   : > { %3072 = vadd.xlane.f32.xlu1 %v3071_v18  ;;  %v2893_v55 = vpop.xlane.xlu1 %2892  ;;  %3075 = vadd.xlane.f32.xlu0 %v3074_v54  ;;  %v2896_v4 = vpop.xlane.xlu0 %2895 }
 0x65d   : > { %v2941_v29 = vmul.f32 0.03125, %v2893_v55  ;;  %v2942_v58 = vmul.f32 0.03125, %v2896_v4  ;;  %v3003_v36 = vmul.f32 %v10551_v48, %v10551_v48  ;;  %v3004_v35 = vmul.f32 %v10554_v53, %v10554_v53  ;;  %v8110_v55 = vld [vmem:[%s13388_s10] sm:$0xff]  }
 0x65e   : > { %7775 = vmatprep.subr.bf16.mxu0 %v8110_v55 }
 0x65f   : > { %v10566_v27 = vsub.f32 %v10372_v38, %v2941_v29  ;;  %v10569_v25 = vsub.f32 %v10379_v31, %v2942_v58  ;;  %v3077_v18 = vsel %vm928_vm2, %v3003_v36, 0.0  ;;  %v3080_v54 = vsel %vm928_vm2, %v3004_v35, 0.0  ;;  %7776 = vmatpush3.bf16.msra.mxu0 %v8110_v55 }
 0x660   : > { %3078 = vadd.xlane.f32.xlu1 %v3077_v18  ;;  %v2899_v4 = vpop.xlane.xlu1 %2898  ;;  %3081 = vadd.xlane.f32.xlu0 %v3080_v54  ;;  %v2902_v42 = vpop.xlane.xlu0 %2901 }
 0x661   : > { %v2943_v13 = vmul.f32 0.03125, %v2899_v4  ;;  %v2944_v28 = vmul.f32 0.03125, %v2902_v42  ;;  %v3005_v29 = vmul.f32 %v10566_v27, %v10566_v27  ;;  %v3006_v58 = vmul.f32 %v10569_v25, %v10569_v25 }
 0x663   : > { %v10581_v36 = vsub.f32 %v10391_v62, %v2943_v13  ;;  %v10584_v35 = vsub.f32 %v10383_v5, %v2944_v28  ;;  %v3083_v18 = vsel %vm928_vm2, %v3005_v29, 0.0  ;;  %v3086_v54 = vsel %vm928_vm2, %v3006_v58, 0.0 }
 0x664   : > { %3084 = vadd.xlane.f32.xlu1 %v3083_v18  ;;  %v2905_v42 = vpop.xlane.xlu1 %2904  ;;  %3087 = vadd.xlane.f32.xlu0 %v3086_v54  ;;  %v2908_v4 = vpop.xlane.xlu0 %2907 }
 0x665   : > { %v2945_v31 = vmul.f32 0.03125, %v2905_v42  ;;  %v2946_v38 = vmul.f32 0.03125, %v2908_v4  ;;  %v3007_v45 = vmul.f32 %v10581_v36, %v10581_v36  ;;  %v3008_v13 = vmul.f32 %v10584_v35, %v10584_v35 }
 0x667   : > { %v10593_v55 = vsub.f32 %v10394_v15, %v2945_v31  ;;  %v10596_v28 = vsub.f32 %v10403_v59, %v2946_v38  ;;  %v3089_v29 = vsel %vm928_vm2, %v3007_v45, 0.0  ;;  %v3092_v58 = vsel %vm928_vm2, %v3008_v13, 0.0 }
 0x668   : > { %3090 = vadd.xlane.f32.xlu1 %v3089_v29  ;;  %v2911_v18 = vpop.xlane.xlu1 %2910  ;;  %3093 = vadd.xlane.f32.xlu0 %v3092_v58  ;;  %v2914_v54 = vpop.xlane.xlu0 %2913 }
 0x669   : > { %v2947_v42 = vmul.f32 0.03125, %v2911_v18  ;;  %v2948_v4 = vmul.f32 0.03125, %v2914_v54  ;;  %v3009_v62 = vmul.f32 %v10593_v55, %v10593_v55  ;;  %v3010_v31 = vmul.f32 %v10596_v28, %v10596_v28 }
 0x66b   : > { %v10605_v15 = vsub.f32 %v10415_v32, %v2947_v42  ;;  %v10608_v38 = vsub.f32 %v10408_v40, %v2948_v4  ;;  %v3095_v45 = vsel %vm928_vm2, %v3009_v62, 0.0  ;;  %v3098_v13 = vsel %vm928_vm2, %v3010_v31, 0.0 }
 0x66c   : > { %3096 = vadd.xlane.f32.xlu1 %v3095_v45  ;;  %v2917_v29 = vpop.xlane.xlu1 %2916  ;;  %3099 = vadd.xlane.f32.xlu0 %v3098_v13 }
 0x66d   : > { %v2949_v58 = vmul.f32 0.03125, %v2917_v29  ;;  %v3011_v18 = vmul.f32 %v10605_v15, %v10605_v15  ;;  %v3012_v54 = vmul.f32 %v10608_v38, %v10608_v38 }
 0x66f   : > { %v10617_v42 = vsub.f32 %v10418_v1, %v2949_v58  ;;  %v3101_v4 = vsel %vm928_vm2, %v3011_v18, 0.0  ;;  %v3104_v32 = vsel %vm928_vm2, %v3012_v54, 0.0 }
 0x670   : > { %3102 = vadd.xlane.f32.xlu1 %v3101_v4  ;;  %3105 = vadd.xlane.f32.xlu0 %v3104_v32 }
 0x671   : > { %v3013_v62 = vmul.f32 %v10617_v42, %v10617_v42 }
 0x673   : > { %v3107_v31 = vsel %vm928_vm2, %v3013_v62, 0.0 }
 0x674   : > { %3108 = vadd.xlane.f32.xlu1 %v3107_v31 }
 0x6bd   : > { %v3016_v45 = vpop.xlane.xlu0 %3015 }
 0x6be   : > { %v3110_v13 = vmul.f32 0.03125, %v3016_v45 }
 0x6c0   : > { %v3142_v29 = vadd.f32 1e-05, %v3110_v13 }
 0x6c1   : > { %v3019_v40 = vpop.xlane.xlu1 %3018  ;;  %v3022_v59 = vpop.xlane.xlu0 %3021 }
 0x6c2   : > { %8249 = vrsqrt.f32 %v3142_v29  ;;  %v3111_v58 = vmul.f32 0.03125, %v3019_v40  ;;  %v3112_v1 = vmul.f32 0.03125, %v3022_v59 }
 0x6c4   : > { %v3143_v5 = vadd.f32 1e-05, %v3111_v58  ;;  %v3144_v18 = vadd.f32 1e-05, %v3112_v1 }
 0x6c5   : > { %v3025_v30 = vpop.xlane.xlu1 %3024  ;;  %v3028_v54 = vpop.xlane.xlu0 %3027 }
 0x6c6   : > { %8251 = vrsqrt.f32 %v3143_v5  ;;  %v3113_v32 = vmul.f32 0.03125, %v3025_v30  ;;  %v3114_v4 = vmul.f32 0.03125, %v3028_v54 }
 0x6c7   : > { %8253 = vrsqrt.f32 %v3144_v18 }
 0x6c8   : > { %v3145_v6 = vadd.f32 1e-05, %v3113_v32  ;;  %v3146_v24 = vadd.f32 1e-05, %v3114_v4 }
 0x6c9   : > { %v3031_v62 = vpop.xlane.xlu1 %3030  ;;  %v3034_v31 = vpop.xlane.xlu0 %3033 }
 0x6ca   : > { %8255 = vrsqrt.f32 %v3145_v6  ;;  %v3115_v45 = vmul.f32 0.03125, %v3031_v62  ;;  %v3116_v13 = vmul.f32 0.03125, %v3034_v31  ;;  %v10628_v6 = vld [vmem:[%s13386_s8] ss:$0 sm:$0xff] }
 0x6cb   : > { %8257 = vrsqrt.f32 %v3146_v24 }
 0x6cc   : > { %v3147_v22 = vadd.f32 1e-05, %v3115_v45  ;;  %v3148_v29 = vadd.f32 1e-05, %v3116_v13 }
 0x6cd   : > { %v3037_v40 = vpop.xlane.xlu1 %3036  ;;  %v3040_v59 = vpop.xlane.xlu0 %3039 }
 0x6ce   : > { %8259 = vrsqrt.f32 %v3147_v22  ;;  %v3117_v1 = vmul.f32 0.03125, %v3037_v40  ;;  %v3118_v58 = vmul.f32 0.03125, %v3040_v59 }
 0x6cf   : > { %v8250_v11 = vpop.eup %8249  ;;  %8261 = vrsqrt.f32 %v3148_v29 }
 0x6d0   : > { %v3149_v30 = vadd.f32 1e-05, %v3117_v1  ;;  %v3150_v5 = vadd.f32 1e-05, %v3118_v58  ;;  %v3206_v32 = vmul.f32 %v8250_v11, %v10427_v14  ;;  %v10636_v58 = vld [vmem:[%s13387_s9] ss:$0 sm:$0xff] }
 0x6d1   : > { %v3043_v18 = vpop.xlane.xlu1 %3042  ;;  %v3046_v54 = vpop.xlane.xlu0 %3045 }
 0x6d2   : > { %8263 = vrsqrt.f32 %v3149_v30  ;;  %v3119_v24 = vmul.f32 0.03125, %v3043_v18  ;;  %v3120_v4 = vmul.f32 0.03125, %v3046_v54  ;;  %v3244_v11 = vmul.f32 %v10628_v6, %v3206_v32 }
 0x6d3   : > { %v8252_v62 = vpop.eup %8251  ;;  %8265 = vrsqrt.f32 %v3150_v5 }
 0x6d4   : > { %v8254_v22 = vpop.eup %8253  ;;  %v3151_v31 = vadd.f32 1e-05, %v3119_v24  ;;  %v3152_v45 = vadd.f32 1e-05, %v3120_v4  ;;  %v3207_v13 = vmul.f32 %v8252_v62, %v10432_v33 }
 0x6d5   : > { %v3208_v29 = vmul.f32 %v8254_v22, %v10435_v34  ;;  %v3049_v40 = vpop.xlane.xlu1 %3048  ;;  %v3052_v59 = vpop.xlane.xlu0 %3051  ;;  %v3282_v22 = vadd.f32 %v10636_v58, %v3244_v11 }
 0x6d6   : > { %8267 = vrsqrt.f32 %v3151_v31  ;;  %v3121_v14 = vmul.f32 0.03125, %v3049_v40  ;;  %v3122_v1 = vmul.f32 0.03125, %v3052_v59  ;;  %v3245_v30 = vmul.f32 %v10628_v6, %v3207_v13 }
 0x6d7   : > { %v8256_v5 = vpop.eup %8255  ;;  %v3246_v18 = vmul.f32 %v10628_v6, %v3208_v29  ;;  %8269 = vrsqrt.f32 %v3152_v45 }
 0x6d8   : > { %v8258_v33 = vpop.eup %8257  ;;  %v3209_v34 = vmul.f32 %v8256_v5, %v10443_v0  ;;  %v3153_v54 = vadd.f32 1e-05, %v3121_v14  ;;  %v3154_v24 = vadd.f32 1e-05, %v3122_v1  ;;  %v3283_v32 = vadd.f32 %v10636_v58, %v3245_v30 }
 0x6d9   : > { %v3055_v4 = vpop.xlane.xlu1 %3054  ;;  %v3058_v62 = vpop.xlane.xlu0 %3057  ;;  %v3210_v31 = vmul.f32 %v8258_v33, %v10446_v60  ;;  %v3284_v0 = vadd.f32 %v10636_v58, %v3246_v18 }
 0x6da   : > { %v3247_v40 = vmul.f32 %v10628_v6, %v3209_v34  ;;  %8271 = vrsqrt.f32 %v3153_v54  ;;  %v3123_v13 = vmul.f32 0.03125, %v3055_v4  ;;  %v3124_v59 = vmul.f32 0.03125, %v3058_v62 }
 0x6db   : > { %v8260_v29 = vpop.eup %8259  ;;  %8273 = vrsqrt.f32 %v3154_v24  ;;  %v3314_v45 = vpack.c.bf16 %v3283_v32, %v3282_v22  ;;  %v3248_v33 = vmul.f32 %v10628_v6, %v3210_v31 }
 0x6dc   : > { %v8262_v14 = vpop.eup %8261  ;;  %v3155_v1 = vadd.f32 1e-05, %v3123_v13  ;;  %v3156_v5 = vadd.f32 1e-05, %v3124_v59  ;;  %v3285_v30 = vadd.f32 %v10636_v58, %v3247_v40  ;;  %v3211_v21 = vmul.f32 %v8260_v29, %v10455_v2 }
 0x6dd   : > { %7777 = vmatprep.mubr.msk.bf16.mxu0 %vm928_vm2, %v3314_v45  ;;  %v3061_v60 = vpop.xlane.xlu1 %3060  ;;  %v3064_v11 = vpop.xlane.xlu0 %3063  ;;  %v3212_v34 = vmul.f32 %v8262_v14, %v10458_v43  ;;  %v3286_v43 = vadd.f32 %v10636_v58, %v3248_v33 }
 0x6de   : > { %8275 = vrsqrt.f32 %v3155_v1  ;;  %v3125_v54 = vmul.f32 0.03125, %v3061_v60  ;;  %v3126_v24 = vmul.f32 0.03125, %v3064_v11  ;;  %v3315_v32 = vpack.c.bf16 %v3285_v30, %v3284_v0 }
 0x6df   : > { %v8264_v18 = vpop.eup %8263  ;;  %8277 = vrsqrt.f32 %v3156_v5  ;;  %v3249_v4 = vmul.f32 %v10628_v6, %v3211_v21  ;;  %v3250_v62 = vmul.f32 %v10628_v6, %v3212_v34 }
 0x6e0   : > { %v8266_v22 = vpop.eup %8265  ;;  %v3157_v2 = vadd.f32 1e-05, %v3125_v54  ;;  %v3158_v40 = vadd.f32 1e-05, %v3126_v24  ;;  %7778 = vmatmul.mubr.msk.bf16.vlgmr.msra.gmra.mxu0 %vm928_vm2, %v3315_v32  ;;  %v3213_v13 = vmul.f32 %v8264_v18, %v10467_v50 }
 0x6e1   : > { %v3067_v31 = vpop.xlane.xlu1 %3066  ;;  %v3070_v59 = vpop.xlane.xlu0 %3069  ;;  %v3287_v29 = vadd.f32 %v10636_v58, %v3249_v4  ;;  %v3214_v45 = vmul.f32 %v8266_v22, %v10470_v56  ;;  %v3288_v30 = vadd.f32 %v10636_v58, %v3250_v62 }
 0x6e2   : > { %8279 = vrsqrt.f32 %v3157_v2  ;;  %v3127_v0 = vmul.f32 0.03125, %v3067_v31  ;;  %v3128_v21 = vmul.f32 0.03125, %v3070_v59  ;;  %v3251_v14 = vmul.f32 %v10628_v6, %v3213_v13 }
 0x6e3   : > { %v8268_v1 = vpop.eup %8267  ;;  %8281 = vrsqrt.f32 %v3158_v40  ;;  %v3316_v5 = vpack.c.bf16 %v3287_v29, %v3286_v43  ;;  %v3252_v24 = vmul.f32 %v10628_v6, %v3214_v45 }
 0x6e4   : > { %v8270_v60 = vpop.eup %8269  ;;  %v3159_v50 = vadd.f32 1e-05, %v3127_v0  ;;  %v3160_v11 = vadd.f32 1e-05, %v3128_v21  ;;  %v3289_v34 = vadd.f32 %v10636_v58, %v3251_v14  ;;  %v3215_v33 = vmul.f32 %v8268_v1, %v10479_v44 }
 0x6e5   : > { %7781 = vmatprep.mubr.msk.bf16.mxu0 %vm928_vm2, %v3316_v5  ;;  %v3073_v56 = vpop.xlane.xlu1 %3072  ;;  %v3076_v54 = vpop.xlane.xlu0 %3075  ;;  %v3216_v32 = vmul.f32 %v8270_v60, %v10482_v49  ;;  %v3290_v49 = vadd.f32 %v10636_v58, %v3252_v24 }
 0x6e6   : > { %8283 = vrsqrt.f32 %v3159_v50  ;;  %v3129_v18 = vmul.f32 0.03125, %v3073_v56  ;;  %v3130_v4 = vmul.f32 0.03125, %v3076_v54  ;;  %v3317_v22 = vpack.c.bf16 %v3289_v34, %v3288_v30 }
 0x6e7   : > { %v8272_v62 = vpop.eup %8271  ;;  %8285 = vrsqrt.f32 %v3160_v11  ;;  %v3253_v2 = vmul.f32 %v10628_v6, %v3215_v33  ;;  %v3254_v40 = vmul.f32 %v10628_v6, %v3216_v32 }
 0x6e8   : > { %v8274_v13 = vpop.eup %8273  ;;  %v3161_v44 = vadd.f32 1e-05, %v3129_v18  ;;  %v3162_v31 = vadd.f32 1e-05, %v3130_v4  ;;  %7782 = vmatmul.mubr.msk.bf16.gmra.mxu0 %vm928_vm2, %v3317_v22  ;;  %v3217_v59 = vmul.f32 %v8272_v62, %v10491_v51 }
 0x6e9   : > { %v3079_v43 = vpop.xlane.xlu1 %3078  ;;  %v3082_v29 = vpop.xlane.xlu0 %3081  ;;  %v3291_v45 = vadd.f32 %v10636_v58, %v3253_v2  ;;  %v3218_v0 = vmul.f32 %v8274_v13, %v10494_v3  ;;  %v3292_v60 = vadd.f32 %v10636_v58, %v3254_v40 }
 0x6ea   : > { %8287 = vrsqrt.f32 %v3161_v44  ;;  %v3131_v21 = vmul.f32 0.03125, %v3079_v43  ;;  %v3132_v14 = vmul.f32 0.03125, %v3082_v29  ;;  %v3255_v1 = vmul.f32 %v10628_v6, %v3217_v59 }
 0x6eb   : > { %v8276_v5 = vpop.eup %8275  ;;  %8289 = vrsqrt.f32 %v3162_v31  ;;  %v3318_v30 = vpack.c.bf16 %v3291_v45, %v3290_v49  ;;  %v3256_v54 = vmul.f32 %v10628_v6, %v3218_v0 }
 0x6ec   : > { %v8278_v50 = vpop.eup %8277  ;;  %v3163_v51 = vadd.f32 1e-05, %v3131_v21  ;;  %v3164_v11 = vadd.f32 1e-05, %v3132_v14  ;;  %v3293_v34 = vadd.f32 %v10636_v58, %v3255_v1  ;;  %v3219_v33 = vmul.f32 %v8276_v5, %v10503_v23 }
 0x6ed   : > { %7785 = vmatprep.mubr.msk.bf16.mxu0 %vm928_vm2, %v3318_v30  ;;  %v3085_v3 = vpop.xlane.xlu1 %3084  ;;  %v3088_v56 = vpop.xlane.xlu0 %3087  ;;  %v3220_v24 = vmul.f32 %v8278_v50, %v10506_v20  ;;  %v3294_v20 = vadd.f32 %v10636_v58, %v3256_v54 }
 0x6ee   : > { %8291 = vrsqrt.f32 %v3163_v51  ;;  %v3133_v32 = vmul.f32 0.03125, %v3085_v3  ;;  %v3134_v18 = vmul.f32 0.03125, %v3088_v56  ;;  %v3319_v4 = vpack.c.bf16 %v3293_v34, %v3292_v60 }
 0x6ef   : > { %v8280_v22 = vpop.eup %8279  ;;  %8293 = vrsqrt.f32 %v3164_v11  ;;  %v3257_v62 = vmul.f32 %v10628_v6, %v3219_v33  ;;  %v3258_v2 = vmul.f32 %v10628_v6, %v3220_v24 }
 0x6f0   : > { %v8282_v40 = vpop.eup %8281  ;;  %v3165_v23 = vadd.f32 1e-05, %v3133_v32  ;;  %v3166_v13 = vadd.f32 1e-05, %v3134_v18  ;;  %7786 = vmatmul.mubr.msk.bf16.gmra.mxu0 %vm928_vm2, %v3319_v4  ;;  %v3221_v44 = vmul.f32 %v8280_v22, %v10515_v47 }
 0x6f1   : > { %v3091_v31 = vpop.xlane.xlu1 %3090  ;;  %v3094_v59 = vpop.xlane.xlu0 %3093  ;;  %v3295_v43 = vadd.f32 %v10636_v58, %v3257_v62  ;;  %v3222_v29 = vmul.f32 %v8282_v40, %v10518_v16  ;;  %v3296_v1 = vadd.f32 %v10636_v58, %v3258_v2 }
 0x6f2   : > { %8295 = vrsqrt.f32 %v3165_v23  ;;  %v3135_v49 = vmul.f32 0.03125, %v3091_v31  ;;  %v3136_v45 = vmul.f32 0.03125, %v3094_v59  ;;  %v3259_v0 = vmul.f32 %v10628_v6, %v3221_v44 }
 0x6f3   : > { %v8284_v21 = vpop.eup %8283  ;;  %8297 = vrsqrt.f32 %v3166_v13  ;;  %v3320_v14 = vpack.c.bf16 %v3295_v43, %v3294_v20  ;;  %v3260_v34 = vmul.f32 %v10628_v6, %v3222_v29 }
 0x6f4   : > { %v8286_v5 = vpop.eup %8285  ;;  %v3167_v47 = vadd.f32 1e-05, %v3135_v49  ;;  %v3168_v30 = vadd.f32 1e-05, %v3136_v45  ;;  %v3297_v60 = vadd.f32 %v10636_v58, %v3259_v0  ;;  %v3223_v50 = vmul.f32 %v8284_v21, %v10527_v41 }
 0x6f5   : > { %v3224_v51 = vmul.f32 %v8286_v5, %v10530_v12  ;;  %7789 = vmatprep.mubr.msk.bf16.mxu0 %vm928_vm2, %v3320_v14  ;;  %v3097_v16 = vpop.xlane.xlu1 %3096  ;;  %v3100_v11 = vpop.xlane.xlu0 %3099  ;;  %v3298_v2 = vadd.f32 %v10636_v58, %v3260_v34 }
 0x6f6   : > { %8299 = vrsqrt.f32 %v3167_v47  ;;  %v3137_v33 = vmul.f32 0.03125, %v3097_v16  ;;  %v3138_v3 = vmul.f32 0.03125, %v3100_v11  ;;  %v3321_v56 = vpack.c.bf16 %v3297_v60, %v3296_v1 }
 0x6f7   : > { %v8288_v54 = vpop.eup %8287  ;;  %8301 = vrsqrt.f32 %v3168_v30  ;;  %v3261_v24 = vmul.f32 %v10628_v6, %v3223_v50  ;;  %v3262_v32 = vmul.f32 %v10628_v6, %v3224_v51 }
 0x6f8   : > { %v8290_v18 = vpop.eup %8289  ;;  %v3225_v41 = vmul.f32 %v8288_v54, %v10539_v19  ;;  %v3169_v12 = vadd.f32 1e-05, %v3137_v33  ;;  %v3170_v4 = vadd.f32 1e-05, %v3138_v3  ;;  %7790 = vmatmul.mubr.msk.bf16.gmra.mxu0 %vm928_vm2, %v3321_v56 }
 0x6f9   : > { %v3103_v22 = vpop.xlane.xlu1 %3102  ;;  %v3106_v62 = vpop.xlane.xlu0 %3105  ;;  %v3299_v40 = vadd.f32 %v10636_v58, %v3261_v24  ;;  %v3226_v23 = vmul.f32 %v8290_v18, %v10542_v39  ;;  %v3300_v20 = vadd.f32 %v10636_v58, %v3262_v32 }
 0x6fa   : > { %8303 = vrsqrt.f32 %v3169_v12  ;;  %v3139_v13 = vmul.f32 0.03125, %v3103_v22  ;;  %v3140_v44 = vmul.f32 0.03125, %v3106_v62  ;;  %v3263_v31 = vmul.f32 %v10628_v6, %v3225_v41 }
 0x6fb   : > { %v8292_v59 = vpop.eup %8291  ;;  %8305 = vrsqrt.f32 %v3170_v4  ;;  %v3322_v19 = vpack.c.bf16 %v3299_v40, %v3298_v2  ;;  %v3264_v43 = vmul.f32 %v10628_v6, %v3226_v23 }
 0x6fc   : > { %v8294_v29 = vpop.eup %8293  ;;  %v3171_v49 = vadd.f32 1e-05, %v3139_v13  ;;  %v3172_v45 = vadd.f32 1e-05, %v3140_v44  ;;  %v3301_v0 = vadd.f32 %v10636_v58, %v3263_v31  ;;  %v3227_v21 = vmul.f32 %v8292_v59, %v10551_v48 }
 0x6fd   : > { %v3228_v39 = vmul.f32 %v8294_v29, %v10554_v53  ;;  %7793 = vmatprep.mubr.msk.bf16.mxu0 %vm928_vm2, %v3322_v19  ;;  %v3109_v14 = vpop.xlane.xlu1 %3108  ;;  %v3302_v60 = vadd.f32 %v10636_v58, %v3264_v43 }
 0x6fe   : > { %8307 = vrsqrt.f32 %v3171_v49  ;;  %v3141_v1 = vmul.f32 0.03125, %v3109_v14  ;;  %v3323_v5 = vpack.c.bf16 %v3301_v0, %v3300_v20  ;;  %v3265_v47 = vmul.f32 %v10628_v6, %v3227_v21 }
 0x6ff   : > { %v8296_v30 = vpop.eup %8295  ;;  %8309 = vrsqrt.f32 %v3172_v45  ;;  %v3266_v53 = vmul.f32 %v10628_v6, %v3228_v39 }
 0x700   : > { %v8298_v50 = vpop.eup %8297  ;;  %v3229_v51 = vmul.f32 %v8296_v30, %v10566_v27  ;;  %v3173_v16 = vadd.f32 1e-05, %v3141_v1  ;;  %7794 = vmatmul.mubr.msk.bf16.gmra.mxu0 %vm928_vm2, %v3323_v5  ;;  %v3303_v48 = vadd.f32 %v10636_v58, %v3265_v47  ;;  %v8112_v5 = vld [vmem:[%s13390_s12] sm:$0xff]  }
 0x701   : > { %v3230_v11 = vmul.f32 %v8298_v50, %v10569_v25  ;;  %v3304_v54 = vadd.f32 %v10636_v58, %v3266_v53 }
 0x702   : > { %8311 = vrsqrt.f32 %v3173_v16  ;;  %v3324_v34 = vpack.c.bf16 %v3303_v48, %v3302_v60  ;;  %v3267_v33 = vmul.f32 %v10628_v6, %v3229_v51 }
 0x703   : > { %v8300_v3 = vpop.eup %8299  ;;  %v3268_v32 = vmul.f32 %v10628_v6, %v3230_v11 }
 0x704   : > { %v8302_v56 = vpop.eup %8301  ;;  %7797 = vmatprep.mubr.msk.bf16.mxu0 %vm928_vm2, %v3324_v34  ;;  %v3305_v27 = vadd.f32 %v10636_v58, %v3267_v33  ;;  %v3231_v24 = vmul.f32 %v8300_v3, %v10581_v36 }
 0x705   : > { %v3232_v18 = vmul.f32 %v8302_v56, %v10584_v35  ;;  %v3306_v62 = vadd.f32 %v10636_v58, %v3268_v32 }
 0x706   : > { %v3325_v41 = vpack.c.bf16 %v3305_v27, %v3304_v54  ;;  %v3269_v25 = vmul.f32 %v10628_v6, %v3231_v24 }
 0x707   : > { %v8304_v12 = vpop.eup %8303  ;;  %v3270_v40 = vmul.f32 %v10628_v6, %v3232_v18 }
 0x708   : > { %v8306_v4 = vpop.eup %8305  ;;  %v3233_v22 = vmul.f32 %v8304_v12, %v10593_v55  ;;  %7798 = vmatmul.mubr.msk.bf16.gmra.mxu0 %vm928_vm2, %v3325_v41  ;;  %v3307_v2 = vadd.f32 %v10636_v58, %v3269_v25 }
 0x709   : > { %v3234_v36 = vmul.f32 %v8306_v4, %v10596_v28  ;;  %v3308_v31 = vadd.f32 %v10636_v58, %v3270_v40 }
 0x70a   : > { %v3326_v23 = vpack.c.bf16 %v3307_v2, %v3306_v62  ;;  %v3271_v35 = vmul.f32 %v10628_v6, %v3233_v22 }
 0x70b   : > { %v8308_v13 = vpop.eup %8307  ;;  %v3272_v19 = vmul.f32 %v10628_v6, %v3234_v36 }
 0x70c   : > { %v8310_v44 = vpop.eup %8309  ;;  %7801 = vmatprep.mubr.msk.bf16.mxu0 %vm928_vm2, %v3326_v23  ;;  %v3309_v55 = vadd.f32 %v10636_v58, %v3271_v35  ;;  %v3235_v59 = vmul.f32 %v8308_v13, %v10605_v15 }
 0x70d   : > { %v3236_v20 = vmul.f32 %v8310_v44, %v10608_v38  ;;  %v3310_v45 = vadd.f32 %v10636_v58, %v3272_v19 }
 0x70e   : > { %v3327_v43 = vpack.c.bf16 %v3309_v55, %v3308_v31  ;;  %v3273_v28 = vmul.f32 %v10628_v6, %v3235_v59 }
 0x70f   : > { %v8312_v29 = vpop.eup %8311  ;;  %v3274_v21 = vmul.f32 %v10628_v6, %v3236_v20 }
 0x710   : > { %v3237_v49 = vmul.f32 %v8312_v29, %v10617_v42  ;;  %7802 = vmatmul.mubr.msk.bf16.gmra.mxu0 %vm928_vm2, %v3327_v43  ;;  %v3311_v0 = vadd.f32 %v10636_v58, %v3273_v28  ;;  %v8111_v42 = vld [vmem:[%s13390_s12 + $0x8] sm:$0xff]  }
 0x711   : > { %v3312_v38 = vadd.f32 %v10636_v58, %v3274_v21  ;;  %7809 = vmatprep.subr.bf16.mxu0 %v8111_v42 }
 0x712   : > { %v3328_v39 = vpack.c.bf16 %v3311_v0, %v3310_v45  ;;  %v3275_v15 = vmul.f32 %v10628_v6, %v3237_v49  ;;  %7810 = vmatpush3.bf16.msra.mxu0 %v8111_v42  ;;  %v10755_v6 = vld [vmem:[%s13383_s5 + $0x8] sm:$0xff]  }
 0x713   : > { %7811 = vmatprep.subr.bf16.mxu0 %v8112_v5 }
 0x714   : > { %7805 = vmatprep.mubr.msk.bf16.mxu0 %vm928_vm2, %v3328_v39  ;;  %v3313_v14 = vadd.f32 %v10636_v58, %v3275_v15  ;;  %v10761_v58 = vld [vmem:[%s13389_s11] ss:$0 sm:$0xff] }
 0x716   : > { %v3329_v1 = vpack.c.bf16 %v3313_v14, %v3312_v38  ;;  %7812 = vmatpush3.bf16.msra.mxu0 %v8112_v5 }
 0x717   : > { %7845 = vmatprep.subr.bf16.mxu0 %v10755_v6 }
 0x718   : > { %7806 = vmatmul.mubr.msk.bf16.gmra.mxu0 %vm928_vm2, %v3329_v1 }
 0x7a0   : > { %v7779_v47 = vpop.f32.mrf.mxu0 }
 0x7a1   : > { %v3444_v30 = vadd.f32 %v7779_v47, %v10761_v58 }
 0x7a2   : > { %v3435_v60 = vpop.f32.mrf.mxu0 }
 0x7a3   : > { %v10765_v50 = vadd.f32 %v10761_v58, %v3435_v60  ;;  %v3596_v51 = vmul.f32 0.044715, %v3444_v30 }
 0x7a4   : > { %v7780_v16 = vpop.f32.mrf.mxu0 }
 0x7a5   : > { %v3594_v48 = vmul.f32 0.044715, %v10765_v50  ;;  %v10769_v53 = vadd.f32 %v7780_v16, %v10761_v58  ;;  %v3628_v3 = vmul.f32 %v3596_v51, %v3444_v30 }
 0x7a6   : > { %v3438_v11 = vpop.f32.mrf.mxu0 }
 0x7a7   : > { %v3626_v34 = vmul.f32 %v3594_v48, %v10765_v50  ;;  %v3597_v33 = vmul.f32 0.044715, %v10769_v53  ;;  %v10774_v56 = vadd.f32 %v10761_v58, %v3438_v11  ;;  %v3660_v25 = vmul.f32 %v3628_v3, %v3444_v30 }
 0x7a8   : > { %v7783_v54 = vpop.f32.mrf.mxu0 }
 0x7a9   : > { %v3629_v27 = vmul.f32 %v3597_v33, %v10769_v53  ;;  %v3595_v24 = vmul.f32 0.044715, %v10774_v56  ;;  %v3658_v18 = vmul.f32 %v3626_v34, %v10765_v50  ;;  %v3692_v23 = vadd.f32 %v3660_v25, %v3444_v30 }
 0x7aa   : > { %v3451_v32 = vpop.f32.mrf.mxu0  ;;  %v3460_v35 = vadd.f32 %v7783_v54, %v10761_v58  ;;  %v3564_v54 = vmul.f32 0.5, %v3444_v30  ;;  %v3562_v25 = vmul.f32 0.5, %v10765_v50  ;;  %v3565_v30 = vmul.f32 0.5, %v10769_v53 }
 0x7ab   : > { %v3661_v41 = vmul.f32 %v3629_v27, %v10769_v53  ;;  %v3627_v12 = vmul.f32 %v3595_v24, %v10774_v56  ;;  %v3452_v2 = vadd.f32 %v10761_v58, %v3451_v32  ;;  %v3690_v36 = vadd.f32 %v3658_v18, %v10765_v50 }
 0x7ac   : > { %v7784_v4 = vpop.f32.mrf.mxu0  ;;  %v3724_v43 = vmul.f32 0.7978846, %v3692_v23  ;;  %v3600_v28 = vmul.f32 0.044715, %v3460_v35  ;;  %v10824_v50 = vmul.f32 0.5, %v3460_v35 }
 0x7ad   : > { %v3693_v22 = vadd.f32 %v3661_v41, %v10769_v53  ;;  %v3659_v62 = vmul.f32 %v3627_v12, %v10774_v56  ;;  %v10787_v13 = vadd.f32 %v7784_v4, %v10761_v58  ;;  %v3598_v59 = vmul.f32 0.044715, %v3452_v2 }
 0x7ae   : > { %v3454_v40 = vpop.f32.mrf.mxu0  ;;  %v3722_v20 = vmul.f32 0.7978846, %v3690_v36  ;;  %v3632_v15 = vmul.f32 %v3600_v28, %v3460_v35 }
 0x7af   : > { %v3691_v31 = vadd.f32 %v3659_v62, %v10774_v56  ;;  %v3725_v55 = vmul.f32 0.7978846, %v3693_v22  ;;  %v3601_v29 = vmul.f32 0.044715, %v10787_v13  ;;  %v3630_v0 = vmul.f32 %v3598_v59, %v3452_v2 }
 0x7b0   : > { %v7787_v44 = vpop.f32.mrf.mxu0  ;;  %v10792_v39 = vadd.f32 %v10761_v58, %v3454_v40  ;;  %v3664_v60 = vmul.f32 %v3632_v15, %v3460_v35 }
 0x7b1   : > { %v3723_v45 = vmul.f32 0.7978846, %v3691_v31  ;;  %8313 = vtanh.f32 %v3725_v55  ;;  %v3633_v38 = vmul.f32 %v3601_v29, %v10787_v13  ;;  %v10796_v1 = vadd.f32 %v7787_v44, %v10761_v58 }
 0x7b2   : > { %v3467_v19 = vpop.f32.mrf.mxu0  ;;  %8315 = vtanh.f32 %v3722_v20  ;;  %v3662_v42 = vmul.f32 %v3630_v0, %v3452_v2  ;;  %v3599_v47 = vmul.f32 0.044715, %v10792_v39  ;;  %v3696_v24 = vadd.f32 %v3664_v60, %v3460_v35 }
 0x7b3   : > { %8317 = vtanh.f32 %v3724_v43  ;;  %v3665_v51 = vmul.f32 %v3633_v38, %v10787_v13  ;;  %v3604_v48 = vmul.f32 0.044715, %v10796_v1  ;;  %v10802_v11 = vadd.f32 %v10761_v58, %v3467_v19 }
 0x7b4   : > { %v7788_v49 = vpop.f32.mrf.mxu0  ;;  %8319 = vtanh.f32 %v3723_v45  ;;  %v3694_v33 = vadd.f32 %v3662_v42, %v3452_v2  ;;  %v3631_v27 = vmul.f32 %v3599_v47, %v10792_v39  ;;  %v3563_v44 = vmul.f32 0.5, %v10774_v56 }
 0x7b5   : > { %v10805_v34 = vadd.f32 %v7788_v49, %v10761_v58  ;;  %v3697_v32 = vadd.f32 %v3665_v51, %v10787_v13  ;;  %v3636_v12 = vmul.f32 %v3604_v48, %v10796_v1  ;;  %v3602_v4 = vmul.f32 0.044715, %v10802_v11 }
 0x7b6   : > { %v3470_v21 = vpop.f32.mrf.mxu0  ;;  %v3726_v40 = vmul.f32 0.7978846, %v3694_v33  ;;  %v3663_v55 = vmul.f32 %v3631_v27, %v10792_v39  ;;  %v10830_v19 = vmul.f32 0.5, %v3452_v2  ;;  %v3728_v43 = vmul.f32 0.7978846, %v3696_v24 }
 0x7b7   : > { %v3605_v22 = vmul.f32 0.044715, %v10805_v34  ;;  %v10821_v36 = vadd.f32 %v10761_v58, %v3470_v21  ;;  %v3729_v53 = vmul.f32 0.7978846, %v3697_v32  ;;  %v3668_v45 = vmul.f32 %v3636_v12, %v10796_v1 }
 0x7b8   : > { %v7791_v14 = vpop.f32.mrf.mxu0  ;;  %v3634_v56 = vmul.f32 %v3602_v4, %v10802_v11  ;;  %8321 = vtanh.f32 %v3726_v40  ;;  %v3695_v42 = vadd.f32 %v3663_v55, %v10792_v39 }
 0x7b9   : > { %v10810_v18 = vadd.f32 %v7791_v14, %v10761_v58  ;;  %v3637_v35 = vmul.f32 %v3605_v22, %v10805_v34  ;;  %v3603_v2 = vmul.f32 0.044715, %v10821_v36  ;;  %8323 = vtanh.f32 %v3729_v53 }
 0x7ba   : > { %v3483_v5 = vpop.f32.mrf.mxu0  ;;  %v3666_v27 = vmul.f32 %v3634_v56, %v10802_v11  ;;  %8325 = vtanh.f32 %v3728_v43  ;;  %v10883_v43 = vmul.f32 0.5, %v10787_v13  ;;  %v8636_v13 = vld [vmem:[%s13383_s5] sm:$0xff]  }
 0x7bb   : > { %v10817_v62 = vadd.f32 %v10761_v58, %v3483_v5  ;;  %v3608_v28 = vmul.f32 0.044715, %v10810_v18  ;;  %v3669_v24 = vmul.f32 %v3637_v35, %v10805_v34  ;;  %v3635_v4 = vmul.f32 %v3603_v2, %v10821_v36 }
 0x7bc   : > { %v7792_v16 = vpop.f32.mrf.mxu0  ;;  %v3698_v35 = vadd.f32 %v3666_v27, %v10802_v11  ;;  %v3727_v2 = vmul.f32 0.7978846, %v3695_v42 }
 0x7bd   : > { %v10828_v59 = vadd.f32 %v7792_v16, %v10761_v58  ;;  %v3606_v0 = vmul.f32 0.044715, %v10817_v62  ;;  %v3640_v16 = vmul.f32 %v3608_v28, %v10810_v18  ;;  %v3700_v28 = vadd.f32 %v3668_v45, %v10796_v1 }
 0x7be   : > { %v3486_v3 = vpop.f32.mrf.mxu0  ;;  %v8314_v31 = vpop.eup %8313  ;;  %v3667_v45 = vmul.f32 %v3635_v4, %v10821_v36  ;;  %8327 = vtanh.f32 %v3727_v2 }
 0x7bf   : > { %v8316_v20 = vpop.eup %8315  ;;  %v3789_v15 = vadd.f32 1.0, %v8314_v31  ;;  %v3609_v5 = vmul.f32 0.044715, %v10828_v59  ;;  %v10848_v48 = vadd.f32 %v10761_v58, %v3486_v3  ;;  %v3638_v32 = vmul.f32 %v3606_v0, %v10817_v62 }
 0x7c0   : > { %v7795_v41 = vpop.f32.mrf.mxu0  ;;  %v8318_v49 = vpop.eup %8317  ;;  %v3786_v60 = vadd.f32 1.0, %v8316_v20 }
 0x7c1   : > { %v8320_v21 = vpop.eup %8319  ;;  %v10839_v38 = vadd.f32 %v7795_v41, %v10761_v58  ;;  %v3788_v51 = vadd.f32 1.0, %v8318_v49  ;;  %v3821_v12 = vmul.f32 %v3789_v15, %v3565_v30  ;;  %v3641_v3 = vmul.f32 %v3609_v5, %v10828_v59 }
 0x7c2   : > { %v3499_v23 = vpop.f32.mrf.mxu0  ;;  %v3787_v41 = vadd.f32 1.0, %v8320_v21  ;;  %v3818_v55 = vmul.f32 %v3786_v60, %v3562_v25  ;;  %v3672_v49 = vmul.f32 %v3640_v16, %v10810_v18  ;;  %v3607_v30 = vmul.f32 0.044715, %v10848_v48 }
 0x7c3   : > { %v10844_v47 = vadd.f32 %v10761_v58, %v3499_v23  ;;  %v3612_v22 = vmul.f32 0.044715, %v10839_v38  ;;  %v3820_v53 = vmul.f32 %v3788_v51, %v3564_v54  ;;  %v3670_v0 = vmul.f32 %v3638_v32, %v10817_v62 }
 0x7c4   : > { %v7796_v29 = vpop.f32.mrf.mxu0  ;;  %v3819_v20 = vmul.f32 %v3787_v41, %v3563_v44  ;;  %v3673_v5 = vmul.f32 %v3641_v3, %v10828_v59  ;;  %v3732_v51 = vmul.f32 0.7978846, %v3700_v28  ;;  %v3704_v16 = vadd.f32 %v3672_v49, %v10810_v18 }
 0x7c5   : > { %v10858_v40 = vadd.f32 %v7796_v29, %v10761_v58  ;;  %v3610_v31 = vmul.f32 0.044715, %v10844_v47  ;;  %v3701_v29 = vadd.f32 %v3669_v24, %v10805_v34  ;;  %v3851_v15 = vpack.c.bf16 %v3821_v12, %v3820_v53 }
 0x7c6   : > { %v3502_v14 = vpop.f32.mrf.mxu0  ;;  %v3850_v21 = vpack.c.bf16 %v3819_v20, %v3818_v55  ;;  %v3644_v25 = vmul.f32 %v3612_v22, %v10839_v38  ;;  %v3639_v27 = vmul.f32 %v3607_v30, %v10848_v48  ;;  %v3730_v32 = vmul.f32 0.7978846, %v3698_v35 }
 0x7c7   : > { %v3613_v54 = vmul.f32 0.044715, %v10858_v40  ;;  %v3642_v60 = vmul.f32 %v3610_v31, %v10844_v47  ;;  %v10877_v42 = vadd.f32 %v10761_v58, %v3502_v14  ;;  %v3733_v41 = vmul.f32 0.7978846, %v3701_v29  ;;  %v8322_v31 = vpop.eup %8321 }
 0x7c8   : > { %v10850_v33 = vpop.f32.mrf.mxu0  ;;  %7813 = vmatprep.mubr.msk.bf16.mxu0 %vm928_vm2, %v3850_v21  ;;  %v3702_v12 = vadd.f32 %v3670_v0, %v10817_v62  ;;  %v3676_v4 = vmul.f32 %v3644_v25, %v10839_v38  ;;  %v10896_v55 = vmul.f32 0.5, %v10796_v1  ;;  %v3705_v20 = vadd.f32 %v3673_v5, %v10828_v59  ;;  %v8324_v35 = vpop.eup %8323 }
 0x7c9   : > { %7814 = vmatmul.mubr.msk.bf16.vlgmr.msra.gmra.mxu0 %vm928_vm2, %v3851_v15  ;;  %v3645_v22 = vmul.f32 %v3613_v54, %v10858_v40  ;;  %v3674_v53 = vmul.f32 %v3642_v60, %v10844_v47  ;;  %8329 = vtanh.f32 %v3732_v51  ;;  %v3671_v28 = vmul.f32 %v3639_v27, %v10848_v48  ;;  %v8637_v54 = vld [vmem:[%s13382_s4 + $0x8] sm:$0xff]  }
 0x7ca   : > { %v3515_v23 = vpop.f32.mrf.mxu0  ;;  %7846 = vmatpush3.bf16.msra.mxu0 %v10755_v6  ;;  %v3699_v6 = vadd.f32 %v3667_v45, %v10821_v36  ;;  %v3611_v49 = vmul.f32 0.044715, %v10877_v42  ;;  %8331 = vtanh.f32 %v3730_v32  ;;  %v3734_v29 = vmul.f32 0.7978846, %v3702_v12 }
 0x7cb   : > { %v10890_v14 = vadd.f32 %v10761_v58, %v3515_v23  ;;  %7847 = vmatprep.subr.bf16.mxu0 %v8636_v13  ;;  %v3736_v23 = vmul.f32 0.7978846, %v3704_v16  ;;  %v10905_v1 = vadd.f32 %v10850_v33, %v10761_v58  ;;  %v3567_v0 = vmul.f32 0.5, %v10792_v39 }
 0x7cc   : > { %v7800_v56 = vpop.f32.mrf.mxu0  ;;  %8333 = vtanh.f32 %v3733_v41  ;;  %v3708_v21 = vadd.f32 %v3676_v4, %v10839_v38  ;;  %v3677_v15 = vmul.f32 %v3645_v22, %v10858_v40  ;;  %v3731_v45 = vmul.f32 0.7978846, %v3699_v6 }
 0x7cd   : > { %v3614_v2 = vmul.f32 0.044715, %v10890_v14  ;;  %v3737_v5 = vmul.f32 0.7978846, %v3705_v20  ;;  %v3706_v33 = vadd.f32 %v3674_v53, %v10844_v47  ;;  %v10916_v39 = vadd.f32 %v7800_v56, %v10761_v58  ;;  %v8326_v53 = vpop.eup %8325 }
 0x7ce   : > { %v3518_v44 = vpop.f32.mrf.mxu0  ;;  %7848 = vmatpush3.bf16.msra.mxu0 %v8636_v13  ;;  %8335 = vtanh.f32 %v3736_v23  ;;  %v3703_v60 = vadd.f32 %v3671_v28, %v10848_v48  ;;  %v3643_v51 = vmul.f32 %v3611_v49, %v10877_v42  ;;  %v10926_v32 = vmul.f32 0.5, %v10805_v34 }
 0x7cf   : > { %7881 = vmatprep.subr.bf16.mxu0 %v8637_v54  ;;  %v10921_v16 = vadd.f32 %v10761_v58, %v3518_v44  ;;  %8337 = vtanh.f32 %v3734_v29  ;;  %v3616_v41 = vmul.f32 0.044715, %v10905_v1  ;;  %v3740_v56 = vmul.f32 0.7978846, %v3708_v21 }
 0x7d0   : > { %v10880_v24 = vpop.f32.mrf.mxu0  ;;  %v3709_v4 = vadd.f32 %v3677_v15, %v10858_v40  ;;  %v3646_v22 = vmul.f32 %v3614_v2, %v10890_v14  ;;  %8339 = vtanh.f32 %v3737_v5  ;;  %v3738_v6 = vmul.f32 0.7978846, %v3706_v33  ;;  %v8328_v5 = vpop.eup %8327 }
 0x7d1   : > { %v3617_v34 = vmul.f32 0.044715, %v10916_v39  ;;  %v10939_v20 = vmul.f32 0.5, %v10802_v11  ;;  %v3735_v23 = vmul.f32 0.7978846, %v3703_v60  ;;  %v3675_v28 = vmul.f32 %v3643_v51, %v10877_v42 }
 0x7d2   : > { %v3531_v3 = vpop.f32.mrf.mxu0  ;;  %v3615_v49 = vmul.f32 0.044715, %v10921_v16  ;;  %8341 = vtanh.f32 %v3731_v45  ;;  %v3648_v29 = vmul.f32 %v3616_v41, %v10905_v1  ;;  %v3790_v21 = vadd.f32 1.0, %v8322_v31 }
 0x7d3   : > { %v10935_v13 = vadd.f32 %v10761_v58, %v3531_v3  ;;  %v3793_v3 = vadd.f32 1.0, %v8324_v35  ;;  %8343 = vtanh.f32 %v3740_v56  ;;  %v3741_v2 = vmul.f32 0.7978846, %v3709_v4 }
 0x7d4   : > { %v7804_v30 = vpop.f32.mrf.mxu0  ;;  %8345 = vtanh.f32 %v3738_v6  ;;  %v3649_v33 = vmul.f32 %v3617_v34, %v10916_v39  ;;  %v10950_v45 = vadd.f32 %v10880_v24, %v10761_v58  ;;  %v3792_v60 = vadd.f32 1.0, %v8326_v53 }
 0x7d5   : > { %v3618_v11 = vmul.f32 0.044715, %v10935_v13  ;;  %v3707_v31 = vadd.f32 %v3675_v28, %v10877_v42  ;;  %v3647_v35 = vmul.f32 %v3615_v49, %v10921_v16  ;;  %v3791_v51 = vadd.f32 1.0, %v8328_v5 }
 0x7d6   : > { %v3534_v25 = vpop.f32.mrf.mxu0  ;;  %v10955_v41 = vadd.f32 %v7804_v30, %v10761_v58  ;;  %v8330_v56 = vpop.eup %8329  ;;  %v3680_v4 = vmul.f32 %v3648_v29, %v10905_v1  ;;  %v3825_v6 = vmul.f32 %v3793_v3, %v10883_v43  ;;  %8347 = vtanh.f32 %v3741_v2 }
 0x7d7   : > { %v10930_v12 = vadd.f32 %v10761_v58, %v3534_v25  ;;  %v3678_v25 = vmul.f32 %v3646_v22, %v10890_v14  ;;  %v3822_v22 = vmul.f32 %v3790_v21, %v10830_v19  ;;  %v8332_v24 = vpop.eup %8331  ;;  %v3823_v52 = vmul.f32 %v3791_v51, %v3567_v0 }
 0x7d8   : > { %v10923_v27 = vpop.f32.mrf.mxu0  ;;  %v3650_v28 = vmul.f32 %v3618_v11, %v10935_v13  ;;  %v3681_v29 = vmul.f32 %v3649_v33, %v10916_v39  ;;  %v3620_v19 = vmul.f32 0.044715, %v10950_v45  ;;  %v3824_v43 = vmul.f32 %v3792_v60, %v10824_v50 }
 0x7d9   : > { %v3619_v15 = vmul.f32 0.044715, %v10930_v12  ;;  %v3710_v53 = vadd.f32 %v3678_v25, %v10890_v14  ;;  %v8334_v5 = vpop.eup %8333  ;;  %v3739_v21 = vmul.f32 0.7978846, %v3707_v31  ;;  %v3679_v3 = vmul.f32 %v3647_v35, %v10921_v16 }
 0x7da   : > { %v3547_v44 = vpop.f32.mrf.mxu0  ;;  %v3621_v0 = vmul.f32 0.044715, %v10955_v41  ;;  %v3853_v11 = vpack.c.bf16 %v3825_v6, %v3824_v43  ;;  %v3682_v50 = vmul.f32 %v3650_v28, %v10935_v13  ;;  %8349 = vtanh.f32 %v3735_v23 }
 0x7db   : > { %v3651_v34 = vmul.f32 %v3619_v15, %v10930_v12  ;;  %v10964_v49 = vadd.f32 %v10761_v58, %v3547_v44  ;;  %v3852_v15 = vpack.c.bf16 %v3823_v52, %v3822_v22  ;;  %v10971_v25 = vpop.eup %8335  ;;  %v3712_v44 = vadd.f32 %v3680_v4, %v10905_v1 }
 0x7dc   : > { %v7808_v54 = vpop.f32.mrf.mxu0  ;;  %v8338_v33 = vpop.eup %8337  ;;  %v3742_v9 = vmul.f32 0.7978846, %v3710_v53  ;;  %v3713_v60 = vadd.f32 %v3681_v29, %v10916_v39  ;;  %v3652_v31 = vmul.f32 %v3620_v19, %v10950_v45  ;;  %v3797_v35 = vadd.f32 1.0, %v8334_v5 }
 0x7dd   : > { %v3683_v51 = vmul.f32 %v3651_v34, %v10930_v12  ;;  %7817 = vmatprep.mubr.msk.bf16.mxu0 %vm928_vm2, %v3852_v15  ;;  %v3622_v52 = vmul.f32 0.044715, %v10964_v49  ;;  %v8340_v22 = vpop.eup %8339  ;;  %v3711_v6 = vadd.f32 %v3679_v3, %v10921_v16  ;;  %v3653_v34 = vmul.f32 %v3621_v0, %v10955_v41 }
 0x7de   : > { %v3550_v30 = vpop.f32.mrf.mxu0  ;;  %7818 = vmatmul.mubr.msk.bf16.gmra.mxu0 %vm928_vm2, %v3853_v11  ;;  %v3571_v53 = vmul.f32 0.5, %v10821_v36  ;;  %v3794_v28 = vadd.f32 1.0, %v8332_v24  ;;  %v3796_v43 = vadd.f32 1.0, %v8330_v56  ;;  %v10990_v29 = vadd.f32 %v7808_v54, %v10761_v58 }
 0x7df   : > { %v10976_v2 = vadd.f32 %v10761_v58, %v3550_v30  ;;  %v8342_v30 = vpop.eup %8341  ;;  %v3715_v23 = vadd.f32 %v3683_v51, %v10930_v12  ;;  %v3714_v5 = vadd.f32 %v3682_v50, %v10935_v13  ;;  %v3654_v11 = vmul.f32 %v3622_v52, %v10964_v49 }
 0x7e0   : > { %v3795_v15 = vadd.f32 1.0, %v8342_v30  ;;  %8351 = vtanh.f32 %v3739_v21  ;;  %v10995_v3 = vpop.eup %8343  ;;  %v3745_v36 = vmul.f32 0.7978846, %v3713_v60  ;;  %v10999_v24 = vadd.f32 %v10923_v27, %v10761_v58 }
 0x7e1   : > { %v3623_v4 = vmul.f32 0.044715, %v10976_v2  ;;  %8353 = vtanh.f32 %v3742_v9  ;;  %v3829_v56 = vmul.f32 %v3797_v35, %v10926_v32  ;;  %v8346_v54 = vpop.eup %8345  ;;  %v3743_v0 = vmul.f32 0.7978846, %v3711_v6 }
 0x7e2   : > { %v3826_v51 = vmul.f32 %v3794_v28, %v10939_v20  ;;  %v3685_v52 = vmul.f32 %v3653_v34, %v10955_v41  ;;  %v3747_v21 = vmul.f32 0.7978846, %v3715_v23  ;;  %v3828_v30 = vmul.f32 %v3796_v43, %v10896_v55 }
 0x7e3   : > { %v3655_v19 = vmul.f32 %v3623_v4, %v10976_v2  ;;  %v3827_v4 = vmul.f32 %v3795_v15, %v3571_v53  ;;  %v3625_v9 = vmul.f32 0.044715, %v10990_v29  ;;  %v3744_v60 = vmul.f32 0.7978846, %v3712_v44  ;;  %v8348_v6 = vpop.eup %8347 }
 0x7e4   : > { %v3746_v26 = vmul.f32 0.7978846, %v3714_v5  ;;  %v3686_v27 = vmul.f32 %v3654_v11, %v10964_v49  ;;  %8355 = vtanh.f32 %v3745_v36  ;;  %v3684_v32 = vmul.f32 %v3652_v31, %v10950_v45 }
 0x7e5   : > { %v3687_v50 = vmul.f32 %v3655_v19, %v10976_v2  ;;  %v3854_v58 = vpack.c.bf16 %v3827_v4, %v3826_v51  ;;  %v3624_v20 = vmul.f32 0.044715, %v10999_v24  ;;  %v3855_v35 = vpack.c.bf16 %v3829_v56, %v3828_v30 }
 0x7e6   : > { %8357 = vtanh.f32 %v3743_v0  ;;  %v3717_v55 = vadd.f32 %v3685_v52, %v10955_v41  ;;  %v3657_v44 = vmul.f32 %v3625_v9, %v10990_v29  ;;  %v3801_v53 = vadd.f32 1.0, %v8340_v22 }
 0x7e7   : > { %7821 = vmatprep.mubr.msk.bf16.mxu0 %vm928_vm2, %v3854_v58  ;;  %v3719_v34 = vadd.f32 %v3687_v50, %v10976_v2  ;;  %8359 = vtanh.f32 %v3747_v21  ;;  %v3577_v28 = vmul.f32 0.5, %v10828_v59  ;;  %v3718_v31 = vadd.f32 %v3686_v27, %v10964_v49  ;;  %v8350_v43 = vpop.eup %8349 }
 0x7e8   : > { %7822 = vmatmul.mubr.msk.bf16.gmra.mxu0 %vm928_vm2, %v3855_v35  ;;  %8361 = vtanh.f32 %v3746_v26  ;;  %v3798_v23 = vadd.f32 1.0, %v8338_v33  ;;  %v3716_v19 = vadd.f32 %v3684_v32, %v10950_v45  ;;  %v3656_v5 = vmul.f32 %v3624_v20, %v10999_v24 }
 0x7e9   : > { %8363 = vtanh.f32 %v3744_v60  ;;  %v3800_v15 = vadd.f32 1.0, %v10971_v25  ;;  %v3751_v11 = vmul.f32 0.7978846, %v3719_v34  ;;  %v3574_v36 = vmul.f32 0.5, %v10817_v62 }
 0x7ea   : > { %v3575_v22 = vmul.f32 0.5, %v10848_v48  ;;  %v3799_v56 = vadd.f32 1.0, %v8350_v43  ;;  %v3576_v59 = vmul.f32 0.5, %v10810_v18  ;;  %v3749_v26 = vmul.f32 0.7978846, %v3717_v55 }
 0x7eb   : > { %v3689_v0 = vmul.f32 %v3657_v44, %v10990_v29  ;;  %v3833_v33 = vmul.f32 %v3801_v53, %v3577_v28  ;;  %v3750_v51 = vmul.f32 0.7978846, %v3718_v31  ;;  %v3830_v4 = vmul.f32 %v3798_v23, %v3574_v36 }
 0x7ec   : > { %v3831_v50 = vmul.f32 %v3799_v56, %v3575_v22  ;;  %v3802_v52 = vadd.f32 1.0, %v8346_v54  ;;  %v3748_v30 = vmul.f32 0.7978846, %v3716_v19  ;;  %v3688_v25 = vmul.f32 %v3656_v5, %v10999_v24 }
 0x7ed   : > { %v8352_v21 = vpop.eup %8351  ;;  %v3832_v9 = vmul.f32 %v3800_v15, %v3576_v59  ;;  %v3578_v62 = vmul.f32 0.5, %v10844_v47  ;;  %v3579_v58 = vmul.f32 0.5, %v10877_v42  ;;  %8365 = vtanh.f32 %v3751_v11 }
 0x7ee   : > { %v8354_v60 = vpop.eup %8353  ;;  %v3856_v48 = vpack.c.bf16 %v3831_v50, %v3830_v4  ;;  %v3803_v18 = vadd.f32 1.0, %v8352_v21  ;;  %8367 = vtanh.f32 %v3749_v26  ;;  %v3721_v27 = vadd.f32 %v3689_v0, %v10990_v29 }
 0x7ef   : > { %v3857_v32 = vpack.c.bf16 %v3833_v33, %v3832_v9  ;;  %v3805_v20 = vadd.f32 1.0, %v8348_v6  ;;  %8369 = vtanh.f32 %v3750_v51  ;;  %v3834_v54 = vmul.f32 %v3802_v52, %v3578_v62 }
 0x7f0   : > { %7825 = vmatprep.mubr.msk.bf16.mxu0 %vm928_vm2, %v3856_v48  ;;  %v3835_v35 = vmul.f32 %v3803_v18, %v3579_v58  ;;  %v3581_v34 = vmul.f32 0.5, %v10858_v40  ;;  %8371 = vtanh.f32 %v3748_v30  ;;  %v3720_v47 = vadd.f32 %v3688_v25, %v10999_v24 }
 0x7f1   : > { %7826 = vmatmul.mubr.msk.bf16.gmra.mxu0 %vm928_vm2, %v3857_v32  ;;  %v3804_v42 = vadd.f32 1.0, %v10995_v3  ;;  %v8356_v55 = vpop.eup %8355  ;;  %v3806_v53 = vadd.f32 1.0, %v8354_v60  ;;  %v3580_v6 = vmul.f32 0.5, %v10839_v38  ;;  %v3753_v31 = vmul.f32 0.7978846, %v3721_v27 }
 0x7f2   : > { %v3858_v44 = vpack.c.bf16 %v3835_v35, %v3834_v54  ;;  %v3837_v23 = vmul.f32 %v3805_v20, %v3581_v34  ;;  %v3582_v40 = vmul.f32 0.5, %v10890_v14  ;;  %v3583_v19 = vmul.f32 0.5, %v10921_v16 }
 0x7f3   : > { %v8358_v28 = vpop.eup %8357  ;;  %v3752_v11 = vmul.f32 0.7978846, %v3720_v47  ;;  %v3836_v36 = vmul.f32 %v3804_v42, %v3580_v6  ;;  %8373 = vtanh.f32 %v3753_v31  ;;  %v3809_v38 = vadd.f32 1.0, %v8356_v55 }
 0x7f4   : > { %v8360_v43 = vpop.eup %8359  ;;  %7829 = vmatprep.mubr.msk.bf16.mxu0 %vm928_vm2, %v3858_v44  ;;  %v3807_v5 = vadd.f32 1.0, %v8358_v28  ;;  %v3838_v22 = vmul.f32 %v3806_v53, %v3582_v40  ;;  %v3587_v33 = vmul.f32 0.5, %v10930_v12  ;;  %v3585_v4 = vmul.f32 0.5, %v10916_v39 }
 0x7f5   : > { %v8362_v15 = vpop.eup %8361  ;;  %v3811_v59 = vadd.f32 1.0, %v8360_v43  ;;  %v3859_v26 = vpack.c.bf16 %v3837_v23, %v3836_v36  ;;  %8375 = vtanh.f32 %v3752_v11  ;;  %v3586_v16 = vmul.f32 0.5, %v10935_v13  ;;  %v11057_v43 = vld [vmem:[%s13391_s13] ss:$0 sm:$0xff] }
 0x7f6   : > { %v8364_v3 = vpop.eup %8363  ;;  %v3839_v56 = vmul.f32 %v3807_v5, %v3583_v19  ;;  %v3810_v51 = vadd.f32 1.0, %v8362_v15  ;;  %v3584_v21 = vmul.f32 0.5, %v10905_v1  ;;  %v3841_v30 = vmul.f32 %v3809_v38, %v3585_v4 }
 0x7f7   : > { %v3808_v14 = vadd.f32 1.0, %v8364_v3  ;;  %v3843_v50 = vmul.f32 %v3811_v59, %v3587_v33  ;;  %v3591_v27 = vmul.f32 0.5, %v10976_v2  ;;  %v3589_v20 = vmul.f32 0.5, %v10955_v41 }
 0x7f8   : > { %v3860_v0 = vpack.c.bf16 %v3839_v56, %v3838_v22  ;;  %v3842_v9 = vmul.f32 %v3810_v51, %v3586_v16  ;;  %v3590_v1 = vmul.f32 0.5, %v10964_v49  ;;  %v3588_v35 = vmul.f32 0.5, %v10950_v45 }
 0x7f9   : > { %7830 = vmatmul.mubr.msk.bf16.gmra.mxu0 %vm928_vm2, %v3859_v26  ;;  %v3840_v12 = vmul.f32 %v3808_v14, %v3584_v21  ;;  %v3593_v41 = vmul.f32 0.5, %v10990_v29  ;;  %v3592_v49 = vmul.f32 0.5, %v10999_v24 }
 0x7fa   : > { %7833 = vmatprep.mubr.msk.bf16.mxu0 %vm928_vm2, %v3860_v0  ;;  %v8366_v52 = vpop.eup %8365  ;;  %v3862_v48 = vpack.c.bf16 %v3843_v50, %v3842_v9 }
 0x7fb   : > { %v8368_v25 = vpop.eup %8367  ;;  %v3815_v39 = vadd.f32 1.0, %v8366_v52  ;;  %v3861_v58 = vpack.c.bf16 %v3841_v30, %v3840_v12 }
 0x7fc   : > { %v8370_v62 = vpop.eup %8369  ;;  %v3813_v18 = vadd.f32 1.0, %v8368_v25 }
 0x7fd   : > { %v8372_v60 = vpop.eup %8371  ;;  %v3814_v32 = vadd.f32 1.0, %v8370_v62  ;;  %v3847_v54 = vmul.f32 %v3815_v39, %v3591_v27  ;;  %v13598_v39 = vld [vmem:[#allocation2_spill] sm:$0xff] }
 0x7fe   : > { %v3812_v13 = vadd.f32 1.0, %v8372_v60  ;;  %v3845_v34 = vmul.f32 %v3813_v18, %v3589_v20  ;;  %v13600_v20 = vld [vmem:[#allocation3_spill] sm:$0xff] }
 0x7ff   : > { %v3846_v42 = vmul.f32 %v3814_v32, %v3590_v1  ;;  %v13602_v1 = vld [vmem:[#allocation4_spill] sm:$0xff] }
 0x800   : > { %v8374_v47 = vpop.eup %8373  ;;  %v3844_v55 = vmul.f32 %v3812_v13, %v3588_v35 }
 0x801   : > { %7834 = vmatmul.mubr.msk.bf16.gmra.mxu0 %vm928_vm2, %v3861_v58  ;;  %v3864_v53 = vpack.c.bf16 %v3847_v54, %v3846_v42  ;;  %v3817_v28 = vadd.f32 1.0, %v8374_v47 }
 0x802   : > { %7837 = vmatprep.mubr.msk.bf16.mxu0 %vm928_vm2, %v3862_v48  ;;  %v8376_v44 = vpop.eup %8375  ;;  %v3863_v2 = vpack.c.bf16 %v3845_v34, %v3844_v55 }
 0x803   : > { %v3816_v6 = vadd.f32 1.0, %v8376_v44  ;;  %v3849_v31 = vmul.f32 %v3817_v28, %v3593_v41  ;;  %v13604_v44 = vld [vmem:[#allocation5_spill] sm:$0xff] }
 0x805   : > { %v3848_v23 = vmul.f32 %v3816_v6, %v3592_v49  ;;  %v13606_v6 = vld [vmem:[#allocation6_spill] sm:$0xff] }
 0x807   : > { %v3865_v45 = vpack.c.bf16 %v3849_v31, %v3848_v23 }
 0x809   : > { %7838 = vmatmul.mubr.msk.bf16.gmra.mxu0 %vm928_vm2, %v3863_v2 }
 0x80a   : > { %7841 = vmatprep.mubr.msk.bf16.mxu0 %vm928_vm2, %v3864_v53 }
 0x811   : > { %7842 = vmatmul.mubr.msk.bf16.gmra.mxu0 %vm928_vm2, %v3865_v45 }
 0x889   : > { %v7815_v40 = vpop.f32.mrf.mxu0 }
 0x88a   : > { %v3980_v29 = vadd.f32 %v7815_v40, %v11057_v43  ;;  %v13608_v40 = vld [vmem:[#allocation7_spill] sm:$0xff] }
 0x88b   : > { %v3971_v19 = vpop.f32.mrf.mxu0 }
 0x88c   : > { %v11061_v5 = vadd.f32 %v3980_v29, %v10248_v7  ;;  %v3972_v15 = vadd.f32 %v11057_v43, %v3971_v19 }
 0x88d   : > { %v7816_v24 = vpop.f32.mrf.mxu0 }
 0x88e   : > { %v11065_v11 = vadd.f32 %v3972_v15, %v10245_v63  ;;  %v3983_v36 = vadd.f32 %v7816_v24, %v11057_v43  ;;  %v4140_v3 = vsel %vm928_vm2, %v11061_v5, 0.0  ;;  %v13610_v24 = vld [vmem:[#allocation8_spill] sm:$0xff] }
 0x88f   : > { %4141 = vadd.xlane.f32.xlu0 %v4140_v3  ;;  %v3974_v22 = vpop.f32.mrf.mxu0 }
 0x890   : > { %v11071_v56 = vadd.f32 %v3983_v36, %v10256_v17  ;;  %v3975_v59 = vadd.f32 %v11057_v43, %v3974_v22  ;;  %v4134_v63 = vsel %vm928_vm2, %v11065_v11, 0.0 }
 0x892   : > { %13591 = vst [vmem:[#allocation26_spill] sm:$0xff] %v11071_v56  ;;  %v11075_v7 = vadd.f32 %v3975_v59, %v10253_v8  ;;  %v4143_v26 = vsel %vm928_vm2, %v11071_v56, 0.0 }
 0x893   : > { %4144 = vadd.xlane.f32.xlu1 %v4143_v26  ;;  %4135 = vadd.xlane.f32.xlu0 %v4134_v63  ;;  %v13612_v63 = vld [vmem:[#allocation9_spill] sm:$0xff] }
 0x894   : > { %13592 = vst [vmem:[#allocation25_spill] sm:$0xff] %v11075_v7  ;;  %v4137_v38 = vsel %vm928_vm2, %v11075_v7, 0.0 }
 0x897   : > { %4138 = vadd.xlane.f32.xlu1 %v4137_v38 }
 0x89e   : > { %v7819_v0 = vpop.f32.mrf.mxu0 }
 0x89f   : > { %v3996_v17 = vadd.f32 %v7819_v0, %v11057_v43 }
 0x8a0   : > { %v3987_v33 = vpop.f32.mrf.mxu0 }
 0x8a1   : > { %v11085_v51 = vadd.f32 %v3996_v17, %v10268_v10  ;;  %v3988_v8 = vadd.f32 %v11057_v43, %v3987_v33  ;;  %v13614_v33 = vld [vmem:[#allocation10_spill] sm:$0xff] }
 0x8a2   : > { %v7820_v4 = vpop.f32.mrf.mxu0 }
 0x8a3   : > { %13593 = vst [vmem:[#allocation27_spill] sm:$0xff] %v11085_v51  ;;  %v11089_v14 = vadd.f32 %v3988_v8, %v10263_v61  ;;  %v3999_v16 = vadd.f32 %v7820_v4, %v11057_v43  ;;  %v4152_v50 = vsel %vm928_vm2, %v11085_v51, 0.0 }
 0x8a4   : > { %v3990_v52 = vpop.f32.mrf.mxu0  ;;  %4153 = vadd.xlane.f32.xlu0 %v4152_v50 }
 0x8a5   : > { %13594 = vst [vmem:[#allocation28_spill] sm:$0xff] %v11089_v14  ;;  %v11095_v21 = vadd.f32 %v3999_v16, %v10276_v46  ;;  %v3991_v30 = vadd.f32 %v11057_v43, %v3990_v52  ;;  %v4146_v61 = vsel %vm928_vm2, %v11089_v14, 0.0 }
 0x8a7   : > { %13595 = vst [vmem:[#allocation29_spill] sm:$0xff] %v11095_v21  ;;  %v11099_v10 = vadd.f32 %v3991_v30, %v10273_v57  ;;  %v4155_v25 = vsel %vm928_vm2, %v11095_v21, 0.0  ;;  %v13616_v30 = vld [vmem:[#allocation11_spill] sm:$0xff] }
 0x8a8   : > { %v7823_v9 = vpop.f32.mrf.mxu0  ;;  %4156 = vadd.xlane.f32.xlu1 %v4155_v25  ;;  %4147 = vadd.xlane.f32.xlu0 %v4146_v61 }
 0x8a9   : > { %13596 = vst [vmem:[#allocation30_spill] sm:$0xff] %v11099_v10  ;;  %v4012_v62 = vadd.f32 %v7823_v9, %v11057_v43  ;;  %v4149_v57 = vsel %vm928_vm2, %v11099_v10, 0.0 }
 0x8aa   : > { %v4003_v12 = vpop.f32.mrf.mxu0 }
 0x8ab   : > { %v11107_v46 = vadd.f32 %v4012_v62, %v10286_v37  ;;  %v4004_v60 = vadd.f32 %v11057_v43, %v4003_v12  ;;  %v13618_v62 = vld [vmem:[#allocation12_spill] sm:$0xff] }
 0x8ac   : > { %v7824_v48 = vpop.f32.mrf.mxu0  ;;  %4150 = vadd.xlane.f32.xlu1 %v4149_v57 }
 0x8ad   : > { %13597 = vst [vmem:[#allocation31_spill] sm:$0xff] %v11107_v46  ;;  %v11113_v58 = vadd.f32 %v4004_v60, %v13598_v39  ;;  %v4015_v18 = vadd.f32 %v7824_v48, %v11057_v43  ;;  %v4164_v27 = vsel %vm928_vm2, %v11107_v46, 0.0 }
 0x8ae   : > { %v4006_v32 = vpop.f32.mrf.mxu0  ;;  %4165 = vadd.xlane.f32.xlu0 %v4164_v27 }
 0x8af   : > { %13599 = vst [vmem:[#allocation2_spill] sm:$0xff] %v11113_v58  ;;  %v11119_v37 = vadd.f32 %v4015_v18, %v13600_v20  ;;  %v4007_v13 = vadd.f32 %v11057_v43, %v4006_v32  ;;  %v4158_v34 = vsel %vm928_vm2, %v11113_v58, 0.0  ;;  %v13620_v18 = vld [vmem:[#allocation13_spill] sm:$0xff] }
 0x8b1   : > { %13601 = vst [vmem:[#allocation3_spill] sm:$0xff] %v11119_v37  ;;  %v11123_v54 = vadd.f32 %v4007_v13, %v13602_v1  ;;  %v4167_v35 = vsel %vm928_vm2, %v11119_v37, 0.0  ;;  %v7827_v47 = vpop.f32.mrf.mxu0  ;;  %v13622_v13 = vld [vmem:[#allocation14_spill] sm:$0xff] }
 0x8b2   : > { %4168 = vadd.xlane.f32.xlu1 %v4167_v35  ;;  %4159 = vadd.xlane.f32.xlu0 %v4158_v34  ;;  %v4028_v42 = vadd.f32 %v7827_v47, %v11057_v43 }
 0x8b3   : > { %13603 = vst [vmem:[#allocation4_spill] sm:$0xff] %v11123_v54  ;;  %v4019_v55 = vpop.f32.mrf.mxu0  ;;  %v4161_v28 = vsel %vm928_vm2, %v11123_v54, 0.0 }
 0x8b4   : > { %v11131_v53 = vadd.f32 %v4028_v42, %v13604_v44  ;;  %v4020_v2 = vadd.f32 %v11057_v43, %v4019_v55  ;;  %v13624_v55 = vld [vmem:[#allocation15_spill] sm:$0xff] }
 0x8b5   : > { %v7828_v41 = vpop.f32.mrf.mxu0 }
 0x8b6   : > { %13605 = vst [vmem:[#allocation5_spill] sm:$0xff] %v11131_v53  ;;  %4162 = vadd.xlane.f32.xlu1 %v4161_v28  ;;  %v11137_v49 = vadd.f32 %v4020_v2, %v13606_v6  ;;  %v4031_v31 = vadd.f32 %v7828_v41, %v11057_v43  ;;  %v4176_v23 = vsel %vm928_vm2, %v11131_v53, 0.0  ;;  %v13626_v41 = vld [vmem:[#allocation16_spill] sm:$0xff] }
 0x8b7   : > { %v4022_v45 = vpop.f32.mrf.mxu0  ;;  %4177 = vadd.xlane.f32.xlu0 %v4176_v23 }
 0x8b8   : > { %13607 = vst [vmem:[#allocation6_spill] sm:$0xff] %v11137_v49  ;;  %v11143_v29 = vadd.f32 %v4031_v31, %v13608_v40  ;;  %v4023_v19 = vadd.f32 %v11057_v43, %v4022_v45  ;;  %v4170_v59 = vsel %vm928_vm2, %v11137_v49, 0.0 }
 0x8b9   : > { %v7831_v15 = vpop.f32.mrf.mxu0 }
 0x8ba   : > { %13609 = vst [vmem:[#allocation7_spill] sm:$0xff] %v11143_v29  ;;  %v11147_v36 = vadd.f32 %v4023_v19, %v13610_v24  ;;  %v4044_v3 = vadd.f32 %v7831_v15, %v11057_v43  ;;  %v4179_v22 = vsel %vm928_vm2, %v11143_v29, 0.0  ;;  %v13628_v19 = vld [vmem:[#allocation17_spill] sm:$0xff] }
 0x8bb   : > { %v4035_v26 = vpop.f32.mrf.mxu0  ;;  %4180 = vadd.xlane.f32.xlu1 %v4179_v22  ;;  %4171 = vadd.xlane.f32.xlu0 %v4170_v59  ;;  %v13630_v22 = vld [vmem:[#allocation18_spill] sm:$0xff] }
 0x8bc   : > { %13611 = vst [vmem:[#allocation8_spill] sm:$0xff] %v11147_v36  ;;  %v11155_v38 = vadd.f32 %v4044_v3, %v13612_v63  ;;  %v4036_v0 = vadd.f32 %v11057_v43, %v4035_v26  ;;  %v4173_v16 = vsel %vm928_vm2, %v11147_v36, 0.0 }
 0x8bd   : > { %v7832_v17 = vpop.f32.mrf.mxu0 }
 0x8be   : > { %13613 = vst [vmem:[#allocation9_spill] sm:$0xff] %v11155_v38  ;;  %v11159_v8 = vadd.f32 %v4036_v0, %v13614_v33  ;;  %v4047_v4 = vadd.f32 %v7832_v17, %v11057_v43  ;;  %v4188_v50 = vsel %vm928_vm2, %v11155_v38, 0.0  ;;  %v13632_v33 = vld [vmem:[#allocation19_spill] sm:$0xff] }
 0x8bf   : > { %v4038_v52 = vpop.f32.mrf.mxu0  ;;  %4174 = vadd.xlane.f32.xlu1 %v4173_v16  ;;  %4189 = vadd.xlane.f32.xlu0 %v4188_v50 }
 0x8c0   : > { %13615 = vst [vmem:[#allocation10_spill] sm:$0xff] %v11159_v8  ;;  %v11167_v25 = vadd.f32 %v4047_v4, %v13616_v30  ;;  %v4039_v61 = vadd.f32 %v11057_v43, %v4038_v52  ;;  %v4182_v48 = vsel %vm928_vm2, %v11159_v8, 0.0  ;;  %v13634_v52 = vld [vmem:[#allocation20_spill] sm:$0xff] }
 0x8c1   : > { %v7835_v9 = vpop.f32.mrf.mxu0 }
 0x8c2   : > { %13617 = vst [vmem:[#allocation11_spill] sm:$0xff] %v11167_v25  ;;  %v11171_v12 = vadd.f32 %v4039_v61, %v13618_v62  ;;  %v4060_v60 = vadd.f32 %v7835_v9, %v11057_v43  ;;  %v4191_v57 = vsel %vm928_vm2, %v11167_v25, 0.0 }
 0x8c3   : > { %v4051_v39 = vpop.f32.mrf.mxu0  ;;  %4192 = vadd.xlane.f32.xlu1 %v4191_v57  ;;  %4183 = vadd.xlane.f32.xlu0 %v4182_v48 }
 0x8c4   : > { %13619 = vst [vmem:[#allocation12_spill] sm:$0xff] %v11171_v12  ;;  %v11179_v27 = vadd.f32 %v4060_v60, %v13620_v18  ;;  %v4052_v32 = vadd.f32 %v11057_v43, %v4051_v39  ;;  %v4185_v34 = vsel %vm928_vm2, %v11171_v12, 0.0  ;;  %v13636_v39 = vld [vmem:[#allocation22_spill] sm:$0xff] }
 0x8c5   : > { %v7836_v20 = vpop.f32.mrf.mxu0 }
 0x8c6   : > { %13621 = vst [vmem:[#allocation13_spill] sm:$0xff] %v11179_v27  ;;  %v11183_v1 = vadd.f32 %v4052_v32, %v13622_v13  ;;  %v4063_v35 = vadd.f32 %v7836_v20, %v11057_v43  ;;  %v4200_v47 = vsel %vm928_vm2, %v11179_v27, 0.0  ;;  %v13638_v13 = vld [vmem:[#allocation21_spill] sm:$0xff] }
 0x8c7   : > { %v4054_v42 = vpop.f32.mrf.mxu0  ;;  %4186 = vadd.xlane.f32.xlu1 %v4185_v34  ;;  %4201 = vadd.xlane.f32.xlu0 %v4200_v47 }
 0x8c8   : > { %13623 = vst [vmem:[#allocation14_spill] sm:$0xff] %v11183_v1  ;;  %v11191_v44 = vadd.f32 %v4063_v35, %v13624_v55  ;;  %v4055_v2 = vadd.f32 %v11057_v43, %v4054_v42  ;;  %v4194_v45 = vsel %vm928_vm2, %v11183_v1, 0.0  ;;  %v13640_v55 = vld [vmem:[#allocation24_spill] sm:$0xff] }
 0x8c9   : > { %v7839_v28 = vpop.f32.mrf.mxu0 }
 0x8ca   : > { %13625 = vst [vmem:[#allocation15_spill] sm:$0xff] %v11191_v44  ;;  %v11195_v6 = vadd.f32 %v4055_v2, %v13626_v41  ;;  %v4076_v31 = vadd.f32 %v7839_v28, %v11057_v43  ;;  %v4203_v23 = vsel %vm928_vm2, %v11191_v44, 0.0  ;;  %v13642_v28 = vld [vmem:[#allocation23_spill] sm:$0xff] }
 0x8cb   : > { %v4067_v40 = vpop.f32.mrf.mxu0  ;;  %4204 = vadd.xlane.f32.xlu1 %v4203_v23  ;;  %4195 = vadd.xlane.f32.xlu0 %v4194_v45 }
 0x8cc   : > { %13627 = vst [vmem:[#allocation16_spill] sm:$0xff] %v11195_v6  ;;  %v11203_v15 = vadd.f32 %v4076_v31, %v13628_v19  ;;  %v4068_v24 = vadd.f32 %v11057_v43, %v4067_v40  ;;  %v4197_v63 = vsel %vm928_vm2, %v11195_v6, 0.0 }
 0x8cd   : > { %v7840_v3 = vpop.f32.mrf.mxu0 }
 0x8ce   : > { %13629 = vst [vmem:[#allocation17_spill] sm:$0xff] %v11203_v15  ;;  %v11207_v59 = vadd.f32 %v4068_v24, %v13630_v22  ;;  %v4079_v26 = vadd.f32 %v7840_v3, %v11057_v43  ;;  %v4212_v0 = vsel %vm928_vm2, %v11203_v15, 0.0 }
 0x8cf   : > { %v4070_v17 = vpop.f32.mrf.mxu0  ;;  %4198 = vadd.xlane.f32.xlu1 %v4197_v63  ;;  %4213 = vadd.xlane.f32.xlu0 %v4212_v0 }
 0x8d0   : > { %13631 = vst [vmem:[#allocation18_spill] sm:$0xff] %v11207_v59  ;;  %v11215_v4 = vadd.f32 %v4079_v26, %v13632_v33  ;;  %v4071_v16 = vadd.f32 %v11057_v43, %v4070_v17  ;;  %v4206_v9 = vsel %vm928_vm2, %v11207_v59, 0.0 }
 0x8d1   : > { %v7843_v50 = vpop.f32.mrf.mxu0 }
 0x8d2   : > { %13633 = vst [vmem:[#allocation19_spill] sm:$0xff] %v11215_v4  ;;  %v11219_v30 = vadd.f32 %v4071_v16, %v13634_v52  ;;  %v4215_v61 = vsel %vm928_vm2, %v11215_v4, 0.0  ;;  %v4092_v60 = vadd.f32 %v7843_v50, %v11057_v43 }
 0x8d3   : > { %4216 = vadd.xlane.f32.xlu1 %v4215_v61  ;;  %4207 = vadd.xlane.f32.xlu0 %v4206_v9  ;;  %v4083_v62 = vpop.f32.mrf.mxu0 }
 0x8d4   : > { %13635 = vst [vmem:[#allocation20_spill] sm:$0xff] %v11219_v30  ;;  %v4084_v57 = vadd.f32 %v11057_v43, %v4083_v62  ;;  %v4209_v32 = vsel %vm928_vm2, %v11219_v30, 0.0  ;;  %v11233_v35 = vadd.f32 %v4092_v60, %v13638_v13 }
 0x8d5   : > { %v7844_v48 = vpop.f32.mrf.mxu0 }
 0x8d6   : > { %v11228_v18 = vadd.f32 %v4084_v57, %v13636_v39  ;;  %13639 = vst [vmem:[#allocation21_spill] sm:$0xff] %v11233_v35  ;;  %v4095_v34 = vadd.f32 %v7844_v48, %v11057_v43  ;;  %v4224_v23 = vsel %vm928_vm2, %v11233_v35, 0.0 }
 0x8d7   : > { %4210 = vadd.xlane.f32.xlu1 %v4209_v32  ;;  %v4086_v20 = vpop.f32.mrf.mxu0 }
 0x8d8   : > { %13637 = vst [vmem:[#allocation22_spill] sm:$0xff] %v11228_v18  ;;  %v4087_v47 = vadd.f32 %v11057_v43, %v4086_v20  ;;  %v4218_v42 = vsel %vm928_vm2, %v11228_v18, 0.0  ;;  %v11243_v41 = vadd.f32 %v4095_v34, %v13642_v28 }
 0x8d9   : > { %4219 = vadd.xlane.f32.xlu0 %v4218_v42 }
 0x8da   : > { %v11240_v2 = vadd.f32 %v4087_v47, %v13640_v55  ;;  %13643 = vst [vmem:[#allocation23_spill] sm:$0xff] %v11243_v41  ;;  %v4227_v43 = vsel %vm928_vm2, %v11243_v41, 0.0 }
 0x8dc   : > { %13641 = vst [vmem:[#allocation24_spill] sm:$0xff] %v11240_v2  ;;  %v4221_v31 = vsel %vm928_vm2, %v11240_v2, 0.0 }
 0x8dd   : > { %4222 = vadd.xlane.f32.xlu1 %v4221_v31  ;;  %4225 = vadd.xlane.f32.xlu0 %v4224_v23 }
 0x8e1   : > { %4228 = vadd.xlane.f32.xlu1 %v4227_v43 }
 0x918   : > { %v4142_v45 = vpop.xlane.xlu0 %4141 }
 0x919   : > { %v4232_v40 = vmul.f32 0.03125, %v4142_v45 }
 0x91b   : > { %v11252_v19 = vsub.f32 %v11061_v5, %v4232_v40 }
 0x91c   : > { %v4145_v24 = vpop.xlane.xlu1 %4144  ;;  %v4136_v3 = vpop.xlane.xlu0 %4135 }
 0x91d   : > { %v4233_v22 = vmul.f32 0.03125, %v4145_v24  ;;  %v4230_v26 = vmul.f32 0.03125, %v4136_v3  ;;  %v4296_v63 = vmul.f32 %v11252_v19, %v11252_v19 }
 0x91f   : > { %v11257_v0 = vsub.f32 %v11071_v56, %v4233_v22  ;;  %v11260_v17 = vsub.f32 %v11065_v11, %v4230_v26  ;;  %v4332_v33 = vsel %vm928_vm2, %v4296_v63, 0.0 }
 0x920   : > { %v4139_v16 = vpop.xlane.xlu1 %4138  ;;  %4333 = vadd.xlane.f32.xlu0 %v4332_v33 }
 0x921   : > { %v4231_v50 = vmul.f32 0.03125, %v4139_v16  ;;  %v4297_v52 = vmul.f32 %v11257_v0, %v11257_v0  ;;  %v4294_v61 = vmul.f32 %v11260_v17, %v11260_v17 }
 0x923   : > { %v11268_v9 = vsub.f32 %v11075_v7, %v4231_v50  ;;  %v4335_v62 = vsel %vm928_vm2, %v4297_v52, 0.0  ;;  %v4326_v60 = vsel %vm928_vm2, %v4294_v61, 0.0 }
 0x924   : > { %4336 = vadd.xlane.f32.xlu1 %v4335_v62  ;;  %4327 = vadd.xlane.f32.xlu0 %v4326_v60 }
 0x925   : > { %v4295_v57 = vmul.f32 %v11268_v9, %v11268_v9 }
 0x927   : > { %v4329_v48 = vsel %vm928_vm2, %v4295_v57, 0.0 }
 0x928   : > { %4330 = vadd.xlane.f32.xlu1 %v4329_v48 }
 0x92d   : > { %v4154_v39 = vpop.xlane.xlu0 %4153 }
 0x92e   : > { %v4236_v32 = vmul.f32 0.03125, %v4154_v39 }
 0x930   : > { %v11276_v20 = vsub.f32 %v11085_v51, %v4236_v32 }
 0x931   : > { %v4157_v13 = vpop.xlane.xlu1 %4156  ;;  %v4148_v34 = vpop.xlane.xlu0 %4147 }
 0x932   : > { %v4237_v47 = vmul.f32 0.03125, %v4157_v13  ;;  %v4234_v42 = vmul.f32 0.03125, %v4148_v34  ;;  %v4300_v55 = vmul.f32 %v11276_v20, %v11276_v20 }
 0x934   : > { %v11281_v28 = vsub.f32 %v11095_v21, %v4237_v47  ;;  %v11284_v31 = vsub.f32 %v11089_v14, %v4234_v42  ;;  %v4344_v23 = vsel %vm928_vm2, %v4300_v55, 0.0 }
 0x935   : > { %v4151_v43 = vpop.xlane.xlu1 %4150  ;;  %4345 = vadd.xlane.f32.xlu0 %v4344_v23 }
 0x936   : > { %v4235_v45 = vmul.f32 0.03125, %v4151_v43  ;;  %v4301_v40 = vmul.f32 %v11281_v28, %v11281_v28  ;;  %v4298_v24 = vmul.f32 %v11284_v31, %v11284_v31 }
 0x937   : > { %v4166_v3 = vpop.xlane.xlu0 %4165 }
 0x938   : > { %v11292_v22 = vsub.f32 %v11099_v10, %v4235_v45  ;;  %v4240_v26 = vmul.f32 0.03125, %v4166_v3  ;;  %v4347_v63 = vsel %vm928_vm2, %v4301_v40, 0.0  ;;  %v4338_v33 = vsel %vm928_vm2, %v4298_v24, 0.0 }
 0x939   : > { %4348 = vadd.xlane.f32.xlu1 %v4347_v63  ;;  %4339 = vadd.xlane.f32.xlu0 %v4338_v33 }
 0x93a   : > { %v11297_v16 = vsub.f32 %v11107_v46, %v4240_v26  ;;  %v4299_v50 = vmul.f32 %v11292_v22, %v11292_v22 }
 0x93b   : > { %v4169_v52 = vpop.xlane.xlu1 %4168  ;;  %v4160_v61 = vpop.xlane.xlu0 %4159 }
 0x93c   : > { %v4241_v62 = vmul.f32 0.03125, %v4169_v52  ;;  %v4238_v60 = vmul.f32 0.03125, %v4160_v61  ;;  %v4341_v57 = vsel %vm928_vm2, %v4299_v50, 0.0  ;;  %v4304_v48 = vmul.f32 %v11297_v16, %v11297_v16 }
 0x93d   : > { %4342 = vadd.xlane.f32.xlu1 %v4341_v57 }
 0x93e   : > { %v11305_v39 = vsub.f32 %v11119_v37, %v4241_v62  ;;  %v11308_v32 = vsub.f32 %v11113_v58, %v4238_v60  ;;  %v4356_v13 = vsel %vm928_vm2, %v4304_v48, 0.0 }
 0x93f   : > { %v4163_v34 = vpop.xlane.xlu1 %4162  ;;  %4357 = vadd.xlane.f32.xlu0 %v4356_v13 }
 0x940   : > { %v4239_v47 = vmul.f32 0.03125, %v4163_v34  ;;  %v4305_v42 = vmul.f32 %v11305_v39, %v11305_v39  ;;  %v4302_v55 = vmul.f32 %v11308_v32, %v11308_v32  ;;  %v4178_v23 = vpop.xlane.xlu0 %4177 }
 0x941   : > { %v4244_v45 = vmul.f32 0.03125, %v4178_v23 }
 0x942   : > { %v11316_v43 = vsub.f32 %v11123_v54, %v4239_v47  ;;  %v4359_v40 = vsel %vm928_vm2, %v4305_v42, 0.0  ;;  %v4350_v24 = vsel %vm928_vm2, %v4302_v55, 0.0 }
 0x943   : > { %4360 = vadd.xlane.f32.xlu1 %v4359_v40  ;;  %4351 = vadd.xlane.f32.xlu0 %v4350_v24  ;;  %v11321_v3 = vsub.f32 %v11131_v53, %v4244_v45 }
 0x944   : > { %v4303_v26 = vmul.f32 %v11316_v43, %v11316_v43  ;;  %v4181_v63 = vpop.xlane.xlu1 %4180  ;;  %v4172_v33 = vpop.xlane.xlu0 %4171 }
 0x945   : > { %v4245_v50 = vmul.f32 0.03125, %v4181_v63  ;;  %v4242_v52 = vmul.f32 0.03125, %v4172_v33  ;;  %v4308_v62 = vmul.f32 %v11321_v3, %v11321_v3 }
 0x946   : > { %v4353_v61 = vsel %vm928_vm2, %v4303_v26, 0.0 }
 0x947   : > { %4354 = vadd.xlane.f32.xlu1 %v4353_v61  ;;  %v11329_v60 = vsub.f32 %v11143_v29, %v4245_v50  ;;  %v11332_v57 = vsub.f32 %v11137_v49, %v4242_v52  ;;  %v4368_v48 = vsel %vm928_vm2, %v4308_v62, 0.0 }
 0x948   : > { %v4175_v13 = vpop.xlane.xlu1 %4174  ;;  %v4190_v34 = vpop.xlane.xlu0 %4189  ;;  %4369 = vadd.xlane.f32.xlu0 %v4368_v48 }
 0x949   : > { %v4243_v47 = vmul.f32 0.03125, %v4175_v13  ;;  %v4248_v42 = vmul.f32 0.03125, %v4190_v34  ;;  %v4309_v55 = vmul.f32 %v11329_v60, %v11329_v60  ;;  %v4306_v23 = vmul.f32 %v11332_v57, %v11332_v57 }
 0x94b   : > { %v11340_v45 = vsub.f32 %v11147_v36, %v4243_v47  ;;  %v11343_v40 = vsub.f32 %v11155_v38, %v4248_v42  ;;  %v4371_v24 = vsel %vm928_vm2, %v4309_v55, 0.0  ;;  %v4362_v26 = vsel %vm928_vm2, %v4306_v23, 0.0 }
 0x94c   : > { %v4193_v63 = vpop.xlane.xlu1 %4192  ;;  %v4184_v33 = vpop.xlane.xlu0 %4183  ;;  %4372 = vadd.xlane.f32.xlu1 %v4371_v24  ;;  %4363 = vadd.xlane.f32.xlu0 %v4362_v26 }
 0x94d   : > { %v4249_v50 = vmul.f32 0.03125, %v4193_v63  ;;  %v4246_v52 = vmul.f32 0.03125, %v4184_v33  ;;  %v4307_v61 = vmul.f32 %v11340_v45, %v11340_v45  ;;  %v4312_v62 = vmul.f32 %v11343_v40, %v11343_v40 }
 0x94f   : > { %v11352_v48 = vsub.f32 %v11167_v25, %v4249_v50  ;;  %v11355_v13 = vsub.f32 %v11159_v8, %v4246_v52  ;;  %v4365_v34 = vsel %vm928_vm2, %v4307_v61, 0.0  ;;  %v4380_v47 = vsel %vm928_vm2, %v4312_v62, 0.0 }
 0x950   : > { %v4187_v42 = vpop.xlane.xlu1 %4186  ;;  %v4202_v55 = vpop.xlane.xlu0 %4201  ;;  %4366 = vadd.xlane.f32.xlu1 %v4365_v34  ;;  %4381 = vadd.xlane.f32.xlu0 %v4380_v47 }
 0x951   : > { %v4247_v23 = vmul.f32 0.03125, %v4187_v42  ;;  %v4252_v24 = vmul.f32 0.03125, %v4202_v55  ;;  %v4313_v26 = vmul.f32 %v11352_v48, %v11352_v48  ;;  %v4310_v63 = vmul.f32 %v11355_v13, %v11355_v13 }
 0x953   : > { %v11364_v33 = vsub.f32 %v11171_v12, %v4247_v23  ;;  %v11367_v50 = vsub.f32 %v11179_v27, %v4252_v24  ;;  %v4383_v52 = vsel %vm928_vm2, %v4313_v26, 0.0  ;;  %v4374_v61 = vsel %vm928_vm2, %v4310_v63, 0.0 }
 0x954   : > { %v4205_v62 = vpop.xlane.xlu1 %4204  ;;  %v4196_v34 = vpop.xlane.xlu0 %4195  ;;  %4384 = vadd.xlane.f32.xlu1 %v4383_v52  ;;  %4375 = vadd.xlane.f32.xlu0 %v4374_v61 }
 0x955   : > { %v4253_v47 = vmul.f32 0.03125, %v4205_v62  ;;  %v4250_v42 = vmul.f32 0.03125, %v4196_v34  ;;  %v4311_v55 = vmul.f32 %v11364_v33, %v11364_v33  ;;  %v4316_v23 = vmul.f32 %v11367_v50, %v11367_v50 }
 0x957   : > { %v11376_v25 = vsub.f32 %v11191_v44, %v4253_v47  ;;  %v11379_v24 = vsub.f32 %v11183_v1, %v4250_v42  ;;  %v4377_v26 = vsel %vm928_vm2, %v4311_v55, 0.0  ;;  %v4392_v63 = vsel %vm928_vm2, %v4316_v23, 0.0 }
 0x958   : > { %v4199_v52 = vpop.xlane.xlu1 %4198  ;;  %v4214_v61 = vpop.xlane.xlu0 %4213  ;;  %4378 = vadd.xlane.f32.xlu1 %v4377_v26  ;;  %4393 = vadd.xlane.f32.xlu0 %v4392_v63 }
 0x959   : > { %v4251_v62 = vmul.f32 0.03125, %v4199_v52  ;;  %v4256_v34 = vmul.f32 0.03125, %v4214_v61  ;;  %v4317_v27 = vmul.f32 %v11376_v25, %v11376_v25  ;;  %v4314_v47 = vmul.f32 %v11379_v24, %v11379_v24 }
 0x95b   : > { %v11388_v44 = vsub.f32 %v11195_v6, %v4251_v62  ;;  %v11391_v42 = vsub.f32 %v11203_v15, %v4256_v34  ;;  %v4395_v55 = vsel %vm928_vm2, %v4317_v27, 0.0  ;;  %v4386_v23 = vsel %vm928_vm2, %v4314_v47, 0.0 }
 0x95c   : > { %v4217_v26 = vpop.xlane.xlu1 %4216  ;;  %v4208_v63 = vpop.xlane.xlu0 %4207  ;;  %4396 = vadd.xlane.f32.xlu1 %v4395_v55  ;;  %4387 = vadd.xlane.f32.xlu0 %v4386_v23 }
 0x95d   : > { %v4257_v52 = vmul.f32 0.03125, %v4217_v26  ;;  %v4254_v61 = vmul.f32 0.03125, %v4208_v63  ;;  %v4315_v1 = vmul.f32 %v11388_v44, %v11388_v44  ;;  %v4320_v62 = vmul.f32 %v11391_v42, %v11391_v42 }
 0x95f   : > { %v11400_v6 = vsub.f32 %v11215_v4, %v4257_v52  ;;  %v11403_v34 = vsub.f32 %v11207_v59, %v4254_v61  ;;  %v4389_v27 = vsel %vm928_vm2, %v4315_v1, 0.0  ;;  %v4404_v47 = vsel %vm928_vm2, %v4320_v62, 0.0 }
 0x960   : > { %v4211_v55 = vpop.xlane.xlu1 %4210  ;;  %4390 = vadd.xlane.f32.xlu1 %v4389_v27  ;;  %4405 = vadd.xlane.f32.xlu0 %v4404_v47 }
 0x961   : > { %v4255_v23 = vmul.f32 0.03125, %v4211_v55  ;;  %v4321_v26 = vmul.f32 %v11400_v6, %v11400_v6  ;;  %v4318_v63 = vmul.f32 %v11403_v34, %v11403_v34 }
 0x962   : > { %v4220_v15 = vpop.xlane.xlu0 %4219 }
 0x963   : > { %v11412_v52 = vsub.f32 %v11219_v30, %v4255_v23  ;;  %v4258_v61 = vmul.f32 0.03125, %v4220_v15  ;;  %v4407_v4 = vsel %vm928_vm2, %v4321_v26, 0.0  ;;  %v4398_v1 = vsel %vm928_vm2, %v4318_v63, 0.0 }
 0x964   : > { %4408 = vadd.xlane.f32.xlu1 %v4407_v4  ;;  %4399 = vadd.xlane.f32.xlu0 %v4398_v1 }
 0x965   : > { %v11417_v62 = vsub.f32 %v11228_v18, %v4258_v61  ;;  %v4319_v27 = vmul.f32 %v11412_v52, %v11412_v52 }
 0x966   : > { %v4223_v47 = vpop.xlane.xlu1 %4222  ;;  %v4226_v55 = vpop.xlane.xlu0 %4225 }
 0x967   : > { %v4259_v59 = vmul.f32 0.03125, %v4223_v47  ;;  %v4260_v12 = vmul.f32 0.03125, %v4226_v55  ;;  %v4401_v23 = vsel %vm928_vm2, %v4319_v27, 0.0  ;;  %v4322_v15 = vmul.f32 %v11417_v62, %v11417_v62 }
 0x968   : > { %4402 = vadd.xlane.f32.xlu1 %v4401_v23 }
 0x969   : > { %v11425_v26 = vsub.f32 %v11240_v2, %v4259_v59  ;;  %v11428_v4 = vsub.f32 %v11233_v35, %v4260_v12  ;;  %v4410_v63 = vsel %vm928_vm2, %v4322_v15, 0.0 }
 0x96a   : > { %v4229_v61 = vpop.xlane.xlu1 %4228  ;;  %4411 = vadd.xlane.f32.xlu0 %v4410_v63 }
 0x96b   : > { %v4261_v1 = vmul.f32 0.03125, %v4229_v61  ;;  %v4323_v47 = vmul.f32 %v11425_v26, %v11425_v26  ;;  %v4324_v27 = vmul.f32 %v11428_v4, %v11428_v4 }
 0x96d   : > { %v11436_v55 = vsub.f32 %v11243_v41, %v4261_v1  ;;  %v4413_v59 = vsel %vm928_vm2, %v4323_v47, 0.0  ;;  %v4416_v23 = vsel %vm928_vm2, %v4324_v27, 0.0 }
 0x96e   : > { %4414 = vadd.xlane.f32.xlu1 %v4413_v59  ;;  %4417 = vadd.xlane.f32.xlu0 %v4416_v23 }
 0x96f   : > { %v4325_v12 = vmul.f32 %v11436_v55, %v11436_v55 }
 0x971   : > { %v4419_v15 = vsel %vm928_vm2, %v4325_v12, 0.0 }
 0x972   : > { %4420 = vadd.xlane.f32.xlu1 %v4419_v15 }
 0x9a9   : > { %v4334_v63 = vpop.xlane.xlu0 %4333 }
 0x9aa   : > { %v4424_v41 = vmul.f32 0.03125, %v4334_v63 }
 0x9ac   : > { %v4456_v27 = vadd.f32 1e-05, %v4424_v41 }
 0x9ad   : > { %v4337_v61 = vpop.xlane.xlu1 %4336  ;;  %v4328_v2 = vpop.xlane.xlu0 %4327 }
 0x9ae   : > { %v4425_v47 = vmul.f32 0.03125, %v4337_v61  ;;  %v4422_v59 = vmul.f32 0.03125, %v4328_v2  ;;  %8377 = vrsqrt.f32 %v4456_v27 }
 0x9b0   : > { %v4457_v23 = vadd.f32 1e-05, %v4425_v47  ;;  %v4454_v12 = vadd.f32 1e-05, %v4422_v59 }
 0x9b1   : > { %v4331_v35 = vpop.xlane.xlu1 %4330 }
 0x9b2   : > { %v4423_v29 = vmul.f32 0.03125, %v4331_v35  ;;  %8379 = vrsqrt.f32 %v4457_v23 }
 0x9b3   : > { %8381 = vrsqrt.f32 %v4454_v12 }
 0x9b4   : > { %v4455_v49 = vadd.f32 1e-05, %v4423_v29 }
 0x9b6   : > { %8383 = vrsqrt.f32 %v4455_v49 }
 0x9bb   : > { %v8378_v10 = vpop.eup %8377 }
 0x9bc   : > { %v4520_v49 = vmul.f32 %v8378_v10, %v11252_v19  ;;  %v11454_v19 = vld [vmem:[%s13385_s7 + $0x1] ss:$0 sm:$0xff] }
 0x9be   : > { %v4346_v18 = vpop.xlane.xlu0 %4345 }
 0x9bf   : > { %v4428_v15 = vmul.f32 0.03125, %v4346_v18  ;;  %v8380_v51 = vpop.eup %8379 }
 0x9c1   : > { %v4460_v54 = vadd.f32 1e-05, %v4428_v15  ;;  %v4521_v15 = vmul.f32 %v8380_v51, %v11257_v0 }
 0x9c2   : > { %v4349_v30 = vpop.xlane.xlu1 %4348  ;;  %v4340_v1 = vpop.xlane.xlu0 %4339 }
 0x9c3   : > { %v4429_v63 = vmul.f32 0.03125, %v4349_v30  ;;  %v4426_v58 = vmul.f32 0.03125, %v4340_v1  ;;  %8385 = vrsqrt.f32 %v4460_v54  ;;  %v8382_v1 = vpop.eup %8381 }
 0x9c5   : > { %v4461_v47 = vadd.f32 1e-05, %v4429_v63  ;;  %v4458_v35 = vadd.f32 1e-05, %v4426_v58 }
 0x9c6   : > { %v4343_v38 = vpop.xlane.xlu1 %4342 }
 0x9c7   : > { %v4427_v2 = vmul.f32 0.03125, %v4343_v38  ;;  %8387 = vrsqrt.f32 %v4461_v47  ;;  %v11447_v38 = vld [vmem:[%s13384_s6 + $0x1] ss:$0 sm:$0xff]  ;;  %v4518_v47 = vmul.f32 %v8382_v1, %v11260_v17 }
 0x9c8   : > { %v4358_v8 = vpop.xlane.xlu0 %4357  ;;  %8389 = vrsqrt.f32 %v4458_v35  ;;  %v4558_v10 = vmul.f32 %v11447_v38, %v4520_v49 }
 0x9c9   : > { %v4432_v21 = vmul.f32 0.03125, %v4358_v8  ;;  %v4459_v23 = vadd.f32 1e-05, %v4427_v2  ;;  %v4556_v17 = vmul.f32 %v11447_v38, %v4518_v47 }
 0x9cb   : > { %v4464_v30 = vadd.f32 1e-05, %v4432_v21  ;;  %8391 = vrsqrt.f32 %v4459_v23 }
 0x9cc   : > { %v4361_v36 = vpop.xlane.xlu1 %4360  ;;  %v4352_v53 = vpop.xlane.xlu0 %4351 }
 0x9cd   : > { %v4433_v27 = vmul.f32 0.03125, %v4361_v36  ;;  %v4430_v29 = vmul.f32 0.03125, %v4352_v53  ;;  %8393 = vrsqrt.f32 %v4464_v30 }
 0x9cf   : > { %v4465_v58 = vadd.f32 1e-05, %v4433_v27  ;;  %v4462_v53 = vadd.f32 1e-05, %v4430_v29 }
 0x9d0   : > { %v4355_v37 = vpop.xlane.xlu1 %4354 }
 0x9d1   : > { %v4370_v46 = vpop.xlane.xlu0 %4369  ;;  %v4431_v12 = vmul.f32 0.03125, %v4355_v37  ;;  %v8384_v37 = vpop.eup %8383  ;;  %8395 = vrsqrt.f32 %v4465_v58 }
 0x9d2   : > { %v4436_v54 = vmul.f32 0.03125, %v4370_v46  ;;  %v8386_v0 = vpop.eup %8385  ;;  %v4519_v27 = vmul.f32 %v8384_v37, %v11268_v9  ;;  %8397 = vrsqrt.f32 %v4462_v53 }
 0x9d3   : > { %v4463_v2 = vadd.f32 1e-05, %v4431_v12  ;;  %v4524_v30 = vmul.f32 %v8386_v0, %v11276_v20 }
 0x9d4   : > { %v4468_v21 = vadd.f32 1e-05, %v4436_v54  ;;  %v4557_v9 = vmul.f32 %v11447_v38, %v4519_v27  ;;  %v8388_v37 = vpop.eup %8387 }
 0x9d5   : > { %v4373_v61 = vpop.xlane.xlu1 %4372  ;;  %v4364_v41 = vpop.xlane.xlu0 %4363  ;;  %8399 = vrsqrt.f32 %v4463_v2 }
 0x9d6   : > { %v4437_v63 = vmul.f32 0.03125, %v4373_v61  ;;  %v4434_v46 = vmul.f32 0.03125, %v4364_v41  ;;  %v4559_v61 = vmul.f32 %v11447_v38, %v4521_v15  ;;  %v11460_v41 = vadd.f32 %v11454_v19, %v4558_v10 }
 0x9d7   : > { %8401 = vrsqrt.f32 %v4468_v21  ;;  %v11473_v10 = vadd.f32 %v11454_v19, %v4556_v17  ;;  %v4562_v21 = vmul.f32 %v11447_v38, %v4524_v30 }
 0x9d8   : > { %v4469_v23 = vadd.f32 1e-05, %v4437_v63  ;;  %v4466_v12 = vadd.f32 1e-05, %v4434_v46  ;;  %v11465_v15 = vadd.f32 %v11454_v19, %v4559_v61  ;;  %v11481_v61 = vadd.f32 %v11454_v19, %v4557_v9 }
 0x9d9   : > { %v4367_v59 = vpop.xlane.xlu1 %4366  ;;  %v4382_v18 = vpop.xlane.xlu0 %4381  ;;  %v11487_v14 = vsel %vm928_vm2, %v11473_v10, -inf  ;;  %v11490_v9 = vadd.f32 %v11454_v19, %v4562_v21 }
 0x9da   : > { %v4435_v29 = vmul.f32 0.03125, %v4367_v59  ;;  %v4440_v49 = vmul.f32 0.03125, %v4382_v18  ;;  %8403 = vrsqrt.f32 %v4469_v23  ;;  %v11470_v18 = vsel %vm928_vm2, %v11460_v41, -inf }
 0x9db   : > { %8405 = vrsqrt.f32 %v4466_v12 }
 0x9dc   : > { %v4467_v53 = vadd.f32 1e-05, %v4435_v29  ;;  %v4472_v2 = vadd.f32 1e-05, %v4440_v49  ;;  %v4525_v29 = vmul.f32 %v8388_v37, %v11281_v28 }
 0x9dd   : > { %v4385_v8 = vpop.xlane.xlu1 %4384  ;;  %v4376_v36 = vpop.xlane.xlu0 %4375 }
 0x9de   : > { %v4441_v54 = vmul.f32 0.03125, %v4385_v8  ;;  %v4438_v59 = vmul.f32 0.03125, %v4376_v36  ;;  %v8390_v8 = vpop.eup %8389  ;;  %8407 = vrsqrt.f32 %v4467_v53 }
 0x9df   : > { %v4522_v17 = vmul.f32 %v8390_v8, %v11284_v31  ;;  %8409 = vrsqrt.f32 %v4472_v2  ;;  %v4563_v8 = vmul.f32 %v11447_v38, %v4525_v29 }
 0x9e0   : > { %v4473_v46 = vadd.f32 1e-05, %v4441_v54  ;;  %v4470_v27 = vadd.f32 1e-05, %v4438_v59 }
 0x9e1   : > { %v4379_v35 = vpop.xlane.xlu1 %4378  ;;  %v4394_v51 = vpop.xlane.xlu0 %4393 }
 0x9e2   : > { %v4439_v63 = vmul.f32 0.03125, %v4379_v35  ;;  %v4444_v20 = vmul.f32 0.03125, %v4394_v51  ;;  %v11478_v35 = vsel %vm928_vm2, %v11465_v15, -inf  ;;  %v8392_v51 = vpop.eup %8391  ;;  %8411 = vrsqrt.f32 %v4473_v46 }
 0x9e3   : > { %8413 = vrsqrt.f32 %v4470_v27  ;;  %v4560_v46 = vmul.f32 %v11447_v38, %v4522_v17 }
 0x9e4   : > { %v4471_v12 = vadd.f32 1e-05, %v4439_v63  ;;  %v4476_v30 = vadd.f32 1e-05, %v4444_v20  ;;  %v4523_v63 = vmul.f32 %v8392_v51, %v11292_v22  ;;  %v11495_v20 = vsel %vm928_vm2, %v11481_v61, -inf }
 0x9e5   : > { %v4397_v58 = vpop.xlane.xlu1 %4396  ;;  %v4388_v1 = vpop.xlane.xlu0 %4387 }
 0x9e6   : > { %v4445_v47 = vmul.f32 0.03125, %v4397_v58  ;;  %v4442_v23 = vmul.f32 0.03125, %v4388_v1  ;;  %v8394_v58 = vpop.eup %8393  ;;  %8415 = vrsqrt.f32 %v4471_v12  ;;  %v4561_v29 = vmul.f32 %v11447_v38, %v4523_v63 }
 0x9e7   : > { %v8396_v53 = vpop.eup %8395  ;;  %8417 = vrsqrt.f32 %v4476_v30  ;;  %v4528_v22 = vmul.f32 %v8394_v58, %v11297_v16  ;;  %v11512_v58 = vadd.f32 %v11454_v19, %v4560_v46 }
 0x9e8   : > { %v4477_v1 = vadd.f32 1e-05, %v4445_v47  ;;  %v4474_v31 = vadd.f32 1e-05, %v4442_v23  ;;  %v8398_v2 = vpop.eup %8397  ;;  %v4529_v27 = vmul.f32 %v8396_v53, %v11305_v39  ;;  %v11509_v39 = vadd.f32 %v11454_v19, %v4563_v8 }
 0x9e9   : > { %v4391_v0 = vpop.xlane.xlu1 %4390  ;;  %v4406_v36 = vpop.xlane.xlu0 %4405  ;;  %v4526_v17 = vmul.f32 %v8398_v2, %v11308_v32  ;;  %v4566_v53 = vmul.f32 %v11447_v38, %v4528_v22 }
 0x9ea   : > { %v4443_v49 = vmul.f32 0.03125, %v4391_v0  ;;  %v4448_v54 = vmul.f32 0.03125, %v4406_v36  ;;  %v8400_v0 = vpop.eup %8399  ;;  %8419 = vrsqrt.f32 %v4477_v1  ;;  %v4567_v63 = vmul.f32 %v11447_v38, %v4529_v27 }
 0x9eb   : > { %v8402_v56 = vpop.eup %8401  ;;  %8421 = vrsqrt.f32 %v4474_v31  ;;  %v4527_v30 = vmul.f32 %v8400_v0, %v11316_v43  ;;  %v11518_v43 = vadd.f32 %v11454_v19, %v4561_v29  ;;  %v4636_v46 = vsel %vm928_vm2, %v11509_v39, -inf }
 0x9ec   : > { %v4475_v21 = vadd.f32 1e-05, %v4443_v49  ;;  %v4480_v47 = vadd.f32 1e-05, %v4448_v54  ;;  %v8404_v49 = vpop.eup %8403  ;;  %v4532_v1 = vmul.f32 %v8402_v56, %v11321_v3  ;;  %v4564_v56 = vmul.f32 %v11447_v38, %v4526_v17 }
 0x9ed   : > { %v4409_v59 = vpop.xlane.xlu1 %4408  ;;  %v4400_v28 = vpop.xlane.xlu0 %4399  ;;  %v4533_v31 = vmul.f32 %v8404_v49, %v11329_v60  ;;  %v4565_v3 = vmul.f32 %v11447_v38, %v4527_v30  ;;  %v11532_v27 = vadd.f32 %v11454_v19, %v4566_v53  ;;  %v4632_v29 = vsel %vm928_vm2, %v11518_v43, -inf }
 0x9ee   : > { %v4449_v37 = vmul.f32 0.03125, %v4409_v59  ;;  %v4446_v36 = vmul.f32 0.03125, %v4400_v28  ;;  %v11503_v59 = vsel %vm928_vm2, %v11490_v9, -inf  ;;  %8423 = vrsqrt.f32 %v4475_v21  ;;  %v8406_v28 = vpop.eup %8405 }
 0x9ef   : > { %8425 = vrsqrt.f32 %v4480_v47  ;;  %v4635_v2 = vmax.f32 %v11470_v18, %v11503_v59  ;;  %v8408_v0 = vpop.eup %8407  ;;  %v4570_v47 = vmul.f32 %v11447_v38, %v4532_v1  ;;  %v4530_v60 = vmul.f32 %v8406_v28, %v11332_v57 }
 0x9f0   : > { %v4481_v23 = vadd.f32 1e-05, %v4449_v37  ;;  %v4478_v12 = vadd.f32 1e-05, %v4446_v36  ;;  %v8410_v22 = vpop.eup %8409  ;;  %v4630_v18 = vsel %vm928_vm2, %v11512_v58, -inf  ;;  %v11541_v17 = vadd.f32 %v11454_v19, %v4564_v56 }
 0x9f1   : > { %v4403_v51 = vpop.xlane.xlu1 %4402  ;;  %v8412_v59 = vpop.eup %8411  ;;  %v11544_v30 = vadd.f32 %v11454_v19, %v4565_v3  ;;  %v4637_v53 = vmax.f32 %v11478_v35, %v4636_v46  ;;  %v4642_v56 = vsel %vm928_vm2, %v11532_v27, -inf  ;;  %v4633_v35 = vmax.f32 %v11495_v20, %v4632_v29 }
 0x9f2   : > { %v4447_v16 = vmul.f32 0.03125, %v4403_v51  ;;  %8427 = vrsqrt.f32 %v4481_v23  ;;  %v11535_v23 = vadd.f32 %v11454_v19, %v4567_v63  ;;  %v8414_v49 = vpop.eup %8413  ;;  %v4631_v63 = vmax.f32 %v11487_v14, %v4630_v18 }
 0x9f3   : > { %v4412_v54 = vpop.xlane.xlu0 %4411  ;;  %8429 = vrsqrt.f32 %v4478_v12  ;;  %v4571_v12 = vmul.f32 %v11447_v38, %v4533_v31  ;;  %v8416_v28 = vpop.eup %8415  ;;  %v4568_v31 = vmul.f32 %v11447_v38, %v4530_v60  ;;  %v4640_v60 = vsel %vm928_vm2, %v11544_v30, -inf }
 0x9f4   : > { %v4479_v32 = vadd.f32 1e-05, %v4447_v16  ;;  %v4450_v37 = vmul.f32 0.03125, %v4412_v54  ;;  %v4531_v16 = vmul.f32 %v8408_v0, %v11340_v45  ;;  %v4644_v3 = vsel %vm928_vm2, %v11535_v23, -inf }
 0x9f5   : > { %v4536_v45 = vmul.f32 %v8410_v22, %v11343_v40  ;;  %v11560_v14 = vadd.f32 %v11454_v19, %v4571_v12  ;;  %v4537_v40 = vmul.f32 %v8412_v59, %v11352_v48  ;;  %v4643_v18 = vmax.f32 %v4635_v2, %v4642_v56 }
 0x9f6   : > { %8431 = vrsqrt.f32 %v4479_v32  ;;  %v4482_v36 = vadd.f32 1e-05, %v4450_v37  ;;  %v11550_v32 = vadd.f32 %v11454_v19, %v4570_v47  ;;  %v8418_v37 = vpop.eup %8417  ;;  %v4638_v47 = vsel %vm928_vm2, %v11541_v17, -inf }
 0x9f7   : > { %v4415_v8 = vpop.xlane.xlu1 %4414  ;;  %v4418_v21 = vpop.xlane.xlu0 %4417  ;;  %v11573_v29 = vadd.f32 %v11454_v19, %v4568_v31  ;;  %v11577_v7 = vmax.f32 %v4631_v63, %v4638_v47  ;;  %v4641_v48 = vmax.f32 %v4633_v35, %v4640_v60  ;;  %v4652_v2 = vsel %vm928_vm2, %v11560_v14, -inf }
 0x9f8   : > { %v4451_v51 = vmul.f32 0.03125, %v4415_v8  ;;  %8433 = vrsqrt.f32 %v4482_v36  ;;  %v4452_v57 = vmul.f32 0.03125, %v4418_v21  ;;  %v8420_v8 = vpop.eup %8419  ;;  %v4569_v36 = vmul.f32 %v11447_v38, %v4531_v16 }
 0x9f9   : > { %v8422_v46 = vpop.eup %8421  ;;  %v4650_v20 = vsel %vm928_vm2, %v11550_v32, -inf  ;;  %v4534_v59 = vmul.f32 %v8414_v49, %v11355_v13  ;;  %v4575_v56 = vmul.f32 %v11447_v38, %v4537_v40  ;;  %v4540_v63 = vmul.f32 %v8418_v37, %v11367_v50 }
 0x9fa   : > { %v4483_v54 = vadd.f32 1e-05, %v4451_v51  ;;  %v4484_v21 = vadd.f32 1e-05, %v4452_v57  ;;  %v11568_v51 = vmax.f32 %v4637_v53, %v4644_v3  ;;  %v4574_v57 = vmul.f32 %v11447_v38, %v4536_v45 }
 0x9fb   : > { %v4421_v1 = vpop.xlane.xlu1 %4420  ;;  %v8424_v22 = vpop.eup %8423  ;;  %v11583_v31 = vadd.f32 %v11454_v19, %v4569_v36  ;;  %v4541_v45 = vmul.f32 %v8420_v8, %v11376_v25  ;;  %v4538_v35 = vmul.f32 %v8422_v46, %v11379_v24  ;;  %v4646_v13 = vsel %vm928_vm2, %v11573_v29, -inf }
 0x9fc   : > { %8435 = vrsqrt.f32 %v4483_v54  ;;  %v4453_v0 = vmul.f32 0.03125, %v4421_v1  ;;  %v8426_v12 = vpop.eup %8425  ;;  %v4535_v54 = vmul.f32 %v8416_v28, %v11364_v33  ;;  %v4539_v3 = vmul.f32 %v8424_v22, %v11388_v44 }
 0x9fd   : > { %8437 = vrsqrt.f32 %v4484_v21  ;;  %v4651_v28 = vmax.f32 %v4643_v18, %v4650_v20  ;;  %v11593_v49 = vadd.f32 %v11454_v19, %v4574_v57  ;;  %v4653_v44 = vmax.f32 %v11568_v51, %v4652_v2 }
 0x9fe   : > { %v4485_v1 = vadd.f32 1e-05, %v4453_v0  ;;  %v4573_v21 = vmul.f32 %v11447_v38, %v4535_v54  ;;  %v4572_v47 = vmul.f32 %v11447_v38, %v4534_v59  ;;  %v4544_v50 = vmul.f32 %v8426_v12, %v11391_v42 }
 0x9ff   : > { %v8428_v16 = vpop.eup %8427  ;;  %v4648_v24 = vsel %vm928_vm2, %v11583_v31, -inf  ;;  %v11604_v8 = vadd.f32 %v11454_v19, %v4575_v56  ;;  %v4577_v46 = vmul.f32 %v11447_v38, %v4539_v3  ;;  %v4578_v36 = vmul.f32 %v11447_v38, %v4540_v63 }
 0xa00   : > { %v8430_v53 = vpop.eup %8429  ;;  %8439 = vrsqrt.f32 %v4485_v1  ;;  %v4545_v25 = vmul.f32 %v8428_v16, %v11400_v6  ;;  %v4579_v40 = vmul.f32 %v11447_v38, %v4541_v45  ;;  %v4576_v42 = vmul.f32 %v11447_v38, %v4538_v35 }
 0xa01   : > { %v4542_v60 = vmul.f32 %v8430_v53, %v11403_v34  ;;  %v4658_v6 = vsel %vm928_vm2, %v11593_v49, -inf  ;;  %v11615_v22 = vadd.f32 %v11454_v19, %v4573_v21  ;;  %v4649_v34 = vmax.f32 %v4641_v48, %v4648_v24 }
 0xa02   : > { %v4582_v12 = vmul.f32 %v11447_v38, %v4544_v50  ;;  %v4583_v57 = vmul.f32 %v11447_v38, %v4545_v25  ;;  %v4660_v54 = vsel %vm928_vm2, %v11604_v8, -inf  ;;  %v11627_v1 = vadd.f32 %v11454_v19, %v4577_v46 }
 0xa03   : > { %v8432_v33 = vpop.eup %8431  ;;  %v4580_v16 = vmul.f32 %v11447_v38, %v4542_v60  ;;  %v11632_v48 = vadd.f32 %v11454_v19, %v4578_v36  ;;  %v11635_v59 = vadd.f32 %v11454_v19, %v4579_v40  ;;  %v11638_v53 = vadd.f32 %v11454_v19, %v4576_v42 }
 0xa04   : > { %v4543_v0 = vmul.f32 %v8432_v33, %v11412_v52  ;;  %v4647_v52 = vmax.f32 %v11577_v7, %v4646_v13  ;;  %v11620_v7 = vadd.f32 %v11454_v19, %v4572_v47  ;;  %v4656_v56 = vsel %vm928_vm2, %v11615_v22, -inf }
 0xa05   : > { %v8434_v37 = vpop.eup %8433  ;;  %v4661_v63 = vmax.f32 %v4653_v44, %v4660_v54  ;;  %v11650_v35 = vadd.f32 %v11454_v19, %v4582_v12  ;;  %v11653_v13 = vadd.f32 %v11454_v19, %v4583_v57  ;;  %v4664_v21 = vsel %vm928_vm2, %v11627_v1, -inf }
 0xa06   : > { %v4581_v18 = vmul.f32 %v11447_v38, %v4543_v0  ;;  %v4546_v51 = vmul.f32 %v8434_v37, %v11417_v62  ;;  %v4659_v62 = vmax.f32 %v4651_v28, %v4658_v6  ;;  %v4654_v45 = vsel %vm928_vm2, %v11620_v7, -inf }
 0xa07   : > { %v11658_v0 = vadd.f32 %v11454_v19, %v4580_v16  ;;  %v4657_v25 = vmax.f32 %v4649_v34, %v4656_v56  ;;  %v4666_v37 = vsel %vm928_vm2, %v11632_v48, -inf  ;;  %v4668_v24 = vsel %vm928_vm2, %v11635_v59, -inf }
 0xa08   : > { %v11643_v3 = vadd.f32 %v11454_v19, %v4581_v18  ;;  %v4584_v33 = vmul.f32 %v11447_v38, %v4546_v51  ;;  %v4662_v46 = vsel %vm928_vm2, %v11638_v53, -inf  ;;  %v4655_v42 = vmax.f32 %v4647_v52, %v4654_v45 }
 0xa09   : > { %v8436_v20 = vpop.eup %8435  ;;  %v4665_v6 = vmax.f32 %v4657_v25, %v4664_v21  ;;  %v4674_v18 = vsel %vm928_vm2, %v11650_v35, -inf  ;;  %v4676_v51 = vsel %vm928_vm2, %v11653_v13, -inf  ;;  %v4669_v52 = vmax.f32 %v4661_v63, %v4668_v24 }
 0xa0a   : > { %v4547_v2 = vmul.f32 %v8436_v20, %v11425_v26  ;;  %v8438_v28 = vpop.eup %8437  ;;  %v4672_v60 = vsel %vm928_vm2, %v11643_v3, -inf  ;;  %v11673_v36 = vadd.f32 %v11454_v19, %v4584_v33  ;;  %v4670_v20 = vsel %vm928_vm2, %v11658_v0, -inf }
 0xa0b   : > { %v4548_v44 = vmul.f32 %v8438_v28, %v11428_v4  ;;  %v4663_v54 = vmax.f32 %v4655_v42, %v4662_v46  ;;  %v4673_v16 = vmax.f32 %v4665_v6, %v4672_v60  ;;  %v4677_v28 = vmax.f32 %v4669_v52, %v4676_v51 }
 0xa0c   : > { %v4585_v26 = vmul.f32 %v11447_v38, %v4547_v2  ;;  %v4678_v2 = vsel %vm928_vm2, %v11673_v36, -inf }
 0xa0d   : > { %v8440_v50 = vpop.eup %8439  ;;  %v4586_v40 = vmul.f32 %v11447_v38, %v4548_v44  ;;  %v4671_v45 = vmax.f32 %v4663_v54, %v4670_v20 }
 0xa0e   : > { %v11661_v47 = vadd.f32 %v11454_v19, %v4585_v26  ;;  %v4549_v4 = vmul.f32 %v8440_v50, %v11436_v55  ;;  %v4667_v55 = vmax.f32 %v4659_v62, %v4666_v37 }
 0xa0f   : > { %v11686_v12 = vadd.f32 %v11454_v19, %v4586_v40  ;;  %v4679_v62 = vmax.f32 %v4671_v45, %v4678_v2 }
 0xa10   : > { %v4680_v34 = vsel %vm928_vm2, %v11661_v47, -inf  ;;  %v4587_v57 = vmul.f32 %v11447_v38, %v4549_v4  ;;  %v4675_v26 = vmax.f32 %v4667_v55, %v4674_v18 }
 0xa11   : > { %v4682_v56 = vsel %vm928_vm2, %v11686_v12, -inf  ;;  %v4681_v21 = vmax.f32 %v4673_v16, %v4680_v34 }
 0xa12   : > { %v11694_v33 = vadd.f32 %v11454_v19, %v4587_v57  ;;  %v4683_v63 = vmax.f32 %v4675_v26, %v4682_v56 }
 0xa13   : > { %v4686_v50 = vmax.f32 %v4679_v62, %v4681_v21 }
 0xa14   : > { %v4684_v38 = vsel %vm928_vm2, %v11694_v33, -inf }
 0xa15   : > { %v4685_v44 = vmax.f32 %v4677_v28, %v4684_v38 }
 0xa17   : > { %v4687_v25 = vmax.f32 %v4683_v63, %v4685_v44 }
 0xa19   : > { %v4688_v37 = vmax.f32 %v4686_v50, %v4687_v25 }
 0xa1b   : > { %v4689_v24 = vrot.slane %v4688_v37, 4 }
 0xa1d   : > { %v4690_v46 = vmax.f32 %v4688_v37, %v4689_v24 }
 0xa1f   : > { %v4691_v60 = vrot.slane %v4690_v46, 2 }
 0xa21   : > { %v4692_v40 = vmax.f32 %v4690_v46, %v4691_v60 }
 0xa23   : > { %v4693_v4 = vrot.slane %v4692_v40, 1 }
 0xa25   : > { %v11698_v19 = vmax.f32 %v4692_v40, %v4693_v4 }
 0xa27   : > { %v4695_v42 = vsub.f32 %v11473_v10, %v11698_v19  ;;  %v4696_v6 = vsub.f32 %v11481_v61, %v11698_v19  ;;  %v4697_v18 = vsub.f32 %v11460_v41, %v11698_v19  ;;  %v4698_v51 = vsub.f32 %v11465_v15, %v11698_v19 }
 0xa28   : > { %v4699_v20 = vsub.f32 %v11512_v58, %v11698_v19  ;;  %v4700_v52 = vsub.f32 %v11518_v43, %v11698_v19  ;;  %v4701_v10 = vsub.f32 %v11490_v9, %v11698_v19  ;;  %v4702_v41 = vsub.f32 %v11509_v39, %v11698_v19 }
 0xa29   : > { %v4727_v34 = vmul.f32 1.442695, %v4695_v42  ;;  %v4729_v57 = vmul.f32 1.442695, %v4696_v6  ;;  %v4731_v55 = vmul.f32 1.442695, %v4697_v18  ;;  %v4703_v58 = vsub.f32 %v11541_v17, %v11698_v19 }
 0xa2a   : > { %v4733_v54 = vmul.f32 1.442695, %v4698_v51  ;;  %v4735_v61 = vmul.f32 1.442695, %v4699_v20  ;;  %v4737_v15 = vmul.f32 1.442695, %v4700_v52  ;;  %v4704_v43 = vsub.f32 %v11544_v30, %v11698_v19 }
 0xa2b   : > { %8441 = vpow2.f32 %v4727_v34  ;;  %v4739_v16 = vmul.f32 1.442695, %v4701_v10  ;;  %v4741_v2 = vmul.f32 1.442695, %v4702_v41  ;;  %v4705_v9 = vsub.f32 %v11532_v27, %v11698_v19 }
 0xa2c   : > { %8443 = vpow2.f32 %v4729_v57  ;;  %v4743_v56 = vmul.f32 1.442695, %v4703_v58  ;;  %v4706_v39 = vsub.f32 %v11535_v23, %v11698_v19  ;;  %v4745_v26 = vmul.f32 1.442695, %v4704_v43 }
 0xa2d   : > { %8445 = vpow2.f32 %v4731_v55  ;;  %v4707_v17 = vsub.f32 %v11573_v29, %v11698_v19  ;;  %v4747_v45 = vmul.f32 1.442695, %v4705_v9  ;;  %v4708_v38 = vsub.f32 %v11583_v31, %v11698_v19 }
 0xa2e   : > { %8447 = vpow2.f32 %v4733_v54  ;;  %v4749_v23 = vmul.f32 1.442695, %v4706_v39  ;;  %v4709_v44 = vsub.f32 %v11550_v32, %v11698_v19  ;;  %v4710_v31 = vsub.f32 %v11560_v14, %v11698_v19 }
 0xa2f   : > { %8449 = vpow2.f32 %v4735_v61  ;;  %v4751_v50 = vmul.f32 1.442695, %v4707_v17  ;;  %v4753_v46 = vmul.f32 1.442695, %v4708_v38  ;;  %v4711_v32 = vsub.f32 %v11620_v7, %v11698_v19 }
 0xa30   : > { %8451 = vpow2.f32 %v4737_v15  ;;  %v4755_v42 = vmul.f32 1.442695, %v4709_v44  ;;  %v4712_v14 = vsub.f32 %v11615_v22, %v11698_v19  ;;  %v4757_v20 = vmul.f32 1.442695, %v4710_v31 }
 0xa31   : > { %8453 = vpow2.f32 %v4739_v16  ;;  %v4713_v7 = vsub.f32 %v11593_v49, %v11698_v19  ;;  %v4759_v52 = vmul.f32 1.442695, %v4711_v32  ;;  %v4714_v22 = vsub.f32 %v11604_v8, %v11698_v19 }
 0xa32   : > { %8455 = vpow2.f32 %v4741_v2  ;;  %v4761_v41 = vmul.f32 1.442695, %v4712_v14  ;;  %v4715_v49 = vsub.f32 %v11638_v53, %v11698_v19  ;;  %v4716_v8 = vsub.f32 %v11627_v1, %v11698_v19 }
 0xa33   : > { %8457 = vpow2.f32 %v4743_v56  ;;  %v4763_v43 = vmul.f32 1.442695, %v4713_v7  ;;  %v4765_v39 = vmul.f32 1.442695, %v4714_v22  ;;  %v4717_v53 = vsub.f32 %v11632_v48, %v11698_v19 }
 0xa34   : > { %8459 = vpow2.f32 %v4745_v26  ;;  %v4718_v1 = vsub.f32 %v11635_v59, %v11698_v19  ;;  %v4719_v48 = vsub.f32 %v11658_v0, %v11698_v19  ;;  %v4720_v59 = vsub.f32 %v11643_v3, %v11698_v19 }
 0xa35   : > { %8461 = vpow2.f32 %v4747_v45  ;;  %v4721_v0 = vsub.f32 %v11650_v35, %v11698_v19  ;;  %v4722_v3 = vsub.f32 %v11653_v13, %v11698_v19  ;;  %v4723_v35 = vsub.f32 %v11673_v36, %v11698_v19 }
 0xa36   : > { %8463 = vpow2.f32 %v4749_v23  ;;  %v4724_v13 = vsub.f32 %v11661_v47, %v11698_v19  ;;  %v4725_v36 = vsub.f32 %v11686_v12, %v11698_v19  ;;  %v4726_v47 = vsub.f32 %v11694_v33, %v11698_v19 }
 0xa37   : > { %8465 = vpow2.f32 %v4751_v50 }
 0xa38   : > { %v11724_v28 = vpop.eup %8441  ;;  %8467 = vpow2.f32 %v4753_v46  ;;  %v4787_v12 = vmul.f32 1.442695, %v4725_v36 }
 0xa39   : > { %v11728_v30 = vpop.eup %8443  ;;  %v4791_v21 = vsel %vm928_vm2, %v11724_v28, 0.0  ;;  %8469 = vpow2.f32 %v4755_v42 }
 0xa3a   : > { %v11732_v27 = vpop.eup %8445  ;;  %v4792_v62 = vsel %vm928_vm2, %v11728_v30, 0.0  ;;  %8471 = vpow2.f32 %v4757_v20 }
 0xa3b   : > { %v11738_v63 = vpop.eup %8447  ;;  %v4793_v29 = vadd.f32 %v4792_v62, %v4791_v21  ;;  %v4794_v25 = vsel %vm928_vm2, %v11732_v27, 0.0  ;;  %8473 = vpow2.f32 %v4759_v52  ;;  %v4767_v21 = vmul.f32 1.442695, %v4715_v49 }
 0xa3c   : > { %v11744_v37 = vpop.eup %8449  ;;  %v4796_v60 = vsel %vm928_vm2, %v11738_v63, 0.0  ;;  %8475 = vpow2.f32 %v4761_v41 }
 0xa3d   : > { %v4795_v24 = vadd.f32 %v4794_v25, %v4793_v29  ;;  %v11750_v40 = vpop.eup %8451  ;;  %v4798_v6 = vsel %vm928_vm2, %v11744_v37, 0.0  ;;  %8477 = vpow2.f32 %v4763_v43  ;;  %v4769_v29 = vmul.f32 1.442695, %v4716_v8 }
 0xa3e   : > { %v11756_v18 = vpop.eup %8453  ;;  %v4800_v34 = vsel %vm928_vm2, %v11750_v40, 0.0  ;;  %8479 = vpow2.f32 %v4765_v39 }
 0xa3f   : > { %v4797_v4 = vadd.f32 %v4796_v60, %v4795_v24  ;;  %v11762_v57 = vpop.eup %8455  ;;  %v4802_v54 = vsel %vm928_vm2, %v11756_v18, 0.0  ;;  %8481 = vpow2.f32 %v4767_v21  ;;  %v4771_v24 = vmul.f32 1.442695, %v4717_v53 }
 0xa40   : > { %v11768_v10 = vpop.eup %8457  ;;  %v4804_v15 = vsel %vm928_vm2, %v11762_v57, 0.0  ;;  %8483 = vpow2.f32 %v4769_v29 }
 0xa41   : > { %v4799_v51 = vadd.f32 %v4798_v6, %v4797_v4  ;;  %v11774_v58 = vpop.eup %8459  ;;  %v4806_v2 = vsel %vm928_vm2, %v11768_v10, 0.0  ;;  %v4773_v4 = vmul.f32 1.442695, %v4718_v1  ;;  %8485 = vpow2.f32 %v4771_v24 }
 0xa42   : > { %v11780_v9 = vpop.eup %8461  ;;  %v4808_v26 = vsel %vm928_vm2, %v11774_v58, 0.0 }
 0xa43   : > { %v4801_v55 = vadd.f32 %v4800_v34, %v4799_v51  ;;  %v11786_v17 = vpop.eup %8463  ;;  %v4810_v38 = vsel %vm928_vm2, %v11780_v9, 0.0  ;;  %v4775_v51 = vmul.f32 1.442695, %v4719_v48  ;;  %8487 = vpow2.f32 %v4773_v4 }
 0xa44   : > { %v11792_v23 = vpop.eup %8465  ;;  %v4812_v44 = vsel %vm928_vm2, %v11786_v17, 0.0 }
 0xa45   : > { %v4803_v61 = vadd.f32 %v4802_v54, %v4801_v55  ;;  %v11798_v50 = vpop.eup %8467  ;;  %v4814_v31 = vsel %vm928_vm2, %v11792_v23, 0.0  ;;  %v4777_v55 = vmul.f32 1.442695, %v4720_v59  ;;  %8489 = vpow2.f32 %v4775_v51 }
 0xa46   : > { %v11804_v46 = vpop.eup %8469  ;;  %v4816_v32 = vsel %vm928_vm2, %v11798_v50, 0.0 }
 0xa47   : > { %v4805_v16 = vadd.f32 %v4804_v15, %v4803_v61  ;;  %v11810_v42 = vpop.eup %8471  ;;  %v4818_v14 = vsel %vm928_vm2, %v11804_v46, 0.0  ;;  %v4779_v61 = vmul.f32 1.442695, %v4721_v0  ;;  %8491 = vpow2.f32 %v4777_v55 }
 0xa48   : > { %v11816_v20 = vpop.eup %8473  ;;  %v4820_v7 = vsel %vm928_vm2, %v11810_v42, 0.0 }
 0xa49   : > { %v4807_v56 = vadd.f32 %v4806_v2, %v4805_v16  ;;  %v11822_v52 = vpop.eup %8475  ;;  %v4822_v22 = vsel %vm928_vm2, %v11816_v20, 0.0  ;;  %v4781_v16 = vmul.f32 1.442695, %v4722_v3  ;;  %8493 = vpow2.f32 %v4779_v61 }
 0xa4a   : > { %v11828_v41 = vpop.eup %8477  ;;  %v4824_v49 = vsel %vm928_vm2, %v11822_v52, 0.0 }
 0xa4b   : > { %v4809_v45 = vadd.f32 %v4808_v26, %v4807_v56  ;;  %v11834_v43 = vpop.eup %8479  ;;  %v4783_v56 = vmul.f32 1.442695, %v4723_v35  ;;  %v4826_v8 = vsel %vm928_vm2, %v11828_v41, 0.0  ;;  %8495 = vpow2.f32 %v4781_v16 }
 0xa4c   : > { %v11840_v39 = vpop.eup %8481  ;;  %v4828_v53 = vsel %vm928_vm2, %v11834_v43, 0.0 }
 0xa4d   : > { %v4811_v62 = vadd.f32 %v4810_v38, %v4809_v45  ;;  %v4785_v45 = vmul.f32 1.442695, %v4724_v13  ;;  %v11846_v21 = vpop.eup %8483  ;;  %8497 = vpow2.f32 %v4783_v56 }
 0xa4e   : > { %v11850_v1 = vpop.eup %8485  ;;  %v4832_v33 = vsel %vm928_vm2, %v11846_v21, 0.0 }
 0xa4f   : > { %v4813_v25 = vadd.f32 %v4812_v44, %v4811_v62  ;;  %v4830_v62 = vsel %vm928_vm2, %v11840_v39, 0.0  ;;  %8499 = vpow2.f32 %v4785_v45  ;;  %v4789_v44 = vmul.f32 1.442695, %v4726_v47 }
 0xa50   : > { %v11854_v19 = vpop.eup %8487  ;;  %8501 = vpow2.f32 %v4787_v12  ;;  %v4834_v48 = vsel %vm928_vm2, %v11850_v1, 0.0 }
 0xa51   : > { %v4815_v60 = vadd.f32 %v4814_v31, %v4813_v25  ;;  %8503 = vpow2.f32 %v4789_v44 }
 0xa52   : > { %v11858_v24 = vpop.eup %8489 }
 0xa53   : > { %v4817_v6 = vadd.f32 %v4816_v32, %v4815_v60  ;;  %v4836_v60 = vsel %vm928_vm2, %v11854_v19, 0.0  ;;  %v4838_v32 = vsel %vm928_vm2, %v11858_v24, 0.0 }
 0xa54   : > { %v11862_v59 = vpop.eup %8491 }
 0xa55   : > { %v4819_v34 = vadd.f32 %v4818_v14, %v4817_v6  ;;  %v4840_v51 = vsel %vm928_vm2, %v11862_v59, 0.0 }
 0xa56   : > { %v11866_v6 = vpop.eup %8493 }
 0xa57   : > { %v4821_v54 = vadd.f32 %v4820_v7, %v4819_v34  ;;  %v4842_v3 = vsel %vm928_vm2, %v11866_v6, 0.0 }
 0xa58   : > { %v11870_v14 = vpop.eup %8495 }
 0xa59   : > { %v4823_v15 = vadd.f32 %v4822_v22, %v4821_v54  ;;  %v4844_v54 = vsel %vm928_vm2, %v11870_v14, 0.0 }
 0xa5a   : > { %v8498_v55 = vpop.eup %8497 }
 0xa5b   : > { %v4825_v2 = vadd.f32 %v4824_v49, %v4823_v15  ;;  %v4846_v22 = vsel %vm928_vm2, %v8498_v55, 0.0 }
 0xa5c   : > { %v8500_v35 = vpop.eup %8499 }
 0xa5d   : > { %v4827_v26 = vadd.f32 %v4826_v8, %v4825_v2  ;;  %v8502_v15 = vpop.eup %8501  ;;  %v4848_v16 = vsel %vm928_vm2, %v8500_v35, 0.0 }
 0xa5e   : > { %v8504_v49 = vpop.eup %8503  ;;  %v4850_v36 = vsel %vm928_vm2, %v8502_v15, 0.0 }
 0xa5f   : > { %v4829_v38 = vadd.f32 %v4828_v53, %v4827_v26  ;;  %v4852_v8 = vsel %vm928_vm2, %v8504_v49, 0.0 }
 0xa61   : > { %v4831_v29 = vadd.f32 %v4830_v62, %v4829_v38 }
 0xa63   : > { %v4833_v25 = vadd.f32 %v4832_v33, %v4831_v29 }
 0xa65   : > { %v4835_v31 = vadd.f32 %v4834_v48, %v4833_v25 }
 0xa67   : > { %v4837_v4 = vadd.f32 %v4836_v60, %v4835_v31 }
 0xa69   : > { %v4839_v0 = vadd.f32 %v4838_v32, %v4837_v4 }
 0xa6b   : > { %v4841_v34 = vadd.f32 %v4840_v51, %v4839_v0 }
 0xa6d   : > { %v4843_v7 = vadd.f32 %v4842_v3, %v4841_v34 }
 0xa6f   : > { %v4845_v61 = vadd.f32 %v4844_v54, %v4843_v7 }
 0xa71   : > { %v4847_v13 = vadd.f32 %v4846_v22, %v4845_v61 }
 0xa73   : > { %v4849_v2 = vadd.f32 %v4848_v16, %v4847_v13 }
 0xa75   : > { %v4851_v56 = vadd.f32 %v4850_v36, %v4849_v2  ;;  %v8639_v2 = vld [vmem:[%s13381_s3 + $0x14] ss:$8 sps:$4 sm:$0xff]   ;;  %v8640_v36 = vld [vmem:[%s13381_s3 + $0x10] ss:$8 sps:$4 sm:$0xff]  }
 0xa77   : > { %v4853_v26 = vadd.f32 %v4852_v8, %v4851_v56  ;;  %v8641_v56 = vld [vmem:[%s13381_s3 + $0x24] ss:$8 sps:$4 sm:$0xff]   ;;  %v8642_v8 = vld [vmem:[%s13381_s3 + $0x20] ss:$8 sps:$4 sm:$0xff]  }
 0xa79   : > { %v4854_v47 = vrot.slane %v4853_v26, 4 }
 0xa7b   : > { %v4855_v45 = vadd.f32 %v4854_v47, %v4853_v26  ;;  %v8643_v26 = vld [vmem:[%s13381_s3 + $0x34] ss:$8 sps:$4 sm:$0xff]   ;;  %v8644_v47 = vld [vmem:[%s13381_s3 + $0x30] ss:$8 sps:$4 sm:$0xff]  }
 0xa7d   : > { %v4856_v53 = vrot.slane %v4855_v45, 2 }
 0xa7f   : > { %v4857_v38 = vadd.f32 %v4856_v53, %v4855_v45  ;;  %v8645_v45 = vld [vmem:[%s13381_s3 + $0x44] ss:$8 sps:$4 sm:$0xff]   ;;  %v8646_v53 = vld [vmem:[%s13381_s3 + $0x40] ss:$8 sps:$4 sm:$0xff]  }
 0xa81   : > { %v4858_v12 = vrot.slane %v4857_v38, 1 }
 0xa83   : > { %v4859_v62 = vadd.f32 %v4858_v12, %v4857_v38  ;;  %v8647_v38 = vld [vmem:[%s13381_s3 + $0x54] ss:$8 sps:$4 sm:$0xff]   ;;  %v8648_v12 = vld [vmem:[%s13381_s3 + $0x50] ss:$8 sps:$4 sm:$0xff]  }
 0xa85   : > { %8505 = vrcp.f32 %v4859_v62  ;;  %v8649_v62 = vld [vmem:[%s13381_s3 + $0x64] ss:$8 sps:$4 sm:$0xff]  }
 0xa92   : > { %v11880_v29 = vpop.eup %8505 }
 0xa93   : > { %v4875_v44 = vmul.f32 %v11880_v29, %v11804_v46  ;;  %v4876_v33 = vmul.f32 %v11880_v29, %v11810_v42  ;;  %v4873_v25 = vmul.f32 %v11880_v29, %v11792_v23  ;;  %v4874_v48 = vmul.f32 %v11880_v29, %v11798_v50 }
 0xa94   : > { %v11899_v31 = vmul.f32 %v11880_v29, %v11780_v9  ;;  %v11903_v60 = vmul.f32 %v11880_v29, %v11786_v17  ;;  %v11907_v46 = vmul.f32 %v11880_v29, %v11768_v10  ;;  %v11911_v23 = vmul.f32 %v11880_v29, %v11774_v58 }
 0xa95   : > { %v4900_v42 = vpack.c.bf16 %v4876_v33, %v4875_v44  ;;  %7010 = vst.msk [vmem:[%s11887_s23 + $0x70] sm:$0xff] %vm928_vm2, %v4875_v44  ;;  %7011 = vst.msk [vmem:[%s11887_s23 + $0x78] sm:$0xff] %vm928_vm2, %v4876_v33  ;;  %v11923_v10 = vmul.f32 %v11880_v29, %v11756_v18  ;;  %v11927_v58 = vmul.f32 %v11880_v29, %v11762_v57  ;;  %v13644_v17 = vmov 0   ;;  %v8651_v44 = vld [vmem:[%s13381_s3 + $0x74] ss:$8 sps:$4 sm:$0xff]  }
 0xa96   : > { %7008 = vst.msk [vmem:[%s11887_s23 + $0x60] sm:$0xff] %vm928_vm2, %v4873_v25  ;;  %7009 = vst.msk [vmem:[%s11887_s23 + $0x68] sm:$0xff] %vm928_vm2, %v4874_v48  ;;  %v11943_v18 = vmul.f32 %v11880_v29, %v11744_v37  ;;  %v11947_v57 = vmul.f32 %v11880_v29, %v11750_v40  ;;  %v11957_v9 = vmul.f32 %v11880_v29, %v11732_v27  ;;  %v8652_v33 = vld [vmem:[%s13381_s3 + $0x70] ss:$8 sps:$4 sm:$0xff]  }
 0xa97   : > { %7006 = vst.msk [vmem:[%s11887_s23 + $0x50] sm:$0xff] %vm928_vm2, %v11899_v31  ;;  %7007 = vst.msk [vmem:[%s11887_s23 + $0x58] sm:$0xff] %vm928_vm2, %v11903_v60  ;;  %4910 = vmatpush1.bf16.msra.mxu1 %v4900_v42  ;;  %v11961_v37 = vmul.f32 %v11880_v29, %v11738_v63  ;;  %v11965_v40 = vmul.f32 %v11880_v29, %v11724_v28  ;;  %v11976_v27 = vmul.f32 %v11880_v29, %v11728_v30  ;;  %v8659_v42 = vld [vmem:[%s13381_s3 + $0xb4] ss:$8 sps:$4 sm:$0xff]  }
 0xa98   : > { %7004 = vst.msk [vmem:[%s11887_s23 + $0x40] sm:$0xff] %vm928_vm2, %v11907_v46  ;;  %7005 = vst.msk [vmem:[%s11887_s23 + $0x48] sm:$0xff] %vm928_vm2, %v11911_v23  ;;  %4911 = vmatprep.subr.bf16.mxu1 %v13644_v17  ;;  %v11979_v63 = vmul.f32 %v11880_v29, %v8502_v15  ;;  %v11982_v28 = vmul.f32 %v11880_v29, %v8504_v49  ;;  %v4899_v50 = vpack.c.bf16 %v4874_v48, %v4873_v25  ;;  %v8638_v49 = vld [vmem:[%s13381_s3] ss:$8 sps:$4 sm:$0xff]   ;;  %v8653_v25 = vld [vmem:[%s13381_s3 + $0x84] ss:$8 sps:$4 sm:$0xff]  }
 0xa99   : > { %7002 = vst.msk [vmem:[%s11887_s23 + $0x30] sm:$0xff] %vm928_vm2, %v11923_v10  ;;  %7003 = vst.msk [vmem:[%s11887_s23 + $0x38] sm:$0xff] %vm928_vm2, %v11927_v58  ;;  %v4889_v30 = vmul.f32 %v11880_v29, %v8498_v55  ;;  %v4890_v4 = vmul.f32 %v11880_v29, %v8500_v35  ;;  %v4887_v32 = vmul.f32 %v11880_v29, %v11866_v6  ;;  %v8654_v48 = vld [vmem:[%s13381_s3 + $0x80] ss:$8 sps:$4 sm:$0xff]  }
 0xa9a   : > { %7000 = vst.msk [vmem:[%s11887_s23 + $0x20] sm:$0xff] %vm928_vm2, %v11943_v18  ;;  %7001 = vst.msk [vmem:[%s11887_s23 + $0x28] sm:$0xff] %vm928_vm2, %v11947_v57  ;;  %v4898_v0 = vpack.c.bf16 %v11903_v60, %v11899_v31  ;;  %v4908_v51 = vpack.c.bf16 %v11982_v28, %v11979_v63  ;;  %v4888_v6 = vmul.f32 %v11880_v29, %v11870_v14  ;;  %v8655_v31 = vld [vmem:[%s13381_s3 + $0x94] ss:$8 sps:$4 sm:$0xff]   ;;  %v8656_v60 = vld [vmem:[%s13381_s3 + $0x90] ss:$8 sps:$4 sm:$0xff]  }
 0xa9b   : > { %6998 = vst.msk [vmem:[%s11887_s23 + $0x10] sm:$0xff] %vm928_vm2, %v11957_v9  ;;  %6999 = vst.msk [vmem:[%s11887_s23 + $0x18] sm:$0xff] %vm928_vm2, %v11961_v37  ;;  %v4885_v34 = vmul.f32 %v11880_v29, %v11858_v24  ;;  %4912 = vmatpush1.bf16.msra.mxu1 %v4899_v50  ;;  %v4907_v3 = vpack.c.bf16 %v4890_v4, %v4889_v30  ;;  %v4886_v55 = vmul.f32 %v11880_v29, %v11862_v59  ;;  %v8671_v50 = vld [vmem:[%s13381_s3 + $0x114] ss:$8 sps:$4 sm:$0xff]  }
 0xa9c   : > { %6996 = vst.msk [vmem:[%s11887_s23] sm:$0xff] %vm928_vm2, %v11965_v40  ;;  %6997 = vst.msk [vmem:[%s11887_s23 + $0x8] sm:$0xff] %vm928_vm2, %v11976_v27  ;;  %v4883_v14 = vmul.f32 %v11880_v29, %v11850_v1  ;;  %v4884_v24 = vmul.f32 %v11880_v29, %v11854_v19  ;;  %4913 = vmatprep.subr.bf16.mxu1 %v13644_v17  ;;  %v4906_v7 = vpack.c.bf16 %v4888_v6, %v4887_v32 }
 0xa9d   : > { %7026 = vst.msk [vmem:[%s11887_s23 + $0xf0] sm:$0xff] %vm928_vm2, %v11979_v63  ;;  %7027 = vst.msk [vmem:[%s11887_s23 + $0xf8] sm:$0xff] %vm928_vm2, %v11982_v28  ;;  %v4881_v54 = vmul.f32 %v11880_v29, %v11840_v39  ;;  %v4882_v59 = vmul.f32 %v11880_v29, %v11846_v21  ;;  %v4879_v1 = vmul.f32 %v11880_v29, %v11828_v41  ;;  %v8669_v63 = vld [vmem:[%s13381_s3 + $0x104] ss:$8 sps:$4 sm:$0xff]   ;;  %v8670_v28 = vld [vmem:[%s13381_s3 + $0x100] ss:$8 sps:$4 sm:$0xff]  }
 0xa9e   : > { %7024 = vst.msk [vmem:[%s11887_s23 + $0xe0] sm:$0xff] %vm928_vm2, %v4889_v30  ;;  %7025 = vst.msk [vmem:[%s11887_s23 + $0xe8] sm:$0xff] %vm928_vm2, %v4890_v4  ;;  %v4905_v19 = vpack.c.bf16 %v4886_v55, %v4885_v34  ;;  %v4904_v35 = vpack.c.bf16 %v4884_v24, %v4883_v14  ;;  %v4880_v39 = vmul.f32 %v11880_v29, %v11834_v43  ;;  %v8672_v30 = vld [vmem:[%s13381_s3 + $0x110] ss:$8 sps:$4 sm:$0xff]   ;;  %v8673_v4 = vld [vmem:[%s13381_s3 + $0x124] ss:$8 sps:$4 sm:$0xff]  }
 0xa9f   : > { %7022 = vst.msk [vmem:[%s11887_s23 + $0xd0] sm:$0xff] %vm928_vm2, %v4887_v32  ;;  %7023 = vst.msk [vmem:[%s11887_s23 + $0xd8] sm:$0xff] %vm928_vm2, %v4888_v6  ;;  %v4877_v21 = vmul.f32 %v11880_v29, %v11816_v20  ;;  %v4903_v61 = vpack.c.bf16 %v4882_v59, %v4881_v54  ;;  %v4878_v41 = vmul.f32 %v11880_v29, %v11822_v52  ;;  %4914 = vmatpush1.bf16.msra.mxu1 %v4898_v0  ;;  %v8650_v29 = vld [vmem:[%s13381_s3 + $0x60] ss:$8 sps:$4 sm:$0xff]   ;;  %v8675_v0 = vld [vmem:[%s13381_s3 + $0x134] ss:$8 sps:$4 sm:$0xff]  }
 0xaa0   : > { %7020 = vst.msk [vmem:[%s11887_s23 + $0xc0] sm:$0xff] %vm928_vm2, %v4885_v34  ;;  %7021 = vst.msk [vmem:[%s11887_s23 + $0xc8] sm:$0xff] %vm928_vm2, %v4886_v55  ;;  %v4902_v22 = vpack.c.bf16 %v4880_v39, %v4879_v1  ;;  %4915 = vmatprep.subr.bf16.mxu1 %v13644_v17  ;;  %v4897_v20 = vpack.c.bf16 %v11911_v23, %v11907_v46  ;;  %v4896_v43 = vpack.c.bf16 %v11927_v58, %v11923_v10  ;;  %v8657_v46 = vld [vmem:[%s13381_s3 + $0xa4] ss:$8 sps:$4 sm:$0xff]   ;;  %v8658_v23 = vld [vmem:[%s13381_s3 + $0xa0] ss:$8 sps:$4 sm:$0xff]  }
 0xaa1   : > { %7018 = vst.msk [vmem:[%s11887_s23 + $0xb0] sm:$0xff] %vm928_vm2, %v4883_v14  ;;  %7019 = vst.msk [vmem:[%s11887_s23 + $0xb8] sm:$0xff] %vm928_vm2, %v4884_v24  ;;  %v4895_v52 = vpack.c.bf16 %v11947_v57, %v11943_v18  ;;  %v4894_v15 = vpack.c.bf16 %v11961_v37, %v11957_v9  ;;  %v4893_v13 = vpack.c.bf16 %v11976_v27, %v11965_v40  ;;  %v8660_v10 = vld [vmem:[%s13381_s3 + $0xb0] ss:$8 sps:$4 sm:$0xff]   ;;  %v8661_v58 = vld [vmem:[%s13381_s3 + $0xc4] ss:$8 sps:$4 sm:$0xff]  }
 0xaa2   : > { %7016 = vst.msk [vmem:[%s11887_s23 + $0xa0] sm:$0xff] %vm928_vm2, %v4881_v54  ;;  %7017 = vst.msk [vmem:[%s11887_s23 + $0xa8] sm:$0xff] %vm928_vm2, %v4882_v59  ;;  %v4901_v16 = vpack.c.bf16 %v4878_v41, %v4877_v21  ;;  %v8662_v18 = vld [vmem:[%s13381_s3 + $0xc0] ss:$8 sps:$4 sm:$0xff]   ;;  %v8663_v57 = vld [vmem:[%s13381_s3 + $0xd4] ss:$8 sps:$4 sm:$0xff]  }
 0xaa3   : > { %7014 = vst.msk [vmem:[%s11887_s23 + $0x90] sm:$0xff] %vm928_vm2, %v4879_v1  ;;  %7015 = vst.msk [vmem:[%s11887_s23 + $0x98] sm:$0xff] %vm928_vm2, %v4880_v39  ;;  %4916 = vmatpush1.bf16.msra.mxu1 %v4897_v20  ;;  %v8664_v9 = vld [vmem:[%s13381_s3 + $0xd0] ss:$8 sps:$4 sm:$0xff]   ;;  %v8665_v37 = vld [vmem:[%s13381_s3 + $0xe4] ss:$8 sps:$4 sm:$0xff]  }
 0xaa4   : > { %7012 = vst.msk [vmem:[%s11887_s23 + $0x80] sm:$0xff] %vm928_vm2, %v4877_v21  ;;  %7013 = vst.msk [vmem:[%s11887_s23 + $0x88] sm:$0xff] %vm928_vm2, %v4878_v41  ;;  %4917 = vmatprep.subr.bf16.mxu1 %v13644_v17  ;;  %v8666_v40 = vld [vmem:[%s13381_s3 + $0xe0] ss:$8 sps:$4 sm:$0xff]   ;;  %v8668_v27 = vld [vmem:[%s13381_s3 + $0xf0] ss:$8 sps:$4 sm:$0xff]  }
 0xaa5   : > { %v8674_v32 = vld [vmem:[%s13381_s3 + $0x120] ss:$8 sps:$4 sm:$0xff]   ;;  %v8677_v6 = vld [vmem:[%s13381_s3 + $0x144] ss:$8 sps:$4 sm:$0xff]   ;;  %v8680_v55 = vld [vmem:[%s13381_s3 + $0x150] ss:$8 sps:$4 sm:$0xff]  }
 0xaa6   : > { %v8678_v34 = vld [vmem:[%s13381_s3 + $0x140] ss:$8 sps:$4 sm:$0xff]   ;;  %v8681_v14 = vld [vmem:[%s13381_s3 + $0x164] ss:$8 sps:$4 sm:$0xff]   ;;  %v8684_v54 = vld [vmem:[%s13381_s3 + $0x170] ss:$8 sps:$4 sm:$0xff]  }
 0xaa7   : > { %4918 = vmatpush1.bf16.msra.mxu1 %v4896_v43  ;;  %v8682_v24 = vld [vmem:[%s13381_s3 + $0x160] ss:$8 sps:$4 sm:$0xff]   ;;  %v8685_v59 = vld [vmem:[%s13381_s3 + $0x184] ss:$8 sps:$4 sm:$0xff]   ;;  %v8688_v20 = vld [vmem:[%s13381_s3 + $0x190] ss:$8 sps:$4 sm:$0xff]  }
 0xaa8   : > { %4919 = vmatprep.subr.bf16.mxu1 %v13644_v17  ;;  %v8689_v43 = vld [vmem:[%s13381_s3 + $0x1a4] ss:$8 sps:$4 sm:$0xff]  }
 0xaab   : > { %4920 = vmatpush1.bf16.msra.mxu1 %v4895_v52 }
 0xaac   : > { %4921 = vmatprep.subr.bf16.mxu1 %v13644_v17 }
 0xaaf   : > { %4922 = vmatpush1.bf16.msra.mxu1 %v4894_v15 }
 0xab0   : > { %4923 = vmatprep.subr.bf16.mxu1 %v13644_v17 }
 0xab3   : > { %4924 = vmatpush1.bf16.msra.mxu1 %v4893_v13 }
 0xab4   : > { %4925 = vmatprep.subr.bf16.mxu1 %v13644_v17 }
 0xab7   : > { %4926 = vmatpush2.bf16.msra.mxu1 %v4908_v51  ;;  %v8676_v51 = vld [vmem:[%s13381_s3 + $0x130] ss:$8 sps:$4 sm:$0xff]  }
 0xab8   : > { %4927 = vmatprep.subr.bf16.mxu1 %v13644_v17 }
 0xabb   : > { %4928 = vmatpush2.bf16.msra.mxu1 %v4907_v3  ;;  %v8679_v3 = vld [vmem:[%s13381_s3 + $0x154] ss:$8 sps:$4 sm:$0xff]  }
 0xabc   : > { %4929 = vmatprep.subr.bf16.mxu1 %v13644_v17 }
 0xabf   : > { %4930 = vmatpush2.bf16.msra.mxu1 %v4906_v7  ;;  %v8683_v7 = vld [vmem:[%s13381_s3 + $0x174] ss:$8 sps:$4 sm:$0xff]  }
 0xac0   : > { %4931 = vmatprep.subr.bf16.mxu1 %v13644_v17 }
 0xac3   : > { %4932 = vmatpush2.bf16.msra.mxu1 %v4905_v19  ;;  %v8686_v19 = vld [vmem:[%s13381_s3 + $0x180] ss:$8 sps:$4 sm:$0xff]  }
 0xac4   : > { %4933 = vmatprep.subr.bf16.mxu1 %v13644_v17 }
 0xac7   : > { %4934 = vmatpush2.bf16.msra.mxu1 %v4904_v35  ;;  %v8687_v35 = vld [vmem:[%s13381_s3 + $0x194] ss:$8 sps:$4 sm:$0xff]  }
 0xac8   : > { %4935 = vmatprep.subr.bf16.mxu1 %v13644_v17 }
 0xacb   : > { %4936 = vmatpush2.bf16.msra.mxu1 %v4903_v61 }
 0xacc   : > { %4937 = vmatprep.subr.bf16.mxu1 %v13644_v17 }
 0xacf   : > { %4938 = vmatpush2.bf16.msra.mxu1 %v4902_v22 }
 0xad0   : > { %4939 = vmatprep.subr.bf16.mxu1 %v13644_v17  ;;  %v8667_v17 = vld [vmem:[%s13381_s3 + $0xf4] ss:$8 sps:$4 sm:$0xff]  }
 0xad3   : > { %4940 = vmatpush2.bf16.msra.mxu1 %v4901_v16 }
 0xad6   : > { %4942 = vmatmul.mubr.bf16.vlgmr.msra.gmra.mxu1 %v8638_v49 }
 0xad7   : > { %4949 = vmatprep.mubr.bf16.mxu1 %v8639_v2  ;;  %v8690_v2 = vld [vmem:[%s13381_s3 + $0x1a0] ss:$8 sps:$4 sm:$0xff]  }
 0xade   : > { %4950 = vmatmul.mubr.bf16.gmra.mxu1 %v8640_v36  ;;  %v8691_v36 = vld [vmem:[%s13381_s3 + $0x1b4] ss:$8 sps:$4 sm:$0xff]  }
 0xadf   : > { %4957 = vmatprep.mubr.bf16.mxu1 %v8641_v56 }
 0xae6   : > { %4958 = vmatmul.mubr.bf16.gmra.mxu1 %v8642_v8 }
 0xae7   : > { %4965 = vmatprep.mubr.bf16.mxu1 %v8643_v26 }
 0xaee   : > { %4966 = vmatmul.mubr.bf16.gmra.mxu1 %v8644_v47 }
 0xaef   : > { %4973 = vmatprep.mubr.bf16.mxu1 %v8645_v45 }
 0xaf6   : > { %4974 = vmatmul.mubr.bf16.gmra.mxu1 %v8646_v53  ;;  %v8692_v53 = vld [vmem:[%s13381_s3 + $0x1b0] ss:$8 sps:$4 sm:$0xff]  }
 0xaf7   : > { %4981 = vmatprep.mubr.bf16.mxu1 %v8647_v38  ;;  %v8693_v38 = vld [vmem:[%s13381_s3 + $0x1c4] ss:$8 sps:$4 sm:$0xff]  }
 0xafe   : > { %4982 = vmatmul.mubr.bf16.gmra.mxu1 %v8648_v12 }
 0xaff   : > { %4989 = vmatprep.mubr.bf16.mxu1 %v8649_v62 }
 0xb06   : > { %4990 = vmatmul.mubr.bf16.gmra.mxu1 %v8650_v29 }
 0xb07   : > { %4997 = vmatprep.mubr.bf16.mxu1 %v8651_v44 }
 0xb0e   : > { %4998 = vmatmul.mubr.bf16.gmra.mxu1 %v8652_v33 }
 0xb0f   : > { %5005 = vmatprep.mubr.bf16.mxu1 %v8653_v25  ;;  %v8694_v25 = vld [vmem:[%s13381_s3 + $0x1c0] ss:$8 sps:$4 sm:$0xff]  }
 0xb16   : > { %5006 = vmatmul.mubr.bf16.gmra.mxu1 %v8654_v48  ;;  %v8695_v48 = vld [vmem:[%s13381_s3 + $0x1d4] ss:$8 sps:$4 sm:$0xff]  }
 0xb17   : > { %5013 = vmatprep.mubr.bf16.mxu1 %v8655_v31 }
 0xb1e   : > { %5014 = vmatmul.mubr.bf16.gmra.mxu1 %v8656_v60 }
 0xb1f   : > { %5021 = vmatprep.mubr.bf16.mxu1 %v8657_v46 }
 0xb26   : > { %5022 = vmatmul.mubr.bf16.gmra.mxu1 %v8658_v23 }
 0xb27   : > { %5029 = vmatprep.mubr.bf16.mxu1 %v8659_v42 }
 0xb2e   : > { %5030 = vmatmul.mubr.bf16.gmra.mxu1 %v8660_v10  ;;  %v8696_v10 = vld [vmem:[%s13381_s3 + $0x1d0] ss:$8 sps:$4 sm:$0xff]  }
 0xb2f   : > { %5037 = vmatprep.mubr.bf16.mxu1 %v8661_v58  ;;  %v8697_v58 = vld [vmem:[%s13381_s3 + $0x1e4] ss:$8 sps:$4 sm:$0xff]  }
 0xb36   : > { %5038 = vmatmul.mubr.bf16.gmra.mxu1 %v8662_v18 }
 0xb37   : > { %5045 = vmatprep.mubr.bf16.mxu1 %v8663_v57 }
 0xb3e   : > { %5046 = vmatmul.mubr.bf16.gmra.mxu1 %v8664_v9 }
 0xb3f   : > { %5053 = vmatprep.mubr.bf16.mxu1 %v8665_v37 }
 0xb46   : > { %5054 = vmatmul.mubr.bf16.gmra.mxu1 %v8666_v40 }
 0xb47   : > { %5061 = vmatprep.mubr.bf16.mxu1 %v8667_v17  ;;  %v8698_v17 = vld [vmem:[%s13381_s3 + $0x1e0] ss:$8 sps:$4 sm:$0xff]  }
 0xb4e   : > { %5062 = vmatmul.mubr.bf16.gmra.mxu1 %v8668_v27  ;;  %v8699_v27 = vld [vmem:[%s13381_s3 + $0x1f4] ss:$8 sps:$4 sm:$0xff]  }
 0xb4f   : > { %5069 = vmatprep.mubr.bf16.mxu1 %v8669_v63 }
 0xb56   : > { %5070 = vmatmul.mubr.bf16.gmra.mxu1 %v8670_v28 }
 0xb57   : > { %5077 = vmatprep.mubr.bf16.mxu1 %v8671_v50 }
 0xb5e   : > { %5078 = vmatmul.mubr.bf16.gmra.mxu1 %v8672_v30 }
 0xb5f   : > { %5085 = vmatprep.mubr.bf16.mxu1 %v8673_v4 }
 0xb66   : > { %5086 = vmatmul.mubr.bf16.gmra.mxu1 %v8674_v32  ;;  %v8700_v32 = vld [vmem:[%s13381_s3 + $0x1f0] ss:$8 sps:$4 sm:$0xff]  }
 0xb67   : > { %5093 = vmatprep.mubr.bf16.mxu1 %v8675_v0 }
 0xb6e   : > { %5094 = vmatmul.mubr.bf16.gmra.mxu1 %v8676_v51 }
 0xb6f   : > { %5101 = vmatprep.mubr.bf16.mxu1 %v8677_v6 }
 0xb76   : > { %5102 = vmatmul.mubr.bf16.gmra.mxu1 %v8678_v34 }
 0xb77   : > { %5109 = vmatprep.mubr.bf16.mxu1 %v8679_v3 }
 0xb7e   : > { %5110 = vmatmul.mubr.bf16.gmra.mxu1 %v8680_v55 }
 0xb7f   : > { %5117 = vmatprep.mubr.bf16.mxu1 %v8681_v14 }
 0xb86   : > { %5118 = vmatmul.mubr.bf16.gmra.mxu1 %v8682_v24 }
 0xb87   : > { %5125 = vmatprep.mubr.bf16.mxu1 %v8683_v7 }
 0xb8e   : > { %5126 = vmatmul.mubr.bf16.gmra.mxu1 %v8684_v54 }
 0xb8f   : > { %5133 = vmatprep.mubr.bf16.mxu1 %v8685_v59 }
 0xb96   : > { %v12228_v1 = vpop.f32.mrf.mxu1  ;;  %5134 = vmatmul.mubr.bf16.gmra.mxu1 %v8686_v19 }
 0xb97   : > { %5141 = vmatprep.mubr.bf16.mxu1 %v8687_v35 }
 0xb98   : > { %v4945_v39 = vpop.f32.mrf.mxu1 }
 0xb9a   : > { %v12236_v21 = vpop.f32.mrf.mxu1 }
 0xb9b   : > { %v5198_v61 = vpack.c.bf16 %v12236_v21, %v12228_v1 }
 0xb9c   : > { %v4948_v41 = vpop.f32.mrf.mxu1 }
 0xb9e   : > { %v12240_v22 = vpop.f32.mrf.mxu1  ;;  %5142 = vmatmul.mubr.bf16.gmra.mxu1 %v8688_v20 }
 0xb9f   : > { %5149 = vmatprep.mubr.bf16.mxu1 %v8689_v43 }
 0xba0   : > { %v4953_v52 = vpop.f32.mrf.mxu1 }
 0xba2   : > { %v12248_v15 = vpop.f32.mrf.mxu1 }
 0xba3   : > { %v5199_v13 = vpack.c.bf16 %v12248_v15, %v12240_v22 }
 0xba4   : > { %v4956_v16 = vpop.f32.mrf.mxu1 }
 0xba6   : > { %v12252_v49 = vpop.f32.mrf.mxu1  ;;  %5150 = vmatmul.mubr.bf16.gmra.mxu1 %v8690_v2 }
 0xba7   : > { %5157 = vmatprep.mubr.bf16.mxu1 %v8691_v36 }
 0xba8   : > { %v4961_v56 = vpop.f32.mrf.mxu1 }
 0xbaa   : > { %v12260_v8 = vpop.f32.mrf.mxu1 }
 0xbab   : > { %v5200_v26 = vpack.c.bf16 %v12260_v8, %v12252_v49 }
 0xbac   : > { %v4964_v47 = vpop.f32.mrf.mxu1 }
 0xbae   : > { %v12264_v45 = vpop.f32.mrf.mxu1  ;;  %5158 = vmatmul.mubr.bf16.gmra.mxu1 %v8692_v53 }
 0xbaf   : > { %5165 = vmatprep.mubr.bf16.mxu1 %v8693_v38 }
 0xbb0   : > { %v4969_v12 = vpop.f32.mrf.mxu1 }
 0xbb2   : > { %v12272_v62 = vpop.f32.mrf.mxu1 }
 0xbb3   : > { %v5201_v29 = vpack.c.bf16 %v12272_v62, %v12264_v45 }
 0xbb4   : > { %v4972_v44 = vpop.f32.mrf.mxu1 }
 0xbb6   : > { %v12276_v33 = vpop.f32.mrf.mxu1  ;;  %5166 = vmatmul.mubr.bf16.gmra.mxu1 %v8694_v25 }
 0xbb7   : > { %5173 = vmatprep.mubr.bf16.mxu1 %v8695_v48 }
 0xbb8   : > { %v4977_v31 = vpop.f32.mrf.mxu1 }
 0xbba   : > { %v12284_v60 = vpop.f32.mrf.mxu1 }
 0xbbb   : > { %v5202_v46 = vpack.c.bf16 %v12284_v60, %v12276_v33 }
 0xbbc   : > { %v4980_v23 = vpop.f32.mrf.mxu1 }
 0xbbe   : > { %v12288_v42 = vpop.f32.mrf.mxu1  ;;  %5174 = vmatmul.mubr.bf16.gmra.mxu1 %v8696_v10 }
 0xbbf   : > { %5181 = vmatprep.mubr.bf16.mxu1 %v8697_v58 }
 0xbc0   : > { %v4985_v18 = vpop.f32.mrf.mxu1 }
 0xbc2   : > { %v12296_v57 = vpop.f32.mrf.mxu1 }
 0xbc3   : > { %v5203_v9 = vpack.c.bf16 %v12296_v57, %v12288_v42 }
 0xbc4   : > { %v4988_v37 = vpop.f32.mrf.mxu1 }
 0xbc6   : > { %v12300_v40 = vpop.f32.mrf.mxu1  ;;  %5182 = vmatmul.mubr.bf16.gmra.mxu1 %v8698_v17 }
 0xbc7   : > { %5189 = vmatprep.mubr.bf16.mxu1 %v8699_v27 }
 0xbc8   : > { %v4993_v63 = vpop.f32.mrf.mxu1 }
 0xbca   : > { %v12308_v28 = vpop.f32.mrf.mxu1 }
 0xbcb   : > { %v5204_v50 = vpack.c.bf16 %v12308_v28, %v12300_v40 }
 0xbcc   : > { %v4996_v30 = vpop.f32.mrf.mxu1 }
 0xbce   : > { %v12312_v4 = vpop.f32.mrf.mxu1  ;;  %5190 = vmatmul.mubr.bf16.gmra.mxu1 %v8700_v32 }
 0xbd0   : > { %v5001_v0 = vpop.f32.mrf.mxu1 }
 0xbd2   : > { %v12317_v51 = vpop.f32.mrf.mxu1 }
 0xbd3   : > { %v5205_v6 = vpack.c.bf16 %v12317_v51, %v12312_v4 }
 0xbd4   : > { %v5004_v34 = vpop.f32.mrf.mxu1 }
 0xbd6   : > { %v12321_v3 = vpop.f32.mrf.mxu1 }
 0xbd8   : > { %v5009_v55 = vpop.f32.mrf.mxu1 }
 0xbda   : > { %v12323_v14 = vpop.f32.mrf.mxu1 }
 0xbdb   : > { %v5206_v24 = vpack.c.bf16 %v12323_v14, %v12321_v3 }
 0xbdc   : > { %v5012_v7 = vpop.f32.mrf.mxu1 }
 0xbde   : > { %v12327_v54 = vpop.f32.mrf.mxu1 }
 0xbe0   : > { %v5017_v59 = vpop.f32.mrf.mxu1 }
 0xbe2   : > { %v12329_v19 = vpop.f32.mrf.mxu1 }
 0xbe3   : > { %v5207_v35 = vpack.c.bf16 %v12329_v19, %v12327_v54 }
 0xbe4   : > { %v5020_v39 = vpop.f32.mrf.mxu1 }
 0xbe6   : > { %v12333_v41 = vpop.f32.mrf.mxu1 }
 0xbe8   : > { %v5025_v20 = vpop.f32.mrf.mxu1 }
 0xbea   : > { %v12335_v43 = vpop.f32.mrf.mxu1 }
 0xbeb   : > { %v5208_v52 = vpack.c.bf16 %v12335_v43, %v12333_v41 }
 0xbec   : > { %v5028_v16 = vpop.f32.mrf.mxu1 }
 0xbee   : > { %v12339_v2 = vpop.f32.mrf.mxu1 }
 0xbf0   : > { %v5033_v36 = vpop.f32.mrf.mxu1 }
 0xbf2   : > { %v12341_v56 = vpop.f32.mrf.mxu1 }
 0xbf3   : > { %v5209_v47 = vpack.c.bf16 %v12341_v56, %v12339_v2 }
 0xbf4   : > { %v5036_v53 = vpop.f32.mrf.mxu1 }
 0xbf6   : > { %v12345_v38 = vpop.f32.mrf.mxu1 }
 0xbf8   : > { %v5041_v12 = vpop.f32.mrf.mxu1 }
 0xbfa   : > { %v12347_v44 = vpop.f32.mrf.mxu1 }
 0xbfb   : > { %v5210_v25 = vpack.c.bf16 %v12347_v44, %v12345_v38 }
 0xbfc   : > { %v5044_v48 = vpop.f32.mrf.mxu1 }
 0xbfe   : > { %v12351_v31 = vpop.f32.mrf.mxu1 }
 0xc00   : > { %v5049_v23 = vpop.f32.mrf.mxu1 }
 0xc02   : > { %v12353_v10 = vpop.f32.mrf.mxu1 }
 0xc03   : > { %v5211_v58 = vpack.c.bf16 %v12353_v10, %v12351_v31 }
 0xc04   : > { %v5052_v18 = vpop.f32.mrf.mxu1 }
 0xc06   : > { %v12357_v37 = vpop.f32.mrf.mxu1 }
 0xc08   : > { %v5057_v17 = vpop.f32.mrf.mxu1 }
 0xc0a   : > { %v12359_v27 = vpop.f32.mrf.mxu1 }
 0xc0b   : > { %v13645_v1 = vpack.c.bf16 %v12359_v27, %v12357_v37 }
 0xc0c   : > { %v5060_v30 = vpop.f32.mrf.mxu1 }
 0xc0d   : > { %v8701_v30 = vld [vmem:[%s13382_s4 + $0x8] sm:$0xff]  }
 0xc0e   : > { %v12363_v32 = vpop.f32.mrf.mxu1 }
 0xc10   : > { %v5065_v0 = vpop.f32.mrf.mxu1 }
 0xc11   : > { %v8702_v0 = vld [vmem:[%s13382_s4] sm:$0xff]  }
 0xc12   : > { %v12365_v34 = vpop.f32.mrf.mxu1 }
 0xc13   : > { %v13646_v21 = vpack.c.bf16 %v12365_v34, %v12363_v32 }
 0xc14   : > { %v5068_v7 = vpop.f32.mrf.mxu1 }
 0xc16   : > { %v5071_v59 = vpop.f32.mrf.mxu1 }
 0xc18   : > { %v5073_v39 = vpop.f32.mrf.mxu1 }
 0xc1a   : > { %v5074_v20 = vpop.f32.mrf.mxu1 }
 0xc1b   : > { %v5214_v16 = vpack.c.bf16 %v5074_v20, %v5071_v59 }
 0xc1c   : > { %v5076_v36 = vpop.f32.mrf.mxu1 }
 0xc1d   : > { %7849 = vmatprep.mubr.msk.bf16.mxu0 %vm928_vm2, %v5214_v16 }
 0xc1e   : > { %v5079_v53 = vpop.f32.mrf.mxu1 }
 0xc20   : > { %v5081_v12 = vpop.f32.mrf.mxu1 }
 0xc22   : > { %v5082_v48 = vpop.f32.mrf.mxu1 }
 0xc23   : > { %v5215_v23 = vpack.c.bf16 %v5082_v48, %v5079_v53 }
 0xc24   : > { %v5084_v18 = vpop.f32.mrf.mxu1 }
 0xc25   : > { %7850 = vmatmul.mubr.msk.bf16.vlgmr.msra.gmra.mxu0 %vm928_vm2, %v5215_v23 }
 0xc26   : > { %v5087_v17 = vpop.f32.mrf.mxu1  ;;  %7882 = vmatpush3.bf16.msra.mxu0 %v8701_v30 }
 0xc27   : > { %7883 = vmatprep.subr.bf16.mxu0 %v8702_v0 }
 0xc28   : > { %v5089_v7 = vpop.f32.mrf.mxu1 }
 0xc2a   : > { %v5090_v59 = vpop.f32.mrf.mxu1  ;;  %7884 = vmatpush3.bf16.msra.mxu0 %v8702_v0 }
 0xc2b   : > { %v5216_v39 = vpack.c.bf16 %v5090_v59, %v5087_v17 }
 0xc2c   : > { %v5092_v20 = vpop.f32.mrf.mxu1 }
 0xc2d   : > { %7853 = vmatprep.mubr.msk.bf16.mxu0 %vm928_vm2, %v5216_v39 }
 0xc2e   : > { %v5095_v16 = vpop.f32.mrf.mxu1 }
 0xc30   : > { %v5097_v36 = vpop.f32.mrf.mxu1 }
 0xc32   : > { %v5098_v53 = vpop.f32.mrf.mxu1 }
 0xc33   : > { %v5217_v12 = vpack.c.bf16 %v5098_v53, %v5095_v16 }
 0xc34   : > { %v5100_v48 = vpop.f32.mrf.mxu1 }
 0xc35   : > { %7854 = vmatmul.mubr.msk.bf16.gmra.mxu0 %vm928_vm2, %v5217_v12 }
 0xc36   : > { %v5103_v23 = vpop.f32.mrf.mxu1 }
 0xc38   : > { %v5105_v18 = vpop.f32.mrf.mxu1 }
 0xc3a   : > { %v5106_v30 = vpop.f32.mrf.mxu1 }
 0xc3b   : > { %v5218_v55 = vpack.c.bf16 %v5106_v30, %v5103_v23 }
 0xc3c   : > { %v5108_v63 = vpop.f32.mrf.mxu1 }
 0xc3d   : > { %7857 = vmatprep.mubr.msk.bf16.mxu0 %vm928_vm2, %v5218_v55 }
 0xc3e   : > { %v5111_v7 = vpop.f32.mrf.mxu1 }
 0xc40   : > { %v5113_v0 = vpop.f32.mrf.mxu1 }
 0xc42   : > { %v5114_v17 = vpop.f32.mrf.mxu1 }
 0xc43   : > { %v5219_v59 = vpack.c.bf16 %v5114_v17, %v5111_v7 }
 0xc44   : > { %v5116_v20 = vpop.f32.mrf.mxu1 }
 0xc45   : > { %7858 = vmatmul.mubr.msk.bf16.gmra.mxu0 %vm928_vm2, %v5219_v59 }
 0xc46   : > { %v5119_v39 = vpop.f32.mrf.mxu1 }
 0xc48   : > { %v5121_v36 = vpop.f32.mrf.mxu1 }
 0xc4a   : > { %v5122_v16 = vpop.f32.mrf.mxu1 }
 0xc4b   : > { %v5220_v53 = vpack.c.bf16 %v5122_v16, %v5119_v39 }
 0xc4c   : > { %v5124_v48 = vpop.f32.mrf.mxu1 }
 0xc4d   : > { %7861 = vmatprep.mubr.msk.bf16.mxu0 %vm928_vm2, %v5220_v53 }
 0xc4e   : > { %v5127_v12 = vpop.f32.mrf.mxu1 }
 0xc50   : > { %v5129_v18 = vpop.f32.mrf.mxu1 }
 0xc52   : > { %v5130_v23 = vpop.f32.mrf.mxu1 }
 0xc53   : > { %v5221_v63 = vpack.c.bf16 %v5130_v23, %v5127_v12 }
 0xc54   : > { %v5132_v30 = vpop.f32.mrf.mxu1 }
 0xc55   : > { %7862 = vmatmul.mubr.msk.bf16.gmra.mxu0 %vm928_vm2, %v5221_v63 }
 0xc56   : > { %v5135_v55 = vpop.f32.mrf.mxu1 }
 0xc58   : > { %v5137_v0 = vpop.f32.mrf.mxu1 }
 0xc5a   : > { %v5138_v7 = vpop.f32.mrf.mxu1 }
 0xc5b   : > { %v5222_v17 = vpack.c.bf16 %v5138_v7, %v5135_v55 }
 0xc5c   : > { %v5140_v20 = vpop.f32.mrf.mxu1 }
 0xc5d   : > { %7865 = vmatprep.mubr.msk.bf16.mxu0 %vm928_vm2, %v5222_v17 }
 0xc5e   : > { %v5143_v59 = vpop.f32.mrf.mxu1 }
 0xc60   : > { %v5145_v36 = vpop.f32.mrf.mxu1 }
 0xc62   : > { %v5146_v39 = vpop.f32.mrf.mxu1 }
 0xc63   : > { %v5223_v16 = vpack.c.bf16 %v5146_v39, %v5143_v59 }
 0xc64   : > { %v5148_v48 = vpop.f32.mrf.mxu1 }
 0xc65   : > { %7866 = vmatmul.mubr.msk.bf16.gmra.mxu0 %vm928_vm2, %v5223_v16 }
 0xc66   : > { %v5151_v53 = vpop.f32.mrf.mxu1 }
 0xc68   : > { %v5153_v18 = vpop.f32.mrf.mxu1 }
 0xc6a   : > { %v5154_v12 = vpop.f32.mrf.mxu1 }
 0xc6b   : > { %v5224_v23 = vpack.c.bf16 %v5154_v12, %v5151_v53 }
 0xc6c   : > { %v5156_v30 = vpop.f32.mrf.mxu1 }
 0xc6d   : > { %7869 = vmatprep.mubr.msk.bf16.mxu0 %vm928_vm2, %v5224_v23 }
 0xc6e   : > { %v5159_v63 = vpop.f32.mrf.mxu1 }
 0xc70   : > { %v5161_v0 = vpop.f32.mrf.mxu1 }
 0xc72   : > { %v5162_v55 = vpop.f32.mrf.mxu1 }
 0xc73   : > { %v5225_v7 = vpack.c.bf16 %v5162_v55, %v5159_v63 }
 0xc74   : > { %v5164_v20 = vpop.f32.mrf.mxu1 }
 0xc75   : > { %7870 = vmatmul.mubr.msk.bf16.gmra.mxu0 %vm928_vm2, %v5225_v7 }
 0xc76   : > { %v5167_v17 = vpop.f32.mrf.mxu1 }
 0xc78   : > { %v5169_v36 = vpop.f32.mrf.mxu1 }
 0xc7a   : > { %v5170_v59 = vpop.f32.mrf.mxu1 }
 0xc7b   : > { %v5226_v39 = vpack.c.bf16 %v5170_v59, %v5167_v17 }
 0xc7c   : > { %v5172_v48 = vpop.f32.mrf.mxu1 }
 0xc7d   : > { %7873 = vmatprep.mubr.msk.bf16.mxu0 %vm928_vm2, %v5226_v39  ;;  %v13647_v39 = vld [vmem:[#allocation25_spill] sm:$0xff] }
 0xc7e   : > { %v5175_v16 = vpop.f32.mrf.mxu1 }
 0xc80   : > { %v5177_v18 = vpop.f32.mrf.mxu1 }
 0xc81   : > { %v13648_v18 = vld [vmem:[#allocation26_spill] sm:$0xff] }
 0xc82   : > { %v5178_v53 = vpop.f32.mrf.mxu1 }
 0xc83   : > { %v5227_v12 = vpack.c.bf16 %v5178_v53, %v5175_v16 }
 0xc84   : > { %v5180_v30 = vpop.f32.mrf.mxu1 }
 0xc85   : > { %7874 = vmatmul.mubr.msk.bf16.gmra.mxu0 %vm928_vm2, %v5227_v12 }
 0xc86   : > { %v5183_v23 = vpop.f32.mrf.mxu1 }
 0xc88   : > { %v5185_v0 = vpop.f32.mrf.mxu1 }
 0xc8a   : > { %v5186_v63 = vpop.f32.mrf.mxu1 }
 0xc8b   : > { %v5228_v55 = vpack.c.bf16 %v5186_v63, %v5183_v23  ;;  %v13649_v63 = vld [vmem:[#allocation28_spill] sm:$0xff] }
 0xc8c   : > { %v5188_v20 = vpop.f32.mrf.mxu1 }
 0xc8d   : > { %7877 = vmatprep.mubr.msk.bf16.mxu0 %vm928_vm2, %v5228_v55 }
 0xc8e   : > { %v5191_v7 = vpop.f32.mrf.mxu1 }
 0xc90   : > { %v5193_v36 = vpop.f32.mrf.mxu1 }
 0xc91   : > { %v13650_v36 = vld [vmem:[#allocation27_spill] sm:$0xff] }
 0xc92   : > { %v5194_v17 = vpop.f32.mrf.mxu1 }
 0xc93   : > { %v5229_v59 = vpack.c.bf16 %v5194_v17, %v5191_v7 }
 0xc94   : > { %v5196_v48 = vpop.f32.mrf.mxu1 }
 0xc95   : > { %7878 = vmatmul.mubr.msk.bf16.gmra.mxu0 %vm928_vm2, %v5229_v59 }
 0xc96   : > { %7885 = vmatprep.mubr.msk.bf16.mxu0 %vm928_vm2, %v5198_v61 }
 0xc9d   : > { %7886 = vmatmul.mubr.msk.bf16.vlgmr.msra.gmra.mxu0 %vm928_vm2, %v5199_v13 }
 0xc9e   : > { %7889 = vmatprep.mubr.msk.bf16.mxu0 %vm928_vm2, %v5200_v26 }
 0xca5   : > { %7890 = vmatmul.mubr.msk.bf16.gmra.mxu0 %vm928_vm2, %v5201_v29 }
 0xca6   : > { %7893 = vmatprep.mubr.msk.bf16.mxu0 %vm928_vm2, %v5202_v46 }
 0xcad   : > { %7894 = vmatmul.mubr.msk.bf16.gmra.mxu0 %vm928_vm2, %v5203_v9 }
 0xcae   : > { %7897 = vmatprep.mubr.msk.bf16.mxu0 %vm928_vm2, %v5204_v50 }
 0xcb5   : > { %7898 = vmatmul.mubr.msk.bf16.gmra.mxu0 %vm928_vm2, %v5205_v6 }
 0xcb6   : > { %7901 = vmatprep.mubr.msk.bf16.mxu0 %vm928_vm2, %v5206_v24 }
 0xcbd   : > { %7902 = vmatmul.mubr.msk.bf16.gmra.mxu0 %vm928_vm2, %v5207_v35 }
 0xcbe   : > { %7905 = vmatprep.mubr.msk.bf16.mxu0 %vm928_vm2, %v5208_v52 }
 0xcc5   : > { %7906 = vmatmul.mubr.msk.bf16.gmra.mxu0 %vm928_vm2, %v5209_v47 }
 0xcc6   : > { %7909 = vmatprep.mubr.msk.bf16.mxu0 %vm928_vm2, %v5210_v25 }
 0xccd   : > { %7910 = vmatmul.mubr.msk.bf16.gmra.mxu0 %vm928_vm2, %v5211_v58 }
 0xcce   : > { %7913 = vmatprep.mubr.msk.bf16.mxu0 %vm928_vm2, %v13645_v1 }
 0xcd5   : > { %7914 = vmatmul.mubr.msk.bf16.gmra.mxu0 %vm928_vm2, %v13646_v21 }
 0xce5   : > { %v7851_v61 = vpop.f32.mrf.mxu0 }
 0xce7   : > { %v5312_v22 = vpop.f32.mrf.mxu0 }
 0xce9   : > { %v7852_v15 = vpop.f32.mrf.mxu0 }
 0xceb   : > { %v5315_v13 = vpop.f32.mrf.mxu0 }
 0xcf5   : > { %v7855_v49 = vpop.f32.mrf.mxu0 }
 0xcf7   : > { %v5328_v8 = vpop.f32.mrf.mxu0 }
 0xcf9   : > { %v7856_v26 = vpop.f32.mrf.mxu0 }
 0xcfb   : > { %v5331_v45 = vpop.f32.mrf.mxu0 }
 0xd05   : > { %v7859_v62 = vpop.f32.mrf.mxu0 }
 0xd07   : > { %v5344_v29 = vpop.f32.mrf.mxu0 }
 0xd09   : > { %v12455_v33 = vpop.f32.mrf.mxu0 }
 0xd0b   : > { %v12457_v60 = vpop.f32.mrf.mxu0 }
 0xd15   : > { %v12459_v46 = vpop.f32.mrf.mxu0 }
 0xd17   : > { %v12461_v42 = vpop.f32.mrf.mxu0 }
 0xd19   : > { %v12463_v57 = vpop.f32.mrf.mxu0 }
 0xd1b   : > { %v12465_v9 = vpop.f32.mrf.mxu0 }
 0xd25   : > { %v12467_v40 = vpop.f32.mrf.mxu0 }
 0xd27   : > { %v12469_v28 = vpop.f32.mrf.mxu0 }
 0xd29   : > { %v12471_v50 = vpop.f32.mrf.mxu0 }
 0xd2b   : > { %v12473_v4 = vpop.f32.mrf.mxu0 }
 0xd35   : > { %v12475_v51 = vpop.f32.mrf.mxu0 }
 0xd37   : > { %v12477_v6 = vpop.f32.mrf.mxu0 }
 0xd39   : > { %v12479_v3 = vpop.f32.mrf.mxu0 }
 0xd3b   : > { %v12481_v14 = vpop.f32.mrf.mxu0 }
 0xd45   : > { %v12483_v24 = vpop.f32.mrf.mxu0 }
 0xd47   : > { %v12485_v54 = vpop.f32.mrf.mxu0 }
 0xd49   : > { %v12487_v19 = vpop.f32.mrf.mxu0 }
 0xd4b   : > { %v12489_v35 = vpop.f32.mrf.mxu0 }
 0xd55   : > { %v12491_v41 = vpop.f32.mrf.mxu0 }
 0xd57   : > { %v12493_v43 = vpop.f32.mrf.mxu0 }
 0xd59   : > { %v12495_v52 = vpop.f32.mrf.mxu0 }
 0xd5b   : > { %v12497_v2 = vpop.f32.mrf.mxu0 }
 0xd5d   : > { %v7887_v56 = vpop.f32.mrf.mxu0 }
 0xd5e   : > { %v5530_v38 = vadd.f32 %v7887_v56, %v7851_v61  ;;  %v13651_v61 = vld [vmem:[#allocation30_spill] sm:$0xff] }
 0xd5f   : > { %v5521_v47 = vpop.f32.mrf.mxu0 }
 0xd60   : > { %v5522_v44 = vadd.f32 %v5521_v47, %v5312_v22  ;;  %v12503_v37 = vadd.f32 %v5530_v38, %v11061_v5  ;;  %v13653_v38 = vld [vmem:[#allocation2_spill] sm:$0xff] }
 0xd61   : > { %v7888_v25 = vpop.f32.mrf.mxu0 }
 0xd62   : > { %v12500_v31 = vadd.f32 %v5522_v44, %v11065_v11  ;;  %v5533_v10 = vadd.f32 %v7888_v25, %v7852_v15  ;;  %v5690_v5 = vsel %vm928_vm2, %v12503_v37, 0.0  ;;  %v13654_v25 = vld [vmem:[#allocation31_spill] sm:$0xff] }
 0xd63   : > { %v5524_v58 = vpop.f32.mrf.mxu0 }
 0xd64   : > { %v5525_v27 = vadd.f32 %v5524_v58, %v5315_v13  ;;  %v5684_v32 = vsel %vm928_vm2, %v12500_v31, 0.0  ;;  %v12511_v53 = vadd.f32 %v5533_v10, %v13648_v18 }
 0xd65   : > { %v7891_v34 = vpop.f32.mrf.mxu0  ;;  %5685 = vadd.xlane.f32.xlu0 %v5684_v32 }
 0xd66   : > { %v12508_v16 = vadd.f32 %v5525_v27, %v13647_v39  ;;  %v5546_v11 = vadd.f32 %v7891_v34, %v7855_v49  ;;  %v5693_v7 = vsel %vm928_vm2, %v12511_v53, 0.0  ;;  %v13652_v49 = vld [vmem:[#allocation29_spill] sm:$0xff]  ;;  %v13655_v39 = vld [vmem:[#allocation4_spill] sm:$0xff] }
 0xd67   : > { %v5537_v12 = vpop.f32.mrf.mxu0 }
 0xd68   : > { %v5538_v30 = vadd.f32 %v5537_v12, %v5328_v8  ;;  %v5687_v23 = vsel %vm928_vm2, %v12508_v16, 0.0  ;;  %v12523_v17 = vadd.f32 %v5546_v11, %v13650_v36 }
 0xd69   : > { %v7892_v0 = vpop.f32.mrf.mxu0  ;;  %5688 = vadd.xlane.f32.xlu1 %v5687_v23  ;;  %5691 = vadd.xlane.f32.xlu0 %v5690_v5 }
 0xd6a   : > { %v12518_v55 = vadd.f32 %v5538_v30, %v13649_v63  ;;  %v5549_v59 = vadd.f32 %v7892_v0, %v7856_v26  ;;  %v5702_v26 = vsel %vm928_vm2, %v12523_v17, 0.0  ;;  %v13656_v30 = vld [vmem:[#allocation3_spill] sm:$0xff]  ;;  %v13657_v63 = vld [vmem:[#allocation6_spill] sm:$0xff] }
 0xd6b   : > { %v5540_v20 = vpop.f32.mrf.mxu0 }
 0xd6c   : > { %v5541_v48 = vadd.f32 %v5540_v20, %v5331_v45  ;;  %v5696_v1 = vsel %vm928_vm2, %v12518_v55, 0.0  ;;  %v12531_v8 = vadd.f32 %v5549_v59, %v13652_v49  ;;  %v13659_v59 = vld [vmem:[#allocation5_spill] sm:$0xff] }
 0xd6d   : > { %v7895_v21 = vpop.f32.mrf.mxu0  ;;  %5694 = vadd.xlane.f32.xlu1 %v5693_v7  ;;  %5697 = vadd.xlane.f32.xlu0 %v5696_v1 }
 0xd6e   : > { %v12528_v22 = vadd.f32 %v5541_v48, %v13651_v61  ;;  %v5562_v15 = vadd.f32 %v7895_v21, %v7859_v62  ;;  %v5705_v27 = vsel %vm928_vm2, %v12531_v8, 0.0  ;;  %v13661_v61 = vld [vmem:[#allocation8_spill] sm:$0xff] }
 0xd6f   : > { %v5553_v13 = vpop.f32.mrf.mxu0 }
 0xd70   : > { %v5554_v56 = vadd.f32 %v5553_v13, %v5344_v29  ;;  %v5699_v47 = vsel %vm928_vm2, %v12528_v22, 0.0  ;;  %v12541_v10 = vadd.f32 %v5562_v15, %v13654_v25  ;;  %v13663_v13 = vld [vmem:[#allocation7_spill] sm:$0xff] }
 0xd71   : > { %v7896_v45 = vpop.f32.mrf.mxu0  ;;  %5700 = vadd.xlane.f32.xlu1 %v5699_v47  ;;  %5703 = vadd.xlane.f32.xlu0 %v5702_v26 }
 0xd72   : > { %v12538_v44 = vadd.f32 %v5554_v56, %v13653_v38  ;;  %v5565_v58 = vadd.f32 %v7896_v45, %v12455_v33  ;;  %v5714_v11 = vsel %vm928_vm2, %v12541_v10, 0.0  ;;  %v13665_v38 = vld [vmem:[#allocation10_spill] sm:$0xff] }
 0xd73   : > { %v5556_v62 = vpop.f32.mrf.mxu0 }
 0xd74   : > { %v5557_v29 = vadd.f32 %v5556_v62, %v12457_v60  ;;  %v5708_v32 = vsel %vm928_vm2, %v12538_v44, 0.0  ;;  %v12555_v33 = vadd.f32 %v5565_v58, %v13656_v30 }
 0xd75   : > { %v7899_v34 = vpop.f32.mrf.mxu0  ;;  %5706 = vadd.xlane.f32.xlu1 %v5705_v27  ;;  %5709 = vadd.xlane.f32.xlu0 %v5708_v32 }
 0xd76   : > { %v12550_v18 = vadd.f32 %v5557_v29, %v13655_v39  ;;  %v5578_v60 = vadd.f32 %v7899_v34, %v12459_v46  ;;  %v5717_v46 = vsel %vm928_vm2, %v12555_v33, 0.0  ;;  %v13667_v29 = vld [vmem:[#allocation9_spill] sm:$0xff]  ;;  %v13669_v39 = vld [vmem:[#allocation12_spill] sm:$0xff] }
 0xd77   : > { %v5569_v12 = vpop.f32.mrf.mxu0 }
 0xd78   : > { %v5570_v23 = vadd.f32 %v5569_v12, %v12461_v42  ;;  %v5711_v5 = vsel %vm928_vm2, %v12550_v18, 0.0  ;;  %v12566_v48 = vadd.f32 %v5578_v60, %v13659_v59  ;;  %v13671_v60 = vld [vmem:[#allocation11_spill] sm:$0xff] }
 0xd79   : > { %v7900_v0 = vpop.f32.mrf.mxu0  ;;  %5712 = vadd.xlane.f32.xlu1 %v5711_v5  ;;  %5715 = vadd.xlane.f32.xlu0 %v5714_v11 }
 0xd7a   : > { %v12562_v20 = vadd.f32 %v5570_v23, %v13657_v63  ;;  %v5581_v7 = vadd.f32 %v7900_v0, %v12463_v57  ;;  %13660 = vst [vmem:[#allocation26_spill] sm:$0xff] %v12566_v48  ;;  %v5726_v26 = vsel %vm928_vm2, %v12566_v48, 0.0  ;;  %v13673_v63 = vld [vmem:[#allocation14_spill] sm:$0xff] }
 0xd7b   : > { %v5572_v36 = vpop.f32.mrf.mxu0 }
 0xd7c   : > { %13658 = vst [vmem:[#allocation25_spill] sm:$0xff] %v12562_v20  ;;  %v5573_v1 = vadd.f32 %v5572_v36, %v12465_v9  ;;  %v5720_v42 = vsel %vm928_vm2, %v12562_v20, 0.0  ;;  %v12577_v57 = vadd.f32 %v5581_v7, %v13663_v13  ;;  %v13675_v36 = vld [vmem:[#allocation13_spill] sm:$0xff] }
 0xd7d   : > { %v7903_v21 = vpop.f32.mrf.mxu0  ;;  %5718 = vadd.xlane.f32.xlu1 %v5717_v46  ;;  %5721 = vadd.xlane.f32.xlu0 %v5720_v42 }
 0xd7e   : > { %v12574_v15 = vadd.f32 %v5573_v1, %v13661_v61  ;;  %13664 = vst [vmem:[#allocation27_spill] sm:$0xff] %v12577_v57  ;;  %v5594_v56 = vadd.f32 %v7903_v21, %v12467_v40  ;;  %v5729_v58 = vsel %vm928_vm2, %v12577_v57, 0.0  ;;  %v13677_v61 = vld [vmem:[#allocation16_spill] sm:$0xff] }
 0xd7f   : > { %v5585_v49 = vpop.f32.mrf.mxu0 }
 0xd80   : > { %13662 = vst [vmem:[#allocation28_spill] sm:$0xff] %v12574_v15  ;;  %v5586_v9 = vadd.f32 %v5585_v49, %v12469_v28  ;;  %v5723_v47 = vsel %vm928_vm2, %v12574_v15, 0.0  ;;  %v12591_v40 = vadd.f32 %v5594_v56, %v13667_v29 }
 0xd81   : > { %v7904_v45 = vpop.f32.mrf.mxu0  ;;  %5724 = vadd.xlane.f32.xlu1 %v5723_v47  ;;  %5727 = vadd.xlane.f32.xlu0 %v5726_v26 }
 0xd82   : > { %v12586_v25 = vadd.f32 %v5586_v9, %v13665_v38  ;;  %13668 = vst [vmem:[#allocation29_spill] sm:$0xff] %v12591_v40  ;;  %v5597_v28 = vadd.f32 %v7904_v45, %v12471_v50  ;;  %v13679_v9 = vld [vmem:[#allocation15_spill] sm:$0xff]  ;;  %v13681_v38 = vld [vmem:[#allocation18_spill] sm:$0xff] }
 0xd83   : > { %v5588_v62 = vpop.f32.mrf.mxu0 }
 0xd84   : > { %13666 = vst [vmem:[#allocation30_spill] sm:$0xff] %v12586_v25  ;;  %v5589_v27 = vadd.f32 %v5588_v62, %v12473_v4  ;;  %v5732_v32 = vsel %vm928_vm2, %v12586_v25, 0.0  ;;  %v12602_v23 = vadd.f32 %v5597_v28, %v13671_v60  ;;  %v5738_v4 = vsel %vm928_vm2, %v12591_v40, 0.0  ;;  %v13683_v28 = vld [vmem:[#allocation17_spill] sm:$0xff] }
 0xd85   : > { %v7907_v34 = vpop.f32.mrf.mxu0  ;;  %5730 = vadd.xlane.f32.xlu1 %v5729_v58  ;;  %5733 = vadd.xlane.f32.xlu0 %v5732_v32 }
 0xd86   : > { %v12598_v12 = vadd.f32 %v5589_v27, %v13669_v39  ;;  %v5610_v11 = vadd.f32 %v7907_v34, %v12475_v51  ;;  %13672 = vst [vmem:[#allocation31_spill] sm:$0xff] %v12602_v23  ;;  %v5741_v46 = vsel %vm928_vm2, %v12602_v23, 0.0  ;;  %v13685_v39 = vld [vmem:[#allocation20_spill] sm:$0xff] }
 0xd87   : > { %v5601_v30 = vpop.f32.mrf.mxu0 }
 0xd88   : > { %13670 = vst [vmem:[#allocation2_spill] sm:$0xff] %v12598_v12  ;;  %v5602_v5 = vadd.f32 %v5601_v30, %v12477_v6  ;;  %v5735_v50 = vsel %vm928_vm2, %v12598_v12, 0.0  ;;  %v12613_v51 = vadd.f32 %v5610_v11, %v13675_v36  ;;  %v13687_v30 = vld [vmem:[#allocation19_spill] sm:$0xff] }
 0xd89   : > { %v7908_v0 = vpop.f32.mrf.mxu0  ;;  %5736 = vadd.xlane.f32.xlu1 %v5735_v50  ;;  %5739 = vadd.xlane.f32.xlu0 %v5738_v4 }
 0xd8a   : > { %v12610_v7 = vadd.f32 %v5602_v5, %v13673_v63  ;;  %13676 = vst [vmem:[#allocation3_spill] sm:$0xff] %v12613_v51  ;;  %v5613_v1 = vadd.f32 %v7908_v0, %v12479_v3  ;;  %v5750_v56 = vsel %vm928_vm2, %v12613_v51, 0.0  ;;  %v13689_v63 = vld [vmem:[#allocation22_spill] sm:$0xff] }
 0xd8b   : > { %v5604_v59 = vpop.f32.mrf.mxu0 }
 0xd8c   : > { %13674 = vst [vmem:[#allocation4_spill] sm:$0xff] %v12610_v7  ;;  %v5605_v6 = vadd.f32 %v5604_v59, %v12481_v14  ;;  %v5744_v42 = vsel %vm928_vm2, %v12610_v7, 0.0  ;;  %v12627_v3 = vadd.f32 %v5613_v1, %v13679_v9 }
 0xd8d   : > { %v7911_v21 = vpop.f32.mrf.mxu0  ;;  %5742 = vadd.xlane.f32.xlu1 %v5741_v46  ;;  %5745 = vadd.xlane.f32.xlu0 %v5744_v42 }
 0xd8e   : > { %v12622_v13 = vadd.f32 %v5605_v6, %v13677_v61  ;;  %13680 = vst [vmem:[#allocation5_spill] sm:$0xff] %v12627_v3  ;;  %v5626_v14 = vadd.f32 %v7911_v21, %v12483_v24  ;;  %v5753_v24 = vsel %vm928_vm2, %v12627_v3, 0.0  ;;  %v13691_v6 = vld [vmem:[#allocation21_spill] sm:$0xff]  ;;  %v13693_v21 = vld [vmem:[#allocation24_spill] sm:$0xff] }
 0xd8f   : > { %v5617_v49 = vpop.f32.mrf.mxu0 }
 0xd90   : > { %13678 = vst [vmem:[#allocation6_spill] sm:$0xff] %v12622_v13  ;;  %v5618_v47 = vadd.f32 %v5617_v49, %v12485_v54  ;;  %v5747_v26 = vsel %vm928_vm2, %v12622_v13, 0.0  ;;  %v12638_v27 = vadd.f32 %v5626_v14, %v13683_v28  ;;  %v13695_v49 = vld [vmem:[#allocation23_spill] sm:$0xff] }
 0xd91   : > { %v7912_v45 = vpop.f32.mrf.mxu0  ;;  %5748 = vadd.xlane.f32.xlu1 %v5747_v26  ;;  %5751 = vadd.xlane.f32.xlu0 %v5750_v56 }
 0xd92   : > { %v12634_v62 = vadd.f32 %v5618_v47, %v13681_v38  ;;  %v5629_v58 = vadd.f32 %v7912_v45, %v12487_v19  ;;  %13684 = vst [vmem:[#allocation7_spill] sm:$0xff] %v12638_v27  ;;  %v5762_v4 = vsel %vm928_vm2, %v12638_v27, 0.0 }
 0xd93   : > { %v5620_v29 = vpop.f32.mrf.mxu0 }
 0xd94   : > { %13682 = vst [vmem:[#allocation8_spill] sm:$0xff] %v12634_v62  ;;  %v5621_v32 = vadd.f32 %v5620_v29, %v12489_v35  ;;  %v5756_v54 = vsel %vm928_vm2, %v12634_v62, 0.0  ;;  %v12649_v19 = vadd.f32 %v5629_v58, %v13687_v30 }
 0xd95   : > { %v7915_v34 = vpop.f32.mrf.mxu0  ;;  %5754 = vadd.xlane.f32.xlu1 %v5753_v24  ;;  %5757 = vadd.xlane.f32.xlu0 %v5756_v54 }
 0xd96   : > { %v12646_v11 = vadd.f32 %v5621_v32, %v13685_v39  ;;  %13688 = vst [vmem:[#allocation9_spill] sm:$0xff] %v12649_v19  ;;  %v5642_v5 = vadd.f32 %v7915_v34, %v12491_v41  ;;  %v5765_v1 = vsel %vm928_vm2, %v12649_v19, 0.0 }
 0xd97   : > { %v5633_v60 = vpop.f32.mrf.mxu0 }
 0xd98   : > { %13686 = vst [vmem:[#allocation10_spill] sm:$0xff] %v12646_v11  ;;  %v5634_v35 = vadd.f32 %v5633_v60, %v12493_v43  ;;  %v5759_v50 = vsel %vm928_vm2, %v12646_v11, 0.0  ;;  %v12663_v41 = vadd.f32 %v5642_v5, %v13691_v6 }
 0xd99   : > { %v7916_v0 = vpop.f32.mrf.mxu0  ;;  %5760 = vadd.xlane.f32.xlu1 %v5759_v50  ;;  %5763 = vadd.xlane.f32.xlu0 %v5762_v4 }
 0xd9a   : > { %v12658_v36 = vadd.f32 %v5634_v35, %v13689_v63  ;;  %13692 = vst [vmem:[#allocation11_spill] sm:$0xff] %v12663_v41  ;;  %v5645_v43 = vadd.f32 %v7916_v0, %v12495_v52  ;;  %v5774_v14 = vsel %vm928_vm2, %v12663_v41, 0.0 }
 0xd9b   : > { %v5636_v59 = vpop.f32.mrf.mxu0 }
 0xd9c   : > { %13690 = vst [vmem:[#allocation12_spill] sm:$0xff] %v12658_v36  ;;  %v5637_v46 = vadd.f32 %v5636_v59, %v12497_v2  ;;  %v5768_v42 = vsel %vm928_vm2, %v12658_v36, 0.0  ;;  %v12673_v56 = vadd.f32 %v5645_v43, %v13695_v49 }
 0xd9d   : > { %5766 = vadd.xlane.f32.xlu1 %v5765_v1  ;;  %5769 = vadd.xlane.f32.xlu0 %v5768_v42 }
 0xd9e   : > { %v12670_v61 = vadd.f32 %v5637_v46, %v13693_v21  ;;  %13696 = vst [vmem:[#allocation13_spill] sm:$0xff] %v12673_v56  ;;  %v5777_v52 = vsel %vm928_vm2, %v12673_v56, 0.0 }
 0xda0   : > { %13694 = vst [vmem:[#allocation14_spill] sm:$0xff] %v12670_v61  ;;  %v5771_v9 = vsel %vm928_vm2, %v12670_v61, 0.0 }
 0xda1   : > { %5772 = vadd.xlane.f32.xlu1 %v5771_v9  ;;  %5775 = vadd.xlane.f32.xlu0 %v5774_v14 }
 0xda5   : > { %5778 = vadd.xlane.f32.xlu1 %v5777_v52 }
 0xdee   : > { %v5686_v2 = vpop.xlane.xlu0 %5685 }
 0xdef   : > { %v5780_v47 = vmul.f32 0.03125, %v5686_v2 }
 0xdf1   : > { %v12682_v26 = vsub.f32 %v12500_v31, %v5780_v47 }
 0xdf2   : > { %v5689_v45 = vpop.xlane.xlu1 %5688  ;;  %v5692_v38 = vpop.xlane.xlu0 %5691 }
 0xdf3   : > { %v5781_v58 = vmul.f32 0.03125, %v5689_v45  ;;  %v5782_v29 = vmul.f32 0.03125, %v5692_v38  ;;  %v5844_v28 = vmul.f32 %v12682_v26, %v12682_v26 }
 0xdf5   : > { %v12687_v32 = vsub.f32 %v12508_v16, %v5781_v58  ;;  %v12690_v24 = vsub.f32 %v12503_v37, %v5782_v29  ;;  %v5876_v54 = vsel %vm928_vm2, %v5844_v28, 0.0 }
 0xdf6   : > { %v5695_v34 = vpop.xlane.xlu1 %5694  ;;  %5877 = vadd.xlane.f32.xlu0 %v5876_v54  ;;  %v5698_v39 = vpop.xlane.xlu0 %5697 }
 0xdf7   : > { %v5783_v30 = vmul.f32 0.03125, %v5695_v34  ;;  %v5784_v60 = vmul.f32 0.03125, %v5698_v39  ;;  %v5845_v5 = vmul.f32 %v12687_v32, %v12687_v32  ;;  %v5846_v35 = vmul.f32 %v12690_v24, %v12690_v24 }
 0xdf9   : > { %v12698_v50 = vsub.f32 %v12511_v53, %v5783_v30  ;;  %v12701_v4 = vsub.f32 %v12518_v55, %v5784_v60  ;;  %v5879_v0 = vsel %vm928_vm2, %v5845_v5, 0.0  ;;  %v5882_v63 = vsel %vm928_vm2, %v5846_v35, 0.0 }
 0xdfa   : > { %5880 = vadd.xlane.f32.xlu1 %v5879_v0  ;;  %v5701_v59 = vpop.xlane.xlu1 %5700  ;;  %5883 = vadd.xlane.f32.xlu0 %v5882_v63  ;;  %v5704_v1 = vpop.xlane.xlu0 %5703 }
 0xdfb   : > { %v5785_v6 = vmul.f32 0.03125, %v5701_v59  ;;  %v5786_v43 = vmul.f32 0.03125, %v5704_v1  ;;  %v5847_v46 = vmul.f32 %v12698_v50, %v12698_v50  ;;  %v5848_v42 = vmul.f32 %v12701_v4, %v12701_v4 }
 0xdfd   : > { %v12710_v21 = vsub.f32 %v12528_v22, %v5785_v6  ;;  %v12713_v49 = vsub.f32 %v12523_v17, %v5786_v43  ;;  %v5885_v9 = vsel %vm928_vm2, %v5847_v46, 0.0  ;;  %v5888_v14 = vsel %vm928_vm2, %v5848_v42, 0.0 }
 0xdfe   : > { %5886 = vadd.xlane.f32.xlu1 %v5885_v9  ;;  %v5707_v52 = vpop.xlane.xlu1 %5706  ;;  %5889 = vadd.xlane.f32.xlu0 %v5888_v14  ;;  %v5710_v2 = vpop.xlane.xlu0 %5709 }
 0xdff   : > { %v5787_v47 = vmul.f32 0.03125, %v5707_v52  ;;  %v5788_v45 = vmul.f32 0.03125, %v5710_v2  ;;  %v5849_v38 = vmul.f32 %v12710_v21, %v12710_v21  ;;  %v5850_v58 = vmul.f32 %v12713_v49, %v12713_v49 }
 0xe01   : > { %v12722_v29 = vsub.f32 %v12531_v8, %v5787_v47  ;;  %v12725_v28 = vsub.f32 %v12538_v44, %v5788_v45  ;;  %v5891_v54 = vsel %vm928_vm2, %v5849_v38, 0.0  ;;  %v5894_v34 = vsel %vm928_vm2, %v5850_v58, 0.0 }
 0xe02   : > { %5892 = vadd.xlane.f32.xlu1 %v5891_v54  ;;  %v5713_v39 = vpop.xlane.xlu1 %5712  ;;  %5895 = vadd.xlane.f32.xlu0 %v5894_v34  ;;  %v5716_v30 = vpop.xlane.xlu0 %5715 }
 0xe03   : > { %v5789_v60 = vmul.f32 0.03125, %v5713_v39  ;;  %v5790_v5 = vmul.f32 0.03125, %v5716_v30  ;;  %v5851_v35 = vmul.f32 %v12722_v29, %v12722_v29  ;;  %v5852_v0 = vmul.f32 %v12725_v28, %v12725_v28 }
 0xe05   : > { %v12734_v63 = vsub.f32 %v12550_v18, %v5789_v60  ;;  %v12737_v59 = vsub.f32 %v12541_v10, %v5790_v5  ;;  %v5897_v1 = vsel %vm928_vm2, %v5851_v35, 0.0  ;;  %v5900_v6 = vsel %vm928_vm2, %v5852_v0, 0.0 }
 0xe06   : > { %5898 = vadd.xlane.f32.xlu1 %v5897_v1  ;;  %v5719_v43 = vpop.xlane.xlu1 %5718  ;;  %5901 = vadd.xlane.f32.xlu0 %v5900_v6  ;;  %v5722_v46 = vpop.xlane.xlu0 %5721 }
 0xe07   : > { %v5791_v42 = vmul.f32 0.03125, %v5719_v43  ;;  %v5792_v9 = vmul.f32 0.03125, %v5722_v46  ;;  %v5853_v14 = vmul.f32 %v12734_v63, %v12734_v63  ;;  %v5854_v52 = vmul.f32 %v12737_v59, %v12737_v59 }
 0xe09   : > { %v12746_v2 = vsub.f32 %v12555_v33, %v5791_v42  ;;  %v12749_v47 = vsub.f32 %v12562_v20, %v5792_v9  ;;  %v5903_v45 = vsel %vm928_vm2, %v5853_v14, 0.0  ;;  %v5906_v38 = vsel %vm928_vm2, %v5854_v52, 0.0 }
 0xe0a   : > { %5904 = vadd.xlane.f32.xlu1 %v5903_v45  ;;  %v5725_v58 = vpop.xlane.xlu1 %5724  ;;  %5907 = vadd.xlane.f32.xlu0 %v5906_v38  ;;  %v5728_v54 = vpop.xlane.xlu0 %5727 }
 0xe0b   : > { %v5793_v34 = vmul.f32 0.03125, %v5725_v58  ;;  %v5794_v39 = vmul.f32 0.03125, %v5728_v54  ;;  %v5855_v30 = vmul.f32 %v12746_v2, %v12746_v2  ;;  %v5856_v60 = vmul.f32 %v12749_v47, %v12749_v47 }
 0xe0d   : > { %v12758_v5 = vsub.f32 %v12574_v15, %v5793_v34  ;;  %v12761_v35 = vsub.f32 %v12566_v48, %v5794_v39  ;;  %v5909_v0 = vsel %vm928_vm2, %v5855_v30, 0.0  ;;  %v5912_v1 = vsel %vm928_vm2, %v5856_v60, 0.0 }
 0xe0e   : > { %5910 = vadd.xlane.f32.xlu1 %v5909_v0  ;;  %v5731_v6 = vpop.xlane.xlu1 %5730  ;;  %5913 = vadd.xlane.f32.xlu0 %v5912_v1  ;;  %v5734_v43 = vpop.xlane.xlu0 %5733 }
 0xe0f   : > { %v5795_v46 = vmul.f32 0.03125, %v5731_v6  ;;  %v5796_v42 = vmul.f32 0.03125, %v5734_v43  ;;  %v5857_v9 = vmul.f32 %v12758_v5, %v12758_v5  ;;  %v5858_v14 = vmul.f32 %v12761_v35, %v12761_v35 }
 0xe11   : > { %v12770_v52 = vsub.f32 %v12577_v57, %v5795_v46  ;;  %v12773_v45 = vsub.f32 %v12586_v25, %v5796_v42  ;;  %v5915_v38 = vsel %vm928_vm2, %v5857_v9, 0.0  ;;  %v5918_v58 = vsel %vm928_vm2, %v5858_v14, 0.0 }
 0xe12   : > { %5916 = vadd.xlane.f32.xlu1 %v5915_v38  ;;  %v5737_v54 = vpop.xlane.xlu1 %5736  ;;  %5919 = vadd.xlane.f32.xlu0 %v5918_v58  ;;  %v5740_v34 = vpop.xlane.xlu0 %5739 }
 0xe13   : > { %v5797_v39 = vmul.f32 0.03125, %v5737_v54  ;;  %v5798_v30 = vmul.f32 0.03125, %v5740_v34  ;;  %v5859_v60 = vmul.f32 %v12770_v52, %v12770_v52  ;;  %v5860_v0 = vmul.f32 %v12773_v45, %v12773_v45 }
 0xe15   : > { %v12782_v1 = vsub.f32 %v12598_v12, %v5797_v39  ;;  %v12785_v6 = vsub.f32 %v12591_v40, %v5798_v30  ;;  %v5921_v43 = vsel %vm928_vm2, %v5859_v60, 0.0  ;;  %v5924_v46 = vsel %vm928_vm2, %v5860_v0, 0.0 }
 0xe16   : > { %5922 = vadd.xlane.f32.xlu1 %v5921_v43  ;;  %v5743_v42 = vpop.xlane.xlu1 %5742  ;;  %5925 = vadd.xlane.f32.xlu0 %v5924_v46  ;;  %v5746_v9 = vpop.xlane.xlu0 %5745 }
 0xe17   : > { %v5799_v14 = vmul.f32 0.03125, %v5743_v42  ;;  %v5800_v38 = vmul.f32 0.03125, %v5746_v9  ;;  %v5861_v58 = vmul.f32 %v12782_v1, %v12782_v1  ;;  %v5862_v54 = vmul.f32 %v12785_v6, %v12785_v6 }
 0xe19   : > { %v12794_v34 = vsub.f32 %v12602_v23, %v5799_v14  ;;  %v12797_v39 = vsub.f32 %v12610_v7, %v5800_v38  ;;  %v5927_v30 = vsel %vm928_vm2, %v5861_v58, 0.0  ;;  %v5930_v60 = vsel %vm928_vm2, %v5862_v54, 0.0 }
 0xe1a   : > { %5928 = vadd.xlane.f32.xlu1 %v5927_v30  ;;  %v5749_v0 = vpop.xlane.xlu1 %5748  ;;  %5931 = vadd.xlane.f32.xlu0 %v5930_v60  ;;  %v5752_v43 = vpop.xlane.xlu0 %5751 }
 0xe1b   : > { %v5801_v46 = vmul.f32 0.03125, %v5749_v0  ;;  %v5802_v42 = vmul.f32 0.03125, %v5752_v43  ;;  %v5863_v9 = vmul.f32 %v12794_v34, %v12794_v34  ;;  %v5864_v14 = vmul.f32 %v12797_v39, %v12797_v39 }
 0xe1d   : > { %v12806_v23 = vsub.f32 %v12622_v13, %v5801_v46  ;;  %v12809_v38 = vsub.f32 %v12613_v51, %v5802_v42  ;;  %v5933_v58 = vsel %vm928_vm2, %v5863_v9, 0.0  ;;  %v5936_v54 = vsel %vm928_vm2, %v5864_v14, 0.0 }
 0xe1e   : > { %5934 = vadd.xlane.f32.xlu1 %v5933_v58  ;;  %v5755_v30 = vpop.xlane.xlu1 %5754  ;;  %5937 = vadd.xlane.f32.xlu0 %v5936_v54  ;;  %v5758_v60 = vpop.xlane.xlu0 %5757 }
 0xe1f   : > { %v5803_v0 = vmul.f32 0.03125, %v5755_v30  ;;  %v5804_v43 = vmul.f32 0.03125, %v5758_v60  ;;  %v5865_v7 = vmul.f32 %v12806_v23, %v12806_v23  ;;  %v5866_v46 = vmul.f32 %v12809_v38, %v12809_v38 }
 0xe21   : > { %v12818_v13 = vsub.f32 %v12627_v3, %v5803_v0  ;;  %v12821_v42 = vsub.f32 %v12634_v62, %v5804_v43  ;;  %v5939_v9 = vsel %vm928_vm2, %v5865_v7, 0.0  ;;  %v5942_v14 = vsel %vm928_vm2, %v5866_v46, 0.0 }
 0xe22   : > { %5940 = vadd.xlane.f32.xlu1 %v5939_v9  ;;  %v5761_v58 = vpop.xlane.xlu1 %5760  ;;  %5943 = vadd.xlane.f32.xlu0 %v5942_v14  ;;  %v5764_v54 = vpop.xlane.xlu0 %5763 }
 0xe23   : > { %v5805_v30 = vmul.f32 0.03125, %v5761_v58  ;;  %v5806_v60 = vmul.f32 0.03125, %v5764_v54  ;;  %v5867_v51 = vmul.f32 %v12818_v13, %v12818_v13  ;;  %v5868_v0 = vmul.f32 %v12821_v42, %v12821_v42 }
 0xe25   : > { %v12830_v3 = vsub.f32 %v12646_v11, %v5805_v30  ;;  %v12833_v43 = vsub.f32 %v12638_v27, %v5806_v60  ;;  %v5945_v7 = vsel %vm928_vm2, %v5867_v51, 0.0  ;;  %v5948_v46 = vsel %vm928_vm2, %v5868_v0, 0.0 }
 0xe26   : > { %5946 = vadd.xlane.f32.xlu1 %v5945_v7  ;;  %v5767_v9 = vpop.xlane.xlu1 %5766  ;;  %5949 = vadd.xlane.f32.xlu0 %v5948_v46  ;;  %v5770_v14 = vpop.xlane.xlu0 %5769 }
 0xe27   : > { %v5807_v58 = vmul.f32 0.03125, %v5767_v9  ;;  %v5808_v54 = vmul.f32 0.03125, %v5770_v14  ;;  %v5869_v62 = vmul.f32 %v12830_v3, %v12830_v3  ;;  %v5870_v30 = vmul.f32 %v12833_v43, %v12833_v43  ;;  %v8113_v9 = vld [vmem:[%s13388_s10 + $0x18] sm:$0xff]  }
 0xe28   : > { %7917 = vmatprep.subr.bf16.mxu0 %v8113_v9 }
 0xe29   : > { %v12842_v11 = vsub.f32 %v12649_v19, %v5807_v58  ;;  %v12845_v60 = vsub.f32 %v12658_v36, %v5808_v54  ;;  %v5951_v51 = vsel %vm928_vm2, %v5869_v62, 0.0  ;;  %v5954_v0 = vsel %vm928_vm2, %v5870_v30, 0.0  ;;  %7918 = vmatpush3.bf16.msra.mxu0 %v8113_v9 }
 0xe2a   : > { %5952 = vadd.xlane.f32.xlu1 %v5951_v51  ;;  %v5773_v7 = vpop.xlane.xlu1 %5772  ;;  %5955 = vadd.xlane.f32.xlu0 %v5954_v0  ;;  %v5776_v46 = vpop.xlane.xlu0 %5775 }
 0xe2b   : > { %v5809_v14 = vmul.f32 0.03125, %v5773_v7  ;;  %v5810_v27 = vmul.f32 0.03125, %v5776_v46  ;;  %v5871_v58 = vmul.f32 %v12842_v11, %v12842_v11  ;;  %v5872_v54 = vmul.f32 %v12845_v60, %v12845_v60 }
 0xe2d   : > { %v12857_v62 = vsub.f32 %v12670_v61, %v5809_v14  ;;  %v12860_v30 = vsub.f32 %v12663_v41, %v5810_v27  ;;  %v5957_v51 = vsel %vm928_vm2, %v5871_v58, 0.0  ;;  %v5960_v0 = vsel %vm928_vm2, %v5872_v54, 0.0  ;;  %v8114_v27 = vld [vmem:[%s13388_s10 + $0x10] sm:$0xff]  }
 0xe2e   : > { %5958 = vadd.xlane.f32.xlu1 %v5957_v51  ;;  %v5779_v7 = vpop.xlane.xlu1 %5778  ;;  %5961 = vadd.xlane.f32.xlu0 %v5960_v0 }
 0xe2f   : > { %v5811_v46 = vmul.f32 0.03125, %v5779_v7  ;;  %v5873_v36 = vmul.f32 %v12857_v62, %v12857_v62  ;;  %v5874_v19 = vmul.f32 %v12860_v30, %v12860_v30  ;;  %7919 = vmatprep.subr.bf16.mxu0 %v8114_v27 }
 0xe30   : > { %7920 = vmatpush3.bf16.msra.mxu0 %v8114_v27 }
 0xe31   : > { %v12872_v14 = vsub.f32 %v12673_v56, %v5811_v46  ;;  %v5963_v58 = vsel %vm928_vm2, %v5873_v36, 0.0  ;;  %v5966_v9 = vsel %vm928_vm2, %v5874_v19, 0.0 }
 0xe32   : > { %5964 = vadd.xlane.f32.xlu1 %v5963_v58  ;;  %5967 = vadd.xlane.f32.xlu0 %v5966_v9 }
 0xe33   : > { %v5875_v54 = vmul.f32 %v12872_v14, %v12872_v14 }
 0xe35   : > { %v5969_v51 = vsel %vm928_vm2, %v5875_v54, 0.0 }
 0xe36   : > { %5970 = vadd.xlane.f32.xlu1 %v5969_v51 }
 0xe7f   : > { %v5878_v0 = vpop.xlane.xlu0 %5877 }
 0xe80   : > { %v5972_v7 = vmul.f32 0.03125, %v5878_v0 }
 0xe82   : > { %v6004_v61 = vadd.f32 1e-05, %v5972_v7 }
 0xe83   : > { %v5881_v41 = vpop.xlane.xlu1 %5880  ;;  %v5884_v46 = vpop.xlane.xlu0 %5883 }
 0xe84   : > { %8507 = vrsqrt.f32 %v6004_v61  ;;  %v5973_v56 = vmul.f32 0.03125, %v5881_v41  ;;  %v5974_v36 = vmul.f32 0.03125, %v5884_v46 }
 0xe86   : > { %v6005_v12 = vadd.f32 1e-05, %v5973_v56  ;;  %v6006_v19 = vadd.f32 1e-05, %v5974_v36 }
 0xe87   : > { %v5887_v40 = vpop.xlane.xlu1 %5886  ;;  %v5890_v58 = vpop.xlane.xlu0 %5889 }
 0xe88   : > { %8509 = vrsqrt.f32 %v6005_v12  ;;  %v5975_v9 = vmul.f32 0.03125, %v5887_v40  ;;  %v5976_v25 = vmul.f32 0.03125, %v5890_v58 }
 0xe89   : > { %8511 = vrsqrt.f32 %v6006_v19 }
 0xe8a   : > { %v6007_v27 = vadd.f32 1e-05, %v5975_v9  ;;  %v6008_v57 = vadd.f32 1e-05, %v5976_v25  ;;  %v12883_v9 = vld [vmem:[%s13386_s8 + $0x1] ss:$0 sm:$0xff] }
 0xe8b   : > { %v5893_v54 = vpop.xlane.xlu1 %5892  ;;  %v5896_v51 = vpop.xlane.xlu0 %5895 }
 0xe8c   : > { %8513 = vrsqrt.f32 %v6007_v27  ;;  %v5977_v0 = vmul.f32 0.03125, %v5893_v54  ;;  %v5978_v7 = vmul.f32 0.03125, %v5896_v51 }
 0xe8d   : > { %8515 = vrsqrt.f32 %v6008_v57 }
 0xe8e   : > { %v6009_v15 = vadd.f32 1e-05, %v5977_v0  ;;  %v6010_v61 = vadd.f32 1e-05, %v5978_v7 }
 0xe8f   : > { %v5899_v41 = vpop.xlane.xlu1 %5898  ;;  %v5902_v46 = vpop.xlane.xlu0 %5901 }
 0xe90   : > { %8517 = vrsqrt.f32 %v6009_v15  ;;  %v5979_v56 = vmul.f32 0.03125, %v5899_v41  ;;  %v5980_v36 = vmul.f32 0.03125, %v5902_v46 }
 0xe91   : > { %v8508_v48 = vpop.eup %8507  ;;  %8519 = vrsqrt.f32 %v6010_v61 }
 0xe92   : > { %v6011_v40 = vadd.f32 1e-05, %v5979_v56  ;;  %v6012_v12 = vadd.f32 1e-05, %v5980_v36  ;;  %v6068_v25 = vmul.f32 %v8508_v48, %v12682_v26  ;;  %v12891_v26 = vld [vmem:[%s13387_s9 + $0x1] ss:$0 sm:$0xff] }
 0xe93   : > { %v5905_v19 = vpop.xlane.xlu1 %5904  ;;  %v5908_v58 = vpop.xlane.xlu0 %5907 }
 0xe94   : > { %8521 = vrsqrt.f32 %v6011_v40  ;;  %v5981_v57 = vmul.f32 0.03125, %v5905_v19  ;;  %v5982_v27 = vmul.f32 0.03125, %v5908_v58  ;;  %v6106_v48 = vmul.f32 %v12883_v9, %v6068_v25 }
 0xe95   : > { %v8510_v54 = vpop.eup %8509  ;;  %8523 = vrsqrt.f32 %v6012_v12 }
 0xe96   : > { %v8512_v15 = vpop.eup %8511  ;;  %v6013_v51 = vadd.f32 1e-05, %v5981_v57  ;;  %v6014_v0 = vadd.f32 1e-05, %v5982_v27  ;;  %v6069_v7 = vmul.f32 %v8510_v54, %v12687_v32 }
 0xe97   : > { %v6070_v61 = vmul.f32 %v8512_v15, %v12690_v24  ;;  %v5911_v41 = vpop.xlane.xlu1 %5910  ;;  %v5914_v46 = vpop.xlane.xlu0 %5913  ;;  %v6144_v15 = vadd.f32 %v12891_v26, %v6106_v48 }
 0xe98   : > { %8525 = vrsqrt.f32 %v6013_v51  ;;  %v5983_v56 = vmul.f32 0.03125, %v5911_v41  ;;  %v5984_v36 = vmul.f32 0.03125, %v5914_v46  ;;  %v6107_v40 = vmul.f32 %v12883_v9, %v6069_v7 }
 0xe99   : > { %v8514_v12 = vpop.eup %8513  ;;  %v6108_v19 = vmul.f32 %v12883_v9, %v6070_v61  ;;  %8527 = vrsqrt.f32 %v6014_v0 }
 0xe9a   : > { %v8516_v32 = vpop.eup %8515  ;;  %v6071_v24 = vmul.f32 %v8514_v12, %v12698_v50  ;;  %v6015_v58 = vadd.f32 1e-05, %v5983_v56  ;;  %v6016_v57 = vadd.f32 1e-05, %v5984_v36  ;;  %v6145_v25 = vadd.f32 %v12891_v26, %v6107_v40 }
 0xe9b   : > { %v5917_v27 = vpop.xlane.xlu1 %5916  ;;  %v5920_v54 = vpop.xlane.xlu0 %5919  ;;  %v6072_v51 = vmul.f32 %v8516_v32, %v12701_v4  ;;  %v6146_v0 = vadd.f32 %v12891_v26, %v6108_v19 }
 0xe9c   : > { %v6109_v41 = vmul.f32 %v12883_v9, %v6071_v24  ;;  %8529 = vrsqrt.f32 %v6015_v58  ;;  %v5985_v7 = vmul.f32 0.03125, %v5917_v27  ;;  %v5986_v46 = vmul.f32 0.03125, %v5920_v54 }
 0xe9d   : > { %v8518_v61 = vpop.eup %8517  ;;  %8531 = vrsqrt.f32 %v6016_v57  ;;  %v6176_v50 = vpack.c.bf16 %v6145_v25, %v6144_v15  ;;  %v6110_v24 = vmul.f32 %v12883_v9, %v6072_v51 }
 0xe9e   : > { %v8520_v56 = vpop.eup %8519  ;;  %v6147_v36 = vadd.f32 %v12891_v26, %v6109_v41  ;;  %v6017_v40 = vadd.f32 1e-05, %v5985_v7  ;;  %v6018_v12 = vadd.f32 1e-05, %v5986_v46  ;;  %v6073_v20 = vmul.f32 %v8518_v61, %v12710_v21 }
 0xe9f   : > { %v6074_v48 = vmul.f32 %v8520_v56, %v12713_v49  ;;  %7921 = vmatprep.mubr.msk.bf16.mxu0 %vm928_vm2, %v6176_v50  ;;  %v5923_v4 = vpop.xlane.xlu1 %5922  ;;  %v5926_v32 = vpop.xlane.xlu0 %5925  ;;  %v6148_v51 = vadd.f32 %v12891_v26, %v6110_v24 }
 0xea0   : > { %v6177_v58 = vpack.c.bf16 %v6147_v36, %v6146_v0  ;;  %8533 = vrsqrt.f32 %v6017_v40  ;;  %v5987_v19 = vmul.f32 0.03125, %v5923_v4  ;;  %v5988_v57 = vmul.f32 0.03125, %v5926_v32 }
 0xea1   : > { %v8522_v25 = vpop.eup %8521  ;;  %8535 = vrsqrt.f32 %v6018_v12  ;;  %v6111_v27 = vmul.f32 %v12883_v9, %v6073_v20  ;;  %v6112_v54 = vmul.f32 %v12883_v9, %v6074_v48 }
 0xea2   : > { %v8524_v15 = vpop.eup %8523  ;;  %v6075_v21 = vmul.f32 %v8522_v25, %v12722_v29  ;;  %v6019_v49 = vadd.f32 1e-05, %v5987_v19  ;;  %v6020_v41 = vadd.f32 1e-05, %v5988_v57  ;;  %7922 = vmatmul.mubr.msk.bf16.vlgmr.msra.gmra.mxu0 %vm928_vm2, %v6177_v58 }
 0xea3   : > { %v5929_v7 = vpop.xlane.xlu1 %5928  ;;  %v5932_v46 = vpop.xlane.xlu0 %5931  ;;  %v6149_v61 = vadd.f32 %v12891_v26, %v6111_v27  ;;  %v6076_v0 = vmul.f32 %v8524_v15, %v12725_v28  ;;  %v6150_v40 = vadd.f32 %v12891_v26, %v6112_v54 }
 0xea4   : > { %8537 = vrsqrt.f32 %v6019_v49  ;;  %v5989_v50 = vmul.f32 0.03125, %v5929_v7  ;;  %v5990_v20 = vmul.f32 0.03125, %v5932_v46  ;;  %v6113_v56 = vmul.f32 %v12883_v9, %v6075_v21 }
 0xea5   : > { %v8526_v36 = vpop.eup %8525  ;;  %8539 = vrsqrt.f32 %v6020_v41  ;;  %v6178_v29 = vpack.c.bf16 %v6149_v61, %v6148_v51  ;;  %v6114_v57 = vmul.f32 %v12883_v9, %v6076_v0 }
 0xea6   : > { %v8528_v12 = vpop.eup %8527  ;;  %v6021_v48 = vadd.f32 1e-05, %v5989_v50  ;;  %v6022_v4 = vadd.f32 1e-05, %v5990_v20  ;;  %v6151_v32 = vadd.f32 %v12891_v26, %v6113_v56  ;;  %v6077_v24 = vmul.f32 %v8526_v36, %v12734_v63 }
 0xea7   : > { %v6078_v58 = vmul.f32 %v8528_v12, %v12737_v59  ;;  %7925 = vmatprep.mubr.msk.bf16.mxu0 %vm928_vm2, %v6178_v29  ;;  %v5935_v28 = vpop.xlane.xlu1 %5934  ;;  %v5938_v19 = vpop.xlane.xlu0 %5937  ;;  %v6152_v61 = vadd.f32 %v12891_v26, %v6114_v57 }
 0xea8   : > { %8541 = vrsqrt.f32 %v6021_v48  ;;  %v5991_v25 = vmul.f32 0.03125, %v5935_v28  ;;  %v5992_v27 = vmul.f32 0.03125, %v5938_v19  ;;  %v6179_v15 = vpack.c.bf16 %v6151_v32, %v6150_v40 }
 0xea9   : > { %v8530_v54 = vpop.eup %8529  ;;  %8543 = vrsqrt.f32 %v6022_v4  ;;  %v6115_v21 = vmul.f32 %v12883_v9, %v6077_v24  ;;  %v6116_v49 = vmul.f32 %v12883_v9, %v6078_v58 }
 0xeaa   : > { %v8532_v41 = vpop.eup %8531  ;;  %v6079_v63 = vmul.f32 %v8530_v54, %v12746_v2  ;;  %v6023_v59 = vadd.f32 1e-05, %v5991_v25  ;;  %v6024_v7 = vadd.f32 1e-05, %v5992_v27  ;;  %7926 = vmatmul.mubr.msk.bf16.gmra.mxu0 %vm928_vm2, %v6179_v15 }
 0xeab   : > { %v5941_v46 = vpop.xlane.xlu1 %5940  ;;  %v5944_v51 = vpop.xlane.xlu0 %5943  ;;  %v6153_v0 = vadd.f32 %v12891_v26, %v6115_v21  ;;  %v6080_v50 = vmul.f32 %v8532_v41, %v12749_v47  ;;  %v6154_v40 = vadd.f32 %v12891_v26, %v6116_v49 }
 0xeac   : > { %8545 = vrsqrt.f32 %v6023_v59  ;;  %v5993_v20 = vmul.f32 0.03125, %v5941_v46  ;;  %v5994_v56 = vmul.f32 0.03125, %v5944_v51  ;;  %v6117_v36 = vmul.f32 %v12883_v9, %v6079_v63 }
 0xead   : > { %v8534_v29 = vpop.eup %8533  ;;  %8547 = vrsqrt.f32 %v6024_v7  ;;  %v6180_v2 = vpack.c.bf16 %v6153_v0, %v6152_v61  ;;  %v6118_v19 = vmul.f32 %v12883_v9, %v6080_v50 }
 0xeae   : > { %v8536_v12 = vpop.eup %8535  ;;  %v6025_v48 = vadd.f32 1e-05, %v5993_v20  ;;  %v6026_v4 = vadd.f32 1e-05, %v5994_v56  ;;  %v6155_v32 = vadd.f32 %v12891_v26, %v6117_v36  ;;  %v6081_v24 = vmul.f32 %v8534_v29, %v12758_v5 }
 0xeaf   : > { %v6082_v58 = vmul.f32 %v8536_v12, %v12761_v35  ;;  %7929 = vmatprep.mubr.msk.bf16.mxu0 %vm928_vm2, %v6180_v2  ;;  %v5947_v47 = vpop.xlane.xlu1 %5946  ;;  %v5950_v28 = vpop.xlane.xlu0 %5949  ;;  %v6156_v7 = vadd.f32 %v12891_v26, %v6118_v19 }
 0xeb0   : > { %8549 = vrsqrt.f32 %v6025_v48  ;;  %v5995_v57 = vmul.f32 0.03125, %v5947_v47  ;;  %v5996_v25 = vmul.f32 0.03125, %v5950_v28  ;;  %v6181_v27 = vpack.c.bf16 %v6155_v32, %v6154_v40 }
 0xeb1   : > { %v8538_v15 = vpop.eup %8537  ;;  %8551 = vrsqrt.f32 %v6026_v4  ;;  %v6119_v54 = vmul.f32 %v12883_v9, %v6081_v24  ;;  %v6120_v21 = vmul.f32 %v12883_v9, %v6082_v58 }
 0xeb2   : > { %v8540_v49 = vpop.eup %8539  ;;  %v6083_v5 = vmul.f32 %v8538_v15, %v12770_v52  ;;  %v6027_v35 = vadd.f32 1e-05, %v5995_v57  ;;  %v6028_v41 = vadd.f32 1e-05, %v5996_v25  ;;  %7930 = vmatmul.mubr.msk.bf16.gmra.mxu0 %vm928_vm2, %v6181_v27 }
 0xeb3   : > { %v5953_v63 = vpop.xlane.xlu1 %5952  ;;  %v5956_v59 = vpop.xlane.xlu0 %5955  ;;  %v6157_v46 = vadd.f32 %v12891_v26, %v6119_v54  ;;  %v6084_v51 = vmul.f32 %v8540_v49, %v12773_v45  ;;  %v6158_v56 = vadd.f32 %v12891_v26, %v6120_v21 }
 0xeb4   : > { %8553 = vrsqrt.f32 %v6027_v35  ;;  %v5997_v61 = vmul.f32 0.03125, %v5953_v63  ;;  %v5998_v0 = vmul.f32 0.03125, %v5956_v59  ;;  %v6121_v50 = vmul.f32 %v12883_v9, %v6083_v5 }
 0xeb5   : > { %v8542_v20 = vpop.eup %8541  ;;  %8555 = vrsqrt.f32 %v6028_v41  ;;  %v6182_v52 = vpack.c.bf16 %v6157_v46, %v6156_v7  ;;  %v6122_v32 = vmul.f32 %v12883_v9, %v6084_v51 }
 0xeb6   : > { %v8544_v36 = vpop.eup %8543  ;;  %v6029_v29 = vadd.f32 1e-05, %v5997_v61  ;;  %v6030_v2 = vadd.f32 1e-05, %v5998_v0  ;;  %v6159_v40 = vadd.f32 %v12891_v26, %v6121_v50  ;;  %v6085_v12 = vmul.f32 %v8542_v20, %v12782_v1 }
 0xeb7   : > { %v6086_v48 = vmul.f32 %v8544_v36, %v12785_v6  ;;  %7933 = vmatprep.mubr.msk.bf16.mxu0 %vm928_vm2, %v6182_v52  ;;  %v5959_v45 = vpop.xlane.xlu1 %5958  ;;  %v5962_v4 = vpop.xlane.xlu0 %5961  ;;  %v6160_v21 = vadd.f32 %v12891_v26, %v6122_v32 }
 0xeb8   : > { %8557 = vrsqrt.f32 %v6029_v29  ;;  %v5999_v24 = vmul.f32 0.03125, %v5959_v45  ;;  %v6000_v58 = vmul.f32 0.03125, %v5962_v4  ;;  %v6183_v47 = vpack.c.bf16 %v6159_v40, %v6158_v56 }
 0xeb9   : > { %v8546_v28 = vpop.eup %8545  ;;  %8559 = vrsqrt.f32 %v6030_v2  ;;  %v6123_v19 = vmul.f32 %v12883_v9, %v6085_v12  ;;  %v6124_v57 = vmul.f32 %v12883_v9, %v6086_v48 }
 0xeba   : > { %v8548_v25 = vpop.eup %8547  ;;  %v6087_v1 = vmul.f32 %v8546_v28, %v12794_v34  ;;  %v6031_v6 = vadd.f32 1e-05, %v5999_v24  ;;  %v6032_v27 = vadd.f32 1e-05, %v6000_v58  ;;  %7934 = vmatmul.mubr.msk.bf16.gmra.mxu0 %vm928_vm2, %v6183_v47 }
 0xebb   : > { %v5965_v15 = vpop.xlane.xlu1 %5964  ;;  %v5968_v54 = vpop.xlane.xlu0 %5967  ;;  %v6161_v49 = vadd.f32 %v12891_v26, %v6123_v19  ;;  %v6088_v5 = vmul.f32 %v8548_v25, %v12797_v39  ;;  %v6162_v7 = vadd.f32 %v12891_v26, %v6124_v57 }
 0xebc   : > { %8561 = vrsqrt.f32 %v6031_v6  ;;  %v6001_v35 = vmul.f32 0.03125, %v5965_v15  ;;  %v6002_v41 = vmul.f32 0.03125, %v5968_v54  ;;  %v6125_v63 = vmul.f32 %v12883_v9, %v6087_v1 }
 0xebd   : > { %v8550_v59 = vpop.eup %8549  ;;  %8563 = vrsqrt.f32 %v6032_v27  ;;  %v6184_v34 = vpack.c.bf16 %v6161_v49, %v6160_v21  ;;  %v6126_v46 = vmul.f32 %v12883_v9, %v6088_v5 }
 0xebe   : > { %v8552_v51 = vpop.eup %8551  ;;  %v6033_v61 = vadd.f32 1e-05, %v6001_v35  ;;  %v6034_v0 = vadd.f32 1e-05, %v6002_v41  ;;  %v6163_v50 = vadd.f32 %v12891_v26, %v6125_v63  ;;  %v6089_v20 = vmul.f32 %v8550_v59, %v12806_v23 }
 0xebf   : > { %v6090_v39 = vmul.f32 %v8552_v51, %v12809_v38  ;;  %7937 = vmatprep.mubr.msk.bf16.mxu0 %vm928_vm2, %v6184_v34  ;;  %v5971_v52 = vpop.xlane.xlu1 %5970  ;;  %v6164_v40 = vadd.f32 %v12891_v26, %v6126_v46 }
 0xec0   : > { %8565 = vrsqrt.f32 %v6033_v61  ;;  %v6003_v56 = vmul.f32 0.03125, %v5971_v52  ;;  %v6185_v36 = vpack.c.bf16 %v6163_v50, %v6162_v7  ;;  %v6127_v29 = vmul.f32 %v12883_v9, %v6089_v20 }
 0xec1   : > { %v8554_v2 = vpop.eup %8553  ;;  %8567 = vrsqrt.f32 %v6034_v0  ;;  %v6128_v38 = vmul.f32 %v12883_v9, %v6090_v39 }
 0xec2   : > { %v8556_v12 = vpop.eup %8555  ;;  %v6091_v48 = vmul.f32 %v8554_v2, %v12818_v13  ;;  %v6035_v45 = vadd.f32 1e-05, %v6003_v56  ;;  %7938 = vmatmul.mubr.msk.bf16.gmra.mxu0 %vm928_vm2, %v6185_v36  ;;  %v6165_v23 = vadd.f32 %v12891_v26, %v6127_v29  ;;  %v8116_v36 = vld [vmem:[%s13390_s12 + $0x10] sm:$0xff]  }
 0xec3   : > { %v6092_v4 = vmul.f32 %v8556_v12, %v12821_v42  ;;  %v6166_v28 = vadd.f32 %v12891_v26, %v6128_v38 }
 0xec4   : > { %8569 = vrsqrt.f32 %v6035_v45  ;;  %v6186_v32 = vpack.c.bf16 %v6165_v23, %v6164_v40  ;;  %v6129_v24 = vmul.f32 %v12883_v9, %v6091_v48 }
 0xec5   : > { %v8558_v58 = vpop.eup %8557  ;;  %v6130_v57 = vmul.f32 %v12883_v9, %v6092_v4 }
 0xec6   : > { %v8560_v47 = vpop.eup %8559  ;;  %7941 = vmatprep.mubr.msk.bf16.mxu0 %vm928_vm2, %v6186_v32  ;;  %v6167_v13 = vadd.f32 %v12891_v26, %v6129_v24  ;;  %v6093_v19 = vmul.f32 %v8558_v58, %v12830_v3 }
 0xec7   : > { %v6094_v25 = vmul.f32 %v8560_v47, %v12833_v43  ;;  %v6168_v54 = vadd.f32 %v12891_v26, %v6130_v57 }
 0xec8   : > { %v6187_v1 = vpack.c.bf16 %v6167_v13, %v6166_v28  ;;  %v6131_v42 = vmul.f32 %v12883_v9, %v6093_v19 }
 0xec9   : > { %v8562_v6 = vpop.eup %8561  ;;  %v6132_v49 = vmul.f32 %v12883_v9, %v6094_v25 }
 0xeca   : > { %v8564_v27 = vpop.eup %8563  ;;  %v6095_v15 = vmul.f32 %v8562_v6, %v12842_v11  ;;  %7942 = vmatmul.mubr.msk.bf16.gmra.mxu0 %vm928_vm2, %v6187_v1  ;;  %v6169_v21 = vadd.f32 %v12891_v26, %v6131_v42 }
 0xecb   : > { %v6096_v3 = vmul.f32 %v8564_v27, %v12845_v60  ;;  %v6170_v63 = vadd.f32 %v12891_v26, %v6132_v49 }
 0xecc   : > { %v6188_v5 = vpack.c.bf16 %v6169_v21, %v6168_v54  ;;  %v6133_v43 = vmul.f32 %v12883_v9, %v6095_v15 }
 0xecd   : > { %v8566_v35 = vpop.eup %8565  ;;  %v6134_v34 = vmul.f32 %v12883_v9, %v6096_v3 }
 0xece   : > { %v8568_v41 = vpop.eup %8567  ;;  %7945 = vmatprep.mubr.msk.bf16.mxu0 %vm928_vm2, %v6188_v5  ;;  %v6171_v11 = vadd.f32 %v12891_v26, %v6133_v43  ;;  %v6097_v59 = vmul.f32 %v8566_v35, %v12857_v62 }
 0xecf   : > { %v6098_v7 = vmul.f32 %v8568_v41, %v12860_v30  ;;  %v6172_v0 = vadd.f32 %v12891_v26, %v6134_v34 }
 0xed0   : > { %v6189_v46 = vpack.c.bf16 %v6171_v11, %v6170_v63  ;;  %v6135_v60 = vmul.f32 %v12883_v9, %v6097_v59 }
 0xed1   : > { %v8570_v51 = vpop.eup %8569  ;;  %v6136_v20 = vmul.f32 %v12883_v9, %v6098_v7 }
 0xed2   : > { %v6099_v61 = vmul.f32 %v8570_v51, %v12872_v14  ;;  %7946 = vmatmul.mubr.msk.bf16.gmra.mxu0 %vm928_vm2, %v6189_v46  ;;  %v6173_v50 = vadd.f32 %v12891_v26, %v6135_v60  ;;  %v8115_v14 = vld [vmem:[%s13390_s12 + $0x18] sm:$0xff]  }
 0xed3   : > { %v6174_v30 = vadd.f32 %v12891_v26, %v6136_v20  ;;  %7953 = vmatprep.subr.bf16.mxu0 %v8115_v14 }
 0xed4   : > { %v6190_v39 = vpack.c.bf16 %v6173_v50, %v6172_v0  ;;  %v6137_v62 = vmul.f32 %v12883_v9, %v6099_v61  ;;  %7954 = vmatpush3.bf16.msra.mxu0 %v8115_v14  ;;  %v13010_v9 = vld [vmem:[%s13389_s11 + $0x1] ss:$0 sm:$0xff] }
 0xed5   : > { %7955 = vmatprep.subr.bf16.mxu0 %v8116_v36 }
 0xed6   : > { %7949 = vmatprep.mubr.msk.bf16.mxu0 %vm928_vm2, %v6190_v39  ;;  %v6175_v52 = vadd.f32 %v12891_v26, %v6137_v62 }
 0xed8   : > { %v6191_v56 = vpack.c.bf16 %v6175_v52, %v6174_v30  ;;  %7956 = vmatpush3.bf16.msra.mxu0 %v8116_v36 }
 0xeda   : > { %7950 = vmatmul.mubr.msk.bf16.gmra.mxu0 %vm928_vm2, %v6191_v56 }
 0xf62   : > { %v7923_v26 = vpop.f32.mrf.mxu0 }
 0xf63   : > { %v6308_v29 = vadd.f32 %v7923_v26, %v13010_v9 }
 0xf64   : > { %v6299_v2 = vpop.f32.mrf.mxu0 }
 0xf65   : > { %v6460_v40 = vmul.f32 0.044715, %v6308_v29  ;;  %v6300_v12 = vadd.f32 %v13010_v9, %v6299_v2 }
 0xf66   : > { %v7924_v48 = vpop.f32.mrf.mxu0 }
 0xf67   : > { %v6492_v45 = vmul.f32 %v6460_v40, %v6308_v29  ;;  %v6458_v23 = vmul.f32 0.044715, %v6300_v12  ;;  %v6311_v38 = vadd.f32 %v7924_v48, %v13010_v9 }
 0xf68   : > { %v6302_v4 = vpop.f32.mrf.mxu0 }
 0xf69   : > { %v6524_v32 = vmul.f32 %v6492_v45, %v6308_v29  ;;  %v6490_v24 = vmul.f32 %v6458_v23, %v6300_v12  ;;  %v6461_v58 = vmul.f32 0.044715, %v6311_v38  ;;  %v6303_v47 = vadd.f32 %v13010_v9, %v6302_v4 }
 0xf6a   : > { %v7927_v28 = vpop.f32.mrf.mxu0 }
 0xf6b   : > { %v6556_v13 = vadd.f32 %v6524_v32, %v6308_v29  ;;  %v6493_v19 = vmul.f32 %v6461_v58, %v6311_v38  ;;  %v6324_v57 = vadd.f32 %v7927_v28, %v13010_v9  ;;  %v6522_v25 = vmul.f32 %v6490_v24, %v6300_v12 }
 0xf6c   : > { %v6459_v1 = vmul.f32 0.044715, %v6303_v47  ;;  %v6315_v42 = vpop.f32.mrf.mxu0  ;;  %v13023_v32 = vmul.f32 0.5, %v6308_v29  ;;  %v13025_v24 = vmul.f32 0.5, %v6311_v38 }
 0xf6d   : > { %v6588_v6 = vmul.f32 0.7978846, %v6556_v13  ;;  %v6525_v27 = vmul.f32 %v6493_v19, %v6311_v38  ;;  %v6464_v54 = vmul.f32 0.044715, %v6324_v57  ;;  %v6316_v21 = vadd.f32 %v13010_v9, %v6315_v42 }
 0xf6e   : > { %v6491_v15 = vmul.f32 %v6459_v1, %v6303_v47  ;;  %v7928_v49 = vpop.f32.mrf.mxu0  ;;  %v6554_v43 = vadd.f32 %v6522_v25, %v6300_v12  ;;  %v13027_v13 = vmul.f32 0.5, %v6300_v12  ;;  %v13029_v1 = vmul.f32 0.5, %v6303_v47 }
 0xf6f   : > { %v6557_v3 = vadd.f32 %v6525_v27, %v6311_v38  ;;  %v6327_v5 = vadd.f32 %v7928_v49, %v13010_v9  ;;  %v6496_v41 = vmul.f32 %v6464_v54, %v6324_v57  ;;  %v6462_v63 = vmul.f32 0.044715, %v6316_v21 }
 0xf70   : > { %v6523_v35 = vmul.f32 %v6491_v15, %v6303_v47  ;;  %v6318_v11 = vpop.f32.mrf.mxu0  ;;  %8571 = vtanh.f32 %v6588_v6  ;;  %v6586_v20 = vmul.f32 0.7978846, %v6554_v43  ;;  %v13034_v29 = vmul.f32 0.5, %v6324_v57 }
 0xf71   : > { %v6589_v59 = vmul.f32 0.7978846, %v6557_v3  ;;  %v6465_v34 = vmul.f32 0.044715, %v6327_v5  ;;  %v6528_v46 = vmul.f32 %v6496_v41, %v6324_v57  ;;  %v6494_v60 = vmul.f32 %v6462_v63, %v6316_v21 }
 0xf72   : > { %v6555_v7 = vadd.f32 %v6523_v35, %v6303_v47  ;;  %v6319_v51 = vadd.f32 %v13010_v9, %v6318_v11  ;;  %v7931_v61 = vpop.f32.mrf.mxu0  ;;  %v13040_v41 = vmul.f32 0.5, %v6327_v5 }
 0xf73   : > { %v6497_v0 = vmul.f32 %v6465_v34, %v6327_v5  ;;  %v6340_v50 = vadd.f32 %v7931_v61, %v13010_v9  ;;  %v6526_v39 = vmul.f32 %v6494_v60, %v6316_v21  ;;  %8573 = vtanh.f32 %v6589_v59 }
 0xf74   : > { %v6463_v62 = vmul.f32 0.044715, %v6319_v51  ;;  %v6331_v30 = vpop.f32.mrf.mxu0  ;;  %v6587_v36 = vmul.f32 0.7978846, %v6555_v7  ;;  %v6560_v26 = vadd.f32 %v6528_v46, %v6324_v57  ;;  %8575 = vtanh.f32 %v6586_v20 }
 0xf75   : > { %v6529_v52 = vmul.f32 %v6497_v0, %v6327_v5  ;;  %v6468_v56 = vmul.f32 0.044715, %v6340_v50  ;;  %v6332_v14 = vadd.f32 %v13010_v9, %v6331_v30  ;;  %v6558_v48 = vadd.f32 %v6526_v39, %v6316_v21 }
 0xf76   : > { %v6495_v2 = vmul.f32 %v6463_v62, %v6319_v51  ;;  %v7932_v40 = vpop.f32.mrf.mxu0  ;;  %v6592_v42 = vmul.f32 0.7978846, %v6560_v26  ;;  %8577 = vtanh.f32 %v6587_v36  ;;  %v13042_v11 = vmul.f32 0.5, %v6340_v50 }
 0xf77   : > { %v6500_v45 = vmul.f32 %v6468_v56, %v6340_v50  ;;  %v6466_v23 = vmul.f32 0.044715, %v6332_v14  ;;  %v6343_v4 = vadd.f32 %v7932_v40, %v13010_v9  ;;  %v6561_v19 = vadd.f32 %v6529_v52, %v6327_v5 }
 0xf78   : > { %v6527_v58 = vmul.f32 %v6495_v2, %v6319_v51  ;;  %v6334_v28 = vpop.f32.mrf.mxu0  ;;  %v6590_v38 = vmul.f32 0.7978846, %v6558_v48  ;;  %v13044_v59 = vmul.f32 0.5, %v6316_v21  ;;  %8579 = vtanh.f32 %v6592_v42 }
 0xf79   : > { %v6498_v25 = vmul.f32 %v6466_v23, %v6332_v14  ;;  %v6532_v6 = vmul.f32 %v6500_v45, %v6340_v50  ;;  %v6469_v27 = vmul.f32 0.044715, %v6343_v4  ;;  %v13032_v15 = vadd.f32 %v13010_v9, %v6334_v28 }
 0xf7a   : > { %v7935_v54 = vpop.f32.mrf.mxu0  ;;  %v6559_v12 = vadd.f32 %v6527_v58, %v6319_v51  ;;  %v6593_v63 = vmul.f32 0.7978846, %v6561_v19  ;;  %v13047_v61 = vmul.f32 0.5, %v6343_v4  ;;  %v13053_v5 = vmul.f32 0.5, %v6319_v51 }
 0xf7b   : > { %v13037_v49 = vadd.f32 %v7935_v54, %v13010_v9  ;;  %v6530_v3 = vmul.f32 %v6498_v25, %v6332_v14  ;;  %v6501_v43 = vmul.f32 %v6469_v27, %v6343_v4  ;;  %v6467_v47 = vmul.f32 0.044715, %v13032_v15 }
 0xf7c   : > { %v6347_v35 = vpop.f32.mrf.mxu0  ;;  %v6564_v57 = vadd.f32 %v6532_v6, %v6340_v50  ;;  %8581 = vtanh.f32 %v6590_v38  ;;  %v6591_v39 = vmul.f32 0.7978846, %v6559_v12  ;;  %v13061_v48 = vmul.f32 0.5, %v6332_v14 }
 0xf7d   : > { %v8572_v34 = vpop.eup %8571  ;;  %v6533_v7 = vmul.f32 %v6501_v43, %v6343_v4  ;;  %v6472_v46 = vmul.f32 0.044715, %v13037_v49  ;;  %v6499_v0 = vmul.f32 %v6467_v47, %v13032_v15  ;;  %v13051_v20 = vadd.f32 %v13010_v9, %v6347_v35 }
 0xf7e   : > { %v7936_v60 = vpop.f32.mrf.mxu0  ;;  %v6562_v21 = vadd.f32 %v6530_v3, %v6332_v14  ;;  %8583 = vtanh.f32 %v6593_v63  ;;  %v6652_v26 = vadd.f32 1.0, %v8572_v34  ;;  %v6596_v2 = vmul.f32 0.7978846, %v6564_v57 }
 0xf7f   : > { %v6359_v62 = vadd.f32 %v7936_v60, %v13010_v9  ;;  %v6504_v50 = vmul.f32 %v6472_v46, %v13037_v49  ;;  %v6470_v52 = vmul.f32 0.044715, %v13051_v20  ;;  %v6565_v40 = vadd.f32 %v6533_v7, %v6343_v4 }
 0xf80   : > { %v6350_v30 = vpop.f32.mrf.mxu0  ;;  %v8574_v36 = vpop.eup %8573  ;;  %v6531_v45 = vmul.f32 %v6499_v0, %v13032_v15  ;;  %8585 = vtanh.f32 %v6591_v39  ;;  %v6594_v19 = vmul.f32 0.7978846, %v6562_v21  ;;  %v13067_v25 = vmul.f32 0.5, %v13037_v49 }
 0xf81   : > { %v13059_v56 = vadd.f32 %v13010_v9, %v6350_v30  ;;  %v6502_v23 = vmul.f32 %v6470_v52, %v13051_v20  ;;  %v6473_v58 = vmul.f32 0.044715, %v6359_v62  ;;  %v6653_v4 = vadd.f32 1.0, %v8574_v36  ;;  %v8576_v38 = vpop.eup %8575 }
 0xf82   : > { %v7939_v51 = vpop.f32.mrf.mxu0  ;;  %v6536_v14 = vmul.f32 %v6504_v50, %v13037_v49  ;;  %v13075_v12 = vmul.f32 %v6652_v26, %v13023_v32  ;;  %8587 = vtanh.f32 %v6596_v2  ;;  %v6597_v35 = vmul.f32 0.7978846, %v6565_v40 }
 0xf83   : > { %v6471_v28 = vmul.f32 0.044715, %v13059_v56  ;;  %v13070_v42 = vadd.f32 %v7939_v51, %v13010_v9  ;;  %v6534_v27 = vmul.f32 %v6502_v23, %v13051_v20  ;;  %v6505_v54 = vmul.f32 %v6473_v58, %v6359_v62  ;;  %v8578_v7 = vpop.eup %8577 }
 0xf84   : > { %v6363_v6 = vpop.f32.mrf.mxu0  ;;  %v6563_v63 = vadd.f32 %v6531_v45, %v13032_v15  ;;  %8589 = vtanh.f32 %v6594_v19  ;;  %v13083_v46 = vmul.f32 0.5, %v6359_v62  ;;  %v6685_v39 = vmul.f32 %v6653_v4, %v13025_v24 }
 0xf85   : > { %v6503_v3 = vmul.f32 %v6471_v28, %v13059_v56  ;;  %v6476_v43 = vmul.f32 0.044715, %v13070_v42  ;;  %v6537_v34 = vmul.f32 %v6505_v54, %v6359_v62  ;;  %v13081_v57 = vadd.f32 %v13010_v9, %v6363_v6  ;;  %v13098_v51 = vpop.eup %8579 }
 0xf86   : > { %v7940_v47 = vpop.f32.mrf.mxu0  ;;  %v6568_v21 = vadd.f32 %v6536_v14, %v13037_v49  ;;  %v6566_v30 = vadd.f32 %v6534_v27, %v13051_v20  ;;  %8591 = vtanh.f32 %v6597_v35  ;;  %v6595_v45 = vmul.f32 0.7978846, %v6563_v63 }
 0xf87   : > { %v6508_v32 = vmul.f32 %v6476_v43, %v13070_v42  ;;  %v13087_v60 = vadd.f32 %v7940_v47, %v13010_v9  ;;  %v6474_v50 = vmul.f32 0.044715, %v13081_v57  ;;  %v6569_v52 = vadd.f32 %v6537_v34, %v6359_v62 }
 0xf88   : > { %v6366_v0 = vpop.f32.mrf.mxu0  ;;  %v6535_v36 = vmul.f32 %v6503_v3, %v13059_v56  ;;  %v6650_v49 = vadd.f32 1.0, %v8576_v38  ;;  %v6651_v28 = vadd.f32 1.0, %v8578_v7  ;;  %v6715_v4 = vpack.c.bf16 %v6685_v39, %v13075_v12 }
 0xf89   : > { %v6477_v26 = vmul.f32 0.044715, %v13087_v60  ;;  %v13096_v2 = vadd.f32 %v13010_v9, %v6366_v0  ;;  %v6506_v24 = vmul.f32 %v6474_v50, %v13081_v57  ;;  %v6540_v23 = vmul.f32 %v6508_v32, %v13070_v42  ;;  %v8582_v6 = vpop.eup %8581 }
 0xf8a   : > { %v7943_v40 = vpop.f32.mrf.mxu0  ;;  %v6600_v14 = vmul.f32 0.7978846, %v6568_v21  ;;  %v6598_v38 = vmul.f32 0.7978846, %v6566_v30  ;;  %v6601_v43 = vmul.f32 0.7978846, %v6569_v52  ;;  %v6567_v47 = vadd.f32 %v6535_v36, %v13059_v56 }
 0xf8b   : > { %v6509_v58 = vmul.f32 %v6477_v26, %v13087_v60  ;;  %v6475_v62 = vmul.f32 0.044715, %v13096_v2  ;;  %v6538_v27 = vmul.f32 %v6506_v24, %v13081_v57  ;;  %v13107_v54 = vadd.f32 %v7943_v40, %v13010_v9  ;;  %v13109_v3 = vpop.eup %8583 }
 0xf8c   : > { %v6379_v19 = vpop.f32.mrf.mxu0  ;;  %v6682_v7 = vmul.f32 %v6650_v49, %v13027_v13  ;;  %v6683_v12 = vmul.f32 %v6651_v28, %v13029_v1  ;;  %8593 = vtanh.f32 %v6595_v45  ;;  %v6572_v0 = vadd.f32 %v6540_v23, %v13070_v42 }
 0xf8d   : > { %v6507_v35 = vmul.f32 %v6475_v62, %v13096_v2  ;;  %v6541_v34 = vmul.f32 %v6509_v58, %v13087_v60  ;;  %v6480_v32 = vmul.f32 0.044715, %v13107_v54  ;;  %v13120_v21 = vadd.f32 %v13010_v9, %v6379_v19  ;;  %v8586_v50 = vpop.eup %8585 }
 0xf8e   : > { %v7944_v63 = vpop.f32.mrf.mxu0  ;;  %8595 = vtanh.f32 %v6600_v14  ;;  %v6570_v52 = vadd.f32 %v6538_v27, %v13081_v57  ;;  %v6714_v36 = vpack.c.bf16 %v6683_v12, %v6682_v7  ;;  %v6599_v49 = vmul.f32 0.7978846, %v6567_v47 }
 0xf8f   : > { %v6539_v39 = vmul.f32 %v6507_v35, %v13096_v2  ;;  %v13124_v13 = vadd.f32 %v7944_v63, %v13010_v9  ;;  %8597 = vtanh.f32 %v6598_v38  ;;  %v6512_v1 = vmul.f32 %v6480_v32, %v13107_v54  ;;  %v13131_v24 = vpop.eup %8587 }
 0xf90   : > { %v6382_v30 = vpop.f32.mrf.mxu0  ;;  %v6478_v26 = vmul.f32 0.044715, %v13120_v21  ;;  %8599 = vtanh.f32 %v6601_v43  ;;  %v6573_v23 = vadd.f32 %v6541_v34, %v13087_v60  ;;  %7957 = vmatprep.mubr.msk.bf16.mxu0 %vm928_vm2, %v6714_v36  ;;  %v6604_v62 = vmul.f32 0.7978846, %v6572_v0 }
 0xf91   : > { %v13129_v40 = vadd.f32 %v13010_v9, %v6382_v30  ;;  %v6481_v58 = vmul.f32 0.044715, %v13124_v13  ;;  %v6571_v28 = vadd.f32 %v6539_v39, %v13096_v2  ;;  %7958 = vmatmul.mubr.msk.bf16.vlgmr.msra.gmra.mxu0 %vm928_vm2, %v6715_v4  ;;  %v8590_v38 = vpop.eup %8589  ;;  %v6602_v35 = vmul.f32 0.7978846, %v6570_v52 }
 0xf92   : > { %v7947_v45 = vpop.f32.mrf.mxu0  ;;  %v6510_v19 = vmul.f32 %v6478_v26, %v13120_v21  ;;  %v6654_v47 = vadd.f32 1.0, %v8582_v6  ;;  %v6655_v63 = vadd.f32 1.0, %v8586_v50  ;;  %v6544_v34 = vmul.f32 %v6512_v1, %v13107_v54 }
 0xf93   : > { %v6479_v14 = vmul.f32 0.044715, %v13129_v40  ;;  %v6513_v43 = vmul.f32 %v6481_v58, %v13124_v13  ;;  %v13145_v32 = vadd.f32 %v7947_v45, %v13010_v9  ;;  %8601 = vtanh.f32 %v6599_v49  ;;  %v8592_v52 = vpop.eup %8591 }
 0xf94   : > { %v6395_v27 = vpop.f32.mrf.mxu0  ;;  %v6542_v7 = vmul.f32 %v6510_v19, %v13120_v21  ;;  %v6605_v0 = vmul.f32 0.7978846, %v6573_v23  ;;  %v6686_v39 = vmul.f32 %v6654_v47, %v13044_v59  ;;  %v6687_v30 = vmul.f32 %v6655_v63, %v13053_v5 }
 0xf95   : > { %v6511_v12 = vmul.f32 %v6479_v14, %v13129_v40  ;;  %8603 = vtanh.f32 %v6604_v62  ;;  %v6603_v6 = vmul.f32 0.7978846, %v6571_v28  ;;  %v6484_v36 = vmul.f32 0.044715, %v13145_v32 }
 0xf96   : > { %v7948_v4 = vpop.f32.mrf.mxu0  ;;  %v6574_v26 = vadd.f32 %v6542_v7, %v13120_v21  ;;  %v6545_v45 = vmul.f32 %v6513_v43, %v13124_v13  ;;  %v6716_v58 = vpack.c.bf16 %v6687_v30, %v6686_v39  ;;  %v6656_v49 = vadd.f32 1.0, %v13098_v51 }
 0xf97   : > { %v6543_v50 = vmul.f32 %v6511_v12, %v13129_v40  ;;  %8605 = vtanh.f32 %v6602_v35  ;;  %v6576_v59 = vadd.f32 %v6544_v34, %v13107_v54  ;;  %v6657_v23 = vadd.f32 1.0, %v13109_v3 }
 0xf98   : > { %v6398_v1 = vpop.f32.mrf.mxu0  ;;  %8607 = vtanh.f32 %v6605_v0  ;;  %7961 = vmatprep.mubr.msk.bf16.mxu0 %vm928_vm2, %v6716_v58  ;;  %v6516_v28 = vmul.f32 %v6484_v36, %v13145_v32  ;;  %v13160_v19 = vadd.f32 %v13010_v9, %v6395_v27  ;;  %v13163_v14 = vadd.f32 %v7948_v4, %v13010_v9 }
 0xf99   : > { %v6575_v5 = vadd.f32 %v6543_v50, %v13129_v40  ;;  %v13166_v51 = vmul.f32 0.5, %v13070_v42  ;;  %8609 = vtanh.f32 %v6603_v6  ;;  %v6688_v35 = vmul.f32 %v6656_v49, %v13034_v29  ;;  %v8594_v47 = vpop.eup %8593 }
 0xf9a   : > { %v7951_v62 = vpop.f32.mrf.mxu0  ;;  %v6689_v3 = vmul.f32 %v6657_v23, %v13040_v41  ;;  %v6606_v63 = vmul.f32 0.7978846, %v6574_v26  ;;  %v6577_v34 = vadd.f32 %v6545_v45, %v13124_v13  ;;  %v6482_v7 = vmul.f32 0.044715, %v13160_v19 }
 0xf9b   : > { %v6485_v27 = vmul.f32 0.044715, %v13163_v14  ;;  %v13173_v12 = vpop.eup %8595  ;;  %v6608_v4 = vmul.f32 0.7978846, %v6576_v59  ;;  %v6607_v0 = vmul.f32 0.7978846, %v6575_v5  ;;  %v13176_v39 = vadd.f32 %v13010_v9, %v6398_v1 }
 0xf9c   : > { %v6411_v43 = vpop.f32.mrf.mxu0  ;;  %v6717_v42 = vpack.c.bf16 %v6689_v3, %v6688_v35  ;;  %v8598_v29 = vpop.eup %8597  ;;  %v6548_v41 = vmul.f32 %v6516_v28, %v13145_v32  ;;  %v6514_v30 = vmul.f32 %v6482_v7, %v13160_v19  ;;  %v6658_v50 = vadd.f32 1.0, %v8590_v38 }
 0xf9d   : > { %v6517_v6 = vmul.f32 %v6485_v27, %v13163_v14  ;;  %v8600_v26 = vpop.eup %8599  ;;  %v6483_v45 = vmul.f32 0.044715, %v13176_v39  ;;  %v6435_v58 = vmul.f32 0.5, %v13032_v15  ;;  %v6659_v49 = vadd.f32 1.0, %v8594_v47 }
 0xf9e   : > { %v7952_v36 = vpop.f32.mrf.mxu0  ;;  %7962 = vmatmul.mubr.msk.bf16.gmra.mxu0 %vm928_vm2, %v6717_v42  ;;  %v13185_v1 = vadd.f32 %v7951_v62, %v13010_v9  ;;  %8611 = vtanh.f32 %v6606_v63  ;;  %v6609_v59 = vmul.f32 0.7978846, %v6577_v34  ;;  %v6546_v5 = vmul.f32 %v6514_v30, %v13160_v19 }
 0xf9f   : > { %v6660_v23 = vadd.f32 1.0, %v13131_v24  ;;  %8613 = vtanh.f32 %v6607_v0  ;;  %v6515_v38 = vmul.f32 %v6483_v45, %v13176_v39  ;;  %v6690_v28 = vmul.f32 %v6658_v50, %v13061_v48 }
 0xfa0   : > { %v6691_v35 = vmul.f32 %v6659_v49, %v6435_v58  ;;  %v6580_v3 = vadd.f32 %v6548_v41, %v13145_v32  ;;  %v6578_v15 = vadd.f32 %v6546_v5, %v13160_v19  ;;  %v6549_v47 = vmul.f32 %v6517_v6, %v13163_v14  ;;  %v6414_v7 = vpop.f32.mrf.mxu0  ;;  %v8602_v63 = vpop.eup %8601 }
 0xfa1   : > { %v6661_v62 = vadd.f32 1.0, %v8592_v52  ;;  %v6547_v34 = vmul.f32 %v6515_v38, %v13176_v39  ;;  %v6488_v24 = vmul.f32 0.044715, %v13185_v1  ;;  %v13197_v0 = vadd.f32 %v13010_v9, %v6411_v43 }
 0xfa2   : > { %v6718_v27 = vpack.c.bf16 %v6691_v35, %v6690_v28  ;;  %v13199_v42 = vpop.eup %8603  ;;  %8615 = vtanh.f32 %v6608_v4  ;;  %v6610_v48 = vmul.f32 0.7978846, %v6578_v15  ;;  %v6692_v41 = vmul.f32 %v6660_v23, %v13042_v11 }
 0xfa3   : > { %v6693_v30 = vmul.f32 %v6661_v62, %v13047_v61  ;;  %v6579_v52 = vadd.f32 %v6547_v34, %v13176_v39  ;;  %v6486_v6 = vmul.f32 0.044715, %v13197_v0  ;;  %v13207_v50 = vadd.f32 %v7952_v36, %v13010_v9 }
 0xfa4   : > { %7965 = vmatprep.mubr.msk.bf16.mxu0 %vm928_vm2, %v6718_v27  ;;  %v13210_v43 = vadd.f32 %v13010_v9, %v6414_v7  ;;  %v8606_v45 = vpop.eup %8605  ;;  %8617 = vtanh.f32 %v6609_v59  ;;  %v6612_v4 = vmul.f32 0.7978846, %v6580_v3  ;;  %v6581_v58 = vadd.f32 %v6549_v47, %v13163_v14 }
 0xfa5   : > { %v6719_v11 = vpack.c.bf16 %v6693_v30, %v6692_v41  ;;  %v8608_v49 = vpop.eup %8607  ;;  %8619 = vtanh.f32 %v6610_v48  ;;  %v6611_v61 = vmul.f32 0.7978846, %v6579_v52  ;;  %v6520_v5 = vmul.f32 %v6488_v24, %v13185_v1 }
 0xfa6   : > { %v6518_v23 = vmul.f32 %v6486_v6, %v13197_v0  ;;  %v8610_v38 = vpop.eup %8609  ;;  %v6489_v36 = vmul.f32 0.044715, %v13207_v50  ;;  %v6487_v9 = vmul.f32 0.044715, %v13210_v43  ;;  %v6438_v59 = vmul.f32 0.5, %v13051_v20 }
 0xfa7   : > { %7966 = vmatmul.mubr.msk.bf16.gmra.mxu0 %vm928_vm2, %v6719_v11  ;;  %v6439_v28 = vmul.f32 0.5, %v13059_v56  ;;  %8621 = vtanh.f32 %v6611_v61  ;;  %v6662_v3 = vadd.f32 1.0, %v8598_v29  ;;  %v6663_v15 = vadd.f32 1.0, %v8602_v63 }
 0xfa8   : > { %v6550_v35 = vmul.f32 %v6518_v23, %v13197_v0  ;;  %v6613_v47 = vmul.f32 0.7978846, %v6581_v58  ;;  %v6521_v62 = vmul.f32 %v6489_v36, %v13207_v50  ;;  %v6519_v7 = vmul.f32 %v6487_v9, %v13210_v43 }
 0xfa9   : > { %v6664_v34 = vadd.f32 1.0, %v13173_v12  ;;  %v6694_v24 = vmul.f32 %v6662_v3, %v6438_v59  ;;  %v6695_v48 = vmul.f32 %v6663_v15, %v6439_v28  ;;  %v6665_v41 = vadd.f32 1.0, %v8600_v26 }
 0xfaa   : > { %v6582_v27 = vadd.f32 %v6550_v35, %v13197_v0  ;;  %8623 = vtanh.f32 %v6612_v4  ;;  %v6552_v20 = vmul.f32 %v6520_v5, %v13185_v1  ;;  %v6553_v56 = vmul.f32 %v6521_v62, %v13207_v50 }
 0xfab   : > { %v6551_v29 = vmul.f32 %v6519_v7, %v13210_v43  ;;  %v8612_v63 = vpop.eup %8611  ;;  %v6720_v52 = vpack.c.bf16 %v6695_v48, %v6694_v24  ;;  %v6696_v6 = vmul.f32 %v6664_v34, %v13067_v25  ;;  %v6697_v58 = vmul.f32 %v6665_v41, %v13083_v46 }
 0xfac   : > { %v6614_v30 = vmul.f32 0.7978846, %v6582_v27  ;;  %v8614_v12 = vpop.eup %8613  ;;  %8625 = vtanh.f32 %v6613_v47  ;;  %v6442_v26 = vmul.f32 0.5, %v13081_v57  ;;  %v6666_v4 = vadd.f32 1.0, %v8606_v45 }
 0xfad   : > { %v6583_v11 = vadd.f32 %v6551_v29, %v13210_v43  ;;  %v6585_v61 = vadd.f32 %v6553_v56, %v13207_v50  ;;  %7969 = vmatprep.mubr.msk.bf16.mxu0 %vm928_vm2, %v6720_v52  ;;  %v6721_v5 = vpack.c.bf16 %v6697_v58, %v6696_v6  ;;  %v6443_v23 = vmul.f32 0.5, %v13096_v2 }
 0xfae   : > { %v6667_v36 = vadd.f32 1.0, %v8610_v38  ;;  %v6445_v9 = vmul.f32 0.5, %v13087_v60  ;;  %8627 = vtanh.f32 %v6614_v30  ;;  %v6669_v46 = vadd.f32 1.0, %v8608_v49 }
 0xfaf   : > { %v6615_v25 = vmul.f32 0.7978846, %v6583_v11  ;;  %v8616_v59 = vpop.eup %8615  ;;  %v6584_v28 = vadd.f32 %v6552_v20, %v13185_v1  ;;  %7970 = vmatmul.mubr.msk.bf16.gmra.mxu0 %vm928_vm2, %v6721_v5  ;;  %v6698_v57 = vmul.f32 %v6666_v4, %v6442_v26  ;;  %v6668_v35 = vadd.f32 1.0, %v13199_v42 }
 0xfb0   : > { %v6699_v45 = vmul.f32 %v6667_v36, %v6443_v23  ;;  %v6446_v3 = vmul.f32 0.5, %v13120_v21  ;;  %v6447_v15 = vmul.f32 0.5, %v13129_v40  ;;  %v6670_v2 = vadd.f32 1.0, %v8612_v63 }
 0xfb1   : > { %v6671_v38 = vadd.f32 1.0, %v8614_v12  ;;  %v8618_v47 = vpop.eup %8617  ;;  %v6617_v60 = vmul.f32 0.7978846, %v6585_v61  ;;  %8629 = vtanh.f32 %v6615_v25  ;;  %v6701_v49 = vmul.f32 %v6669_v46, %v6445_v9 }
 0xfb2   : > { %v6722_v62 = vpack.c.bf16 %v6699_v45, %v6698_v57  ;;  %v8620_v7 = vpop.eup %8619  ;;  %v6702_v34 = vmul.f32 %v6670_v2, %v6446_v3  ;;  %v6616_v24 = vmul.f32 0.7978846, %v6584_v28  ;;  %v6700_v48 = vmul.f32 %v6668_v35, %v13166_v51 }
 0xfb3   : > { %v6703_v27 = vmul.f32 %v6671_v38, %v6447_v15  ;;  %8631 = vtanh.f32 %v6617_v60  ;;  %v6673_v40 = vadd.f32 1.0, %v8618_v47  ;;  %v6451_v56 = vmul.f32 0.5, %v13176_v39 }
 0xfb4   : > { %7973 = vmatprep.mubr.msk.bf16.mxu0 %vm928_vm2, %v6722_v62  ;;  %v8622_v42 = vpop.eup %8621  ;;  %v6723_v21 = vpack.c.bf16 %v6701_v49, %v6700_v48  ;;  %v6674_v29 = vadd.f32 1.0, %v8620_v7  ;;  %v6449_v30 = vmul.f32 0.5, %v13124_v13  ;;  %8633 = vtanh.f32 %v6616_v24  ;;  %v8117_v49 = vld [vmem:[%s13392_s14 + $0x8] sm:$0xff]  }
 0xfb5   : > { %v6724_v41 = vpack.c.bf16 %v6703_v27, %v6702_v34  ;;  %v6675_v20 = vadd.f32 1.0, %v8622_v42  ;;  %v6672_v52 = vadd.f32 1.0, %v8616_v59  ;;  %v6450_v51 = vmul.f32 0.5, %v13160_v19  ;;  %v13269_v34 = vld [vmem:[%s13391_s13 + $0x1] ss:$0 sm:$0xff] }
 0xfb6   : > { %v6448_v12 = vmul.f32 0.5, %v13107_v54  ;;  %v6705_v11 = vmul.f32 %v6673_v40, %v6449_v30  ;;  %v6453_v9 = vmul.f32 0.5, %v13163_v14  ;;  %v6455_v19 = vmul.f32 0.5, %v13210_v43 }
 0xfb7   : > { %v8624_v63 = vpop.eup %8623  ;;  %7974 = vmatmul.mubr.msk.bf16.gmra.mxu0 %vm928_vm2, %v6723_v21  ;;  %v6707_v6 = vmul.f32 %v6675_v20, %v6451_v56  ;;  %v6706_v26 = vmul.f32 %v6674_v29, %v6450_v51  ;;  %v6454_v54 = vmul.f32 0.5, %v13197_v0  ;;  %v6452_v59 = vmul.f32 0.5, %v13145_v32 }
 0xfb8   : > { %7977 = vmatprep.mubr.msk.bf16.mxu0 %vm928_vm2, %v6724_v41  ;;  %v6704_v39 = vmul.f32 %v6672_v52, %v6448_v12  ;;  %v6676_v25 = vadd.f32 1.0, %v8624_v63  ;;  %v6457_v47 = vmul.f32 0.5, %v13207_v50  ;;  %v6456_v0 = vmul.f32 0.5, %v13185_v1  ;;  %v8118_v50 = vld [vmem:[%s13392_s14] sm:$0xff]  }
 0xfb9   : > { %v8626_v58 = vpop.eup %8625  ;;  %v6726_v61 = vpack.c.bf16 %v6707_v6, %v6706_v26  ;;  %v8712_v7 = vmov 0.0  }
 0xfba   : > { %v6725_v5 = vpack.c.bf16 %v6705_v11, %v6704_v39  ;;  %v6677_v23 = vadd.f32 1.0, %v8626_v58  ;;  %v6708_v3 = vmul.f32 %v6676_v25, %v6452_v59  ;;  %7989 = vmatprep.subr.bf16.mxu1 %v8712_v7  ;;  %7993 = vmatprep.mubr.msk.bf16.mxu1 %vm8713_vm3, %v8712_v7 }
 0xfbb   : > { %v8628_v4 = vpop.eup %8627  ;;  %7990 = vmatpush3.bf16.msra.mxu1 %v8117_v49 }
 0xfbc   : > { %v6678_v36 = vadd.f32 1.0, %v8628_v4  ;;  %v6709_v28 = vmul.f32 %v6677_v23, %v6453_v9  ;;  %7991 = vmatprep.subr.bf16.mxu1 %v8712_v7 }
 0xfbe   : > { %v8630_v13 = vpop.eup %8629  ;;  %v6710_v35 = vmul.f32 %v6678_v36, %v6454_v54  ;;  %v6727_v14 = vpack.c.bf16 %v6709_v28, %v6708_v3 }
 0xfbf   : > { %7978 = vmatmul.mubr.msk.bf16.gmra.mxu0 %vm928_vm2, %v6725_v5  ;;  %v6679_v46 = vadd.f32 1.0, %v8630_v13  ;;  %7992 = vmatpush3.bf16.msra.mxu1 %v8118_v50 }
 0xfc0   : > { %7981 = vmatprep.mubr.msk.bf16.mxu0 %vm928_vm2, %v6726_v61  ;;  %v8632_v45 = vpop.eup %8631 }
 0xfc1   : > { %v6711_v57 = vmul.f32 %v6679_v46, %v6455_v19  ;;  %v8634_v15 = vpop.eup %8633  ;;  %v6681_v38 = vadd.f32 1.0, %v8632_v45 }
 0xfc2   : > { %v6680_v43 = vadd.f32 1.0, %v8634_v15 }
 0xfc3   : > { %v6728_v2 = vpack.c.bf16 %v6711_v57, %v6710_v35  ;;  %v6713_v60 = vmul.f32 %v6681_v38, %v6457_v47 }
 0xfc4   : > { %v6712_v32 = vmul.f32 %v6680_v43, %v6456_v0 }
 0xfc6   : > { %v6729_v62 = vpack.c.bf16 %v6713_v60, %v6712_v32 }
 0xfc7   : > { %7982 = vmatmul.mubr.msk.bf16.gmra.mxu0 %vm928_vm2, %v6727_v14 }
 0xfc8   : > { %7985 = vmatprep.mubr.msk.bf16.mxu0 %vm928_vm2, %v6728_v2 }
 0xfcf   : > { %7986 = vmatmul.mubr.msk.bf16.gmra.mxu0 %vm928_vm2, %v6729_v62 }
0x1051   : > { %v7959_v1 = vpop.f32.mrf.mxu0 }
0x1052   : > { %v6846_v42 = vadd.f32 %v7959_v1, %v13269_v34 }
0x1053   : > { %v6837_v27 = vpop.f32.mrf.mxu0 }
0x1054   : > { %v6838_v24 = vadd.f32 %v13269_v34, %v6837_v27  ;;  %v6966_v56 = vadd.f32 %v6846_v42, %v12503_v37 }
0x1055   : > { %v7960_v48 = vpop.f32.mrf.mxu0 }
0x1056   : > { %v6964_v21 = vadd.f32 %v6838_v24, %v12500_v31  ;;  %v6849_v40 = vadd.f32 %v7960_v48, %v13269_v34  ;;  %v7031_v58 = vsel %vm928_vm2, %v6966_v56, 0.0  ;;  %v13697_v24 = vld [vmem:[#allocation25_spill] sm:$0xff] }
0x1057   : > { %v6840_v41 = vpop.f32.mrf.mxu0 }
0x1058   : > { %v6841_v20 = vadd.f32 %v13269_v34, %v6840_v41  ;;  %v7028_v63 = vsel %vm928_vm2, %v6964_v21, 0.0  ;;  %v6967_v30 = vadd.f32 %v6849_v40, %v12511_v53 }
0x105a   : > { %v6965_v29 = vadd.f32 %v6841_v20, %v12508_v16  ;;  %v7033_v11 = vsel %vm928_vm2, %v6967_v30, 0.0  ;;  %v13698_v20 = vld [vmem:[#allocation26_spill] sm:$0xff] }
0x105c   : > { %v7029_v52 = vsel %vm928_vm2, %v6965_v29, 0.0 }
0x105d   : > { %v7030_v51 = vadd.f32 %v7029_v52, %v7028_v63  ;;  %v13699_v63 = vld [vmem:[#allocation28_spill] sm:$0xff] }
0x105e   : > { %v7963_v6 = vpop.f32.mrf.mxu0 }
0x105f   : > { %v7032_v12 = vadd.f32 %v7031_v58, %v7030_v51  ;;  %v6862_v16 = vadd.f32 %v7963_v6, %v13269_v34  ;;  %v13700_v51 = vld [vmem:[#allocation27_spill] sm:$0xff] }
0x1060   : > { %v6853_v31 = vpop.f32.mrf.mxu0 }
0x1061   : > { %v6854_v26 = vadd.f32 %v13269_v34, %v6853_v31  ;;  %v7034_v4 = vadd.f32 %v7033_v11, %v7032_v12  ;;  %v6970_v36 = vadd.f32 %v6862_v16, %v12523_v17 }
0x1062   : > { %v7964_v37 = vpop.f32.mrf.mxu0 }
0x1063   : > { %v6968_v39 = vadd.f32 %v6854_v26, %v12518_v55  ;;  %v6865_v5 = vadd.f32 %v7964_v37, %v13269_v34  ;;  %v7039_v28 = vsel %vm928_vm2, %v6970_v36, 0.0  ;;  %v13701_v37 = vld [vmem:[#allocation30_spill] sm:$0xff] }
0x1064   : > { %v6856_v61 = vpop.f32.mrf.mxu0 }
0x1065   : > { %v7035_v53 = vsel %vm928_vm2, %v6968_v39, 0.0  ;;  %v6857_v23 = vadd.f32 %v13269_v34, %v6856_v61  ;;  %v6971_v19 = vadd.f32 %v6865_v5, %v12531_v8 }
0x1066   : > { %v7036_v13 = vadd.f32 %v7035_v53, %v7034_v4 }
0x1067   : > { %v6969_v9 = vadd.f32 %v6857_v23, %v12528_v22  ;;  %v7967_v25 = vpop.f32.mrf.mxu0  ;;  %v7041_v17 = vsel %vm928_vm2, %v6971_v19, 0.0 }
0x1068   : > { %v6878_v35 = vadd.f32 %v7967_v25, %v13269_v34 }
0x1069   : > { %v7037_v46 = vsel %vm928_vm2, %v6969_v9, 0.0  ;;  %v6869_v54 = vpop.f32.mrf.mxu0  ;;  %v13702_v9 = vld [vmem:[#allocation29_spill] sm:$0xff] }
0x106a   : > { %v7038_v59 = vadd.f32 %v7037_v46, %v7036_v13  ;;  %v6870_v55 = vadd.f32 %v13269_v34, %v6869_v54  ;;  %v6974_v38 = vadd.f32 %v6878_v35, %v12541_v10  ;;  %v13703_v46 = vld [vmem:[#allocation2_spill] sm:$0xff] }
0x106b   : > { %v7968_v57 = vpop.f32.mrf.mxu0 }
0x106c   : > { %v7040_v45 = vadd.f32 %v7039_v28, %v7038_v59  ;;  %v6972_v3 = vadd.f32 %v6870_v55, %v12538_v44  ;;  %v6881_v8 = vadd.f32 %v7968_v57, %v13269_v34  ;;  %v7047_v7 = vsel %vm928_vm2, %v6974_v38, 0.0  ;;  %v13704_v28 = vld [vmem:[#allocation31_spill] sm:$0xff] }
0x106d   : > { %v6872_v22 = vpop.f32.mrf.mxu0 }
0x106e   : > { %v7042_v15 = vadd.f32 %v7041_v17, %v7040_v45  ;;  %v6873_v2 = vadd.f32 %v13269_v34, %v6872_v22  ;;  %v7043_v14 = vsel %vm928_vm2, %v6972_v3, 0.0  ;;  %v6975_v60 = vadd.f32 %v6881_v8, %v12555_v33  ;;  %v13705_v8 = vld [vmem:[#allocation4_spill] sm:$0xff] }
0x106f   : > { %v7971_v0 = vpop.f32.mrf.mxu0 }
0x1070   : > { %v7044_v47 = vadd.f32 %v7043_v14, %v7042_v15  ;;  %v6973_v43 = vadd.f32 %v6873_v2, %v12550_v18  ;;  %v6894_v27 = vadd.f32 %v7971_v0, %v13269_v34  ;;  %v7049_v48 = vsel %vm928_vm2, %v6975_v60, 0.0 }
0x1071   : > { %v6885_v32 = vpop.f32.mrf.mxu0 }
0x1072   : > { %v7045_v44 = vsel %vm928_vm2, %v6973_v43, 0.0  ;;  %v6886_v49 = vadd.f32 %v13269_v34, %v6885_v32  ;;  %v6978_v56 = vadd.f32 %v6894_v27, %v13698_v20  ;;  %v13706_v32 = vld [vmem:[#allocation3_spill] sm:$0xff] }
0x1073   : > { %v7046_v62 = vadd.f32 %v7045_v44, %v7044_v47  ;;  %v7972_v50 = vpop.f32.mrf.mxu0 }
0x1074   : > { %v6976_v10 = vadd.f32 %v6886_v49, %v13697_v24  ;;  %v6897_v33 = vadd.f32 %v7972_v50, %v13269_v34  ;;  %v7055_v26 = vsel %vm928_vm2, %v6978_v56, 0.0  ;;  %v13708_v24 = vld [vmem:[#allocation5_spill] sm:$0xff] }
0x1075   : > { %v7048_v1 = vadd.f32 %v7047_v7, %v7046_v62  ;;  %v6888_v18 = vpop.f32.mrf.mxu0  ;;  %v13707_v7 = vld [vmem:[#allocation6_spill] sm:$0xff] }
0x1076   : > { %v6889_v41 = vadd.f32 %v13269_v34, %v6888_v18  ;;  %v7051_v21 = vsel %vm928_vm2, %v6976_v10, 0.0  ;;  %v6979_v6 = vadd.f32 %v6897_v33, %v13700_v51 }
0x1077   : > { %v7050_v42 = vadd.f32 %v7049_v48, %v7048_v1  ;;  %v7975_v40 = vpop.f32.mrf.mxu0 }
0x1078   : > { %v6977_v30 = vadd.f32 %v6889_v41, %v13699_v63  ;;  %v6910_v4 = vadd.f32 %v7975_v40, %v13269_v34  ;;  %v7057_v53 = vsel %vm928_vm2, %v6979_v6, 0.0  ;;  %v13709_v40 = vld [vmem:[#allocation8_spill] sm:$0xff] }
0x1079   : > { %v7052_v29 = vadd.f32 %v7051_v21, %v7050_v42  ;;  %v6901_v52 = vpop.f32.mrf.mxu0 }
0x107a   : > { %v7053_v58 = vsel %vm928_vm2, %v6977_v30, 0.0  ;;  %v6902_v12 = vadd.f32 %v13269_v34, %v6901_v52  ;;  %v6982_v25 = vadd.f32 %v6910_v4, %v13702_v9  ;;  %v13713_v9 = vld [vmem:[#allocation12_spill] sm:$0xff] }
0x107b   : > { %v7054_v31 = vadd.f32 %v7053_v58, %v7052_v29  ;;  %v7976_v11 = vpop.f32.mrf.mxu0  ;;  %v13710_v58 = vld [vmem:[#allocation7_spill] sm:$0xff] }
0x107c   : > { %v6980_v16 = vadd.f32 %v6902_v12, %v13701_v37  ;;  %v6913_v5 = vadd.f32 %v7976_v11, %v13269_v34  ;;  %v7063_v22 = vsel %vm928_vm2, %v6982_v25, 0.0  ;;  %v13711_v11 = vld [vmem:[#allocation10_spill] sm:$0xff] }
0x107d   : > { %v7056_v39 = vadd.f32 %v7055_v26, %v7054_v31  ;;  %v6904_v61 = vpop.f32.mrf.mxu0 }
0x107e   : > { %v6905_v23 = vadd.f32 %v13269_v34, %v6904_v61  ;;  %v7059_v19 = vsel %vm928_vm2, %v6980_v16, 0.0  ;;  %v6983_v57 = vadd.f32 %v6913_v5, %v13704_v28  ;;  %v13712_v16 = vld [vmem:[#allocation9_spill] sm:$0xff] }
0x107f   : > { %v7058_v13 = vadd.f32 %v7057_v53, %v7056_v39  ;;  %v7979_v36 = vpop.f32.mrf.mxu0 }
0x1080   : > { %v6981_v54 = vadd.f32 %v6905_v23, %v13703_v46  ;;  %v6926_v15 = vadd.f32 %v7979_v36, %v13269_v34  ;;  %v7065_v47 = vsel %vm928_vm2, %v6983_v57, 0.0  ;;  %v13714_v57 = vld [vmem:[#allocation11_spill] sm:$0xff] }
0x1081   : > { %v7060_v59 = vadd.f32 %v7059_v19, %v7058_v13  ;;  %v6917_v55 = vpop.f32.mrf.mxu0 }
0x1082   : > { %v7061_v45 = vsel %vm928_vm2, %v6981_v54, 0.0  ;;  %v6918_v35 = vadd.f32 %v13269_v34, %v6917_v55  ;;  %v6986_v62 = vadd.f32 %v6926_v15, %v13706_v32  ;;  %v13716_v15 = vld [vmem:[#allocation13_spill] sm:$0xff] }
0x1083   : > { %v7062_v3 = vadd.f32 %v7061_v45, %v7060_v59  ;;  %v7980_v17 = vpop.f32.mrf.mxu0 }
0x1084   : > { %v6984_v2 = vadd.f32 %v6918_v35, %v13705_v8  ;;  %v6929_v43 = vadd.f32 %v7980_v17, %v13269_v34  ;;  %v7071_v41 = vsel %vm928_vm2, %v6986_v62, 0.0 }
0x1085   : > { %v7064_v14 = vadd.f32 %v7063_v22, %v7062_v3  ;;  %v6920_v38 = vpop.f32.mrf.mxu0  ;;  %v13715_v3 = vld [vmem:[#allocation14_spill] sm:$0xff] }
0x1086   : > { %v6921_v0 = vadd.f32 %v13269_v34, %v6920_v38  ;;  %v7067_v49 = vsel %vm928_vm2, %v6984_v2, 0.0  ;;  %v6987_v10 = vadd.f32 %v6929_v43, %v13708_v24 }
0x1087   : > { %v7066_v60 = vadd.f32 %v7065_v47, %v7064_v14  ;;  %v7983_v44 = vpop.f32.mrf.mxu0 }
0x1088   : > { %v6985_v50 = vadd.f32 %v6921_v0, %v13707_v7  ;;  %v6942_v21 = vadd.f32 %v7983_v44, %v13269_v34  ;;  %v7073_v63 = vsel %vm928_vm2, %v6987_v10, 0.0 }
0x1089   : > { %v7068_v1 = vadd.f32 %v7067_v49, %v7066_v60  ;;  %v6933_v27 = vpop.f32.mrf.mxu0 }
0x108a   : > { %v7069_v48 = vsel %vm928_vm2, %v6985_v50, 0.0  ;;  %v6934_v18 = vadd.f32 %v13269_v34, %v6933_v27  ;;  %v6990_v12 = vadd.f32 %v6942_v21, %v13710_v58 }
0x108b   : > { %v7070_v42 = vadd.f32 %v7069_v48, %v7068_v1  ;;  %v7984_v33 = vpop.f32.mrf.mxu0  ;;  %v7104_v1 = vld [vmem:[%s13393_s15] sm:$0x1] }
0x108c   : > { %v6988_v20 = vadd.f32 %v6934_v18, %v13709_v40  ;;  %v6945_v30 = vadd.f32 %v7984_v33, %v13269_v34  ;;  %v7079_v13 = vsel %vm928_vm2, %v6990_v12, 0.0 }
0x108d   : > { %v7072_v56 = vadd.f32 %v7071_v41, %v7070_v42  ;;  %v6936_v29 = vpop.f32.mrf.mxu0 }
0x108e   : > { %v6937_v52 = vadd.f32 %v13269_v34, %v6936_v29  ;;  %v7075_v31 = vsel %vm928_vm2, %v6988_v20, 0.0  ;;  %v6991_v39 = vadd.f32 %v6945_v30, %v13712_v16 }
0x108f   : > { %v7074_v51 = vadd.f32 %v7073_v63, %v7072_v56  ;;  %v7987_v6 = vpop.f32.mrf.mxu0 }
0x1090   : > { %v6989_v26 = vadd.f32 %v6937_v52, %v13711_v11  ;;  %v6958_v36 = vadd.f32 %v7987_v6, %v13269_v34  ;;  %v7081_v54 = vsel %vm928_vm2, %v6991_v39, 0.0 }
0x1091   : > { %v7076_v4 = vadd.f32 %v7075_v31, %v7074_v51  ;;  %v6949_v37 = vpop.f32.mrf.mxu0 }
0x1092   : > { %v7077_v61 = vsel %vm928_vm2, %v6989_v26, 0.0  ;;  %v6950_v53 = vadd.f32 %v13269_v34, %v6949_v37  ;;  %v6994_v45 = vadd.f32 %v6958_v36, %v13714_v57 }
0x1093   : > { %v7078_v5 = vadd.f32 %v7077_v61, %v7076_v4  ;;  %v7988_v23 = vpop.f32.mrf.mxu0 }
0x1094   : > { %v6992_v25 = vadd.f32 %v6950_v53, %v13713_v9  ;;  %v6961_v59 = vadd.f32 %v7988_v23, %v13269_v34  ;;  %v7087_v38 = vsel %vm928_vm2, %v6994_v45, 0.0 }
0x1095   : > { %v7080_v19 = vadd.f32 %v7079_v13, %v7078_v5  ;;  %v6952_v46 = vpop.f32.mrf.mxu0 }
0x1096   : > { %v6953_v55 = vadd.f32 %v13269_v34, %v6952_v46  ;;  %v7083_v35 = vsel %vm928_vm2, %v6992_v25, 0.0  ;;  %v6995_v8 = vadd.f32 %v6961_v59, %v13716_v15 }
0x1097   : > { %v7082_v28 = vadd.f32 %v7081_v54, %v7080_v19 }
0x1098   : > { %v6993_v17 = vadd.f32 %v6953_v55, %v13715_v3  ;;  %v7089_v43 = vsel %vm928_vm2, %v6995_v8, 0.0 }
0x1099   : > { %v7084_v22 = vadd.f32 %v7083_v35, %v7082_v28 }
0x109a   : > { %v7085_v2 = vsel %vm928_vm2, %v6993_v17, 0.0 }
0x109b   : > { %v7086_v14 = vadd.f32 %v7085_v2, %v7084_v22 }
0x109d   : > { %v7088_v47 = vadd.f32 %v7087_v38, %v7086_v14 }
0x109f   : > { %v7090_v34 = vadd.f32 %v7089_v43, %v7088_v47 }
0x10a1   : > { %v7091_v0 = vrot.slane %v7090_v34, 4 }
0x10a3   : > { %v7092_v60 = vadd.f32 %v7091_v0, %v7090_v34 }
0x10a5   : > { %v7093_v44 = vrot.slane %v7092_v60, 2 }
0x10a7   : > { %v7094_v32 = vadd.f32 %v7093_v44, %v7092_v60 }
0x10a9   : > { %v7095_v62 = vrot.slane %v7094_v32, 1 }
0x10ab   : > { %v7096_v49 = vadd.f32 %v7095_v62, %v7094_v32 }
0x10ad   : > { %v7098_v7 = vmul.f32 0.00390625, %v7096_v49 }
0x10af   : > { %v7099_v50 = vpack.c.bf16 %v7098_v7, %v7098_v7 }
0x10b1   : > { %7994 = vmatmul.mubr.msk.bf16.vlgmr.msra.gmra.mxu1 %vm928_vm2, %v7099_v50 }
0x1171   : > { %v7154_v27 = vpop.f32.mrf.mxu1 }
0x1172   : > { %v7155_v24 = vadd.f32 %v7154_v27, %v7104_v1 }
0x1173   : > { %v7995_v10 = vpop.f32.mrf.mxu1 }
0x1174   : > { %7160 = vst [vmem:[%s552_s22] sm:$0x1] %v7155_v24 }
0x1175   : > { %v7157_v48 = vpop.f32.mrf.mxu1 }
0x1177   : > { %v7996_v18 = vpop.f32.mrf.mxu1 }
0x1178 PF: > { %s28_s24 = sadd.s32 1, %s8709_s24  }
0x1179   : > { %p25_p4 = scmp.ge.s32.totalorder %s28_s24, 4  }
0x117b   :  { %27 = sbr.rel (!%p25_p4) target bundleno = 3 (0x3), region = 134 }

</bundles_post_ra>
